<compile_context>
chip_gen: v6e
topology: v6e:2x2x1
jax: 0.10.0
libtpu: 0.0.40
codegen_flags: <defaults>
</compile_context>

<pallas_src>
import functools

import jax
import jax.numpy as jnp
from jax import lax
from jax.experimental import pallas as pl
from jax.experimental.pallas import tpu as pltpu


def _round_up(x, m):
    return (x + m - 1) // m * m


# ---------------------------------------------------------------------------
# Kernel 1: direct 3x3 conv + folded-BN (+ReLU), one batch plane per grid step
# ---------------------------------------------------------------------------
def _conv3x3_kernel(x_ref, w_ref, s_ref, b_ref, o_ref, *, relu):
    # x_ref : (1, H+2, W+2, Cp)  bf16   (spatially padded input)
    # w_ref : (9, Cp, N)         bf16   (taps packed as kh*3+kw)
    # s/b   : (1, N)             f32    (folded BN scale / shift)
    # o_ref : (1, H, W, N)       bf16
    H, W, N = o_ref.shape[1], o_ref.shape[2], o_ref.shape[3]
    scale = s_ref[...]
    shift = b_ref[...]

    def body(h, carry):
        acc = jnp.zeros((W, N), jnp.float32)
        for kh in range(3):
            row = x_ref[0, h + kh]                      # (W+2, Cp) bf16
            for kw in range(3):
                xs = row[kw:kw + W, :]                  # (W, Cp)
                acc = acc + jnp.dot(xs, w_ref[kh * 3 + kw],
                                    preferred_element_type=jnp.float32)
        y = acc * scale + shift
        if relu:
            y = jnp.maximum(y, 0.0)
        o_ref[0, h] = y.astype(o_ref.dtype)
        return carry

    lax.fori_loop(0, H, body, 0)


def conv3x3_bn_act(x, w9, scale, shift, relu=True):
    # x: (B, H, W, C) any float; w9: (9, Cp, N) bf16; scale/shift: (N,) f32
    B, H, W, C = x.shape
    Cp, N = w9.shape[1], w9.shape[2]
    x = x.astype(jnp.bfloat16)
    if Cp != C:                                   # channel pad (e.g. RGB 3 -> 8)
        x = jnp.pad(x, ((0, 0), (0, 0), (0, 0), (0, Cp - C)))
    xp = jnp.pad(x, ((0, 0), (1, 1), (1, 1), (0, 0)))   # spatial halo padding

    kernel = functools.partial(_conv3x3_kernel, relu=relu)
    # TODO(synk): tile H (with halo blocks) and Cout for large feature maps;
    # at these sizes one padded batch plane fits comfortably in VMEM.
    return pl.pallas_call(
        kernel,
        out_shape=jax.ShapeDtypeStruct((B, H, W, N), jnp.bfloat16),
        grid=(B,),
        in_specs=[
            pl.BlockSpec((1, H + 2, W + 2, Cp), lambda b: (b, 0, 0, 0)),
            pl.BlockSpec((9, Cp, N), lambda b: (0, 0, 0)),
            pl.BlockSpec((1, N), lambda b: (0, 0)),
            pl.BlockSpec((1, N), lambda b: (0, 0)),
        ],
        out_specs=pl.BlockSpec((1, H, W, N), lambda b: (b, 0, 0, 0)),
        compiler_params=pltpu.CompilerParams(dimension_semantics=("parallel",)),
    )(xp, w9,
      scale.reshape(1, N).astype(jnp.float32),
      shift.reshape(1, N).astype(jnp.float32))


# ---------------------------------------------------------------------------
# Kernel 2: tiled bf16 matmul + BN (+ReLU) (+residual) epilogue
# ---------------------------------------------------------------------------
def _mm_kernel(*refs, relu, has_res):
    if has_res:
        x_ref, w_ref, s_ref, b_ref, r_ref, o_ref, acc_ref = refs
    else:
        x_ref, w_ref, s_ref, b_ref, o_ref, acc_ref = refs
        r_ref = None

    k = pl.program_id(2)

    @pl.when(k == 0)
    def _():
        acc_ref[...] = jnp.zeros_like(acc_ref)

    acc_ref[...] += jnp.dot(x_ref[...], w_ref[...],
                            preferred_element_type=jnp.float32)

    @pl.when(k == pl.num_programs(2) - 1)
    def _():
        y = acc_ref[...] * s_ref[...] + b_ref[...]
        if relu:
            y = jnp.maximum(y, 0.0)
        if r_ref is not None:
            y = y + r_ref[...].astype(jnp.float32)
        o_ref[...] = y.astype(o_ref.dtype)


def matmul_bn_act(x, w, scale, shift, *, relu=True, residual=None):
    # x: (M, K) bf16 ; w: (K, N) bf16 ; scale/shift: (N,) f32 ; residual: (M, N)
    x = x.astype(jnp.bfloat16)
    w = w.astype(jnp.bfloat16)
    M, K = x.shape
    N = w.shape[1]

    tm = 256 if M >= 256 else _round_up(M, 16)
    tn = 256 if N >= 256 else _round_up(N, 128)
    tk = 512 if K >= 512 else _round_up(K, 128)
    Mp, Kp, Np = _round_up(M, tm), _round_up(K, tk), _round_up(N, tn)

    xp = jnp.pad(x, ((0, Mp - M), (0, Kp - K)))
    wp = jnp.pad(w, ((0, Kp - K), (0, Np - N)))
    sp = jnp.pad(scale.reshape(1, N).astype(jnp.float32), ((0, 0), (0, Np - N)))
    bp = jnp.pad(shift.reshape(1, N).astype(jnp.float32), ((0, 0), (0, Np - N)))

    args = [xp, wp, sp, bp]
    in_specs = [
        pl.BlockSpec((tm, tk), lambda i, j, k: (i, k)),
        pl.BlockSpec((tk, tn), lambda i, j, k: (k, j)),
        pl.BlockSpec((1, tn), lambda i, j, k: (0, j)),
        pl.BlockSpec((1, tn), lambda i, j, k: (0, j)),
    ]
    has_res = residual is not None
    if has_res:
        rp = jnp.pad(residual.astype(jnp.bfloat16), ((0, Mp - M), (0, Np - N)))
        args.append(rp)
        in_specs.append(pl.BlockSpec((tm, tn), lambda i, j, k: (i, j)))

    out = pl.pallas_call(
        functools.partial(_mm_kernel, relu=relu, has_res=has_res),
        out_shape=jax.ShapeDtypeStruct((Mp, Np), jnp.bfloat16),
        grid=(Mp // tm, Np // tn, Kp // tk),
        in_specs=in_specs,
        out_specs=pl.BlockSpec((tm, tn), lambda i, j, k: (i, j)),
        scratch_shapes=[pltpu.VMEM((tm, tn), jnp.float32)],
        compiler_params=pltpu.CompilerParams(
            dimension_semantics=("parallel", "parallel", "arbitrary")),
    )(*args)
    return out[:M, :N]


# ---------------------------------------------------------------------------
# Kernel 3: fused feed-forward  relu(bn(x@W1)) -> relu(bn(h@W2)) + x
# ---------------------------------------------------------------------------
def _ff_kernel(x_ref, w1_ref, s1_ref, b1_ref, w2_ref, s2_ref, b2_ref, o_ref):
    x = x_ref[...]                                                  # (tm, K) bf16
    h = jnp.dot(x, w1_ref[...], preferred_element_type=jnp.float32)
    h = jnp.maximum(h * s1_ref[...] + b1_ref[...], 0.0)
    y = jnp.dot(h.astype(x.dtype), w2_ref[...],
                preferred_element_type=jnp.float32)
    y = jnp.maximum(y * s2_ref[...] + b2_ref[...], 0.0)
    y = y + x.astype(jnp.float32)                                   # residual
    o_ref[...] = y.astype(o_ref.dtype)


def feedforward_fused(x, p):
    # x: (M, K) bf16 ; w1: (K, Hd) ; w2: (Hd, K)
    x = x.astype(jnp.bfloat16)
    M, K = x.shape
    Hd = p["w1"].shape[1]
    tm = 128 if M >= 128 else _round_up(M, 16)
    Mp = _round_up(M, tm)
    xp = jnp.pad(x, ((0, Mp - M), (0, 0)))

    out = pl.pallas_call(
        _ff_kernel,
        out_shape=jax.ShapeDtypeStruct((Mp, K), jnp.bfloat16),
        grid=(Mp // tm,),
        in_specs=[
            pl.BlockSpec((tm, K), lambda i: (i, 0)),
            pl.BlockSpec((K, Hd), lambda i: (0, 0)),
            pl.BlockSpec((1, Hd), lambda i: (0, 0)),
            pl.BlockSpec((1, Hd), lambda i: (0, 0)),
            pl.BlockSpec((Hd, K), lambda i: (0, 0)),
            pl.BlockSpec((1, K), lambda i: (0, 0)),
            pl.BlockSpec((1, K), lambda i: (0, 0)),
        ],
        out_specs=pl.BlockSpec((tm, K), lambda i: (i, 0)),
        compiler_params=pltpu.CompilerParams(dimension_semantics=("parallel",)),
    )(xp, p["w1"],
      p["s1"].reshape(1, Hd).astype(jnp.float32),
      p["b1"].reshape(1, Hd).astype(jnp.float32),
      p["w2"],
      p["s2"].reshape(1, K).astype(jnp.float32),
      p["b2"].reshape(1, K).astype(jnp.float32))
    return out[:M]


# ---------------------------------------------------------------------------
# Kernel 4: per-head Gaussian positional weights  exp(-f*dis) / rowsum
# (hoisted: computed once per head per layer, NOT once per batch element)
# ---------------------------------------------------------------------------
def _pos_kernel(factor_ref, dis_ref, o_ref):
    g = pl.program_id(0)
    f = factor_ref[g]                                   # scalar read from SMEM
    d = jnp.exp(-f * dis_ref[...])
    inv = pl.reciprocal(jnp.sum(d, axis=-1, keepdims=True), approx=True)
    o_ref[0] = (d * inv).astype(o_ref.dtype)


def pos_weights(factor, dis):
    G = factor.shape[0]
    N = dis.shape[0]
    return pl.pallas_call(
        _pos_kernel,
        out_shape=jax.ShapeDtypeStruct((G, N, N), jnp.float32),
        grid=(G,),
        in_specs=[
            pl.BlockSpec(memory_space=pltpu.MemorySpace.SMEM),
            pl.BlockSpec((N, N), lambda g: (0, 0)),
        ],
        out_specs=pl.BlockSpec((1, N, N), lambda g: (g, 0, 0)),
        compiler_params=pltpu.CompilerParams(dimension_semantics=("parallel",)),
    )(factor.astype(jnp.float32), dis.astype(jnp.float32))


# ---------------------------------------------------------------------------
# Kernel 5: CNNAttention core — all heads of one batch element per grid step,
# q/k/v read as lane slices of the packed qkv tensor, lane-dense output.
# ---------------------------------------------------------------------------
def _attn_kernel(qkv_ref, pos_ref, o_ref, *, heads, dim_head, smooth):
    inner = heads * dim_head
    parts = []
    for g in range(heads):
        lo = g * dim_head
        q = qkv_ref[0, :, lo:lo + dim_head]                           # (N, D)
        k = qkv_ref[0, :, inner + lo:inner + lo + dim_head]
        v = qkv_ref[0, :, 2 * inner + lo:2 * inner + lo + dim_head]

        kt = k.T                                                      # (D, N)
        s = jnp.dot(q, kt, preferred_element_type=jnp.float32)        # (N, N)

        qf = q.astype(jnp.float32)
        ktf = kt.astype(jnp.float32)
        qn = jnp.sqrt(jnp.sum(qf * qf, axis=-1, keepdims=True) + smooth)   # (N,1)
        kn = jnp.sqrt(jnp.sum(ktf * ktf, axis=0, keepdims=True) + smooth)  # (1,N)

        attn = s * pl.reciprocal(qn * kn + smooth, approx=True)
        attn = attn * pos_ref[g]                                      # Gaussian pos term
        parts.append(jnp.dot(attn.astype(v.dtype), v,
                             preferred_element_type=jnp.float32))     # (N, D)

    o_ref[0] = jnp.concatenate(parts, axis=-1).astype(o_ref.dtype)    # (N, inner)


def attention_core(qkv_tok, pos, heads, dim_head, smooth=1e-4):
    # qkv_tok: (B, N, 3*inner) bf16 ; pos: (heads, N, N) f32
    B, N, C3 = qkv_tok.shape
    inner = heads * dim_head
    kernel = functools.partial(_attn_kernel, heads=heads,
                               dim_head=dim_head, smooth=smooth)
    # TODO(synk): for large N (high-resolution inputs) tile the kv axis
    # flash-style instead of keeping the full (N, N) score matrix resident.
    return pl.pallas_call(
        kernel,
        out_shape=jax.ShapeDtypeStruct((B, N, inner), jnp.bfloat16),
        grid=(B,),
        in_specs=[
            pl.BlockSpec((1, N, C3), lambda b: (b, 0, 0)),
            pl.BlockSpec((heads, N, N), lambda b: (0, 0, 0)),
        ],
        out_specs=pl.BlockSpec((1, N, inner), lambda b: (b, 0, 0)),
        compiler_params=pltpu.CompilerParams(dimension_semantics=("parallel",)),
    )(qkv_tok.astype(jnp.bfloat16), pos)


# ---------------------------------------------------------------------------
# Plain-JAX glue: pooling, bilinear upsample, BN folding, weight packing
# ---------------------------------------------------------------------------
def bn_fold(gamma, beta, mean, var, eps=1e-5):
    scale = gamma / jnp.sqrt(var + eps)
    return scale, beta - mean * scale


def pack_conv3x3(w):  # (Cout, Cin, 3, 3) -> (9, Cin_pad8, Cout) bf16
    co, ci = w.shape[0], w.shape[1]
    w9 = jnp.transpose(w, (2, 3, 1, 0)).reshape(9, ci, co)
    cip = _round_up(ci, 8)
    if cip != ci:
        w9 = jnp.pad(w9, ((0, 0), (0, cip - ci), (0, 0)))
    return w9.astype(jnp.bfloat16)


def pack_conv1x1(w):  # (Cout, Cin[,1,1]) -> (Cin, Cout) bf16
    w2 = w.reshape(w.shape[0], w.shape[1])
    return jnp.transpose(w2, (1, 0)).astype(jnp.bfloat16)


def maxpool2(x):  # MaxPool2d(2), NHWC glue
    B, H, W, C = x.shape
    return x.reshape(B, H // 2, 2, W // 2, 2, C).max(axis=(2, 4))


def relative_pos_dis(height, width):
    ch, cw = jnp.meshgrid(jnp.arange(height), jnp.arange(width), indexing="ij")
    coords = jnp.stack([ch, cw]).reshape(2, -1)                 # (2, N)
    rel = coords[:, :, None] - coords[:, None, :]               # (2, N, N)
    rel = jnp.transpose(rel, (1, 2, 0)).astype(jnp.float32)
    return (rel[:, :, 0] / height) ** 2 + (rel[:, :, 1] / width) ** 2


def upsample_matrix(n_in):  # bilinear, scale_factor=2, align_corners=True
    n_out = 2 * n_in
    if n_in == 1:
        return jnp.ones((n_out, 1), jnp.float32)
    pos = jnp.arange(n_out) * (n_in - 1) / (n_out - 1)
    lo = jnp.floor(pos).astype(jnp.int32)
    hi = jnp.minimum(lo + 1, n_in - 1)
    frac = (pos - lo).astype(jnp.float32)
    m = jnp.zeros((n_out, n_in), jnp.float32)
    m = m.at[jnp.arange(n_out), lo].add(1.0 - frac)
    m = m.at[jnp.arange(n_out), hi].add(frac)
    return m


def upsample2x_bilinear(x):  # NHWC glue (separable linear maps)
    B, H, W, C = x.shape
    Uh, Uw = upsample_matrix(H), upsample_matrix(W)
    x = jnp.einsum("oh,bhwc->bowc", Uh, x)
    x = jnp.einsum("ow,bhwc->bhoc", Uw, x)
    return x


# ---------------------------------------------------------------------------
# Model forward
# ---------------------------------------------------------------------------
def forward(img_nchw, params, cfg):
    heads, dh = cfg["heads"], cfg["dim_head"]
    inner = heads * dh
    x = jnp.transpose(img_nchw, (0, 2, 3, 1)).astype(jnp.bfloat16)  # NCHW -> NHWC

    # --- CNNEncoder2 ---
    enc = params["enc"]
    x = conv3x3_bn_act(x, *enc["inc"])
    for name in ("down1", "down2", "down3"):
        x = maxpool2(x)
        x = conv3x3_bn_act(x, *enc[name])

    # --- CNNTransformer_record ---
    B, H, W, dim = x.shape
    N = H * W
    dis = relative_pos_dis(H, W)
    ones3 = jnp.ones((3 * inner,), jnp.float32)
    zeros3 = jnp.zeros((3 * inner,), jnp.float32)

    for layer in params["layers"]:
        a = layer["attn"]
        factor = 1.0 / (2.0 * (jax.nn.sigmoid(a["headsita"])
                               * (0.4 - 0.003) + 0.003) ** 2)
        pos = pos_weights(factor, dis)                                # (G, N, N)
        qkv = conv3x3_bn_act(x, a["qkv_w"], ones3, zeros3, relu=False)
        attn_out = attention_core(qkv.reshape(B, N, 3 * inner), pos, heads, dh)
        y = matmul_bn_act(attn_out.reshape(B * N, inner), a["out_w"],
                          a["out_scale"], a["out_shift"],
                          relu=True, residual=x.reshape(B * N, dim))
        x = y.reshape(B, H, W, dim)
        y = feedforward_fused(x.reshape(B * N, dim), layer["ff"])
        x = y.reshape(B, H, W, dim)

    # --- decoder ---
    d = params["dec"]
    x = conv3x3_bn_act(x, d["w1"], d["s1"], d["sh1"])
    x = upsample2x_bilinear(x)
    x = conv3x3_bn_act(x, d["w2"], d["s2"], d["sh2"])
    x = upsample2x_bilinear(x)
    Bh, Hh, Wh, Ch = x.shape
    y = matmul_bn_act(x.reshape(Bh * Hh * Wh, Ch), d["w3"],
                      jnp.ones((cfg["n_classes"],), jnp.float32), d["b3"],
                      relu=False, residual=None)     # 1x1 conv with bias
    x = upsample2x_bilinear(y.reshape(Bh, Hh, Wh, cfg["n_classes"]))
    return jnp.transpose(x, (0, 3, 1, 2)).astype(jnp.float32)  # back to NCHW


# ---------------------------------------------------------------------------
# Deterministic synthetic parameters (no checkpoints)
# ---------------------------------------------------------------------------
def init_params(key, cfg):
    dim, heads, dh = cfg["dim"], cfg["heads"], cfg["dim_head"]
    mlp, nc = cfg["mlp_dim"], cfg["n_classes"]
    inner = heads * dh
    keys = iter(jax.random.split(key, 256))

    def rnd(shape):
        return jax.random.normal(next(keys), shape, jnp.float32) * 0.05

    def conv3(co, ci):
        return pack_conv3x3(rnd((co, ci, 3, 3)))

    def conv1(co, ci):
        return pack_conv1x1(rnd((co, ci)))

    def bn(c):  # eval-mode BN folded to (scale, shift)
        g = 1.0 + 0.1 * jax.random.normal(next(keys), (c,), jnp.float32)
        b = 0.1 * jax.random.normal(next(keys), (c,), jnp.float32)
        m = 0.1 * jax.random.normal(next(keys), (c,), jnp.float32)
        v = 0.5 + jnp.abs(jax.random.normal(next(keys), (c,), jnp.float32))
        return bn_fold(g, b, m, v)

    params = {"enc": {
        "inc": (conv3(64, 3),) + bn(64),
        "down1": (conv3(128, 64),) + bn(128),
        "down2": (conv3(256, 128),) + bn(256),
        "down3": (conv3(dim, 256),) + bn(dim),
    }}

    layers = []
    for _ in range(cfg["depth"]):
        attn = {"qkv_w": conv3(inner * 3, dim),
                "headsita": jax.random.normal(next(keys), (heads,), jnp.float32),
                "out_w": conv1(dim, inner)}
        attn["out_scale"], attn["out_shift"] = bn(dim)
        ff = {"w1": conv1(mlp, dim), "w2": conv1(dim, mlp)}
        ff["s1"], ff["b1"] = bn(mlp)
        ff["s2"], ff["b2"] = bn(dim)
        layers.append({"attn": attn, "ff": ff})
    params["layers"] = layers

    dec = {"w1": conv3(dim // 4, dim),
           "w2": conv3(dim // 4, dim // 4),
           "w3": conv1(nc, dim // 4),
           "b3": 0.1 * jax.random.normal(next(keys), (nc,), jnp.float32)}
    dec["s1"], dec["sh1"] = bn(dim // 4)
    dec["s2"], dec["sh2"] = bn(dim // 4)
    params["dec"] = dec
    return params


# ---------------------------------------------------------------------------
if __name__ == "__main__":
    # Small self-consistent config: encoder downsamples x8, so the transformer
    # feature map is (imgsize/8)^2 tokens == patch_num^2 == num_patches.
    cfg = dict(n_classes=3, imgsize=32, patch_num=4, dim=32, depth=2,
               heads=2, dim_head=8, mlp_dim=64)

    key = jax.random.PRNGKey(0)
    kp, kx = jax.random.split(key)
    params = init_params(kp, cfg)
    img = jax.random.normal(kx, (2, 3, cfg["imgsize"], cfg["imgsize"]), jnp.float32)

    fwd = jax.jit(functools.partial(forward, cfg=cfg))
    out = jax.block_until_ready(fwd(img, params))

    assert out.shape == (2, cfg["n_classes"], cfg["imgsize"], cfg["imgsize"])
    assert bool(jnp.all(jnp.isfinite(out)))
    print("KERNEL_OK")
</pallas_src>

<mosaic_0001>
module attributes {stable_mosaic.version = 11 : i64} {
  func.func private @main(%arg0: i32) attributes {dimension_semantics = [#tpu.dimension_semantics<core_parallel>], iteration_bounds = array<i64: 2>, tpu.core_type = #tpu.core_type<sc_scalar_subcore>, window_params = []} {
    return
  }
}

module attributes {stable_mosaic.version = 11 : i64} {
  func.func private @main(%arg0: i32) attributes {dimension_semantics = [#tpu.dimension_semantics<core_parallel>], iteration_bounds = array<i64: 2>, tpu.core_type = #tpu.core_type<sc_scalar_subcore>, window_params = []} {
    return
  }
}

module attributes {stable_mosaic.version = 11 : i64} {
  func.func @_conv3x3_kernel(%arg0: i32, %arg1: memref<1x34x34x8xbf16, #tpu.memory_space<vmem>>, %arg2: memref<9x8x64xbf16, #tpu.memory_space<vmem>>, %arg3: memref<1x64xf32, #tpu.memory_space<vmem>>, %arg4: memref<1x64xf32, #tpu.memory_space<vmem>>, %arg5: memref<1x32x32x64xbf16, #tpu.memory_space<vmem>>) attributes {dimension_semantics = [#tpu.dimension_semantics<parallel>], iteration_bounds = array<i64: 2>, scalar_prefetch = 0 : i64, scratch_operands = 0 : i64, tpu.core_type = #tpu.core_type<tc>, window_params = [{transform_indices = @transform_0, window_bounds = array<i64: 1, 34, 34, 8>}, {pipeline_mode = #tpu.pipeline_mode<synchronous>, transform_indices = @transform_1, window_bounds = array<i64: 9, 8, 64>}, {pipeline_mode = #tpu.pipeline_mode<synchronous>, transform_indices = @transform_2, window_bounds = array<i64: 1, 64>}, {pipeline_mode = #tpu.pipeline_mode<synchronous>, transform_indices = @transform_3, window_bounds = array<i64: 1, 64>}, {transform_indices = @transform_4, window_bounds = array<i64: 1, 32, 32, 64>}]} {
    %c0 = arith.constant 0 : index
    %c0_0 = arith.constant 0 : index
    %0 = vector.load %arg3[%c0, %c0_0] : memref<1x64xf32, #tpu.memory_space<vmem>>, vector<1x64xf32>
    %c0_1 = arith.constant 0 : index
    %c0_2 = arith.constant 0 : index
    %1 = vector.load %arg4[%c0_1, %c0_2] : memref<1x64xf32, #tpu.memory_space<vmem>>, vector<1x64xf32>
    %c0_i32 = arith.constant 0 : i32
    %c32_i32 = arith.constant 32 : i32
    %2 = arith.addi %c0_i32, %c32_i32 : i32
    %c1_i32 = arith.constant 1 : i32
    scf.for %arg6 = %c0_i32 to %2 step %c1_i32  : i32 {
      %cst = arith.constant 0.000000e+00 : f32
      %3 = vector.broadcast %cst : f32 to vector<32x64xf32>
      %c0_i32_4 = arith.constant 0 : i32
      %4 = arith.addi %arg6, %c0_i32_4 : i32
      %c0_5 = arith.constant 0 : index
      %5 = arith.index_cast %4 : i32 to index
      %c0_6 = arith.constant 0 : index
      %c0_7 = arith.constant 0 : index
      %6 = vector.load %arg1[%c0_5, %5, %c0_6, %c0_7] : memref<1x34x34x8xbf16, #tpu.memory_space<vmem>>, vector<1x1x34x8xbf16>
      %7 = vector.shape_cast %6 : vector<1x1x34x8xbf16> to vector<34x8xbf16>
      %8 = vector.extract_strided_slice %7 {offsets = [0, 0], sizes = [32, 8], strides = [1, 1]} : vector<34x8xbf16> to vector<32x8xbf16>
      %c0_8 = arith.constant 0 : index
      %c0_9 = arith.constant 0 : index
      %c0_10 = arith.constant 0 : index
      %9 = vector.load %arg2[%c0_8, %c0_9, %c0_10] : memref<9x8x64xbf16, #tpu.memory_space<vmem>>, vector<1x8x64xbf16>
      %10 = vector.shape_cast %9 : vector<1x8x64xbf16> to vector<8x64xbf16>
      %cst_11 = arith.constant dense<0.000000e+00> : vector<32x64xf32>
      %11 = tpu.matmul %8, %10, %cst_11 {dimension_numbers = #tpu.dot_dimension_numbers<[1], [0], [0], [1], [0, 0, 1, 1], [], []>} : vector<32x8xbf16>, vector<8x64xbf16>, vector<32x64xf32> -> vector<32x64xf32>
      %12 = arith.addf %3, %11 : vector<32x64xf32>
      %13 = vector.extract_strided_slice %7 {offsets = [1, 0], sizes = [32, 8], strides = [1, 1]} : vector<34x8xbf16> to vector<32x8xbf16>
      %c1 = arith.constant 1 : index
      %c0_12 = arith.constant 0 : index
      %c0_13 = arith.constant 0 : index
      %14 = vector.load %arg2[%c1, %c0_12, %c0_13] : memref<9x8x64xbf16, #tpu.memory_space<vmem>>, vector<1x8x64xbf16>
      %15 = vector.shape_cast %14 : vector<1x8x64xbf16> to vector<8x64xbf16>
      %cst_14 = arith.constant dense<0.000000e+00> : vector<32x64xf32>
      %16 = tpu.matmul %13, %15, %cst_14 {dimension_numbers = #tpu.dot_dimension_numbers<[1], [0], [0], [1], [0, 0, 1, 1], [], []>} : vector<32x8xbf16>, vector<8x64xbf16>, vector<32x64xf32> -> vector<32x64xf32>
      %17 = arith.addf %12, %16 : vector<32x64xf32>
      %18 = vector.extract_strided_slice %7 {offsets = [2, 0], sizes = [32, 8], strides = [1, 1]} : vector<34x8xbf16> to vector<32x8xbf16>
      %c2 = arith.constant 2 : index
      %c0_15 = arith.constant 0 : index
      %c0_16 = arith.constant 0 : index
      %19 = vector.load %arg2[%c2, %c0_15, %c0_16] : memref<9x8x64xbf16, #tpu.memory_space<vmem>>, vector<1x8x64xbf16>
      %20 = vector.shape_cast %19 : vector<1x8x64xbf16> to vector<8x64xbf16>
      %cst_17 = arith.constant dense<0.000000e+00> : vector<32x64xf32>
      %21 = tpu.matmul %18, %20, %cst_17 {dimension_numbers = #tpu.dot_dimension_numbers<[1], [0], [0], [1], [0, 0, 1, 1], [], []>} : vector<32x8xbf16>, vector<8x64xbf16>, vector<32x64xf32> -> vector<32x64xf32>
      %22 = arith.addf %17, %21 : vector<32x64xf32>
      %c1_i32_18 = arith.constant 1 : i32
      %23 = arith.addi %arg6, %c1_i32_18 : i32
      %c0_19 = arith.constant 0 : index
      %24 = arith.index_cast %23 : i32 to index
      %c0_20 = arith.constant 0 : index
      %c0_21 = arith.constant 0 : index
      %25 = vector.load %arg1[%c0_19, %24, %c0_20, %c0_21] : memref<1x34x34x8xbf16, #tpu.memory_space<vmem>>, vector<1x1x34x8xbf16>
      %26 = vector.shape_cast %25 : vector<1x1x34x8xbf16> to vector<34x8xbf16>
      %27 = vector.extract_strided_slice %26 {offsets = [0, 0], sizes = [32, 8], strides = [1, 1]} : vector<34x8xbf16> to vector<32x8xbf16>
      %c3 = arith.constant 3 : index
      %c0_22 = arith.constant 0 : index
      %c0_23 = arith.constant 0 : index
      %28 = vector.load %arg2[%c3, %c0_22, %c0_23] : memref<9x8x64xbf16, #tpu.memory_space<vmem>>, vector<1x8x64xbf16>
      %29 = vector.shape_cast %28 : vector<1x8x64xbf16> to vector<8x64xbf16>
      %cst_24 = arith.constant dense<0.000000e+00> : vector<32x64xf32>
      %30 = tpu.matmul %27, %29, %cst_24 {dimension_numbers = #tpu.dot_dimension_numbers<[1], [0], [0], [1], [0, 0, 1, 1], [], []>} : vector<32x8xbf16>, vector<8x64xbf16>, vector<32x64xf32> -> vector<32x64xf32>
      %31 = arith.addf %22, %30 : vector<32x64xf32>
      %32 = vector.extract_strided_slice %26 {offsets = [1, 0], sizes = [32, 8], strides = [1, 1]} : vector<34x8xbf16> to vector<32x8xbf16>
      %c4 = arith.constant 4 : index
      %c0_25 = arith.constant 0 : index
      %c0_26 = arith.constant 0 : index
      %33 = vector.load %arg2[%c4, %c0_25, %c0_26] : memref<9x8x64xbf16, #tpu.memory_space<vmem>>, vector<1x8x64xbf16>
      %34 = vector.shape_cast %33 : vector<1x8x64xbf16> to vector<8x64xbf16>
      %cst_27 = arith.constant dense<0.000000e+00> : vector<32x64xf32>
      %35 = tpu.matmul %32, %34, %cst_27 {dimension_numbers = #tpu.dot_dimension_numbers<[1], [0], [0], [1], [0, 0, 1, 1], [], []>} : vector<32x8xbf16>, vector<8x64xbf16>, vector<32x64xf32> -> vector<32x64xf32>
      %36 = arith.addf %31, %35 : vector<32x64xf32>
      %37 = vector.extract_strided_slice %26 {offsets = [2, 0], sizes = [32, 8], strides = [1, 1]} : vector<34x8xbf16> to vector<32x8xbf16>
      %c5 = arith.constant 5 : index
      %c0_28 = arith.constant 0 : index
      %c0_29 = arith.constant 0 : index
      %38 = vector.load %arg2[%c5, %c0_28, %c0_29] : memref<9x8x64xbf16, #tpu.memory_space<vmem>>, vector<1x8x64xbf16>
      %39 = vector.shape_cast %38 : vector<1x8x64xbf16> to vector<8x64xbf16>
      %cst_30 = arith.constant dense<0.000000e+00> : vector<32x64xf32>
      %40 = tpu.matmul %37, %39, %cst_30 {dimension_numbers = #tpu.dot_dimension_numbers<[1], [0], [0], [1], [0, 0, 1, 1], [], []>} : vector<32x8xbf16>, vector<8x64xbf16>, vector<32x64xf32> -> vector<32x64xf32>
      %41 = arith.addf %36, %40 : vector<32x64xf32>
      %c2_i32 = arith.constant 2 : i32
      %42 = arith.addi %arg6, %c2_i32 : i32
      %c0_31 = arith.constant 0 : index
      %43 = arith.index_cast %42 : i32 to index
      %c0_32 = arith.constant 0 : index
      %c0_33 = arith.constant 0 : index
      %44 = vector.load %arg1[%c0_31, %43, %c0_32, %c0_33] : memref<1x34x34x8xbf16, #tpu.memory_space<vmem>>, vector<1x1x34x8xbf16>
      %45 = vector.shape_cast %44 : vector<1x1x34x8xbf16> to vector<34x8xbf16>
      %46 = vector.extract_strided_slice %45 {offsets = [0, 0], sizes = [32, 8], strides = [1, 1]} : vector<34x8xbf16> to vector<32x8xbf16>
      %c6 = arith.constant 6 : index
      %c0_34 = arith.constant 0 : index
      %c0_35 = arith.constant 0 : index
      %47 = vector.load %arg2[%c6, %c0_34, %c0_35] : memref<9x8x64xbf16, #tpu.memory_space<vmem>>, vector<1x8x64xbf16>
      %48 = vector.shape_cast %47 : vector<1x8x64xbf16> to vector<8x64xbf16>
      %cst_36 = arith.constant dense<0.000000e+00> : vector<32x64xf32>
      %49 = tpu.matmul %46, %48, %cst_36 {dimension_numbers = #tpu.dot_dimension_numbers<[1], [0], [0], [1], [0, 0, 1, 1], [], []>} : vector<32x8xbf16>, vector<8x64xbf16>, vector<32x64xf32> -> vector<32x64xf32>
      %50 = arith.addf %41, %49 : vector<32x64xf32>
      %51 = vector.extract_strided_slice %45 {offsets = [1, 0], sizes = [32, 8], strides = [1, 1]} : vector<34x8xbf16> to vector<32x8xbf16>
      %c7 = arith.constant 7 : index
      %c0_37 = arith.constant 0 : index
      %c0_38 = arith.constant 0 : index
      %52 = vector.load %arg2[%c7, %c0_37, %c0_38] : memref<9x8x64xbf16, #tpu.memory_space<vmem>>, vector<1x8x64xbf16>
      %53 = vector.shape_cast %52 : vector<1x8x64xbf16> to vector<8x64xbf16>
      %cst_39 = arith.constant dense<0.000000e+00> : vector<32x64xf32>
      %54 = tpu.matmul %51, %53, %cst_39 {dimension_numbers = #tpu.dot_dimension_numbers<[1], [0], [0], [1], [0, 0, 1, 1], [], []>} : vector<32x8xbf16>, vector<8x64xbf16>, vector<32x64xf32> -> vector<32x64xf32>
      %55 = arith.addf %50, %54 : vector<32x64xf32>
      %56 = vector.extract_strided_slice %45 {offsets = [2, 0], sizes = [32, 8], strides = [1, 1]} : vector<34x8xbf16> to vector<32x8xbf16>
      %c8 = arith.constant 8 : index
      %c0_40 = arith.constant 0 : index
      %c0_41 = arith.constant 0 : index
      %57 = vector.load %arg2[%c8, %c0_40, %c0_41] : memref<9x8x64xbf16, #tpu.memory_space<vmem>>, vector<1x8x64xbf16>
      %58 = vector.shape_cast %57 : vector<1x8x64xbf16> to vector<8x64xbf16>
      %cst_42 = arith.constant dense<0.000000e+00> : vector<32x64xf32>
      %59 = tpu.matmul %56, %58, %cst_42 {dimension_numbers = #tpu.dot_dimension_numbers<[1], [0], [0], [1], [0, 0, 1, 1], [], []>} : vector<32x8xbf16>, vector<8x64xbf16>, vector<32x64xf32> -> vector<32x64xf32>
      %60 = arith.addf %55, %59 : vector<32x64xf32>
      %61 = vector.broadcast %0 : vector<1x64xf32> to vector<32x64xf32>
      %62 = arith.mulf %60, %61 : vector<32x64xf32>
      %63 = vector.broadcast %1 : vector<1x64xf32> to vector<32x64xf32>
      %64 = arith.addf %62, %63 : vector<32x64xf32>
      %cst_43 = arith.constant 0.000000e+00 : f32
      %65 = vector.broadcast %cst_43 : f32 to vector<32x64xf32>
      %66 = arith.maximumf %64, %65 : vector<32x64xf32>
      %67 = arith.truncf %66 : vector<32x64xf32> to vector<32x64xbf16>
      %c0_44 = arith.constant 0 : index
      %68 = arith.index_cast %arg6 : i32 to index
      %c0_45 = arith.constant 0 : index
      %c0_46 = arith.constant 0 : index
      %69 = vector.load %arg5[%c0_44, %68, %c0_45, %c0_46] : memref<1x32x32x64xbf16, #tpu.memory_space<vmem>>, vector<1x1x32x64xbf16>
      %70 = vector.shape_cast %69 : vector<1x1x32x64xbf16> to vector<32x64xbf16>
      %71 = vector.shape_cast %67 : vector<32x64xbf16> to vector<1x1x32x64xbf16>
      tpu.vector_store %arg5[%c0_44, %68, %c0_45, %c0_46], %71 {strides = array<i32>} : memref<1x32x32x64xbf16, #tpu.memory_space<vmem>>, vector<1x1x32x64xbf16>,
    }
    %c32_i32_3 = arith.constant 32 : i32
    return
  }
  func.func @transform_0(%arg0: i32) -> (i32, i32, i32, i32) {
    %c0_i32 = arith.constant 0 : i32
    %c0_i32_0 = arith.constant 0 : i32
    %c0_i32_1 = arith.constant 0 : i32
    %c0_i32_2 = arith.constant 0 : i32
    return %arg0, %c0_i32, %c0_i32_0, %c0_i32_1 : i32, i32, i32, i32
  }
  func.func @transform_1(%arg0: i32) -> (i32, i32, i32) {
    %c0_i32 = arith.constant 0 : i32
    %c0_i32_0 = arith.constant 0 : i32
    %c0_i32_1 = arith.constant 0 : i32
    %c0_i32_2 = arith.constant 0 : i32
    return %c0_i32, %c0_i32_0, %c0_i32_1 : i32, i32, i32
  }
  func.func @transform_2(%arg0: i32) -> (i32, i32) {
    %c0_i32 = arith.constant 0 : i32
    %c0_i32_0 = arith.constant 0 : i32
    %c0_i32_1 = arith.constant 0 : i32
    return %c0_i32, %c0_i32_0 : i32, i32
  }
  func.func @transform_3(%arg0: i32) -> (i32, i32) {
    %c0_i32 = arith.constant 0 : i32
    %c0_i32_0 = arith.constant 0 : i32
    %c0_i32_1 = arith.constant 0 : i32
    return %c0_i32, %c0_i32_0 : i32, i32
  }
  func.func @transform_4(%arg0: i32) -> (i32, i32, i32, i32) {
    %c0_i32 = arith.constant 0 : i32
    %c0_i32_0 = arith.constant 0 : i32
    %c0_i32_1 = arith.constant 0 : i32
    %c0_i32_2 = arith.constant 0 : i32
    return %arg0, %c0_i32, %c0_i32_0, %c0_i32_1 : i32, i32, i32, i32
  }
}

module attributes {stable_mosaic.version = 11 : i64} {
  func.func @_conv3x3_kernel(%arg0: i32, %arg1: memref<1x18x18x64xbf16, #tpu.memory_space<vmem>>, %arg2: memref<9x64x128xbf16, #tpu.memory_space<vmem>>, %arg3: memref<1x128xf32, #tpu.memory_space<vmem>>, %arg4: memref<1x128xf32, #tpu.memory_space<vmem>>, %arg5: memref<1x16x16x128xbf16, #tpu.memory_space<vmem>>) attributes {dimension_semantics = [#tpu.dimension_semantics<parallel>], iteration_bounds = array<i64: 2>, scalar_prefetch = 0 : i64, scratch_operands = 0 : i64, tpu.core_type = #tpu.core_type<tc>, window_params = [{transform_indices = @transform_0, window_bounds = array<i64: 1, 18, 18, 64>}, {pipeline_mode = #tpu.pipeline_mode<synchronous>, transform_indices = @transform_1, window_bounds = array<i64: 9, 64, 128>}, {pipeline_mode = #tpu.pipeline_mode<synchronous>, transform_indices = @transform_2, window_bounds = array<i64: 1, 128>}, {pipeline_mode = #tpu.pipeline_mode<synchronous>, transform_indices = @transform_3, window_bounds = array<i64: 1, 128>}, {transform_indices = @transform_4, window_bounds = array<i64: 1, 16, 16, 128>}]} {
    %c0 = arith.constant 0 : index
    %c0_0 = arith.constant 0 : index
    %0 = vector.load %arg3[%c0, %c0_0] : memref<1x128xf32, #tpu.memory_space<vmem>>, vector<1x128xf32>
    %c0_1 = arith.constant 0 : index
    %c0_2 = arith.constant 0 : index
    %1 = vector.load %arg4[%c0_1, %c0_2] : memref<1x128xf32, #tpu.memory_space<vmem>>, vector<1x128xf32>
    %c0_i32 = arith.constant 0 : i32
    %c16_i32 = arith.constant 16 : i32
    %2 = arith.addi %c0_i32, %c16_i32 : i32
    %c1_i32 = arith.constant 1 : i32
    scf.for %arg6 = %c0_i32 to %2 step %c1_i32  : i32 {
      %cst = arith.constant 0.000000e+00 : f32
      %3 = vector.broadcast %cst : f32 to vector<16x128xf32>
      %c0_i32_4 = arith.constant 0 : i32
      %4 = arith.addi %arg6, %c0_i32_4 : i32
      %c0_5 = arith.constant 0 : index
      %5 = arith.index_cast %4 : i32 to index
      %c0_6 = arith.constant 0 : index
      %c0_7 = arith.constant 0 : index
      %6 = vector.load %arg1[%c0_5, %5, %c0_6, %c0_7] : memref<1x18x18x64xbf16, #tpu.memory_space<vmem>>, vector<1x1x18x64xbf16>
      %7 = vector.shape_cast %6 : vector<1x1x18x64xbf16> to vector<18x64xbf16>
      %8 = vector.extract_strided_slice %7 {offsets = [0, 0], sizes = [16, 64], strides = [1, 1]} : vector<18x64xbf16> to vector<16x64xbf16>
      %c0_8 = arith.constant 0 : index
      %c0_9 = arith.constant 0 : index
      %c0_10 = arith.constant 0 : index
      %9 = vector.load %arg2[%c0_8, %c0_9, %c0_10] : memref<9x64x128xbf16, #tpu.memory_space<vmem>>, vector<1x64x128xbf16>
      %10 = vector.shape_cast %9 : vector<1x64x128xbf16> to vector<64x128xbf16>
      %cst_11 = arith.constant dense<0.000000e+00> : vector<16x128xf32>
      %11 = tpu.matmul %8, %10, %cst_11 {dimension_numbers = #tpu.dot_dimension_numbers<[1], [0], [0], [1], [0, 0, 1, 1], [], []>} : vector<16x64xbf16>, vector<64x128xbf16>, vector<16x128xf32> -> vector<16x128xf32>
      %12 = arith.addf %3, %11 : vector<16x128xf32>
      %13 = vector.extract_strided_slice %7 {offsets = [1, 0], sizes = [16, 64], strides = [1, 1]} : vector<18x64xbf16> to vector<16x64xbf16>
      %c1 = arith.constant 1 : index
      %c0_12 = arith.constant 0 : index
      %c0_13 = arith.constant 0 : index
      %14 = vector.load %arg2[%c1, %c0_12, %c0_13] : memref<9x64x128xbf16, #tpu.memory_space<vmem>>, vector<1x64x128xbf16>
      %15 = vector.shape_cast %14 : vector<1x64x128xbf16> to vector<64x128xbf16>
      %cst_14 = arith.constant dense<0.000000e+00> : vector<16x128xf32>
      %16 = tpu.matmul %13, %15, %cst_14 {dimension_numbers = #tpu.dot_dimension_numbers<[1], [0], [0], [1], [0, 0, 1, 1], [], []>} : vector<16x64xbf16>, vector<64x128xbf16>, vector<16x128xf32> -> vector<16x128xf32>
      %17 = arith.addf %12, %16 : vector<16x128xf32>
      %18 = vector.extract_strided_slice %7 {offsets = [2, 0], sizes = [16, 64], strides = [1, 1]} : vector<18x64xbf16> to vector<16x64xbf16>
      %c2 = arith.constant 2 : index
      %c0_15 = arith.constant 0 : index
      %c0_16 = arith.constant 0 : index
      %19 = vector.load %arg2[%c2, %c0_15, %c0_16] : memref<9x64x128xbf16, #tpu.memory_space<vmem>>, vector<1x64x128xbf16>
      %20 = vector.shape_cast %19 : vector<1x64x128xbf16> to vector<64x128xbf16>
      %cst_17 = arith.constant dense<0.000000e+00> : vector<16x128xf32>
      %21 = tpu.matmul %18, %20, %cst_17 {dimension_numbers = #tpu.dot_dimension_numbers<[1], [0], [0], [1], [0, 0, 1, 1], [], []>} : vector<16x64xbf16>, vector<64x128xbf16>, vector<16x128xf32> -> vector<16x128xf32>
      %22 = arith.addf %17, %21 : vector<16x128xf32>
      %c1_i32_18 = arith.constant 1 : i32
      %23 = arith.addi %arg6, %c1_i32_18 : i32
      %c0_19 = arith.constant 0 : index
      %24 = arith.index_cast %23 : i32 to index
      %c0_20 = arith.constant 0 : index
      %c0_21 = arith.constant 0 : index
      %25 = vector.load %arg1[%c0_19, %24, %c0_20, %c0_21] : memref<1x18x18x64xbf16, #tpu.memory_space<vmem>>, vector<1x1x18x64xbf16>
      %26 = vector.shape_cast %25 : vector<1x1x18x64xbf16> to vector<18x64xbf16>
      %27 = vector.extract_strided_slice %26 {offsets = [0, 0], sizes = [16, 64], strides = [1, 1]} : vector<18x64xbf16> to vector<16x64xbf16>
      %c3 = arith.constant 3 : index
      %c0_22 = arith.constant 0 : index
      %c0_23 = arith.constant 0 : index
      %28 = vector.load %arg2[%c3, %c0_22, %c0_23] : memref<9x64x128xbf16, #tpu.memory_space<vmem>>, vector<1x64x128xbf16>
      %29 = vector.shape_cast %28 : vector<1x64x128xbf16> to vector<64x128xbf16>
      %cst_24 = arith.constant dense<0.000000e+00> : vector<16x128xf32>
      %30 = tpu.matmul %27, %29, %cst_24 {dimension_numbers = #tpu.dot_dimension_numbers<[1], [0], [0], [1], [0, 0, 1, 1], [], []>} : vector<16x64xbf16>, vector<64x128xbf16>, vector<16x128xf32> -> vector<16x128xf32>
      %31 = arith.addf %22, %30 : vector<16x128xf32>
      %32 = vector.extract_strided_slice %26 {offsets = [1, 0], sizes = [16, 64], strides = [1, 1]} : vector<18x64xbf16> to vector<16x64xbf16>
      %c4 = arith.constant 4 : index
      %c0_25 = arith.constant 0 : index
      %c0_26 = arith.constant 0 : index
      %33 = vector.load %arg2[%c4, %c0_25, %c0_26] : memref<9x64x128xbf16, #tpu.memory_space<vmem>>, vector<1x64x128xbf16>
      %34 = vector.shape_cast %33 : vector<1x64x128xbf16> to vector<64x128xbf16>
      %cst_27 = arith.constant dense<0.000000e+00> : vector<16x128xf32>
      %35 = tpu.matmul %32, %34, %cst_27 {dimension_numbers = #tpu.dot_dimension_numbers<[1], [0], [0], [1], [0, 0, 1, 1], [], []>} : vector<16x64xbf16>, vector<64x128xbf16>, vector<16x128xf32> -> vector<16x128xf32>
      %36 = arith.addf %31, %35 : vector<16x128xf32>
      %37 = vector.extract_strided_slice %26 {offsets = [2, 0], sizes = [16, 64], strides = [1, 1]} : vector<18x64xbf16> to vector<16x64xbf16>
      %c5 = arith.constant 5 : index
      %c0_28 = arith.constant 0 : index
      %c0_29 = arith.constant 0 : index
      %38 = vector.load %arg2[%c5, %c0_28, %c0_29] : memref<9x64x128xbf16, #tpu.memory_space<vmem>>, vector<1x64x128xbf16>
      %39 = vector.shape_cast %38 : vector<1x64x128xbf16> to vector<64x128xbf16>
      %cst_30 = arith.constant dense<0.000000e+00> : vector<16x128xf32>
      %40 = tpu.matmul %37, %39, %cst_30 {dimension_numbers = #tpu.dot_dimension_numbers<[1], [0], [0], [1], [0, 0, 1, 1], [], []>} : vector<16x64xbf16>, vector<64x128xbf16>, vector<16x128xf32> -> vector<16x128xf32>
      %41 = arith.addf %36, %40 : vector<16x128xf32>
      %c2_i32 = arith.constant 2 : i32
      %42 = arith.addi %arg6, %c2_i32 : i32
      %c0_31 = arith.constant 0 : index
      %43 = arith.index_cast %42 : i32 to index
      %c0_32 = arith.constant 0 : index
      %c0_33 = arith.constant 0 : index
      %44 = vector.load %arg1[%c0_31, %43, %c0_32, %c0_33] : memref<1x18x18x64xbf16, #tpu.memory_space<vmem>>, vector<1x1x18x64xbf16>
      %45 = vector.shape_cast %44 : vector<1x1x18x64xbf16> to vector<18x64xbf16>
      %46 = vector.extract_strided_slice %45 {offsets = [0, 0], sizes = [16, 64], strides = [1, 1]} : vector<18x64xbf16> to vector<16x64xbf16>
      %c6 = arith.constant 6 : index
      %c0_34 = arith.constant 0 : index
      %c0_35 = arith.constant 0 : index
      %47 = vector.load %arg2[%c6, %c0_34, %c0_35] : memref<9x64x128xbf16, #tpu.memory_space<vmem>>, vector<1x64x128xbf16>
      %48 = vector.shape_cast %47 : vector<1x64x128xbf16> to vector<64x128xbf16>
      %cst_36 = arith.constant dense<0.000000e+00> : vector<16x128xf32>
      %49 = tpu.matmul %46, %48, %cst_36 {dimension_numbers = #tpu.dot_dimension_numbers<[1], [0], [0], [1], [0, 0, 1, 1], [], []>} : vector<16x64xbf16>, vector<64x128xbf16>, vector<16x128xf32> -> vector<16x128xf32>
      %50 = arith.addf %41, %49 : vector<16x128xf32>
      %51 = vector.extract_strided_slice %45 {offsets = [1, 0], sizes = [16, 64], strides = [1, 1]} : vector<18x64xbf16> to vector<16x64xbf16>
      %c7 = arith.constant 7 : index
      %c0_37 = arith.constant 0 : index
      %c0_38 = arith.constant 0 : index
      %52 = vector.load %arg2[%c7, %c0_37, %c0_38] : memref<9x64x128xbf16, #tpu.memory_space<vmem>>, vector<1x64x128xbf16>
      %53 = vector.shape_cast %52 : vector<1x64x128xbf16> to vector<64x128xbf16>
      %cst_39 = arith.constant dense<0.000000e+00> : vector<16x128xf32>
      %54 = tpu.matmul %51, %53, %cst_39 {dimension_numbers = #tpu.dot_dimension_numbers<[1], [0], [0], [1], [0, 0, 1, 1], [], []>} : vector<16x64xbf16>, vector<64x128xbf16>, vector<16x128xf32> -> vector<16x128xf32>
      %55 = arith.addf %50, %54 : vector<16x128xf32>
      %56 = vector.extract_strided_slice %45 {offsets = [2, 0], sizes = [16, 64], strides = [1, 1]} : vector<18x64xbf16> to vector<16x64xbf16>
      %c8 = arith.constant 8 : index
      %c0_40 = arith.constant 0 : index
      %c0_41 = arith.constant 0 : index
      %57 = vector.load %arg2[%c8, %c0_40, %c0_41] : memref<9x64x128xbf16, #tpu.memory_space<vmem>>, vector<1x64x128xbf16>
      %58 = vector.shape_cast %57 : vector<1x64x128xbf16> to vector<64x128xbf16>
      %cst_42 = arith.constant dense<0.000000e+00> : vector<16x128xf32>
      %59 = tpu.matmul %56, %58, %cst_42 {dimension_numbers = #tpu.dot_dimension_numbers<[1], [0], [0], [1], [0, 0, 1, 1], [], []>} : vector<16x64xbf16>, vector<64x128xbf16>, vector<16x128xf32> -> vector<16x128xf32>
      %60 = arith.addf %55, %59 : vector<16x128xf32>
      %61 = vector.broadcast %0 : vector<1x128xf32> to vector<16x128xf32>
      %62 = arith.mulf %60, %61 : vector<16x128xf32>
      %63 = vector.broadcast %1 : vector<1x128xf32> to vector<16x128xf32>
      %64 = arith.addf %62, %63 : vector<16x128xf32>
      %cst_43 = arith.constant 0.000000e+00 : f32
      %65 = vector.broadcast %cst_43 : f32 to vector<16x128xf32>
      %66 = arith.maximumf %64, %65 : vector<16x128xf32>
      %67 = arith.truncf %66 : vector<16x128xf32> to vector<16x128xbf16>
      %c0_44 = arith.constant 0 : index
      %68 = arith.index_cast %arg6 : i32 to index
      %c0_45 = arith.constant 0 : index
      %c0_46 = arith.constant 0 : index
      %69 = vector.load %arg5[%c0_44, %68, %c0_45, %c0_46] : memref<1x16x16x128xbf16, #tpu.memory_space<vmem>>, vector<1x1x16x128xbf16>
      %70 = vector.shape_cast %69 : vector<1x1x16x128xbf16> to vector<16x128xbf16>
      %71 = vector.shape_cast %67 : vector<16x128xbf16> to vector<1x1x16x128xbf16>
      tpu.vector_store %arg5[%c0_44, %68, %c0_45, %c0_46], %71 {strides = array<i32>} : memref<1x16x16x128xbf16, #tpu.memory_space<vmem>>, vector<1x1x16x128xbf16>,
    }
    %c16_i32_3 = arith.constant 16 : i32
    return
  }
  func.func @transform_0(%arg0: i32) -> (i32, i32, i32, i32) {
    %c0_i32 = arith.constant 0 : i32
    %c0_i32_0 = arith.constant 0 : i32
    %c0_i32_1 = arith.constant 0 : i32
    %c0_i32_2 = arith.constant 0 : i32
    return %arg0, %c0_i32, %c0_i32_0, %c0_i32_1 : i32, i32, i32, i32
  }
  func.func @transform_1(%arg0: i32) -> (i32, i32, i32) {
    %c0_i32 = arith.constant 0 : i32
    %c0_i32_0 = arith.constant 0 : i32
    %c0_i32_1 = arith.constant 0 : i32
    %c0_i32_2 = arith.constant 0 : i32
    return %c0_i32, %c0_i32_0, %c0_i32_1 : i32, i32, i32
  }
  func.func @transform_2(%arg0: i32) -> (i32, i32) {
    %c0_i32 = arith.constant 0 : i32
    %c0_i32_0 = arith.constant 0 : i32
    %c0_i32_1 = arith.constant 0 : i32
    return %c0_i32, %c0_i32_0 : i32, i32
  }
  func.func @transform_3(%arg0: i32) -> (i32, i32) {
    %c0_i32 = arith.constant 0 : i32
    %c0_i32_0 = arith.constant 0 : i32
    %c0_i32_1 = arith.constant 0 : i32
    return %c0_i32, %c0_i32_0 : i32, i32
  }
  func.func @transform_4(%arg0: i32) -> (i32, i32, i32, i32) {
    %c0_i32 = arith.constant 0 : i32
    %c0_i32_0 = arith.constant 0 : i32
    %c0_i32_1 = arith.constant 0 : i32
    %c0_i32_2 = arith.constant 0 : i32
    return %arg0, %c0_i32, %c0_i32_0, %c0_i32_1 : i32, i32, i32, i32
  }
}

module attributes {stable_mosaic.version = 11 : i64} {
  func.func @_conv3x3_kernel(%arg0: i32, %arg1: memref<1x10x10x128xbf16, #tpu.memory_space<vmem>>, %arg2: memref<9x128x256xbf16, #tpu.memory_space<vmem>>, %arg3: memref<1x256xf32, #tpu.memory_space<vmem>>, %arg4: memref<1x256xf32, #tpu.memory_space<vmem>>, %arg5: memref<1x8x8x256xbf16, #tpu.memory_space<vmem>>) attributes {dimension_semantics = [#tpu.dimension_semantics<parallel>], iteration_bounds = array<i64: 2>, scalar_prefetch = 0 : i64, scratch_operands = 0 : i64, tpu.core_type = #tpu.core_type<tc>, window_params = [{transform_indices = @transform_0, window_bounds = array<i64: 1, 10, 10, 128>}, {pipeline_mode = #tpu.pipeline_mode<synchronous>, transform_indices = @transform_1, window_bounds = array<i64: 9, 128, 256>}, {pipeline_mode = #tpu.pipeline_mode<synchronous>, transform_indices = @transform_2, window_bounds = array<i64: 1, 256>}, {pipeline_mode = #tpu.pipeline_mode<synchronous>, transform_indices = @transform_3, window_bounds = array<i64: 1, 256>}, {transform_indices = @transform_4, window_bounds = array<i64: 1, 8, 8, 256>}]} {
    %c0 = arith.constant 0 : index
    %c0_0 = arith.constant 0 : index
    %0 = vector.load %arg3[%c0, %c0_0] : memref<1x256xf32, #tpu.memory_space<vmem>>, vector<1x256xf32>
    %c0_1 = arith.constant 0 : index
    %c0_2 = arith.constant 0 : index
    %1 = vector.load %arg4[%c0_1, %c0_2] : memref<1x256xf32, #tpu.memory_space<vmem>>, vector<1x256xf32>
    %c0_i32 = arith.constant 0 : i32
    %c8_i32 = arith.constant 8 : i32
    %2 = arith.addi %c0_i32, %c8_i32 : i32
    %c1_i32 = arith.constant 1 : i32
    scf.for %arg6 = %c0_i32 to %2 step %c1_i32  : i32 {
      %cst = arith.constant 0.000000e+00 : f32
      %3 = vector.broadcast %cst : f32 to vector<8x256xf32>
      %c0_i32_4 = arith.constant 0 : i32
      %4 = arith.addi %arg6, %c0_i32_4 : i32
      %c0_5 = arith.constant 0 : index
      %5 = arith.index_cast %4 : i32 to index
      %c0_6 = arith.constant 0 : index
      %c0_7 = arith.constant 0 : index
      %6 = vector.load %arg1[%c0_5, %5, %c0_6, %c0_7] : memref<1x10x10x128xbf16, #tpu.memory_space<vmem>>, vector<1x1x10x128xbf16>
      %7 = vector.shape_cast %6 : vector<1x1x10x128xbf16> to vector<10x128xbf16>
      %8 = vector.extract_strided_slice %7 {offsets = [0, 0], sizes = [8, 128], strides = [1, 1]} : vector<10x128xbf16> to vector<8x128xbf16>
      %c0_8 = arith.constant 0 : index
      %c0_9 = arith.constant 0 : index
      %c0_10 = arith.constant 0 : index
      %9 = vector.load %arg2[%c0_8, %c0_9, %c0_10] : memref<9x128x256xbf16, #tpu.memory_space<vmem>>, vector<1x128x256xbf16>
      %10 = vector.shape_cast %9 : vector<1x128x256xbf16> to vector<128x256xbf16>
      %cst_11 = arith.constant dense<0.000000e+00> : vector<8x256xf32>
      %11 = tpu.matmul %8, %10, %cst_11 {dimension_numbers = #tpu.dot_dimension_numbers<[1], [0], [0], [1], [0, 0, 1, 1], [], []>} : vector<8x128xbf16>, vector<128x256xbf16>, vector<8x256xf32> -> vector<8x256xf32>
      %12 = arith.addf %3, %11 : vector<8x256xf32>
      %13 = vector.extract_strided_slice %7 {offsets = [1, 0], sizes = [8, 128], strides = [1, 1]} : vector<10x128xbf16> to vector<8x128xbf16>
      %c1 = arith.constant 1 : index
      %c0_12 = arith.constant 0 : index
      %c0_13 = arith.constant 0 : index
      %14 = vector.load %arg2[%c1, %c0_12, %c0_13] : memref<9x128x256xbf16, #tpu.memory_space<vmem>>, vector<1x128x256xbf16>
      %15 = vector.shape_cast %14 : vector<1x128x256xbf16> to vector<128x256xbf16>
      %cst_14 = arith.constant dense<0.000000e+00> : vector<8x256xf32>
      %16 = tpu.matmul %13, %15, %cst_14 {dimension_numbers = #tpu.dot_dimension_numbers<[1], [0], [0], [1], [0, 0, 1, 1], [], []>} : vector<8x128xbf16>, vector<128x256xbf16>, vector<8x256xf32> -> vector<8x256xf32>
      %17 = arith.addf %12, %16 : vector<8x256xf32>
      %18 = vector.extract_strided_slice %7 {offsets = [2, 0], sizes = [8, 128], strides = [1, 1]} : vector<10x128xbf16> to vector<8x128xbf16>
      %c2 = arith.constant 2 : index
      %c0_15 = arith.constant 0 : index
      %c0_16 = arith.constant 0 : index
      %19 = vector.load %arg2[%c2, %c0_15, %c0_16] : memref<9x128x256xbf16, #tpu.memory_space<vmem>>, vector<1x128x256xbf16>
      %20 = vector.shape_cast %19 : vector<1x128x256xbf16> to vector<128x256xbf16>
      %cst_17 = arith.constant dense<0.000000e+00> : vector<8x256xf32>
      %21 = tpu.matmul %18, %20, %cst_17 {dimension_numbers = #tpu.dot_dimension_numbers<[1], [0], [0], [1], [0, 0, 1, 1], [], []>} : vector<8x128xbf16>, vector<128x256xbf16>, vector<8x256xf32> -> vector<8x256xf32>
      %22 = arith.addf %17, %21 : vector<8x256xf32>
      %c1_i32_18 = arith.constant 1 : i32
      %23 = arith.addi %arg6, %c1_i32_18 : i32
      %c0_19 = arith.constant 0 : index
      %24 = arith.index_cast %23 : i32 to index
      %c0_20 = arith.constant 0 : index
      %c0_21 = arith.constant 0 : index
      %25 = vector.load %arg1[%c0_19, %24, %c0_20, %c0_21] : memref<1x10x10x128xbf16, #tpu.memory_space<vmem>>, vector<1x1x10x128xbf16>
      %26 = vector.shape_cast %25 : vector<1x1x10x128xbf16> to vector<10x128xbf16>
      %27 = vector.extract_strided_slice %26 {offsets = [0, 0], sizes = [8, 128], strides = [1, 1]} : vector<10x128xbf16> to vector<8x128xbf16>
      %c3 = arith.constant 3 : index
      %c0_22 = arith.constant 0 : index
      %c0_23 = arith.constant 0 : index
      %28 = vector.load %arg2[%c3, %c0_22, %c0_23] : memref<9x128x256xbf16, #tpu.memory_space<vmem>>, vector<1x128x256xbf16>
      %29 = vector.shape_cast %28 : vector<1x128x256xbf16> to vector<128x256xbf16>
      %cst_24 = arith.constant dense<0.000000e+00> : vector<8x256xf32>
      %30 = tpu.matmul %27, %29, %cst_24 {dimension_numbers = #tpu.dot_dimension_numbers<[1], [0], [0], [1], [0, 0, 1, 1], [], []>} : vector<8x128xbf16>, vector<128x256xbf16>, vector<8x256xf32> -> vector<8x256xf32>
      %31 = arith.addf %22, %30 : vector<8x256xf32>
      %32 = vector.extract_strided_slice %26 {offsets = [1, 0], sizes = [8, 128], strides = [1, 1]} : vector<10x128xbf16> to vector<8x128xbf16>
      %c4 = arith.constant 4 : index
      %c0_25 = arith.constant 0 : index
      %c0_26 = arith.constant 0 : index
      %33 = vector.load %arg2[%c4, %c0_25, %c0_26] : memref<9x128x256xbf16, #tpu.memory_space<vmem>>, vector<1x128x256xbf16>
      %34 = vector.shape_cast %33 : vector<1x128x256xbf16> to vector<128x256xbf16>
      %cst_27 = arith.constant dense<0.000000e+00> : vector<8x256xf32>
      %35 = tpu.matmul %32, %34, %cst_27 {dimension_numbers = #tpu.dot_dimension_numbers<[1], [0], [0], [1], [0, 0, 1, 1], [], []>} : vector<8x128xbf16>, vector<128x256xbf16>, vector<8x256xf32> -> vector<8x256xf32>
      %36 = arith.addf %31, %35 : vector<8x256xf32>
      %37 = vector.extract_strided_slice %26 {offsets = [2, 0], sizes = [8, 128], strides = [1, 1]} : vector<10x128xbf16> to vector<8x128xbf16>
      %c5 = arith.constant 5 : index
      %c0_28 = arith.constant 0 : index
      %c0_29 = arith.constant 0 : index
      %38 = vector.load %arg2[%c5, %c0_28, %c0_29] : memref<9x128x256xbf16, #tpu.memory_space<vmem>>, vector<1x128x256xbf16>
      %39 = vector.shape_cast %38 : vector<1x128x256xbf16> to vector<128x256xbf16>
      %cst_30 = arith.constant dense<0.000000e+00> : vector<8x256xf32>
      %40 = tpu.matmul %37, %39, %cst_30 {dimension_numbers = #tpu.dot_dimension_numbers<[1], [0], [0], [1], [0, 0, 1, 1], [], []>} : vector<8x128xbf16>, vector<128x256xbf16>, vector<8x256xf32> -> vector<8x256xf32>
      %41 = arith.addf %36, %40 : vector<8x256xf32>
      %c2_i32 = arith.constant 2 : i32
      %42 = arith.addi %arg6, %c2_i32 : i32
      %c0_31 = arith.constant 0 : index
      %43 = arith.index_cast %42 : i32 to index
      %c0_32 = arith.constant 0 : index
      %c0_33 = arith.constant 0 : index
      %44 = vector.load %arg1[%c0_31, %43, %c0_32, %c0_33] : memref<1x10x10x128xbf16, #tpu.memory_space<vmem>>, vector<1x1x10x128xbf16>
      %45 = vector.shape_cast %44 : vector<1x1x10x128xbf16> to vector<10x128xbf16>
      %46 = vector.extract_strided_slice %45 {offsets = [0, 0], sizes = [8, 128], strides = [1, 1]} : vector<10x128xbf16> to vector<8x128xbf16>
      %c6 = arith.constant 6 : index
      %c0_34 = arith.constant 0 : index
      %c0_35 = arith.constant 0 : index
      %47 = vector.load %arg2[%c6, %c0_34, %c0_35] : memref<9x128x256xbf16, #tpu.memory_space<vmem>>, vector<1x128x256xbf16>
      %48 = vector.shape_cast %47 : vector<1x128x256xbf16> to vector<128x256xbf16>
      %cst_36 = arith.constant dense<0.000000e+00> : vector<8x256xf32>
      %49 = tpu.matmul %46, %48, %cst_36 {dimension_numbers = #tpu.dot_dimension_numbers<[1], [0], [0], [1], [0, 0, 1, 1], [], []>} : vector<8x128xbf16>, vector<128x256xbf16>, vector<8x256xf32> -> vector<8x256xf32>
      %50 = arith.addf %41, %49 : vector<8x256xf32>
      %51 = vector.extract_strided_slice %45 {offsets = [1, 0], sizes = [8, 128], strides = [1, 1]} : vector<10x128xbf16> to vector<8x128xbf16>
      %c7 = arith.constant 7 : index
      %c0_37 = arith.constant 0 : index
      %c0_38 = arith.constant 0 : index
      %52 = vector.load %arg2[%c7, %c0_37, %c0_38] : memref<9x128x256xbf16, #tpu.memory_space<vmem>>, vector<1x128x256xbf16>
      %53 = vector.shape_cast %52 : vector<1x128x256xbf16> to vector<128x256xbf16>
      %cst_39 = arith.constant dense<0.000000e+00> : vector<8x256xf32>
      %54 = tpu.matmul %51, %53, %cst_39 {dimension_numbers = #tpu.dot_dimension_numbers<[1], [0], [0], [1], [0, 0, 1, 1], [], []>} : vector<8x128xbf16>, vector<128x256xbf16>, vector<8x256xf32> -> vector<8x256xf32>
      %55 = arith.addf %50, %54 : vector<8x256xf32>
      %56 = vector.extract_strided_slice %45 {offsets = [2, 0], sizes = [8, 128], strides = [1, 1]} : vector<10x128xbf16> to vector<8x128xbf16>
      %c8 = arith.constant 8 : index
      %c0_40 = arith.constant 0 : index
      %c0_41 = arith.constant 0 : index
      %57 = vector.load %arg2[%c8, %c0_40, %c0_41] : memref<9x128x256xbf16, #tpu.memory_space<vmem>>, vector<1x128x256xbf16>
      %58 = vector.shape_cast %57 : vector<1x128x256xbf16> to vector<128x256xbf16>
      %cst_42 = arith.constant dense<0.000000e+00> : vector<8x256xf32>
      %59 = tpu.matmul %56, %58, %cst_42 {dimension_numbers = #tpu.dot_dimension_numbers<[1], [0], [0], [1], [0, 0, 1, 1], [], []>} : vector<8x128xbf16>, vector<128x256xbf16>, vector<8x256xf32> -> vector<8x256xf32>
      %60 = arith.addf %55, %59 : vector<8x256xf32>
      %61 = vector.broadcast %0 : vector<1x256xf32> to vector<8x256xf32>
      %62 = arith.mulf %60, %61 : vector<8x256xf32>
      %63 = vector.broadcast %1 : vector<1x256xf32> to vector<8x256xf32>
      %64 = arith.addf %62, %63 : vector<8x256xf32>
      %cst_43 = arith.constant 0.000000e+00 : f32
      %65 = vector.broadcast %cst_43 : f32 to vector<8x256xf32>
      %66 = arith.maximumf %64, %65 : vector<8x256xf32>
      %67 = arith.truncf %66 : vector<8x256xf32> to vector<8x256xbf16>
      %c0_44 = arith.constant 0 : index
      %68 = arith.index_cast %arg6 : i32 to index
      %c0_45 = arith.constant 0 : index
      %c0_46 = arith.constant 0 : index
      %69 = vector.load %arg5[%c0_44, %68, %c0_45, %c0_46] : memref<1x8x8x256xbf16, #tpu.memory_space<vmem>>, vector<1x1x8x256xbf16>
      %70 = vector.shape_cast %69 : vector<1x1x8x256xbf16> to vector<8x256xbf16>
      %71 = vector.shape_cast %67 : vector<8x256xbf16> to vector<1x1x8x256xbf16>
      tpu.vector_store %arg5[%c0_44, %68, %c0_45, %c0_46], %71 {strides = array<i32>} : memref<1x8x8x256xbf16, #tpu.memory_space<vmem>>, vector<1x1x8x256xbf16>,
    }
    %c8_i32_3 = arith.constant 8 : i32
    return
  }
  func.func @transform_0(%arg0: i32) -> (i32, i32, i32, i32) {
    %c0_i32 = arith.constant 0 : i32
    %c0_i32_0 = arith.constant 0 : i32
    %c0_i32_1 = arith.constant 0 : i32
    %c0_i32_2 = arith.constant 0 : i32
    return %arg0, %c0_i32, %c0_i32_0, %c0_i32_1 : i32, i32, i32, i32
  }
  func.func @transform_1(%arg0: i32) -> (i32, i32, i32) {
    %c0_i32 = arith.constant 0 : i32
    %c0_i32_0 = arith.constant 0 : i32
    %c0_i32_1 = arith.constant 0 : i32
    %c0_i32_2 = arith.constant 0 : i32
    return %c0_i32, %c0_i32_0, %c0_i32_1 : i32, i32, i32
  }
  func.func @transform_2(%arg0: i32) -> (i32, i32) {
    %c0_i32 = arith.constant 0 : i32
    %c0_i32_0 = arith.constant 0 : i32
    %c0_i32_1 = arith.constant 0 : i32
    return %c0_i32, %c0_i32_0 : i32, i32
  }
  func.func @transform_3(%arg0: i32) -> (i32, i32) {
    %c0_i32 = arith.constant 0 : i32
    %c0_i32_0 = arith.constant 0 : i32
    %c0_i32_1 = arith.constant 0 : i32
    return %c0_i32, %c0_i32_0 : i32, i32
  }
  func.func @transform_4(%arg0: i32) -> (i32, i32, i32, i32) {
    %c0_i32 = arith.constant 0 : i32
    %c0_i32_0 = arith.constant 0 : i32
    %c0_i32_1 = arith.constant 0 : i32
    %c0_i32_2 = arith.constant 0 : i32
    return %arg0, %c0_i32, %c0_i32_0, %c0_i32_1 : i32, i32, i32, i32
  }
}

module attributes {stable_mosaic.version = 11 : i64} {
  func.func @_conv3x3_kernel(%arg0: i32, %arg1: memref<1x6x6x256xbf16, #tpu.memory_space<vmem>>, %arg2: memref<9x256x32xbf16, #tpu.memory_space<vmem>>, %arg3: memref<1x32xf32, #tpu.memory_space<vmem>>, %arg4: memref<1x32xf32, #tpu.memory_space<vmem>>, %arg5: memref<1x4x4x32xbf16, #tpu.memory_space<vmem>>) attributes {dimension_semantics = [#tpu.dimension_semantics<parallel>], iteration_bounds = array<i64: 2>, scalar_prefetch = 0 : i64, scratch_operands = 0 : i64, tpu.core_type = #tpu.core_type<tc>, window_params = [{transform_indices = @transform_0, window_bounds = array<i64: 1, 6, 6, 256>}, {pipeline_mode = #tpu.pipeline_mode<synchronous>, transform_indices = @transform_1, window_bounds = array<i64: 9, 256, 32>}, {pipeline_mode = #tpu.pipeline_mode<synchronous>, transform_indices = @transform_2, window_bounds = array<i64: 1, 32>}, {pipeline_mode = #tpu.pipeline_mode<synchronous>, transform_indices = @transform_3, window_bounds = array<i64: 1, 32>}, {transform_indices = @transform_4, window_bounds = array<i64: 1, 4, 4, 32>}]} {
    %c0 = arith.constant 0 : index
    %c0_0 = arith.constant 0 : index
    %0 = vector.load %arg3[%c0, %c0_0] : memref<1x32xf32, #tpu.memory_space<vmem>>, vector<1x32xf32>
    %c0_1 = arith.constant 0 : index
    %c0_2 = arith.constant 0 : index
    %1 = vector.load %arg4[%c0_1, %c0_2] : memref<1x32xf32, #tpu.memory_space<vmem>>, vector<1x32xf32>
    %c0_i32 = arith.constant 0 : i32
    %c4_i32 = arith.constant 4 : i32
    %2 = arith.addi %c0_i32, %c4_i32 : i32
    %c1_i32 = arith.constant 1 : i32
    scf.for %arg6 = %c0_i32 to %2 step %c1_i32  : i32 {
      %cst = arith.constant 0.000000e+00 : f32
      %3 = vector.broadcast %cst : f32 to vector<4x32xf32>
      %c0_i32_4 = arith.constant 0 : i32
      %4 = arith.addi %arg6, %c0_i32_4 : i32
      %c0_5 = arith.constant 0 : index
      %5 = arith.index_cast %4 : i32 to index
      %c0_6 = arith.constant 0 : index
      %c0_7 = arith.constant 0 : index
      %6 = vector.load %arg1[%c0_5, %5, %c0_6, %c0_7] : memref<1x6x6x256xbf16, #tpu.memory_space<vmem>>, vector<1x1x6x256xbf16>
      %7 = vector.shape_cast %6 : vector<1x1x6x256xbf16> to vector<6x256xbf16>
      %8 = vector.extract_strided_slice %7 {offsets = [0, 0], sizes = [4, 256], strides = [1, 1]} : vector<6x256xbf16> to vector<4x256xbf16>
      %c0_8 = arith.constant 0 : index
      %c0_9 = arith.constant 0 : index
      %c0_10 = arith.constant 0 : index
      %9 = vector.load %arg2[%c0_8, %c0_9, %c0_10] : memref<9x256x32xbf16, #tpu.memory_space<vmem>>, vector<1x256x32xbf16>
      %10 = vector.shape_cast %9 : vector<1x256x32xbf16> to vector<256x32xbf16>
      %cst_11 = arith.constant dense<0.000000e+00> : vector<4x32xf32>
      %11 = tpu.matmul %8, %10, %cst_11 {dimension_numbers = #tpu.dot_dimension_numbers<[1], [0], [0], [1], [0, 0, 1, 1], [], []>} : vector<4x256xbf16>, vector<256x32xbf16>, vector<4x32xf32> -> vector<4x32xf32>
      %12 = arith.addf %3, %11 : vector<4x32xf32>
      %13 = vector.extract_strided_slice %7 {offsets = [1, 0], sizes = [4, 256], strides = [1, 1]} : vector<6x256xbf16> to vector<4x256xbf16>
      %c1 = arith.constant 1 : index
      %c0_12 = arith.constant 0 : index
      %c0_13 = arith.constant 0 : index
      %14 = vector.load %arg2[%c1, %c0_12, %c0_13] : memref<9x256x32xbf16, #tpu.memory_space<vmem>>, vector<1x256x32xbf16>
      %15 = vector.shape_cast %14 : vector<1x256x32xbf16> to vector<256x32xbf16>
      %cst_14 = arith.constant dense<0.000000e+00> : vector<4x32xf32>
      %16 = tpu.matmul %13, %15, %cst_14 {dimension_numbers = #tpu.dot_dimension_numbers<[1], [0], [0], [1], [0, 0, 1, 1], [], []>} : vector<4x256xbf16>, vector<256x32xbf16>, vector<4x32xf32> -> vector<4x32xf32>
      %17 = arith.addf %12, %16 : vector<4x32xf32>
      %18 = vector.extract_strided_slice %7 {offsets = [2, 0], sizes = [4, 256], strides = [1, 1]} : vector<6x256xbf16> to vector<4x256xbf16>
      %c2 = arith.constant 2 : index
      %c0_15 = arith.constant 0 : index
      %c0_16 = arith.constant 0 : index
      %19 = vector.load %arg2[%c2, %c0_15, %c0_16] : memref<9x256x32xbf16, #tpu.memory_space<vmem>>, vector<1x256x32xbf16>
      %20 = vector.shape_cast %19 : vector<1x256x32xbf16> to vector<256x32xbf16>
      %cst_17 = arith.constant dense<0.000000e+00> : vector<4x32xf32>
      %21 = tpu.matmul %18, %20, %cst_17 {dimension_numbers = #tpu.dot_dimension_numbers<[1], [0], [0], [1], [0, 0, 1, 1], [], []>} : vector<4x256xbf16>, vector<256x32xbf16>, vector<4x32xf32> -> vector<4x32xf32>
      %22 = arith.addf %17, %21 : vector<4x32xf32>
      %c1_i32_18 = arith.constant 1 : i32
      %23 = arith.addi %arg6, %c1_i32_18 : i32
      %c0_19 = arith.constant 0 : index
      %24 = arith.index_cast %23 : i32 to index
      %c0_20 = arith.constant 0 : index
      %c0_21 = arith.constant 0 : index
      %25 = vector.load %arg1[%c0_19, %24, %c0_20, %c0_21] : memref<1x6x6x256xbf16, #tpu.memory_space<vmem>>, vector<1x1x6x256xbf16>
      %26 = vector.shape_cast %25 : vector<1x1x6x256xbf16> to vector<6x256xbf16>
      %27 = vector.extract_strided_slice %26 {offsets = [0, 0], sizes = [4, 256], strides = [1, 1]} : vector<6x256xbf16> to vector<4x256xbf16>
      %c3 = arith.constant 3 : index
      %c0_22 = arith.constant 0 : index
      %c0_23 = arith.constant 0 : index
      %28 = vector.load %arg2[%c3, %c0_22, %c0_23] : memref<9x256x32xbf16, #tpu.memory_space<vmem>>, vector<1x256x32xbf16>
      %29 = vector.shape_cast %28 : vector<1x256x32xbf16> to vector<256x32xbf16>
      %cst_24 = arith.constant dense<0.000000e+00> : vector<4x32xf32>
      %30 = tpu.matmul %27, %29, %cst_24 {dimension_numbers = #tpu.dot_dimension_numbers<[1], [0], [0], [1], [0, 0, 1, 1], [], []>} : vector<4x256xbf16>, vector<256x32xbf16>, vector<4x32xf32> -> vector<4x32xf32>
      %31 = arith.addf %22, %30 : vector<4x32xf32>
      %32 = vector.extract_strided_slice %26 {offsets = [1, 0], sizes = [4, 256], strides = [1, 1]} : vector<6x256xbf16> to vector<4x256xbf16>
      %c4 = arith.constant 4 : index
      %c0_25 = arith.constant 0 : index
      %c0_26 = arith.constant 0 : index
      %33 = vector.load %arg2[%c4, %c0_25, %c0_26] : memref<9x256x32xbf16, #tpu.memory_space<vmem>>, vector<1x256x32xbf16>
      %34 = vector.shape_cast %33 : vector<1x256x32xbf16> to vector<256x32xbf16>
      %cst_27 = arith.constant dense<0.000000e+00> : vector<4x32xf32>
      %35 = tpu.matmul %32, %34, %cst_27 {dimension_numbers = #tpu.dot_dimension_numbers<[1], [0], [0], [1], [0, 0, 1, 1], [], []>} : vector<4x256xbf16>, vector<256x32xbf16>, vector<4x32xf32> -> vector<4x32xf32>
      %36 = arith.addf %31, %35 : vector<4x32xf32>
      %37 = vector.extract_strided_slice %26 {offsets = [2, 0], sizes = [4, 256], strides = [1, 1]} : vector<6x256xbf16> to vector<4x256xbf16>
      %c5 = arith.constant 5 : index
      %c0_28 = arith.constant 0 : index
      %c0_29 = arith.constant 0 : index
      %38 = vector.load %arg2[%c5, %c0_28, %c0_29] : memref<9x256x32xbf16, #tpu.memory_space<vmem>>, vector<1x256x32xbf16>
      %39 = vector.shape_cast %38 : vector<1x256x32xbf16> to vector<256x32xbf16>
      %cst_30 = arith.constant dense<0.000000e+00> : vector<4x32xf32>
      %40 = tpu.matmul %37, %39, %cst_30 {dimension_numbers = #tpu.dot_dimension_numbers<[1], [0], [0], [1], [0, 0, 1, 1], [], []>} : vector<4x256xbf16>, vector<256x32xbf16>, vector<4x32xf32> -> vector<4x32xf32>
      %41 = arith.addf %36, %40 : vector<4x32xf32>
      %c2_i32 = arith.constant 2 : i32
      %42 = arith.addi %arg6, %c2_i32 : i32
      %c0_31 = arith.constant 0 : index
      %43 = arith.index_cast %42 : i32 to index
      %c0_32 = arith.constant 0 : index
      %c0_33 = arith.constant 0 : index
      %44 = vector.load %arg1[%c0_31, %43, %c0_32, %c0_33] : memref<1x6x6x256xbf16, #tpu.memory_space<vmem>>, vector<1x1x6x256xbf16>
      %45 = vector.shape_cast %44 : vector<1x1x6x256xbf16> to vector<6x256xbf16>
      %46 = vector.extract_strided_slice %45 {offsets = [0, 0], sizes = [4, 256], strides = [1, 1]} : vector<6x256xbf16> to vector<4x256xbf16>
      %c6 = arith.constant 6 : index
      %c0_34 = arith.constant 0 : index
      %c0_35 = arith.constant 0 : index
      %47 = vector.load %arg2[%c6, %c0_34, %c0_35] : memref<9x256x32xbf16, #tpu.memory_space<vmem>>, vector<1x256x32xbf16>
      %48 = vector.shape_cast %47 : vector<1x256x32xbf16> to vector<256x32xbf16>
      %cst_36 = arith.constant dense<0.000000e+00> : vector<4x32xf32>
      %49 = tpu.matmul %46, %48, %cst_36 {dimension_numbers = #tpu.dot_dimension_numbers<[1], [0], [0], [1], [0, 0, 1, 1], [], []>} : vector<4x256xbf16>, vector<256x32xbf16>, vector<4x32xf32> -> vector<4x32xf32>
      %50 = arith.addf %41, %49 : vector<4x32xf32>
      %51 = vector.extract_strided_slice %45 {offsets = [1, 0], sizes = [4, 256], strides = [1, 1]} : vector<6x256xbf16> to vector<4x256xbf16>
      %c7 = arith.constant 7 : index
      %c0_37 = arith.constant 0 : index
      %c0_38 = arith.constant 0 : index
      %52 = vector.load %arg2[%c7, %c0_37, %c0_38] : memref<9x256x32xbf16, #tpu.memory_space<vmem>>, vector<1x256x32xbf16>
      %53 = vector.shape_cast %52 : vector<1x256x32xbf16> to vector<256x32xbf16>
      %cst_39 = arith.constant dense<0.000000e+00> : vector<4x32xf32>
      %54 = tpu.matmul %51, %53, %cst_39 {dimension_numbers = #tpu.dot_dimension_numbers<[1], [0], [0], [1], [0, 0, 1, 1], [], []>} : vector<4x256xbf16>, vector<256x32xbf16>, vector<4x32xf32> -> vector<4x32xf32>
      %55 = arith.addf %50, %54 : vector<4x32xf32>
      %56 = vector.extract_strided_slice %45 {offsets = [2, 0], sizes = [4, 256], strides = [1, 1]} : vector<6x256xbf16> to vector<4x256xbf16>
      %c8 = arith.constant 8 : index
      %c0_40 = arith.constant 0 : index
      %c0_41 = arith.constant 0 : index
      %57 = vector.load %arg2[%c8, %c0_40, %c0_41] : memref<9x256x32xbf16, #tpu.memory_space<vmem>>, vector<1x256x32xbf16>
      %58 = vector.shape_cast %57 : vector<1x256x32xbf16> to vector<256x32xbf16>
      %cst_42 = arith.constant dense<0.000000e+00> : vector<4x32xf32>
      %59 = tpu.matmul %56, %58, %cst_42 {dimension_numbers = #tpu.dot_dimension_numbers<[1], [0], [0], [1], [0, 0, 1, 1], [], []>} : vector<4x256xbf16>, vector<256x32xbf16>, vector<4x32xf32> -> vector<4x32xf32>
      %60 = arith.addf %55, %59 : vector<4x32xf32>
      %61 = vector.broadcast %0 : vector<1x32xf32> to vector<4x32xf32>
      %62 = arith.mulf %60, %61 : vector<4x32xf32>
      %63 = vector.broadcast %1 : vector<1x32xf32> to vector<4x32xf32>
      %64 = arith.addf %62, %63 : vector<4x32xf32>
      %cst_43 = arith.constant 0.000000e+00 : f32
      %65 = vector.broadcast %cst_43 : f32 to vector<4x32xf32>
      %66 = arith.maximumf %64, %65 : vector<4x32xf32>
      %67 = arith.truncf %66 : vector<4x32xf32> to vector<4x32xbf16>
      %c0_44 = arith.constant 0 : index
      %68 = arith.index_cast %arg6 : i32 to index
      %c0_45 = arith.constant 0 : index
      %c0_46 = arith.constant 0 : index
      %69 = vector.load %arg5[%c0_44, %68, %c0_45, %c0_46] : memref<1x4x4x32xbf16, #tpu.memory_space<vmem>>, vector<1x1x4x32xbf16>
      %70 = vector.shape_cast %69 : vector<1x1x4x32xbf16> to vector<4x32xbf16>
      %71 = vector.shape_cast %67 : vector<4x32xbf16> to vector<1x1x4x32xbf16>
      tpu.vector_store %arg5[%c0_44, %68, %c0_45, %c0_46], %71 {strides = array<i32>} : memref<1x4x4x32xbf16, #tpu.memory_space<vmem>>, vector<1x1x4x32xbf16>,
    }
    %c4_i32_3 = arith.constant 4 : i32
    return
  }
  func.func @transform_0(%arg0: i32) -> (i32, i32, i32, i32) {
    %c0_i32 = arith.constant 0 : i32
    %c0_i32_0 = arith.constant 0 : i32
    %c0_i32_1 = arith.constant 0 : i32
    %c0_i32_2 = arith.constant 0 : i32
    return %arg0, %c0_i32, %c0_i32_0, %c0_i32_1 : i32, i32, i32, i32
  }
  func.func @transform_1(%arg0: i32) -> (i32, i32, i32) {
    %c0_i32 = arith.constant 0 : i32
    %c0_i32_0 = arith.constant 0 : i32
    %c0_i32_1 = arith.constant 0 : i32
    %c0_i32_2 = arith.constant 0 : i32
    return %c0_i32, %c0_i32_0, %c0_i32_1 : i32, i32, i32
  }
  func.func @transform_2(%arg0: i32) -> (i32, i32) {
    %c0_i32 = arith.constant 0 : i32
    %c0_i32_0 = arith.constant 0 : i32
    %c0_i32_1 = arith.constant 0 : i32
    return %c0_i32, %c0_i32_0 : i32, i32
  }
  func.func @transform_3(%arg0: i32) -> (i32, i32) {
    %c0_i32 = arith.constant 0 : i32
    %c0_i32_0 = arith.constant 0 : i32
    %c0_i32_1 = arith.constant 0 : i32
    return %c0_i32, %c0_i32_0 : i32, i32
  }
  func.func @transform_4(%arg0: i32) -> (i32, i32, i32, i32) {
    %c0_i32 = arith.constant 0 : i32
    %c0_i32_0 = arith.constant 0 : i32
    %c0_i32_1 = arith.constant 0 : i32
    %c0_i32_2 = arith.constant 0 : i32
    return %arg0, %c0_i32, %c0_i32_0, %c0_i32_1 : i32, i32, i32, i32
  }
}

module attributes {stable_mosaic.version = 11 : i64} {
  func.func @_pos_kernel(%arg0: i32, %arg1: memref<2xf32, #tpu.memory_space<smem>>, %arg2: memref<16x16xf32, #tpu.memory_space<vmem>>, %arg3: memref<1x16x16xf32, #tpu.memory_space<vmem>>) attributes {dimension_semantics = [#tpu.dimension_semantics<parallel>], iteration_bounds = array<i64: 2>, scalar_prefetch = 0 : i64, scratch_operands = 0 : i64, tpu.core_type = #tpu.core_type<tc>, window_params = [{transform_indices = @transform_0, window_bounds = array<i64: 2>}, {pipeline_mode = #tpu.pipeline_mode<synchronous>, transform_indices = @transform_1, window_bounds = array<i64: 16, 16>}, {transform_indices = @transform_2, window_bounds = array<i64: 1, 16, 16>}]} {
    %0 = arith.index_cast %arg0 : i32 to index
    %1 = memref.load %arg1[%0] : memref<2xf32, #tpu.memory_space<smem>>
    %cst = arith.constant 0.000000e+00 : f32
    %2 = arith.subf %cst, %1 : f32
    %c0 = arith.constant 0 : index
    %c0_0 = arith.constant 0 : index
    %3 = vector.load %arg2[%c0, %c0_0] : memref<16x16xf32, #tpu.memory_space<vmem>>, vector<16x16xf32>
    %4 = vector.broadcast %2 : f32 to vector<16x16xf32>
    %5 = arith.mulf %4, %3 : vector<16x16xf32>
    %6 = math.exp %5 : vector<16x16xf32>
    %cst_1 = arith.constant dense<0.000000e+00> : vector<16xf32>
    %7 = vector.multi_reduction <add>, %6, %cst_1 [1] : vector<16x16xf32> to vector<16xf32>
    %8 = vector.shape_cast %7 : vector<16xf32> to vector<16x1xf32>
    %9 = tpu.reciprocal %8 {approx = true} : vector<16x1xf32> -> vector<16x1xf32>
    %10 = vector.broadcast %9 : vector<16x1xf32> to vector<16x16xf32>
    %11 = arith.mulf %6, %10 : vector<16x16xf32>
    %c0_2 = arith.constant 0 : index
    %c0_3 = arith.constant 0 : index
    %c0_4 = arith.constant 0 : index
    %12 = vector.load %arg3[%c0_2, %c0_3, %c0_4] : memref<1x16x16xf32, #tpu.memory_space<vmem>>, vector<1x16x16xf32>
    %13 = vector.shape_cast %12 : vector<1x16x16xf32> to vector<16x16xf32>
    %14 = vector.shape_cast %11 : vector<16x16xf32> to vector<1x16x16xf32>
    tpu.vector_store %arg3[%c0_2, %c0_3, %c0_4], %14 {strides = array<i32>} : memref<1x16x16xf32, #tpu.memory_space<vmem>>, vector<1x16x16xf32>,
    return
  }
  func.func @transform_0(%arg0: i32) -> i32 {
    %c0_i32 = arith.constant 0 : i32
    %c0_i32_0 = arith.constant 0 : i32
    return %c0_i32 : i32
  }
  func.func @transform_1(%arg0: i32) -> (i32, i32) {
    %c0_i32 = arith.constant 0 : i32
    %c0_i32_0 = arith.constant 0 : i32
    %c0_i32_1 = arith.constant 0 : i32
    return %c0_i32, %c0_i32_0 : i32, i32
  }
  func.func @transform_2(%arg0: i32) -> (i32, i32, i32) {
    %c0_i32 = arith.constant 0 : i32
    %c0_i32_0 = arith.constant 0 : i32
    %c0_i32_1 = arith.constant 0 : i32
    return %arg0, %c0_i32, %c0_i32_0 : i32, i32, i32
  }
}

module attributes {stable_mosaic.version = 11 : i64} {
  func.func @_conv3x3_kernel(%arg0: i32, %arg1: memref<1x6x6x32xbf16, #tpu.memory_space<vmem>>, %arg2: memref<9x32x48xbf16, #tpu.memory_space<vmem>>, %arg3: memref<1x48xf32, #tpu.memory_space<vmem>>, %arg4: memref<1x48xf32, #tpu.memory_space<vmem>>, %arg5: memref<1x4x4x48xbf16, #tpu.memory_space<vmem>>) attributes {dimension_semantics = [#tpu.dimension_semantics<parallel>], iteration_bounds = array<i64: 2>, scalar_prefetch = 0 : i64, scratch_operands = 0 : i64, tpu.core_type = #tpu.core_type<tc>, window_params = [{transform_indices = @transform_0, window_bounds = array<i64: 1, 6, 6, 32>}, {pipeline_mode = #tpu.pipeline_mode<synchronous>, transform_indices = @transform_1, window_bounds = array<i64: 9, 32, 48>}, {pipeline_mode = #tpu.pipeline_mode<synchronous>, transform_indices = @transform_2, window_bounds = array<i64: 1, 48>}, {pipeline_mode = #tpu.pipeline_mode<synchronous>, transform_indices = @transform_3, window_bounds = array<i64: 1, 48>}, {transform_indices = @transform_4, window_bounds = array<i64: 1, 4, 4, 48>}]} {
    %c0 = arith.constant 0 : index
    %c0_0 = arith.constant 0 : index
    %0 = vector.load %arg3[%c0, %c0_0] : memref<1x48xf32, #tpu.memory_space<vmem>>, vector<1x48xf32>
    %c0_1 = arith.constant 0 : index
    %c0_2 = arith.constant 0 : index
    %1 = vector.load %arg4[%c0_1, %c0_2] : memref<1x48xf32, #tpu.memory_space<vmem>>, vector<1x48xf32>
    %c0_i32 = arith.constant 0 : i32
    %c4_i32 = arith.constant 4 : i32
    %2 = arith.addi %c0_i32, %c4_i32 : i32
    %c1_i32 = arith.constant 1 : i32
    scf.for %arg6 = %c0_i32 to %2 step %c1_i32  : i32 {
      %cst = arith.constant 0.000000e+00 : f32
      %3 = vector.broadcast %cst : f32 to vector<4x48xf32>
      %c0_i32_4 = arith.constant 0 : i32
      %4 = arith.addi %arg6, %c0_i32_4 : i32
      %c0_5 = arith.constant 0 : index
      %5 = arith.index_cast %4 : i32 to index
      %c0_6 = arith.constant 0 : index
      %c0_7 = arith.constant 0 : index
      %6 = vector.load %arg1[%c0_5, %5, %c0_6, %c0_7] : memref<1x6x6x32xbf16, #tpu.memory_space<vmem>>, vector<1x1x6x32xbf16>
      %7 = vector.shape_cast %6 : vector<1x1x6x32xbf16> to vector<6x32xbf16>
      %8 = vector.extract_strided_slice %7 {offsets = [0, 0], sizes = [4, 32], strides = [1, 1]} : vector<6x32xbf16> to vector<4x32xbf16>
      %c0_8 = arith.constant 0 : index
      %c0_9 = arith.constant 0 : index
      %c0_10 = arith.constant 0 : index
      %9 = vector.load %arg2[%c0_8, %c0_9, %c0_10] : memref<9x32x48xbf16, #tpu.memory_space<vmem>>, vector<1x32x48xbf16>
      %10 = vector.shape_cast %9 : vector<1x32x48xbf16> to vector<32x48xbf16>
      %cst_11 = arith.constant dense<0.000000e+00> : vector<4x48xf32>
      %11 = tpu.matmul %8, %10, %cst_11 {dimension_numbers = #tpu.dot_dimension_numbers<[1], [0], [0], [1], [0, 0, 1, 1], [], []>} : vector<4x32xbf16>, vector<32x48xbf16>, vector<4x48xf32> -> vector<4x48xf32>
      %12 = arith.addf %3, %11 : vector<4x48xf32>
      %13 = vector.extract_strided_slice %7 {offsets = [1, 0], sizes = [4, 32], strides = [1, 1]} : vector<6x32xbf16> to vector<4x32xbf16>
      %c1 = arith.constant 1 : index
      %c0_12 = arith.constant 0 : index
      %c0_13 = arith.constant 0 : index
      %14 = vector.load %arg2[%c1, %c0_12, %c0_13] : memref<9x32x48xbf16, #tpu.memory_space<vmem>>, vector<1x32x48xbf16>
      %15 = vector.shape_cast %14 : vector<1x32x48xbf16> to vector<32x48xbf16>
      %cst_14 = arith.constant dense<0.000000e+00> : vector<4x48xf32>
      %16 = tpu.matmul %13, %15, %cst_14 {dimension_numbers = #tpu.dot_dimension_numbers<[1], [0], [0], [1], [0, 0, 1, 1], [], []>} : vector<4x32xbf16>, vector<32x48xbf16>, vector<4x48xf32> -> vector<4x48xf32>
      %17 = arith.addf %12, %16 : vector<4x48xf32>
      %18 = vector.extract_strided_slice %7 {offsets = [2, 0], sizes = [4, 32], strides = [1, 1]} : vector<6x32xbf16> to vector<4x32xbf16>
      %c2 = arith.constant 2 : index
      %c0_15 = arith.constant 0 : index
      %c0_16 = arith.constant 0 : index
      %19 = vector.load %arg2[%c2, %c0_15, %c0_16] : memref<9x32x48xbf16, #tpu.memory_space<vmem>>, vector<1x32x48xbf16>
      %20 = vector.shape_cast %19 : vector<1x32x48xbf16> to vector<32x48xbf16>
      %cst_17 = arith.constant dense<0.000000e+00> : vector<4x48xf32>
      %21 = tpu.matmul %18, %20, %cst_17 {dimension_numbers = #tpu.dot_dimension_numbers<[1], [0], [0], [1], [0, 0, 1, 1], [], []>} : vector<4x32xbf16>, vector<32x48xbf16>, vector<4x48xf32> -> vector<4x48xf32>
      %22 = arith.addf %17, %21 : vector<4x48xf32>
      %c1_i32_18 = arith.constant 1 : i32
      %23 = arith.addi %arg6, %c1_i32_18 : i32
      %c0_19 = arith.constant 0 : index
      %24 = arith.index_cast %23 : i32 to index
      %c0_20 = arith.constant 0 : index
      %c0_21 = arith.constant 0 : index
      %25 = vector.load %arg1[%c0_19, %24, %c0_20, %c0_21] : memref<1x6x6x32xbf16, #tpu.memory_space<vmem>>, vector<1x1x6x32xbf16>
      %26 = vector.shape_cast %25 : vector<1x1x6x32xbf16> to vector<6x32xbf16>
      %27 = vector.extract_strided_slice %26 {offsets = [0, 0], sizes = [4, 32], strides = [1, 1]} : vector<6x32xbf16> to vector<4x32xbf16>
      %c3 = arith.constant 3 : index
      %c0_22 = arith.constant 0 : index
      %c0_23 = arith.constant 0 : index
      %28 = vector.load %arg2[%c3, %c0_22, %c0_23] : memref<9x32x48xbf16, #tpu.memory_space<vmem>>, vector<1x32x48xbf16>
      %29 = vector.shape_cast %28 : vector<1x32x48xbf16> to vector<32x48xbf16>
      %cst_24 = arith.constant dense<0.000000e+00> : vector<4x48xf32>
      %30 = tpu.matmul %27, %29, %cst_24 {dimension_numbers = #tpu.dot_dimension_numbers<[1], [0], [0], [1], [0, 0, 1, 1], [], []>} : vector<4x32xbf16>, vector<32x48xbf16>, vector<4x48xf32> -> vector<4x48xf32>
      %31 = arith.addf %22, %30 : vector<4x48xf32>
      %32 = vector.extract_strided_slice %26 {offsets = [1, 0], sizes = [4, 32], strides = [1, 1]} : vector<6x32xbf16> to vector<4x32xbf16>
      %c4 = arith.constant 4 : index
      %c0_25 = arith.constant 0 : index
      %c0_26 = arith.constant 0 : index
      %33 = vector.load %arg2[%c4, %c0_25, %c0_26] : memref<9x32x48xbf16, #tpu.memory_space<vmem>>, vector<1x32x48xbf16>
      %34 = vector.shape_cast %33 : vector<1x32x48xbf16> to vector<32x48xbf16>
      %cst_27 = arith.constant dense<0.000000e+00> : vector<4x48xf32>
      %35 = tpu.matmul %32, %34, %cst_27 {dimension_numbers = #tpu.dot_dimension_numbers<[1], [0], [0], [1], [0, 0, 1, 1], [], []>} : vector<4x32xbf16>, vector<32x48xbf16>, vector<4x48xf32> -> vector<4x48xf32>
      %36 = arith.addf %31, %35 : vector<4x48xf32>
      %37 = vector.extract_strided_slice %26 {offsets = [2, 0], sizes = [4, 32], strides = [1, 1]} : vector<6x32xbf16> to vector<4x32xbf16>
      %c5 = arith.constant 5 : index
      %c0_28 = arith.constant 0 : index
      %c0_29 = arith.constant 0 : index
      %38 = vector.load %arg2[%c5, %c0_28, %c0_29] : memref<9x32x48xbf16, #tpu.memory_space<vmem>>, vector<1x32x48xbf16>
      %39 = vector.shape_cast %38 : vector<1x32x48xbf16> to vector<32x48xbf16>
      %cst_30 = arith.constant dense<0.000000e+00> : vector<4x48xf32>
      %40 = tpu.matmul %37, %39, %cst_30 {dimension_numbers = #tpu.dot_dimension_numbers<[1], [0], [0], [1], [0, 0, 1, 1], [], []>} : vector<4x32xbf16>, vector<32x48xbf16>, vector<4x48xf32> -> vector<4x48xf32>
      %41 = arith.addf %36, %40 : vector<4x48xf32>
      %c2_i32 = arith.constant 2 : i32
      %42 = arith.addi %arg6, %c2_i32 : i32
      %c0_31 = arith.constant 0 : index
      %43 = arith.index_cast %42 : i32 to index
      %c0_32 = arith.constant 0 : index
      %c0_33 = arith.constant 0 : index
      %44 = vector.load %arg1[%c0_31, %43, %c0_32, %c0_33] : memref<1x6x6x32xbf16, #tpu.memory_space<vmem>>, vector<1x1x6x32xbf16>
      %45 = vector.shape_cast %44 : vector<1x1x6x32xbf16> to vector<6x32xbf16>
      %46 = vector.extract_strided_slice %45 {offsets = [0, 0], sizes = [4, 32], strides = [1, 1]} : vector<6x32xbf16> to vector<4x32xbf16>
      %c6 = arith.constant 6 : index
      %c0_34 = arith.constant 0 : index
      %c0_35 = arith.constant 0 : index
      %47 = vector.load %arg2[%c6, %c0_34, %c0_35] : memref<9x32x48xbf16, #tpu.memory_space<vmem>>, vector<1x32x48xbf16>
      %48 = vector.shape_cast %47 : vector<1x32x48xbf16> to vector<32x48xbf16>
      %cst_36 = arith.constant dense<0.000000e+00> : vector<4x48xf32>
      %49 = tpu.matmul %46, %48, %cst_36 {dimension_numbers = #tpu.dot_dimension_numbers<[1], [0], [0], [1], [0, 0, 1, 1], [], []>} : vector<4x32xbf16>, vector<32x48xbf16>, vector<4x48xf32> -> vector<4x48xf32>
      %50 = arith.addf %41, %49 : vector<4x48xf32>
      %51 = vector.extract_strided_slice %45 {offsets = [1, 0], sizes = [4, 32], strides = [1, 1]} : vector<6x32xbf16> to vector<4x32xbf16>
      %c7 = arith.constant 7 : index
      %c0_37 = arith.constant 0 : index
      %c0_38 = arith.constant 0 : index
      %52 = vector.load %arg2[%c7, %c0_37, %c0_38] : memref<9x32x48xbf16, #tpu.memory_space<vmem>>, vector<1x32x48xbf16>
      %53 = vector.shape_cast %52 : vector<1x32x48xbf16> to vector<32x48xbf16>
      %cst_39 = arith.constant dense<0.000000e+00> : vector<4x48xf32>
      %54 = tpu.matmul %51, %53, %cst_39 {dimension_numbers = #tpu.dot_dimension_numbers<[1], [0], [0], [1], [0, 0, 1, 1], [], []>} : vector<4x32xbf16>, vector<32x48xbf16>, vector<4x48xf32> -> vector<4x48xf32>
      %55 = arith.addf %50, %54 : vector<4x48xf32>
      %56 = vector.extract_strided_slice %45 {offsets = [2, 0], sizes = [4, 32], strides = [1, 1]} : vector<6x32xbf16> to vector<4x32xbf16>
      %c8 = arith.constant 8 : index
      %c0_40 = arith.constant 0 : index
      %c0_41 = arith.constant 0 : index
      %57 = vector.load %arg2[%c8, %c0_40, %c0_41] : memref<9x32x48xbf16, #tpu.memory_space<vmem>>, vector<1x32x48xbf16>
      %58 = vector.shape_cast %57 : vector<1x32x48xbf16> to vector<32x48xbf16>
      %cst_42 = arith.constant dense<0.000000e+00> : vector<4x48xf32>
      %59 = tpu.matmul %56, %58, %cst_42 {dimension_numbers = #tpu.dot_dimension_numbers<[1], [0], [0], [1], [0, 0, 1, 1], [], []>} : vector<4x32xbf16>, vector<32x48xbf16>, vector<4x48xf32> -> vector<4x48xf32>
      %60 = arith.addf %55, %59 : vector<4x48xf32>
      %61 = vector.broadcast %0 : vector<1x48xf32> to vector<4x48xf32>
      %62 = arith.mulf %60, %61 : vector<4x48xf32>
      %63 = vector.broadcast %1 : vector<1x48xf32> to vector<4x48xf32>
      %64 = arith.addf %62, %63 : vector<4x48xf32>
      %65 = arith.truncf %64 : vector<4x48xf32> to vector<4x48xbf16>
      %c0_43 = arith.constant 0 : index
      %66 = arith.index_cast %arg6 : i32 to index
      %c0_44 = arith.constant 0 : index
      %c0_45 = arith.constant 0 : index
      %67 = vector.load %arg5[%c0_43, %66, %c0_44, %c0_45] : memref<1x4x4x48xbf16, #tpu.memory_space<vmem>>, vector<1x1x4x48xbf16>
      %68 = vector.shape_cast %67 : vector<1x1x4x48xbf16> to vector<4x48xbf16>
      %69 = vector.shape_cast %65 : vector<4x48xbf16> to vector<1x1x4x48xbf16>
      tpu.vector_store %arg5[%c0_43, %66, %c0_44, %c0_45], %69 {strides = array<i32>} : memref<1x4x4x48xbf16, #tpu.memory_space<vmem>>, vector<1x1x4x48xbf16>,
    }
    %c4_i32_3 = arith.constant 4 : i32
    return
  }
  func.func @transform_0(%arg0: i32) -> (i32, i32, i32, i32) {
    %c0_i32 = arith.constant 0 : i32
    %c0_i32_0 = arith.constant 0 : i32
    %c0_i32_1 = arith.constant 0 : i32
    %c0_i32_2 = arith.constant 0 : i32
    return %arg0, %c0_i32, %c0_i32_0, %c0_i32_1 : i32, i32, i32, i32
  }
  func.func @transform_1(%arg0: i32) -> (i32, i32, i32) {
    %c0_i32 = arith.constant 0 : i32
    %c0_i32_0 = arith.constant 0 : i32
    %c0_i32_1 = arith.constant 0 : i32
    %c0_i32_2 = arith.constant 0 : i32
    return %c0_i32, %c0_i32_0, %c0_i32_1 : i32, i32, i32
  }
  func.func @transform_2(%arg0: i32) -> (i32, i32) {
    %c0_i32 = arith.constant 0 : i32
    %c0_i32_0 = arith.constant 0 : i32
    %c0_i32_1 = arith.constant 0 : i32
    return %c0_i32, %c0_i32_0 : i32, i32
  }
  func.func @transform_3(%arg0: i32) -> (i32, i32) {
    %c0_i32 = arith.constant 0 : i32
    %c0_i32_0 = arith.constant 0 : i32
    %c0_i32_1 = arith.constant 0 : i32
    return %c0_i32, %c0_i32_0 : i32, i32
  }
  func.func @transform_4(%arg0: i32) -> (i32, i32, i32, i32) {
    %c0_i32 = arith.constant 0 : i32
    %c0_i32_0 = arith.constant 0 : i32
    %c0_i32_1 = arith.constant 0 : i32
    %c0_i32_2 = arith.constant 0 : i32
    return %arg0, %c0_i32, %c0_i32_0, %c0_i32_1 : i32, i32, i32, i32
  }
}

module attributes {stable_mosaic.version = 11 : i64} {
  func.func @_attn_kernel(%arg0: i32, %arg1: memref<1x16x48xbf16, #tpu.memory_space<vmem>>, %arg2: memref<2x16x16xf32, #tpu.memory_space<vmem>>, %arg3: memref<1x16x16xbf16, #tpu.memory_space<vmem>>) attributes {dimension_semantics = [#tpu.dimension_semantics<parallel>], iteration_bounds = array<i64: 2>, scalar_prefetch = 0 : i64, scratch_operands = 0 : i64, tpu.core_type = #tpu.core_type<tc>, window_params = [{transform_indices = @transform_0, window_bounds = array<i64: 1, 16, 48>}, {pipeline_mode = #tpu.pipeline_mode<synchronous>, transform_indices = @transform_1, window_bounds = array<i64: 2, 16, 16>}, {transform_indices = @transform_2, window_bounds = array<i64: 1, 16, 16>}]} {
    %c0 = arith.constant 0 : index
    %c0_0 = arith.constant 0 : index
    %c0_1 = arith.constant 0 : index
    %0 = vector.load %arg1[%c0, %c0_0, %c0_1] : memref<1x16x48xbf16, #tpu.memory_space<vmem>>, vector<1x16x8xbf16>
    %1 = vector.shape_cast %0 : vector<1x16x8xbf16> to vector<16x8xbf16>
    %c0_2 = arith.constant 0 : index
    %c0_3 = arith.constant 0 : index
    %c16 = arith.constant 16 : index
    %2 = vector.load %arg1[%c0_2, %c0_3, %c16] : memref<1x16x48xbf16, #tpu.memory_space<vmem>>, vector<1x16x8xbf16>
    %3 = vector.shape_cast %2 : vector<1x16x8xbf16> to vector<16x8xbf16>
    %c0_4 = arith.constant 0 : index
    %c0_5 = arith.constant 0 : index
    %c32 = arith.constant 32 : index
    %4 = vector.load %arg1[%c0_4, %c0_5, %c32] : memref<1x16x48xbf16, #tpu.memory_space<vmem>>, vector<1x16x8xbf16>
    %5 = vector.shape_cast %4 : vector<1x16x8xbf16> to vector<16x8xbf16>
    %6 = tpu.transpose %3, [1, 0] : vector<16x8xbf16> -> vector<8x16xbf16>
    %cst = arith.constant dense<0.000000e+00> : vector<16x16xf32>
    %7 = tpu.matmul %1, %6, %cst {dimension_numbers = #tpu.dot_dimension_numbers<[1], [0], [0], [1], [0, 0, 1, 1], [], []>} : vector<16x8xbf16>, vector<8x16xbf16>, vector<16x16xf32> -> vector<16x16xf32>
    %8 = arith.extf %1 : vector<16x8xbf16> to vector<16x8xf32>
    %9 = arith.extf %6 : vector<8x16xbf16> to vector<8x16xf32>
    %10 = arith.mulf %8, %8 : vector<16x8xf32>
    %cst_6 = arith.constant dense<0.000000e+00> : vector<16xf32>
    %11 = vector.multi_reduction <add>, %10, %cst_6 [1] : vector<16x8xf32> to vector<16xf32>
    %12 = vector.shape_cast %11 : vector<16xf32> to vector<16x1xf32>
    %cst_7 = arith.constant 9.99999974E-5 : f32
    %13 = vector.broadcast %cst_7 : f32 to vector<16x1xf32>
    %14 = arith.addf %12, %13 : vector<16x1xf32>
    %15 = math.sqrt %14 : vector<16x1xf32>
    %16 = arith.mulf %9, %9 : vector<8x16xf32>
    %cst_8 = arith.constant dense<0.000000e+00> : vector<16xf32>
    %17 = vector.multi_reduction <add>, %16, %cst_8 [0] : vector<8x16xf32> to vector<16xf32>
    %18 = vector.shape_cast %17 : vector<16xf32> to vector<1x16xf32>
    %cst_9 = arith.constant 9.99999974E-5 : f32
    %19 = vector.broadcast %cst_9 : f32 to vector<1x16xf32>
    %20 = arith.addf %18, %19 : vector<1x16xf32>
    %21 = math.sqrt %20 : vector<1x16xf32>
    %22 = vector.broadcast %15 : vector<16x1xf32> to vector<16x16xf32>
    %23 = vector.broadcast %21 : vector<1x16xf32> to vector<16x16xf32>
    %24 = arith.mulf %22, %23 : vector<16x16xf32>
    %cst_10 = arith.constant 9.99999974E-5 : f32
    %25 = vector.broadcast %cst_10 : f32 to vector<16x16xf32>
    %26 = arith.addf %24, %25 : vector<16x16xf32>
    %27 = tpu.reciprocal %26 {approx = true} : vector<16x16xf32> -> vector<16x16xf32>
    %28 = arith.mulf %7, %27 : vector<16x16xf32>
    %c0_11 = arith.constant 0 : index
    %c0_12 = arith.constant 0 : index
    %c0_13 = arith.constant 0 : index
    %29 = vector.load %arg2[%c0_11, %c0_12, %c0_13] : memref<2x16x16xf32, #tpu.memory_space<vmem>>, vector<1x16x16xf32>
    %30 = vector.shape_cast %29 : vector<1x16x16xf32> to vector<16x16xf32>
    %31 = arith.mulf %28, %30 : vector<16x16xf32>
    %32 = arith.truncf %31 : vector<16x16xf32> to vector<16x16xbf16>
    %cst_14 = arith.constant dense<0.000000e+00> : vector<16x8xf32>
    %33 = tpu.matmul %32, %5, %cst_14 {dimension_numbers = #tpu.dot_dimension_numbers<[1], [0], [0], [1], [0, 0, 1, 1], [], []>} : vector<16x16xbf16>, vector<16x8xbf16>, vector<16x8xf32> -> vector<16x8xf32>
    %c0_15 = arith.constant 0 : index
    %c0_16 = arith.constant 0 : index
    %c8 = arith.constant 8 : index
    %34 = vector.load %arg1[%c0_15, %c0_16, %c8] : memref<1x16x48xbf16, #tpu.memory_space<vmem>>, vector<1x16x8xbf16>
    %35 = vector.shape_cast %34 : vector<1x16x8xbf16> to vector<16x8xbf16>
    %c0_17 = arith.constant 0 : index
    %c0_18 = arith.constant 0 : index
    %c24 = arith.constant 24 : index
    %36 = vector.load %arg1[%c0_17, %c0_18, %c24] : memref<1x16x48xbf16, #tpu.memory_space<vmem>>, vector<1x16x8xbf16>
    %37 = vector.shape_cast %36 : vector<1x16x8xbf16> to vector<16x8xbf16>
    %c0_19 = arith.constant 0 : index
    %c0_20 = arith.constant 0 : index
    %c40 = arith.constant 40 : index
    %38 = vector.load %arg1[%c0_19, %c0_20, %c40] : memref<1x16x48xbf16, #tpu.memory_space<vmem>>, vector<1x16x8xbf16>
    %39 = vector.shape_cast %38 : vector<1x16x8xbf16> to vector<16x8xbf16>
    %40 = tpu.transpose %37, [1, 0] : vector<16x8xbf16> -> vector<8x16xbf16>
    %cst_21 = arith.constant dense<0.000000e+00> : vector<16x16xf32>
    %41 = tpu.matmul %35, %40, %cst_21 {dimension_numbers = #tpu.dot_dimension_numbers<[1], [0], [0], [1], [0, 0, 1, 1], [], []>} : vector<16x8xbf16>, vector<8x16xbf16>, vector<16x16xf32> -> vector<16x16xf32>
    %42 = arith.extf %35 : vector<16x8xbf16> to vector<16x8xf32>
    %43 = arith.extf %40 : vector<8x16xbf16> to vector<8x16xf32>
    %44 = arith.mulf %42, %42 : vector<16x8xf32>
    %cst_22 = arith.constant dense<0.000000e+00> : vector<16xf32>
    %45 = vector.multi_reduction <add>, %44, %cst_22 [1] : vector<16x8xf32> to vector<16xf32>
    %46 = vector.shape_cast %45 : vector<16xf32> to vector<16x1xf32>
    %cst_23 = arith.constant 9.99999974E-5 : f32
    %47 = vector.broadcast %cst_23 : f32 to vector<16x1xf32>
    %48 = arith.addf %46, %47 : vector<16x1xf32>
    %49 = math.sqrt %48 : vector<16x1xf32>
    %50 = arith.mulf %43, %43 : vector<8x16xf32>
    %cst_24 = arith.constant dense<0.000000e+00> : vector<16xf32>
    %51 = vector.multi_reduction <add>, %50, %cst_24 [0] : vector<8x16xf32> to vector<16xf32>
    %52 = vector.shape_cast %51 : vector<16xf32> to vector<1x16xf32>
    %cst_25 = arith.constant 9.99999974E-5 : f32
    %53 = vector.broadcast %cst_25 : f32 to vector<1x16xf32>
    %54 = arith.addf %52, %53 : vector<1x16xf32>
    %55 = math.sqrt %54 : vector<1x16xf32>
    %56 = vector.broadcast %49 : vector<16x1xf32> to vector<16x16xf32>
    %57 = vector.broadcast %55 : vector<1x16xf32> to vector<16x16xf32>
    %58 = arith.mulf %56, %57 : vector<16x16xf32>
    %cst_26 = arith.constant 9.99999974E-5 : f32
    %59 = vector.broadcast %cst_26 : f32 to vector<16x16xf32>
    %60 = arith.addf %58, %59 : vector<16x16xf32>
    %61 = tpu.reciprocal %60 {approx = true} : vector<16x16xf32> -> vector<16x16xf32>
    %62 = arith.mulf %41, %61 : vector<16x16xf32>
    %c1 = arith.constant 1 : index
    %c0_27 = arith.constant 0 : index
    %c0_28 = arith.constant 0 : index
    %63 = vector.load %arg2[%c1, %c0_27, %c0_28] : memref<2x16x16xf32, #tpu.memory_space<vmem>>, vector<1x16x16xf32>
    %64 = vector.shape_cast %63 : vector<1x16x16xf32> to vector<16x16xf32>
    %65 = arith.mulf %62, %64 : vector<16x16xf32>
    %66 = arith.truncf %65 : vector<16x16xf32> to vector<16x16xbf16>
    %cst_29 = arith.constant dense<0.000000e+00> : vector<16x8xf32>
    %67 = tpu.matmul %66, %39, %cst_29 {dimension_numbers = #tpu.dot_dimension_numbers<[1], [0], [0], [1], [0, 0, 1, 1], [], []>} : vector<16x16xbf16>, vector<16x8xbf16>, vector<16x8xf32> -> vector<16x8xf32>
    %68 = tpu.concatenate %33, %67 in 1 : vector<16x8xf32>, vector<16x8xf32> -> vector<16x16xf32>
    %69 = arith.truncf %68 : vector<16x16xf32> to vector<16x16xbf16>
    %c0_30 = arith.constant 0 : index
    %c0_31 = arith.constant 0 : index
    %c0_32 = arith.constant 0 : index
    %70 = vector.load %arg3[%c0_30, %c0_31, %c0_32] : memref<1x16x16xbf16, #tpu.memory_space<vmem>>, vector<1x16x16xbf16>
    %71 = vector.shape_cast %70 : vector<1x16x16xbf16> to vector<16x16xbf16>
    %72 = vector.shape_cast %69 : vector<16x16xbf16> to vector<1x16x16xbf16>
    tpu.vector_store %arg3[%c0_30, %c0_31, %c0_32], %72 {strides = array<i32>} : memref<1x16x16xbf16, #tpu.memory_space<vmem>>, vector<1x16x16xbf16>,
    return
  }
  func.func @transform_0(%arg0: i32) -> (i32, i32, i32) {
    %c0_i32 = arith.constant 0 : i32
    %c0_i32_0 = arith.constant 0 : i32
    %c0_i32_1 = arith.constant 0 : i32
    return %arg0, %c0_i32, %c0_i32_0 : i32, i32, i32
  }
  func.func @transform_1(%arg0: i32) -> (i32, i32, i32) {
    %c0_i32 = arith.constant 0 : i32
    %c0_i32_0 = arith.constant 0 : i32
    %c0_i32_1 = arith.constant 0 : i32
    %c0_i32_2 = arith.constant 0 : i32
    return %c0_i32, %c0_i32_0, %c0_i32_1 : i32, i32, i32
  }
  func.func @transform_2(%arg0: i32) -> (i32, i32, i32) {
    %c0_i32 = arith.constant 0 : i32
    %c0_i32_0 = arith.constant 0 : i32
    %c0_i32_1 = arith.constant 0 : i32
    return %arg0, %c0_i32, %c0_i32_0 : i32, i32, i32
  }
}

module attributes {stable_mosaic.version = 11 : i64} {
  func.func @_mm_kernel(%arg0: i32, %arg1: i32, %arg2: i32, %arg3: memref<32x128xbf16, #tpu.memory_space<vmem>>, %arg4: memref<128x128xbf16, #tpu.memory_space<vmem>>, %arg5: memref<1x128xf32, #tpu.memory_space<vmem>>, %arg6: memref<1x128xf32, #tpu.memory_space<vmem>>, %arg7: memref<32x128xbf16, #tpu.memory_space<vmem>>, %arg8: memref<32x128xbf16, #tpu.memory_space<vmem>>, %arg9: memref<32x128xf32, #tpu.memory_space<vmem>>) attributes {dimension_semantics = [#tpu.dimension_semantics<parallel>, #tpu.dimension_semantics<parallel>, #tpu.dimension_semantics<arbitrary>], iteration_bounds = array<i64: 1, 1, 1>, scalar_prefetch = 0 : i64, scratch_operands = 1 : i64, tpu.core_type = #tpu.core_type<tc>, window_params = [{transform_indices = @transform_0, window_bounds = array<i64: 32, 128>}, {transform_indices = @transform_1, window_bounds = array<i64: 128, 128>}, {transform_indices = @transform_2, window_bounds = array<i64: 1, 128>}, {transform_indices = @transform_3, window_bounds = array<i64: 1, 128>}, {transform_indices = @transform_4, window_bounds = array<i64: 32, 128>}, {transform_indices = @transform_5, window_bounds = array<i64: 32, 128>}]} {
    %c0_i32 = arith.constant 0 : i32
    %0 = arith.cmpi eq, %arg2, %c0_i32 : i32
    %1 = arith.extui %0 : i1 to i32
    %c0_i32_0 = arith.constant 0 : i32
    %2 = arith.cmpi ne, %1, %c0_i32_0 : i32
    scf.if %2 {
      %cst_10 = arith.constant 0.000000e+00 : f32
      %12 = vector.broadcast %cst_10 : f32 to vector<32x128xf32>
      %c0_11 = arith.constant 0 : index
      %c0_12 = arith.constant 0 : index
      %13 = vector.load %arg9[%c0_11, %c0_12] : memref<32x128xf32, #tpu.memory_space<vmem>>, vector<32x128xf32>
      tpu.vector_store %arg9[%c0_11, %c0_12], %12 {strides = array<i32>} : memref<32x128xf32, #tpu.memory_space<vmem>>, vector<32x128xf32>,
    } else {
    }
    %c0 = arith.constant 0 : index
    %c0_1 = arith.constant 0 : index
    %3 = vector.load %arg9[%c0, %c0_1] : memref<32x128xf32, #tpu.memory_space<vmem>>, vector<32x128xf32>
    %c0_2 = arith.constant 0 : index
    %c0_3 = arith.constant 0 : index
    %4 = vector.load %arg3[%c0_2, %c0_3] : memref<32x128xbf16, #tpu.memory_space<vmem>>, vector<32x128xbf16>
    %c0_4 = arith.constant 0 : index
    %c0_5 = arith.constant 0 : index
    %5 = vector.load %arg4[%c0_4, %c0_5] : memref<128x128xbf16, #tpu.memory_space<vmem>>, vector<128x128xbf16>
    %cst = arith.constant dense<0.000000e+00> : vector<32x128xf32>
    %6 = tpu.matmul %4, %5, %cst {dimension_numbers = #tpu.dot_dimension_numbers<[1], [0], [0], [1], [0, 0, 1, 1], [], []>} : vector<32x128xbf16>, vector<128x128xbf16>, vector<32x128xf32> -> vector<32x128xf32>
    %7 = arith.addf %3, %6 : vector<32x128xf32>
    %c0_6 = arith.constant 0 : index
    %c0_7 = arith.constant 0 : index
    %8 = vector.load %arg9[%c0_6, %c0_7] : memref<32x128xf32, #tpu.memory_space<vmem>>, vector<32x128xf32>
    tpu.vector_store %arg9[%c0_6, %c0_7], %7 {strides = array<i32>} : memref<32x128xf32, #tpu.memory_space<vmem>>, vector<32x128xf32>,
    %c0_i32_8 = arith.constant 0 : i32
    %9 = arith.cmpi eq, %arg2, %c0_i32_8 : i32
    %10 = arith.extui %9 : i1 to i32
    %c0_i32_9 = arith.constant 0 : i32
    %11 = arith.cmpi ne, %10, %c0_i32_9 : i32
    scf.if %11 {
      %c0_10 = arith.constant 0 : index
      %c0_11 = arith.constant 0 : index
      %12 = vector.load %arg9[%c0_10, %c0_11] : memref<32x128xf32, #tpu.memory_space<vmem>>, vector<32x128xf32>
      %c0_12 = arith.constant 0 : index
      %c0_13 = arith.constant 0 : index
      %13 = vector.load %arg5[%c0_12, %c0_13] : memref<1x128xf32, #tpu.memory_space<vmem>>, vector<1x128xf32>
      %14 = vector.broadcast %13 : vector<1x128xf32> to vector<32x128xf32>
      %15 = arith.mulf %12, %14 : vector<32x128xf32>
      %c0_14 = arith.constant 0 : index
      %c0_15 = arith.constant 0 : index
      %16 = vector.load %arg6[%c0_14, %c0_15] : memref<1x128xf32, #tpu.memory_space<vmem>>, vector<1x128xf32>
      %17 = vector.broadcast %16 : vector<1x128xf32> to vector<32x128xf32>
      %18 = arith.addf %15, %17 : vector<32x128xf32>
      %cst_16 = arith.constant 0.000000e+00 : f32
      %19 = vector.broadcast %cst_16 : f32 to vector<32x128xf32>
      %20 = arith.maximumf %18, %19 : vector<32x128xf32>
      %c0_17 = arith.constant 0 : index
      %c0_18 = arith.constant 0 : index
      %21 = vector.load %arg7[%c0_17, %c0_18] : memref<32x128xbf16, #tpu.memory_space<vmem>>, vector<32x128xbf16>
      %22 = arith.extf %21 : vector<32x128xbf16> to vector<32x128xf32>
      %23 = arith.addf %20, %22 : vector<32x128xf32>
      %24 = arith.truncf %23 : vector<32x128xf32> to vector<32x128xbf16>
      %c0_19 = arith.constant 0 : index
      %c0_20 = arith.constant 0 : index
      %25 = vector.load %arg8[%c0_19, %c0_20] : memref<32x128xbf16, #tpu.memory_space<vmem>>, vector<32x128xbf16>
      tpu.vector_store %arg8[%c0_19, %c0_20], %24 {strides = array<i32>} : memref<32x128xbf16, #tpu.memory_space<vmem>>, vector<32x128xbf16>,
    } else {
    }
    return
  }
  func.func @transform_0(%arg0: i32, %arg1: i32, %arg2: i32) -> (i32, i32) {
    %c0_i32 = arith.constant 0 : i32
    return %arg0, %arg2 : i32, i32
  }
  func.func @transform_1(%arg0: i32, %arg1: i32, %arg2: i32) -> (i32, i32) {
    %c0_i32 = arith.constant 0 : i32
    return %arg2, %arg1 : i32, i32
  }
  func.func @transform_2(%arg0: i32, %arg1: i32, %arg2: i32) -> (i32, i32) {
    %c0_i32 = arith.constant 0 : i32
    %c0_i32_0 = arith.constant 0 : i32
    return %c0_i32, %arg1 : i32, i32
  }
  func.func @transform_3(%arg0: i32, %arg1: i32, %arg2: i32) -> (i32, i32) {
    %c0_i32 = arith.constant 0 : i32
    %c0_i32_0 = arith.constant 0 : i32
    return %c0_i32, %arg1 : i32, i32
  }
  func.func @transform_4(%arg0: i32, %arg1: i32, %arg2: i32) -> (i32, i32) {
    %c0_i32 = arith.constant 0 : i32
    return %arg0, %arg1 : i32, i32
  }
  func.func @transform_5(%arg0: i32, %arg1: i32, %arg2: i32) -> (i32, i32) {
    %c0_i32 = arith.constant 0 : i32
    return %arg0, %arg1 : i32, i32
  }
}

module attributes {stable_mosaic.version = 11 : i64} {
  func.func @_ff_kernel(%arg0: i32, %arg1: memref<32x32xbf16, #tpu.memory_space<vmem>>, %arg2: memref<32x64xbf16, #tpu.memory_space<vmem>>, %arg3: memref<1x64xf32, #tpu.memory_space<vmem>>, %arg4: memref<1x64xf32, #tpu.memory_space<vmem>>, %arg5: memref<64x32xbf16, #tpu.memory_space<vmem>>, %arg6: memref<1x32xf32, #tpu.memory_space<vmem>>, %arg7: memref<1x32xf32, #tpu.memory_space<vmem>>, %arg8: memref<32x32xbf16, #tpu.memory_space<vmem>>) attributes {dimension_semantics = [#tpu.dimension_semantics<parallel>], iteration_bounds = array<i64: 1>, scalar_prefetch = 0 : i64, scratch_operands = 0 : i64, tpu.core_type = #tpu.core_type<tc>, window_params = [{transform_indices = @transform_0, window_bounds = array<i64: 32, 32>}, {pipeline_mode = #tpu.pipeline_mode<synchronous>, transform_indices = @transform_1, window_bounds = array<i64: 32, 64>}, {pipeline_mode = #tpu.pipeline_mode<synchronous>, transform_indices = @transform_2, window_bounds = array<i64: 1, 64>}, {pipeline_mode = #tpu.pipeline_mode<synchronous>, transform_indices = @transform_3, window_bounds = array<i64: 1, 64>}, {pipeline_mode = #tpu.pipeline_mode<synchronous>, transform_indices = @transform_4, window_bounds = array<i64: 64, 32>}, {pipeline_mode = #tpu.pipeline_mode<synchronous>, transform_indices = @transform_5, window_bounds = array<i64: 1, 32>}, {pipeline_mode = #tpu.pipeline_mode<synchronous>, transform_indices = @transform_6, window_bounds = array<i64: 1, 32>}, {transform_indices = @transform_7, window_bounds = array<i64: 32, 32>}]} {
    %c0 = arith.constant 0 : index
    %c0_0 = arith.constant 0 : index
    %0 = vector.load %arg1[%c0, %c0_0] : memref<32x32xbf16, #tpu.memory_space<vmem>>, vector<32x32xbf16>
    %c0_1 = arith.constant 0 : index
    %c0_2 = arith.constant 0 : index
    %1 = vector.load %arg2[%c0_1, %c0_2] : memref<32x64xbf16, #tpu.memory_space<vmem>>, vector<32x64xbf16>
    %cst = arith.constant dense<0.000000e+00> : vector<32x64xf32>
    %2 = tpu.matmul %0, %1, %cst {dimension_numbers = #tpu.dot_dimension_numbers<[1], [0], [0], [1], [0, 0, 1, 1], [], []>} : vector<32x32xbf16>, vector<32x64xbf16>, vector<32x64xf32> -> vector<32x64xf32>
    %c0_3 = arith.constant 0 : index
    %c0_4 = arith.constant 0 : index
    %3 = vector.load %arg3[%c0_3, %c0_4] : memref<1x64xf32, #tpu.memory_space<vmem>>, vector<1x64xf32>
    %4 = vector.broadcast %3 : vector<1x64xf32> to vector<32x64xf32>
    %5 = arith.mulf %2, %4 : vector<32x64xf32>
    %c0_5 = arith.constant 0 : index
    %c0_6 = arith.constant 0 : index
    %6 = vector.load %arg4[%c0_5, %c0_6] : memref<1x64xf32, #tpu.memory_space<vmem>>, vector<1x64xf32>
    %7 = vector.broadcast %6 : vector<1x64xf32> to vector<32x64xf32>
    %8 = arith.addf %5, %7 : vector<32x64xf32>
    %cst_7 = arith.constant 0.000000e+00 : f32
    %9 = vector.broadcast %cst_7 : f32 to vector<32x64xf32>
    %10 = arith.maximumf %8, %9 : vector<32x64xf32>
    %11 = arith.truncf %10 : vector<32x64xf32> to vector<32x64xbf16>
    %c0_8 = arith.constant 0 : index
    %c0_9 = arith.constant 0 : index
    %12 = vector.load %arg5[%c0_8, %c0_9] : memref<64x32xbf16, #tpu.memory_space<vmem>>, vector<64x32xbf16>
    %cst_10 = arith.constant dense<0.000000e+00> : vector<32x32xf32>
    %13 = tpu.matmul %11, %12, %cst_10 {dimension_numbers = #tpu.dot_dimension_numbers<[1], [0], [0], [1], [0, 0, 1, 1], [], []>} : vector<32x64xbf16>, vector<64x32xbf16>, vector<32x32xf32> -> vector<32x32xf32>
    %c0_11 = arith.constant 0 : index
    %c0_12 = arith.constant 0 : index
    %14 = vector.load %arg6[%c0_11, %c0_12] : memref<1x32xf32, #tpu.memory_space<vmem>>, vector<1x32xf32>
    %15 = vector.broadcast %14 : vector<1x32xf32> to vector<32x32xf32>
    %16 = arith.mulf %13, %15 : vector<32x32xf32>
    %c0_13 = arith.constant 0 : index
    %c0_14 = arith.constant 0 : index
    %17 = vector.load %arg7[%c0_13, %c0_14] : memref<1x32xf32, #tpu.memory_space<vmem>>, vector<1x32xf32>
    %18 = vector.broadcast %17 : vector<1x32xf32> to vector<32x32xf32>
    %19 = arith.addf %16, %18 : vector<32x32xf32>
    %cst_15 = arith.constant 0.000000e+00 : f32
    %20 = vector.broadcast %cst_15 : f32 to vector<32x32xf32>
    %21 = arith.maximumf %19, %20 : vector<32x32xf32>
    %22 = arith.extf %0 : vector<32x32xbf16> to vector<32x32xf32>
    %23 = arith.addf %21, %22 : vector<32x32xf32>
    %24 = arith.truncf %23 : vector<32x32xf32> to vector<32x32xbf16>
    %c0_16 = arith.constant 0 : index
    %c0_17 = arith.constant 0 : index
    %25 = vector.load %arg8[%c0_16, %c0_17] : memref<32x32xbf16, #tpu.memory_space<vmem>>, vector<32x32xbf16>
    tpu.vector_store %arg8[%c0_16, %c0_17], %24 {strides = array<i32>} : memref<32x32xbf16, #tpu.memory_space<vmem>>, vector<32x32xbf16>,
    return
  }
  func.func @transform_0(%arg0: i32) -> (i32, i32) {
    %c0_i32 = arith.constant 0 : i32
    %c0_i32_0 = arith.constant 0 : i32
    return %arg0, %c0_i32 : i32, i32
  }
  func.func @transform_1(%arg0: i32) -> (i32, i32) {
    %c0_i32 = arith.constant 0 : i32
    %c0_i32_0 = arith.constant 0 : i32
    %c0_i32_1 = arith.constant 0 : i32
    return %c0_i32, %c0_i32_0 : i32, i32
  }
  func.func @transform_2(%arg0: i32) -> (i32, i32) {
    %c0_i32 = arith.constant 0 : i32
    %c0_i32_0 = arith.constant 0 : i32
    %c0_i32_1 = arith.constant 0 : i32
    return %c0_i32, %c0_i32_0 : i32, i32
  }
  func.func @transform_3(%arg0: i32) -> (i32, i32) {
    %c0_i32 = arith.constant 0 : i32
    %c0_i32_0 = arith.constant 0 : i32
    %c0_i32_1 = arith.constant 0 : i32
    return %c0_i32, %c0_i32_0 : i32, i32
  }
  func.func @transform_4(%arg0: i32) -> (i32, i32) {
    %c0_i32 = arith.constant 0 : i32
    %c0_i32_0 = arith.constant 0 : i32
    %c0_i32_1 = arith.constant 0 : i32
    return %c0_i32, %c0_i32_0 : i32, i32
  }
  func.func @transform_5(%arg0: i32) -> (i32, i32) {
    %c0_i32 = arith.constant 0 : i32
    %c0_i32_0 = arith.constant 0 : i32
    %c0_i32_1 = arith.constant 0 : i32
    return %c0_i32, %c0_i32_0 : i32, i32
  }
  func.func @transform_6(%arg0: i32) -> (i32, i32) {
    %c0_i32 = arith.constant 0 : i32
    %c0_i32_0 = arith.constant 0 : i32
    %c0_i32_1 = arith.constant 0 : i32
    return %c0_i32, %c0_i32_0 : i32, i32
  }
  func.func @transform_7(%arg0: i32) -> (i32, i32) {
    %c0_i32 = arith.constant 0 : i32
    %c0_i32_0 = arith.constant 0 : i32
    return %arg0, %c0_i32 : i32, i32
  }
}

module attributes {stable_mosaic.version = 11 : i64} {
  func.func @_conv3x3_kernel(%arg0: i32, %arg1: memref<1x6x6x32xbf16, #tpu.memory_space<vmem>>, %arg2: memref<9x32x8xbf16, #tpu.memory_space<vmem>>, %arg3: memref<1x8xf32, #tpu.memory_space<vmem>>, %arg4: memref<1x8xf32, #tpu.memory_space<vmem>>, %arg5: memref<1x4x4x8xbf16, #tpu.memory_space<vmem>>) attributes {dimension_semantics = [#tpu.dimension_semantics<parallel>], iteration_bounds = array<i64: 2>, scalar_prefetch = 0 : i64, scratch_operands = 0 : i64, tpu.core_type = #tpu.core_type<tc>, window_params = [{transform_indices = @transform_0, window_bounds = array<i64: 1, 6, 6, 32>}, {pipeline_mode = #tpu.pipeline_mode<synchronous>, transform_indices = @transform_1, window_bounds = array<i64: 9, 32, 8>}, {pipeline_mode = #tpu.pipeline_mode<synchronous>, transform_indices = @transform_2, window_bounds = array<i64: 1, 8>}, {pipeline_mode = #tpu.pipeline_mode<synchronous>, transform_indices = @transform_3, window_bounds = array<i64: 1, 8>}, {transform_indices = @transform_4, window_bounds = array<i64: 1, 4, 4, 8>}]} {
    %c0 = arith.constant 0 : index
    %c0_0 = arith.constant 0 : index
    %0 = vector.load %arg3[%c0, %c0_0] : memref<1x8xf32, #tpu.memory_space<vmem>>, vector<1x8xf32>
    %c0_1 = arith.constant 0 : index
    %c0_2 = arith.constant 0 : index
    %1 = vector.load %arg4[%c0_1, %c0_2] : memref<1x8xf32, #tpu.memory_space<vmem>>, vector<1x8xf32>
    %c0_i32 = arith.constant 0 : i32
    %c4_i32 = arith.constant 4 : i32
    %2 = arith.addi %c0_i32, %c4_i32 : i32
    %c1_i32 = arith.constant 1 : i32
    scf.for %arg6 = %c0_i32 to %2 step %c1_i32  : i32 {
      %cst = arith.constant 0.000000e+00 : f32
      %3 = vector.broadcast %cst : f32 to vector<4x8xf32>
      %c0_i32_4 = arith.constant 0 : i32
      %4 = arith.addi %arg6, %c0_i32_4 : i32
      %c0_5 = arith.constant 0 : index
      %5 = arith.index_cast %4 : i32 to index
      %c0_6 = arith.constant 0 : index
      %c0_7 = arith.constant 0 : index
      %6 = vector.load %arg1[%c0_5, %5, %c0_6, %c0_7] : memref<1x6x6x32xbf16, #tpu.memory_space<vmem>>, vector<1x1x6x32xbf16>
      %7 = vector.shape_cast %6 : vector<1x1x6x32xbf16> to vector<6x32xbf16>
      %8 = vector.extract_strided_slice %7 {offsets = [0, 0], sizes = [4, 32], strides = [1, 1]} : vector<6x32xbf16> to vector<4x32xbf16>
      %c0_8 = arith.constant 0 : index
      %c0_9 = arith.constant 0 : index
      %c0_10 = arith.constant 0 : index
      %9 = vector.load %arg2[%c0_8, %c0_9, %c0_10] : memref<9x32x8xbf16, #tpu.memory_space<vmem>>, vector<1x32x8xbf16>
      %10 = vector.shape_cast %9 : vector<1x32x8xbf16> to vector<32x8xbf16>
      %cst_11 = arith.constant dense<0.000000e+00> : vector<4x8xf32>
      %11 = tpu.matmul %8, %10, %cst_11 {dimension_numbers = #tpu.dot_dimension_numbers<[1], [0], [0], [1], [0, 0, 1, 1], [], []>} : vector<4x32xbf16>, vector<32x8xbf16>, vector<4x8xf32> -> vector<4x8xf32>
      %12 = arith.addf %3, %11 : vector<4x8xf32>
      %13 = vector.extract_strided_slice %7 {offsets = [1, 0], sizes = [4, 32], strides = [1, 1]} : vector<6x32xbf16> to vector<4x32xbf16>
      %c1 = arith.constant 1 : index
      %c0_12 = arith.constant 0 : index
      %c0_13 = arith.constant 0 : index
      %14 = vector.load %arg2[%c1, %c0_12, %c0_13] : memref<9x32x8xbf16, #tpu.memory_space<vmem>>, vector<1x32x8xbf16>
      %15 = vector.shape_cast %14 : vector<1x32x8xbf16> to vector<32x8xbf16>
      %cst_14 = arith.constant dense<0.000000e+00> : vector<4x8xf32>
      %16 = tpu.matmul %13, %15, %cst_14 {dimension_numbers = #tpu.dot_dimension_numbers<[1], [0], [0], [1], [0, 0, 1, 1], [], []>} : vector<4x32xbf16>, vector<32x8xbf16>, vector<4x8xf32> -> vector<4x8xf32>
      %17 = arith.addf %12, %16 : vector<4x8xf32>
      %18 = vector.extract_strided_slice %7 {offsets = [2, 0], sizes = [4, 32], strides = [1, 1]} : vector<6x32xbf16> to vector<4x32xbf16>
      %c2 = arith.constant 2 : index
      %c0_15 = arith.constant 0 : index
      %c0_16 = arith.constant 0 : index
      %19 = vector.load %arg2[%c2, %c0_15, %c0_16] : memref<9x32x8xbf16, #tpu.memory_space<vmem>>, vector<1x32x8xbf16>
      %20 = vector.shape_cast %19 : vector<1x32x8xbf16> to vector<32x8xbf16>
      %cst_17 = arith.constant dense<0.000000e+00> : vector<4x8xf32>
      %21 = tpu.matmul %18, %20, %cst_17 {dimension_numbers = #tpu.dot_dimension_numbers<[1], [0], [0], [1], [0, 0, 1, 1], [], []>} : vector<4x32xbf16>, vector<32x8xbf16>, vector<4x8xf32> -> vector<4x8xf32>
      %22 = arith.addf %17, %21 : vector<4x8xf32>
      %c1_i32_18 = arith.constant 1 : i32
      %23 = arith.addi %arg6, %c1_i32_18 : i32
      %c0_19 = arith.constant 0 : index
      %24 = arith.index_cast %23 : i32 to index
      %c0_20 = arith.constant 0 : index
      %c0_21 = arith.constant 0 : index
      %25 = vector.load %arg1[%c0_19, %24, %c0_20, %c0_21] : memref<1x6x6x32xbf16, #tpu.memory_space<vmem>>, vector<1x1x6x32xbf16>
      %26 = vector.shape_cast %25 : vector<1x1x6x32xbf16> to vector<6x32xbf16>
      %27 = vector.extract_strided_slice %26 {offsets = [0, 0], sizes = [4, 32], strides = [1, 1]} : vector<6x32xbf16> to vector<4x32xbf16>
      %c3 = arith.constant 3 : index
      %c0_22 = arith.constant 0 : index
      %c0_23 = arith.constant 0 : index
      %28 = vector.load %arg2[%c3, %c0_22, %c0_23] : memref<9x32x8xbf16, #tpu.memory_space<vmem>>, vector<1x32x8xbf16>
      %29 = vector.shape_cast %28 : vector<1x32x8xbf16> to vector<32x8xbf16>
      %cst_24 = arith.constant dense<0.000000e+00> : vector<4x8xf32>
      %30 = tpu.matmul %27, %29, %cst_24 {dimension_numbers = #tpu.dot_dimension_numbers<[1], [0], [0], [1], [0, 0, 1, 1], [], []>} : vector<4x32xbf16>, vector<32x8xbf16>, vector<4x8xf32> -> vector<4x8xf32>
      %31 = arith.addf %22, %30 : vector<4x8xf32>
      %32 = vector.extract_strided_slice %26 {offsets = [1, 0], sizes = [4, 32], strides = [1, 1]} : vector<6x32xbf16> to vector<4x32xbf16>
      %c4 = arith.constant 4 : index
      %c0_25 = arith.constant 0 : index
      %c0_26 = arith.constant 0 : index
      %33 = vector.load %arg2[%c4, %c0_25, %c0_26] : memref<9x32x8xbf16, #tpu.memory_space<vmem>>, vector<1x32x8xbf16>
      %34 = vector.shape_cast %33 : vector<1x32x8xbf16> to vector<32x8xbf16>
      %cst_27 = arith.constant dense<0.000000e+00> : vector<4x8xf32>
      %35 = tpu.matmul %32, %34, %cst_27 {dimension_numbers = #tpu.dot_dimension_numbers<[1], [0], [0], [1], [0, 0, 1, 1], [], []>} : vector<4x32xbf16>, vector<32x8xbf16>, vector<4x8xf32> -> vector<4x8xf32>
      %36 = arith.addf %31, %35 : vector<4x8xf32>
      %37 = vector.extract_strided_slice %26 {offsets = [2, 0], sizes = [4, 32], strides = [1, 1]} : vector<6x32xbf16> to vector<4x32xbf16>
      %c5 = arith.constant 5 : index
      %c0_28 = arith.constant 0 : index
      %c0_29 = arith.constant 0 : index
      %38 = vector.load %arg2[%c5, %c0_28, %c0_29] : memref<9x32x8xbf16, #tpu.memory_space<vmem>>, vector<1x32x8xbf16>
      %39 = vector.shape_cast %38 : vector<1x32x8xbf16> to vector<32x8xbf16>
      %cst_30 = arith.constant dense<0.000000e+00> : vector<4x8xf32>
      %40 = tpu.matmul %37, %39, %cst_30 {dimension_numbers = #tpu.dot_dimension_numbers<[1], [0], [0], [1], [0, 0, 1, 1], [], []>} : vector<4x32xbf16>, vector<32x8xbf16>, vector<4x8xf32> -> vector<4x8xf32>
      %41 = arith.addf %36, %40 : vector<4x8xf32>
      %c2_i32 = arith.constant 2 : i32
      %42 = arith.addi %arg6, %c2_i32 : i32
      %c0_31 = arith.constant 0 : index
      %43 = arith.index_cast %42 : i32 to index
      %c0_32 = arith.constant 0 : index
      %c0_33 = arith.constant 0 : index
      %44 = vector.load %arg1[%c0_31, %43, %c0_32, %c0_33] : memref<1x6x6x32xbf16, #tpu.memory_space<vmem>>, vector<1x1x6x32xbf16>
      %45 = vector.shape_cast %44 : vector<1x1x6x32xbf16> to vector<6x32xbf16>
      %46 = vector.extract_strided_slice %45 {offsets = [0, 0], sizes = [4, 32], strides = [1, 1]} : vector<6x32xbf16> to vector<4x32xbf16>
      %c6 = arith.constant 6 : index
      %c0_34 = arith.constant 0 : index
      %c0_35 = arith.constant 0 : index
      %47 = vector.load %arg2[%c6, %c0_34, %c0_35] : memref<9x32x8xbf16, #tpu.memory_space<vmem>>, vector<1x32x8xbf16>
      %48 = vector.shape_cast %47 : vector<1x32x8xbf16> to vector<32x8xbf16>
      %cst_36 = arith.constant dense<0.000000e+00> : vector<4x8xf32>
      %49 = tpu.matmul %46, %48, %cst_36 {dimension_numbers = #tpu.dot_dimension_numbers<[1], [0], [0], [1], [0, 0, 1, 1], [], []>} : vector<4x32xbf16>, vector<32x8xbf16>, vector<4x8xf32> -> vector<4x8xf32>
      %50 = arith.addf %41, %49 : vector<4x8xf32>
      %51 = vector.extract_strided_slice %45 {offsets = [1, 0], sizes = [4, 32], strides = [1, 1]} : vector<6x32xbf16> to vector<4x32xbf16>
      %c7 = arith.constant 7 : index
      %c0_37 = arith.constant 0 : index
      %c0_38 = arith.constant 0 : index
      %52 = vector.load %arg2[%c7, %c0_37, %c0_38] : memref<9x32x8xbf16, #tpu.memory_space<vmem>>, vector<1x32x8xbf16>
      %53 = vector.shape_cast %52 : vector<1x32x8xbf16> to vector<32x8xbf16>
      %cst_39 = arith.constant dense<0.000000e+00> : vector<4x8xf32>
      %54 = tpu.matmul %51, %53, %cst_39 {dimension_numbers = #tpu.dot_dimension_numbers<[1], [0], [0], [1], [0, 0, 1, 1], [], []>} : vector<4x32xbf16>, vector<32x8xbf16>, vector<4x8xf32> -> vector<4x8xf32>
      %55 = arith.addf %50, %54 : vector<4x8xf32>
      %56 = vector.extract_strided_slice %45 {offsets = [2, 0], sizes = [4, 32], strides = [1, 1]} : vector<6x32xbf16> to vector<4x32xbf16>
      %c8 = arith.constant 8 : index
      %c0_40 = arith.constant 0 : index
      %c0_41 = arith.constant 0 : index
      %57 = vector.load %arg2[%c8, %c0_40, %c0_41] : memref<9x32x8xbf16, #tpu.memory_space<vmem>>, vector<1x32x8xbf16>
      %58 = vector.shape_cast %57 : vector<1x32x8xbf16> to vector<32x8xbf16>
      %cst_42 = arith.constant dense<0.000000e+00> : vector<4x8xf32>
      %59 = tpu.matmul %56, %58, %cst_42 {dimension_numbers = #tpu.dot_dimension_numbers<[1], [0], [0], [1], [0, 0, 1, 1], [], []>} : vector<4x32xbf16>, vector<32x8xbf16>, vector<4x8xf32> -> vector<4x8xf32>
      %60 = arith.addf %55, %59 : vector<4x8xf32>
      %61 = vector.broadcast %0 : vector<1x8xf32> to vector<4x8xf32>
      %62 = arith.mulf %60, %61 : vector<4x8xf32>
      %63 = vector.broadcast %1 : vector<1x8xf32> to vector<4x8xf32>
      %64 = arith.addf %62, %63 : vector<4x8xf32>
      %cst_43 = arith.constant 0.000000e+00 : f32
      %65 = vector.broadcast %cst_43 : f32 to vector<4x8xf32>
      %66 = arith.maximumf %64, %65 : vector<4x8xf32>
      %67 = arith.truncf %66 : vector<4x8xf32> to vector<4x8xbf16>
      %c0_44 = arith.constant 0 : index
      %68 = arith.index_cast %arg6 : i32 to index
      %c0_45 = arith.constant 0 : index
      %c0_46 = arith.constant 0 : index
      %69 = vector.load %arg5[%c0_44, %68, %c0_45, %c0_46] : memref<1x4x4x8xbf16, #tpu.memory_space<vmem>>, vector<1x1x4x8xbf16>
      %70 = vector.shape_cast %69 : vector<1x1x4x8xbf16> to vector<4x8xbf16>
      %71 = vector.shape_cast %67 : vector<4x8xbf16> to vector<1x1x4x8xbf16>
      tpu.vector_store %arg5[%c0_44, %68, %c0_45, %c0_46], %71 {strides = array<i32>} : memref<1x4x4x8xbf16, #tpu.memory_space<vmem>>, vector<1x1x4x8xbf16>,
    }
    %c4_i32_3 = arith.constant 4 : i32
    return
  }
  func.func @transform_0(%arg0: i32) -> (i32, i32, i32, i32) {
    %c0_i32 = arith.constant 0 : i32
    %c0_i32_0 = arith.constant 0 : i32
    %c0_i32_1 = arith.constant 0 : i32
    %c0_i32_2 = arith.constant 0 : i32
    return %arg0, %c0_i32, %c0_i32_0, %c0_i32_1 : i32, i32, i32, i32
  }
  func.func @transform_1(%arg0: i32) -> (i32, i32, i32) {
    %c0_i32 = arith.constant 0 : i32
    %c0_i32_0 = arith.constant 0 : i32
    %c0_i32_1 = arith.constant 0 : i32
    %c0_i32_2 = arith.constant 0 : i32
    return %c0_i32, %c0_i32_0, %c0_i32_1 : i32, i32, i32
  }
  func.func @transform_2(%arg0: i32) -> (i32, i32) {
    %c0_i32 = arith.constant 0 : i32
    %c0_i32_0 = arith.constant 0 : i32
    %c0_i32_1 = arith.constant 0 : i32
    return %c0_i32, %c0_i32_0 : i32, i32
  }
  func.func @transform_3(%arg0: i32) -> (i32, i32) {
    %c0_i32 = arith.constant 0 : i32
    %c0_i32_0 = arith.constant 0 : i32
    %c0_i32_1 = arith.constant 0 : i32
    return %c0_i32, %c0_i32_0 : i32, i32
  }
  func.func @transform_4(%arg0: i32) -> (i32, i32, i32, i32) {
    %c0_i32 = arith.constant 0 : i32
    %c0_i32_0 = arith.constant 0 : i32
    %c0_i32_1 = arith.constant 0 : i32
    %c0_i32_2 = arith.constant 0 : i32
    return %arg0, %c0_i32, %c0_i32_0, %c0_i32_1 : i32, i32, i32, i32
  }
}

module attributes {stable_mosaic.version = 11 : i64} {
  func.func @_conv3x3_kernel(%arg0: i32, %arg1: memref<1x10x10x8xbf16, #tpu.memory_space<vmem>>, %arg2: memref<9x8x8xbf16, #tpu.memory_space<vmem>>, %arg3: memref<1x8xf32, #tpu.memory_space<vmem>>, %arg4: memref<1x8xf32, #tpu.memory_space<vmem>>, %arg5: memref<1x8x8x8xbf16, #tpu.memory_space<vmem>>) attributes {dimension_semantics = [#tpu.dimension_semantics<parallel>], iteration_bounds = array<i64: 2>, scalar_prefetch = 0 : i64, scratch_operands = 0 : i64, tpu.core_type = #tpu.core_type<tc>, window_params = [{transform_indices = @transform_0, window_bounds = array<i64: 1, 10, 10, 8>}, {pipeline_mode = #tpu.pipeline_mode<synchronous>, transform_indices = @transform_1, window_bounds = array<i64: 9, 8, 8>}, {pipeline_mode = #tpu.pipeline_mode<synchronous>, transform_indices = @transform_2, window_bounds = array<i64: 1, 8>}, {pipeline_mode = #tpu.pipeline_mode<synchronous>, transform_indices = @transform_3, window_bounds = array<i64: 1, 8>}, {transform_indices = @transform_4, window_bounds = array<i64: 1, 8, 8, 8>}]} {
    %c0 = arith.constant 0 : index
    %c0_0 = arith.constant 0 : index
    %0 = vector.load %arg3[%c0, %c0_0] : memref<1x8xf32, #tpu.memory_space<vmem>>, vector<1x8xf32>
    %c0_1 = arith.constant 0 : index
    %c0_2 = arith.constant 0 : index
    %1 = vector.load %arg4[%c0_1, %c0_2] : memref<1x8xf32, #tpu.memory_space<vmem>>, vector<1x8xf32>
    %c0_i32 = arith.constant 0 : i32
    %c8_i32 = arith.constant 8 : i32
    %2 = arith.addi %c0_i32, %c8_i32 : i32
    %c1_i32 = arith.constant 1 : i32
    scf.for %arg6 = %c0_i32 to %2 step %c1_i32  : i32 {
      %cst = arith.constant 0.000000e+00 : f32
      %3 = vector.broadcast %cst : f32 to vector<8x8xf32>
      %c0_i32_4 = arith.constant 0 : i32
      %4 = arith.addi %arg6, %c0_i32_4 : i32
      %c0_5 = arith.constant 0 : index
      %5 = arith.index_cast %4 : i32 to index
      %c0_6 = arith.constant 0 : index
      %c0_7 = arith.constant 0 : index
      %6 = vector.load %arg1[%c0_5, %5, %c0_6, %c0_7] : memref<1x10x10x8xbf16, #tpu.memory_space<vmem>>, vector<1x1x10x8xbf16>
      %7 = vector.shape_cast %6 : vector<1x1x10x8xbf16> to vector<10x8xbf16>
      %8 = vector.extract_strided_slice %7 {offsets = [0, 0], sizes = [8, 8], strides = [1, 1]} : vector<10x8xbf16> to vector<8x8xbf16>
      %c0_8 = arith.constant 0 : index
      %c0_9 = arith.constant 0 : index
      %c0_10 = arith.constant 0 : index
      %9 = vector.load %arg2[%c0_8, %c0_9, %c0_10] : memref<9x8x8xbf16, #tpu.memory_space<vmem>>, vector<1x8x8xbf16>
      %10 = vector.shape_cast %9 : vector<1x8x8xbf16> to vector<8x8xbf16>
      %cst_11 = arith.constant dense<0.000000e+00> : vector<8x8xf32>
      %11 = tpu.matmul %8, %10, %cst_11 {dimension_numbers = #tpu.dot_dimension_numbers<[1], [0], [0], [1], [0, 0, 1, 1], [], []>} : vector<8x8xbf16>, vector<8x8xbf16>, vector<8x8xf32> -> vector<8x8xf32>
      %12 = arith.addf %3, %11 : vector<8x8xf32>
      %13 = vector.extract_strided_slice %7 {offsets = [1, 0], sizes = [8, 8], strides = [1, 1]} : vector<10x8xbf16> to vector<8x8xbf16>
      %c1 = arith.constant 1 : index
      %c0_12 = arith.constant 0 : index
      %c0_13 = arith.constant 0 : index
      %14 = vector.load %arg2[%c1, %c0_12, %c0_13] : memref<9x8x8xbf16, #tpu.memory_space<vmem>>, vector<1x8x8xbf16>
      %15 = vector.shape_cast %14 : vector<1x8x8xbf16> to vector<8x8xbf16>
      %cst_14 = arith.constant dense<0.000000e+00> : vector<8x8xf32>
      %16 = tpu.matmul %13, %15, %cst_14 {dimension_numbers = #tpu.dot_dimension_numbers<[1], [0], [0], [1], [0, 0, 1, 1], [], []>} : vector<8x8xbf16>, vector<8x8xbf16>, vector<8x8xf32> -> vector<8x8xf32>
      %17 = arith.addf %12, %16 : vector<8x8xf32>
      %18 = vector.extract_strided_slice %7 {offsets = [2, 0], sizes = [8, 8], strides = [1, 1]} : vector<10x8xbf16> to vector<8x8xbf16>
      %c2 = arith.constant 2 : index
      %c0_15 = arith.constant 0 : index
      %c0_16 = arith.constant 0 : index
      %19 = vector.load %arg2[%c2, %c0_15, %c0_16] : memref<9x8x8xbf16, #tpu.memory_space<vmem>>, vector<1x8x8xbf16>
      %20 = vector.shape_cast %19 : vector<1x8x8xbf16> to vector<8x8xbf16>
      %cst_17 = arith.constant dense<0.000000e+00> : vector<8x8xf32>
      %21 = tpu.matmul %18, %20, %cst_17 {dimension_numbers = #tpu.dot_dimension_numbers<[1], [0], [0], [1], [0, 0, 1, 1], [], []>} : vector<8x8xbf16>, vector<8x8xbf16>, vector<8x8xf32> -> vector<8x8xf32>
      %22 = arith.addf %17, %21 : vector<8x8xf32>
      %c1_i32_18 = arith.constant 1 : i32
      %23 = arith.addi %arg6, %c1_i32_18 : i32
      %c0_19 = arith.constant 0 : index
      %24 = arith.index_cast %23 : i32 to index
      %c0_20 = arith.constant 0 : index
      %c0_21 = arith.constant 0 : index
      %25 = vector.load %arg1[%c0_19, %24, %c0_20, %c0_21] : memref<1x10x10x8xbf16, #tpu.memory_space<vmem>>, vector<1x1x10x8xbf16>
      %26 = vector.shape_cast %25 : vector<1x1x10x8xbf16> to vector<10x8xbf16>
      %27 = vector.extract_strided_slice %26 {offsets = [0, 0], sizes = [8, 8], strides = [1, 1]} : vector<10x8xbf16> to vector<8x8xbf16>
      %c3 = arith.constant 3 : index
      %c0_22 = arith.constant 0 : index
      %c0_23 = arith.constant 0 : index
      %28 = vector.load %arg2[%c3, %c0_22, %c0_23] : memref<9x8x8xbf16, #tpu.memory_space<vmem>>, vector<1x8x8xbf16>
      %29 = vector.shape_cast %28 : vector<1x8x8xbf16> to vector<8x8xbf16>
      %cst_24 = arith.constant dense<0.000000e+00> : vector<8x8xf32>
      %30 = tpu.matmul %27, %29, %cst_24 {dimension_numbers = #tpu.dot_dimension_numbers<[1], [0], [0], [1], [0, 0, 1, 1], [], []>} : vector<8x8xbf16>, vector<8x8xbf16>, vector<8x8xf32> -> vector<8x8xf32>
      %31 = arith.addf %22, %30 : vector<8x8xf32>
      %32 = vector.extract_strided_slice %26 {offsets = [1, 0], sizes = [8, 8], strides = [1, 1]} : vector<10x8xbf16> to vector<8x8xbf16>
      %c4 = arith.constant 4 : index
      %c0_25 = arith.constant 0 : index
      %c0_26 = arith.constant 0 : index
      %33 = vector.load %arg2[%c4, %c0_25, %c0_26] : memref<9x8x8xbf16, #tpu.memory_space<vmem>>, vector<1x8x8xbf16>
      %34 = vector.shape_cast %33 : vector<1x8x8xbf16> to vector<8x8xbf16>
      %cst_27 = arith.constant dense<0.000000e+00> : vector<8x8xf32>
      %35 = tpu.matmul %32, %34, %cst_27 {dimension_numbers = #tpu.dot_dimension_numbers<[1], [0], [0], [1], [0, 0, 1, 1], [], []>} : vector<8x8xbf16>, vector<8x8xbf16>, vector<8x8xf32> -> vector<8x8xf32>
      %36 = arith.addf %31, %35 : vector<8x8xf32>
      %37 = vector.extract_strided_slice %26 {offsets = [2, 0], sizes = [8, 8], strides = [1, 1]} : vector<10x8xbf16> to vector<8x8xbf16>
      %c5 = arith.constant 5 : index
      %c0_28 = arith.constant 0 : index
      %c0_29 = arith.constant 0 : index
      %38 = vector.load %arg2[%c5, %c0_28, %c0_29] : memref<9x8x8xbf16, #tpu.memory_space<vmem>>, vector<1x8x8xbf16>
      %39 = vector.shape_cast %38 : vector<1x8x8xbf16> to vector<8x8xbf16>
      %cst_30 = arith.constant dense<0.000000e+00> : vector<8x8xf32>
      %40 = tpu.matmul %37, %39, %cst_30 {dimension_numbers = #tpu.dot_dimension_numbers<[1], [0], [0], [1], [0, 0, 1, 1], [], []>} : vector<8x8xbf16>, vector<8x8xbf16>, vector<8x8xf32> -> vector<8x8xf32>
      %41 = arith.addf %36, %40 : vector<8x8xf32>
      %c2_i32 = arith.constant 2 : i32
      %42 = arith.addi %arg6, %c2_i32 : i32
      %c0_31 = arith.constant 0 : index
      %43 = arith.index_cast %42 : i32 to index
      %c0_32 = arith.constant 0 : index
      %c0_33 = arith.constant 0 : index
      %44 = vector.load %arg1[%c0_31, %43, %c0_32, %c0_33] : memref<1x10x10x8xbf16, #tpu.memory_space<vmem>>, vector<1x1x10x8xbf16>
      %45 = vector.shape_cast %44 : vector<1x1x10x8xbf16> to vector<10x8xbf16>
      %46 = vector.extract_strided_slice %45 {offsets = [0, 0], sizes = [8, 8], strides = [1, 1]} : vector<10x8xbf16> to vector<8x8xbf16>
      %c6 = arith.constant 6 : index
      %c0_34 = arith.constant 0 : index
      %c0_35 = arith.constant 0 : index
      %47 = vector.load %arg2[%c6, %c0_34, %c0_35] : memref<9x8x8xbf16, #tpu.memory_space<vmem>>, vector<1x8x8xbf16>
      %48 = vector.shape_cast %47 : vector<1x8x8xbf16> to vector<8x8xbf16>
      %cst_36 = arith.constant dense<0.000000e+00> : vector<8x8xf32>
      %49 = tpu.matmul %46, %48, %cst_36 {dimension_numbers = #tpu.dot_dimension_numbers<[1], [0], [0], [1], [0, 0, 1, 1], [], []>} : vector<8x8xbf16>, vector<8x8xbf16>, vector<8x8xf32> -> vector<8x8xf32>
      %50 = arith.addf %41, %49 : vector<8x8xf32>
      %51 = vector.extract_strided_slice %45 {offsets = [1, 0], sizes = [8, 8], strides = [1, 1]} : vector<10x8xbf16> to vector<8x8xbf16>
      %c7 = arith.constant 7 : index
      %c0_37 = arith.constant 0 : index
      %c0_38 = arith.constant 0 : index
      %52 = vector.load %arg2[%c7, %c0_37, %c0_38] : memref<9x8x8xbf16, #tpu.memory_space<vmem>>, vector<1x8x8xbf16>
      %53 = vector.shape_cast %52 : vector<1x8x8xbf16> to vector<8x8xbf16>
      %cst_39 = arith.constant dense<0.000000e+00> : vector<8x8xf32>
      %54 = tpu.matmul %51, %53, %cst_39 {dimension_numbers = #tpu.dot_dimension_numbers<[1], [0], [0], [1], [0, 0, 1, 1], [], []>} : vector<8x8xbf16>, vector<8x8xbf16>, vector<8x8xf32> -> vector<8x8xf32>
      %55 = arith.addf %50, %54 : vector<8x8xf32>
      %56 = vector.extract_strided_slice %45 {offsets = [2, 0], sizes = [8, 8], strides = [1, 1]} : vector<10x8xbf16> to vector<8x8xbf16>
      %c8 = arith.constant 8 : index
      %c0_40 = arith.constant 0 : index
      %c0_41 = arith.constant 0 : index
      %57 = vector.load %arg2[%c8, %c0_40, %c0_41] : memref<9x8x8xbf16, #tpu.memory_space<vmem>>, vector<1x8x8xbf16>
      %58 = vector.shape_cast %57 : vector<1x8x8xbf16> to vector<8x8xbf16>
      %cst_42 = arith.constant dense<0.000000e+00> : vector<8x8xf32>
      %59 = tpu.matmul %56, %58, %cst_42 {dimension_numbers = #tpu.dot_dimension_numbers<[1], [0], [0], [1], [0, 0, 1, 1], [], []>} : vector<8x8xbf16>, vector<8x8xbf16>, vector<8x8xf32> -> vector<8x8xf32>
      %60 = arith.addf %55, %59 : vector<8x8xf32>
      %61 = vector.broadcast %0 : vector<1x8xf32> to vector<8x8xf32>
      %62 = arith.mulf %60, %61 : vector<8x8xf32>
      %63 = vector.broadcast %1 : vector<1x8xf32> to vector<8x8xf32>
      %64 = arith.addf %62, %63 : vector<8x8xf32>
      %cst_43 = arith.constant 0.000000e+00 : f32
      %65 = vector.broadcast %cst_43 : f32 to vector<8x8xf32>
      %66 = arith.maximumf %64, %65 : vector<8x8xf32>
      %67 = arith.truncf %66 : vector<8x8xf32> to vector<8x8xbf16>
      %c0_44 = arith.constant 0 : index
      %68 = arith.index_cast %arg6 : i32 to index
      %c0_45 = arith.constant 0 : index
      %c0_46 = arith.constant 0 : index
      %69 = vector.load %arg5[%c0_44, %68, %c0_45, %c0_46] : memref<1x8x8x8xbf16, #tpu.memory_space<vmem>>, vector<1x1x8x8xbf16>
      %70 = vector.shape_cast %69 : vector<1x1x8x8xbf16> to vector<8x8xbf16>
      %71 = vector.shape_cast %67 : vector<8x8xbf16> to vector<1x1x8x8xbf16>
      tpu.vector_store %arg5[%c0_44, %68, %c0_45, %c0_46], %71 {strides = array<i32>} : memref<1x8x8x8xbf16, #tpu.memory_space<vmem>>, vector<1x1x8x8xbf16>,
    }
    %c8_i32_3 = arith.constant 8 : i32
    return
  }
  func.func @transform_0(%arg0: i32) -> (i32, i32, i32, i32) {
    %c0_i32 = arith.constant 0 : i32
    %c0_i32_0 = arith.constant 0 : i32
    %c0_i32_1 = arith.constant 0 : i32
    %c0_i32_2 = arith.constant 0 : i32
    return %arg0, %c0_i32, %c0_i32_0, %c0_i32_1 : i32, i32, i32, i32
  }
  func.func @transform_1(%arg0: i32) -> (i32, i32, i32) {
    %c0_i32 = arith.constant 0 : i32
    %c0_i32_0 = arith.constant 0 : i32
    %c0_i32_1 = arith.constant 0 : i32
    %c0_i32_2 = arith.constant 0 : i32
    return %c0_i32, %c0_i32_0, %c0_i32_1 : i32, i32, i32
  }
  func.func @transform_2(%arg0: i32) -> (i32, i32) {
    %c0_i32 = arith.constant 0 : i32
    %c0_i32_0 = arith.constant 0 : i32
    %c0_i32_1 = arith.constant 0 : i32
    return %c0_i32, %c0_i32_0 : i32, i32
  }
  func.func @transform_3(%arg0: i32) -> (i32, i32) {
    %c0_i32 = arith.constant 0 : i32
    %c0_i32_0 = arith.constant 0 : i32
    %c0_i32_1 = arith.constant 0 : i32
    return %c0_i32, %c0_i32_0 : i32, i32
  }
  func.func @transform_4(%arg0: i32) -> (i32, i32, i32, i32) {
    %c0_i32 = arith.constant 0 : i32
    %c0_i32_0 = arith.constant 0 : i32
    %c0_i32_1 = arith.constant 0 : i32
    %c0_i32_2 = arith.constant 0 : i32
    return %arg0, %c0_i32, %c0_i32_0, %c0_i32_1 : i32, i32, i32, i32
  }
}

module attributes {stable_mosaic.version = 11 : i64} {
  func.func @_mm_kernel(%arg0: i32, %arg1: i32, %arg2: i32, %arg3: memref<256x128xbf16, #tpu.memory_space<vmem>>, %arg4: memref<128x128xbf16, #tpu.memory_space<vmem>>, %arg5: memref<1x128xf32, #tpu.memory_space<vmem>>, %arg6: memref<1x128xf32, #tpu.memory_space<vmem>>, %arg7: memref<256x128xbf16, #tpu.memory_space<vmem>>, %arg8: memref<256x128xf32, #tpu.memory_space<vmem>>) attributes {dimension_semantics = [#tpu.dimension_semantics<parallel>, #tpu.dimension_semantics<parallel>, #tpu.dimension_semantics<arbitrary>], iteration_bounds = array<i64: 2, 1, 1>, scalar_prefetch = 0 : i64, scratch_operands = 1 : i64, tpu.core_type = #tpu.core_type<tc>, window_params = [{transform_indices = @transform_0, window_bounds = array<i64: 256, 128>}, {transform_indices = @transform_1, window_bounds = array<i64: 128, 128>}, {transform_indices = @transform_2, window_bounds = array<i64: 1, 128>}, {transform_indices = @transform_3, window_bounds = array<i64: 1, 128>}, {transform_indices = @transform_4, window_bounds = array<i64: 256, 128>}]} {
    %c0_i32 = arith.constant 0 : i32
    %0 = arith.cmpi eq, %arg2, %c0_i32 : i32
    %1 = arith.extui %0 : i1 to i32
    %c0_i32_0 = arith.constant 0 : i32
    %2 = arith.cmpi ne, %1, %c0_i32_0 : i32
    scf.if %2 {
      %cst_10 = arith.constant 0.000000e+00 : f32
      %12 = vector.broadcast %cst_10 : f32 to vector<256x128xf32>
      %c0_11 = arith.constant 0 : index
      %c0_12 = arith.constant 0 : index
      %13 = vector.load %arg8[%c0_11, %c0_12] : memref<256x128xf32, #tpu.memory_space<vmem>>, vector<256x128xf32>
      tpu.vector_store %arg8[%c0_11, %c0_12], %12 {strides = array<i32>} : memref<256x128xf32, #tpu.memory_space<vmem>>, vector<256x128xf32>,
    } else {
    }
    %c0 = arith.constant 0 : index
    %c0_1 = arith.constant 0 : index
    %3 = vector.load %arg8[%c0, %c0_1] : memref<256x128xf32, #tpu.memory_space<vmem>>, vector<256x128xf32>
    %c0_2 = arith.constant 0 : index
    %c0_3 = arith.constant 0 : index
    %4 = vector.load %arg3[%c0_2, %c0_3] : memref<256x128xbf16, #tpu.memory_space<vmem>>, vector<256x128xbf16>
    %c0_4 = arith.constant 0 : index
    %c0_5 = arith.constant 0 : index
    %5 = vector.load %arg4[%c0_4, %c0_5] : memref<128x128xbf16, #tpu.memory_space<vmem>>, vector<128x128xbf16>
    %cst = arith.constant dense<0.000000e+00> : vector<256x128xf32>
    %6 = tpu.matmul %4, %5, %cst {dimension_numbers = #tpu.dot_dimension_numbers<[1], [0], [0], [1], [0, 0, 1, 1], [], []>} : vector<256x128xbf16>, vector<128x128xbf16>, vector<256x128xf32> -> vector<256x128xf32>
    %7 = arith.addf %3, %6 : vector<256x128xf32>
    %c0_6 = arith.constant 0 : index
    %c0_7 = arith.constant 0 : index
    %8 = vector.load %arg8[%c0_6, %c0_7] : memref<256x128xf32, #tpu.memory_space<vmem>>, vector<256x128xf32>
    tpu.vector_store %arg8[%c0_6, %c0_7], %7 {strides = array<i32>} : memref<256x128xf32, #tpu.memory_space<vmem>>, vector<256x128xf32>,
    %c0_i32_8 = arith.constant 0 : i32
    %9 = arith.cmpi eq, %arg2, %c0_i32_8 : i32
    %10 = arith.extui %9 : i1 to i32
    %c0_i32_9 = arith.constant 0 : i32
    %11 = arith.cmpi ne, %10, %c0_i32_9 : i32
    scf.if %11 {
      %c0_10 = arith.constant 0 : index
      %c0_11 = arith.constant 0 : index
      %12 = vector.load %arg8[%c0_10, %c0_11] : memref<256x128xf32, #tpu.memory_space<vmem>>, vector<256x128xf32>
      %c0_12 = arith.constant 0 : index
      %c0_13 = arith.constant 0 : index
      %13 = vector.load %arg5[%c0_12, %c0_13] : memref<1x128xf32, #tpu.memory_space<vmem>>, vector<1x128xf32>
      %14 = vector.broadcast %13 : vector<1x128xf32> to vector<256x128xf32>
      %15 = arith.mulf %12, %14 : vector<256x128xf32>
      %c0_14 = arith.constant 0 : index
      %c0_15 = arith.constant 0 : index
      %16 = vector.load %arg6[%c0_14, %c0_15] : memref<1x128xf32, #tpu.memory_space<vmem>>, vector<1x128xf32>
      %17 = vector.broadcast %16 : vector<1x128xf32> to vector<256x128xf32>
      %18 = arith.addf %15, %17 : vector<256x128xf32>
      %19 = arith.truncf %18 : vector<256x128xf32> to vector<256x128xbf16>
      %c0_16 = arith.constant 0 : index
      %c0_17 = arith.constant 0 : index
      %20 = vector.load %arg7[%c0_16, %c0_17] : memref<256x128xbf16, #tpu.memory_space<vmem>>, vector<256x128xbf16>
      tpu.vector_store %arg7[%c0_16, %c0_17], %19 {strides = array<i32>} : memref<256x128xbf16, #tpu.memory_space<vmem>>, vector<256x128xbf16>,
    } else {
    }
    return
  }
  func.func @transform_0(%arg0: i32, %arg1: i32, %arg2: i32) -> (i32, i32) {
    %c0_i32 = arith.constant 0 : i32
    return %arg0, %arg2 : i32, i32
  }
  func.func @transform_1(%arg0: i32, %arg1: i32, %arg2: i32) -> (i32, i32) {
    %c0_i32 = arith.constant 0 : i32
    return %arg2, %arg1 : i32, i32
  }
  func.func @transform_2(%arg0: i32, %arg1: i32, %arg2: i32) -> (i32, i32) {
    %c0_i32 = arith.constant 0 : i32
    %c0_i32_0 = arith.constant 0 : i32
    return %c0_i32, %arg1 : i32, i32
  }
  func.func @transform_3(%arg0: i32, %arg1: i32, %arg2: i32) -> (i32, i32) {
    %c0_i32 = arith.constant 0 : i32
    %c0_i32_0 = arith.constant 0 : i32
    return %c0_i32, %arg1 : i32, i32
  }
  func.func @transform_4(%arg0: i32, %arg1: i32, %arg2: i32) -> (i32, i32) {
    %c0_i32 = arith.constant 0 : i32
    return %arg0, %arg1 : i32, i32
  }
}

</mosaic_0001>

<bundles_post_ra>
// kernel: forward.17
= control target key start
LH: loop header
LB: loop body
LE: loop exit
PB: predicated region body
PF: predicated region fallthrough
CT: control target
= control target key end

     0   :  { %s1258_s15 = smov 0   ;;  %s1413_s0 = inlined_call_operand.vmem [shape: bf16[2,34,34,8], index: 0, kind: input, shape index: {}]   ;;  %s1414_s1 = inlined_call_operand.vmem [shape: bf16[9,8,64], index: 1, kind: input, shape index: {}]   ;;  %s1415_s2 = inlined_call_operand.vmem [shape: f32[1,64], index: 2, kind: input, shape index: {}]   ;;  %s1416_s3 = inlined_call_operand.vmem [shape: f32[1,64], index: 3, kind: input, shape index: {}]   ;;  %s1417_s4 = inlined_call_operand.vmem [shape: bf16[2,32,32,64], index: 4, kind: output, shape index: {}]  }
   0x1 LB: > { %s1030_s16 = sadd.s32 4294967295, %s1227_s15   ;;  %p1034_p0 = scmp.ge.s32.totalorder %s1227_s15, 1  ;;  %s1227_s15 = sphi %s1258_s15, %s14_s15  }
   0x2   : > { %p162_p1 = scmp.lt.s32.totalorder %s1227_s15, 3 }
   0x4   : > { %p163_p2 = pnand %p1034_p0, %p162_p1 }
   0x5   : > { %p188_p3 = scmp.lt.s32.totalorder (!%p163_p2), %s1030_s16, 1  ;;  %s1286_s29 = smov (!%p163_p2), 0  }
   0x6   : > { %166 = sbr.rel (%p163_p2) target bundleno = 269 (0x10d), region = 36 }
   0xb   : > { %v1269_v0 = vld [vmem:[%s1415_s2] ss:$0 sm:$0xff]  ;;  %s1419_s16 = smov (!%p188_p3, %s1030_s16), 1 }
   0xc   : > { %v1274_v1 = vld [vmem:[%s1416_s3] ss:$0 sm:$0xff]  ;;  %s1191_s21 = smul.u32 680, %s1419_s16  ;;  %s1094_s22 = sshll.u32 %s1419_s16, 9 }
   0xd   : > { %s1279_s25 = scalar_lea.vmem %s1417_s4, %s1094_s22 }
   0xe   : > { %s1284_s28 = scalar_lea.vmem %s1413_s0, %s1191_s21 }
   0xf LB: >> { %v1039_v2 = vld [vmem:[%s1414_s1 + $0x4] sm:$0xf]  ;;  %vm259_vm0 = vcmask 1043456   ;;  %v215_v3 = vld [vmem:[%s1414_s1] sm:$0xf]  ;;  %s1095_s10 = smul.u32 20, %s1231_s29  ;;  %s1231_s29 = sphi %s1286_s29, %s206_s29  }
  0x10   : >> { %1182 = vmatprep.subr.msk.bf16.mxu0 %vm259_vm0, %v1039_v2  ;;  %v261_v4 = vsel %vm259_vm0, %v1039_v2, 0  ;;  %1183 = vmatprep.subr.msk.bf16.mxu1 %vm259_vm0, %v215_v3  ;;  %v317_v5 = vsel %vm259_vm0, %v215_v3, 0  ;;  %v1047_v6 = vld [vmem:[%s1414_s1 + $0x8] sm:$0xf]  ;;  %v1055_v7 = vld [vmem:[%s1414_s1 + $0xc] sm:$0xf] }
  0x11   : >> { %1129 = vmatpush3.bf16.msra.mxu0 %v261_v4  ;;  %1135 = vmatpush3.bf16.msra.mxu1 %v317_v5  ;;  %s1311_s13 = scalar_lea.vmem %s1284_s28, %s1095_s10  ;;  %vm231_vm1 = vsmask.f32 7424  ;;  %vm252_vm2 = vcmask 64512   ;;  %v466_v10 = vsel %vm259_vm0, %v1055_v7, 0  ;;  %v1064_v11 = vld [vmem:[%s1414_s1 + $0x14] sm:$0xf] }
  0x12   : >> { %1184 = vmatprep.subr.msk.bf16.mxu0 %vm259_vm0, %v1047_v6  ;;  %1185 = vmatprep.subr.msk.bf16.mxu1 %vm259_vm0, %v1055_v7  ;;  %v1208_v8 = vld [vmem:[%s1311_s13] sm:$0xff]   ;;  %v1315_v9 = vld [vmem:[%s1311_s13 + $0x8] sm:$0xff]   ;;  %v1210_v12 = vld [vmem:[%s1311_s13 + $0x10] ss:$0 sps:$4 sm:$0x11]   ;;  %vm370_vm3 = vcmask 1046528  }
  0x13   : >> { %v1211_v13 = vld [vmem:[%s1311_s13 + $0x14] sm:$0xff]   ;;  %v233_v14 = vshrl.u32 %v1208_v8, 16  ;;  %v235_v15 = vshll.u32 %v1208_v8, 16  ;;  %v240_v16 = vshll.u32 %v1315_v9, 16  ;;  %v244_v17 = vshrl.u32 %v1315_v9, 16  ;;  %1136 = vmatprep.mubr.msk.bf16.mxu1 %vm252_vm2, %v1208_v8  ;;  %v1212_v24 = vld [vmem:[%s1311_s13 + $0x1c] sm:$0xff]  }
  0x14   : >> { %v248_v18 = vshll.u32 %v1210_v12, 16  ;;  %1137 = vmatmul.mubr.msk.bf16.vlgmr.msra.gmra.mxu1 %vm252_vm2, %v1315_v9  ;;  %v371_v19 = vrot.slane %v1208_v8, 1  ;;  %v372_v20 = vrot.slane %v1315_v9, 1  ;;  %v1333_v25 = vld [vmem:[%s1311_s13 + $0x28] sm:$0xff]   ;;  %v528_v28 = vshll.u32 %v1211_v13, 16  ;;  %v1336_v30 = vld [vmem:[%s1311_s13 + $0x30] sm:$0xff]  }
  0x15   : >> { %v237_v21 = vrot.slane %v235_v15, 1  ;;  %v242_v22 = vrot.slane %v240_v16, 1  ;;  %1147 = vmatpush3.bf16.msra.mxu1 %v466_v10  ;;  %1148 = vmatprep.mubr.msk.bf16.mxu1 %vm252_vm2, %v1211_v13  ;;  %v608_v29 = vrot.slane %v1211_v13, 1  ;;  %v383_v31 = vsel %vm259_vm0, %v1047_v6, 0  ;;  %v1060_v39 = vld [vmem:[%s1414_s1 + $0x10] sm:$0xf] }
  0x16   : >> { %v250_v23 = vrot.slane %v248_v18, 1  ;;  %1187 = vmatprep.subr.msk.bf16.mxu1 %vm259_vm0, %v1064_v11  ;;  %v373_v32 = vsel %vm370_vm3, %v371_v19, %v372_v20  ;;  %v526_v33 = vshrl.u32 %v1211_v13, 16  ;;  %v609_v34 = vrot.slane %v1212_v24, 1  ;;  %v1077_v44 = vld [vmem:[%s1414_s1 + $0x1c] sm:$0xf]  ;;  %s1100_s26 = sshll.u32 %s1231_s29, 4 }
  0x17   : >> { %v238_v26 = vor.u32 %v237_v21, %v233_v14  ;;  %v246_v27 = vor.u32 %v244_v17, %v242_v22  ;;  %v530_v37 = vrot.slane %v528_v28, 1  ;;  %v532_v38 = vshll.u32 %v1212_v24, 16  ;;  %v1213_v47 = vld [vmem:[%s1311_s13 + $0x24] ss:$0 sps:$4 sm:$0x11]   ;;  %s954_s27 = scalar_lea.vmem %s1279_s25, %s1100_s26  ;;  %s206_s29 = sadd.s32 1, %s1231_s29  }
  0x18   : >> { %v620_v40 = vsel %vm259_vm0, %v1064_v11, 0  ;;  %v765_v41 = vshll.u32 %v1333_v25, 16  ;;  %v374_v42 = vrot.slane %v1210_v12, 1  ;;  %v610_v43 = vsel %vm370_vm3, %v608_v29, %v609_v34  ;;  %v1216_v52 = vld [vmem:[%s1311_s13 + $0x38] ss:$0 sps:$4 sm:$0x11]  }
  0x19   : >> { %v243_v35 = vsel %vm231_vm1, %v238_v26, %v242_v22  ;;  %v251_v36 = vsel %vm231_vm1, %v246_v27, %v250_v23  ;;  %v763_v45 = vshrl.u32 %v1333_v25, 16  ;;  %v769_v46 = vshll.u32 %v1336_v30, 16  ;;  %v1072_v60 = vld [vmem:[%s1414_s1 + $0x18] sm:$0xf]  ;;  %v1081_v10 = vld [vmem:[%s1414_s1 + $0x20] sm:$0xf] }
  0x1a   : >> { %1130 = vmatprep.mubr.msk.bf16.mxu0 %vm252_vm2, %v243_v35  ;;  %v767_v48 = vrot.slane %v765_v41, 1  ;;  %v531_v49 = vor.u32 %v530_v37, %v526_v33  ;;  %v534_v50 = vrot.slane %v532_v38, 1  ;;  %v611_v51 = vrot.slane %v1213_v47, 1  ;;  %p203_p4 = scmp.ge.s32.totalorder %s206_s29, 32  }
  0x1b   : >> { %1131 = vmatmul.mubr.msk.bf16.vlgmr.msra.gmra.mxu0 %vm252_vm2, %v251_v36  ;;  %v771_v54 = vrot.slane %v769_v46, 1  ;;  %v375_v55 = vsel %vm370_vm3, %v372_v20, %v374_v42  ;;  %v536_v56 = vshrl.u32 %v1212_v24, 16  ;;  %v540_v57 = vshll.u32 %v1213_v47, 16 }
  0x1c   : >> { %1141 = vmatpush3.bf16.msra.mxu0 %v383_v31  ;;  %1142 = vmatprep.mubr.msk.bf16.mxu0 %vm252_vm2, %v373_v32  ;;  %v768_v53 = vor.u32 %v767_v48, %v763_v45  ;;  %v551_v58 = vsel %vm259_vm0, %v1060_v39, 0  ;;  %v535_v59 = vsel %vm231_vm1, %v531_v49, %v534_v50  ;;  %v612_v61 = vsel %vm370_vm3, %v609_v34, %v611_v51 }
  0x1d   : >> { %1186 = vmatprep.subr.msk.bf16.mxu0 %vm259_vm0, %v1060_v39  ;;  %1149 = vmatmul.mubr.msk.bf16.vlgmr.msra.gmra.mxu1 %vm252_vm2, %v1212_v24  ;;  %v773_v62 = vshrl.u32 %v1336_v30, 16  ;;  %v777_v63 = vshll.u32 %v1216_v52, 16  ;;  %v788_v2 = vsel %vm259_vm0, %v1077_v44, 0  ;;  %v538_v4 = vor.u32 %v536_v56, %v534_v50 }
  0x1e   : >> { %1159 = vmatpush3.bf16.msra.mxu1 %v620_v40  ;;  %1160 = vmatprep.mubr.msk.bf16.mxu1 %vm252_vm2, %v610_v43  ;;  %v772_v3 = vsel %vm231_vm1, %v768_v53, %v771_v54  ;;  %v542_v5 = vrot.slane %v540_v57, 1  ;;  %v703_v9 = vsel %vm259_vm0, %v1072_v60, 0  ;;  %v845_v12 = vrot.slane %v1333_v25, 1 }
  0x1f   : >> { %1189 = vmatprep.subr.msk.bf16.mxu1 %vm259_vm0, %v1077_v44  ;;  %v775_v6 = vor.u32 %v773_v62, %v771_v54  ;;  %v779_v7 = vrot.slane %v777_v63, 1  ;;  %v846_v13 = vrot.slane %v1336_v30, 1  ;;  %v857_v14 = vsel %vm259_vm0, %v1081_v10, 0 }
  0x20   : >> { %v543_v8 = vsel %vm231_vm1, %v538_v4, %v542_v5  ;;  %v848_v16 = vrot.slane %v1216_v52, 1  ;;  %vm955_vm4 = vcmask 519168  }
  0x21   : >> { %v780_v11 = vsel %vm231_vm1, %v775_v6, %v779_v7  ;;  %v847_v15 = vsel %vm370_vm3, %v845_v12, %v846_v13 }
  0x22   : >> { %v849_v17 = vsel %vm370_vm3, %v846_v13, %v848_v16 }
  0x23   : >> { %1143 = vmatmul.mubr.msk.bf16.vlgmr.msra.gmra.mxu0 %vm252_vm2, %v375_v55 }
  0x24   : >> { %1153 = vmatpush3.bf16.msra.mxu0 %v551_v58  ;;  %1154 = vmatprep.mubr.msk.bf16.mxu0 %vm252_vm2, %v535_v59 }
  0x25   : >> { %1188 = vmatprep.subr.msk.bf16.mxu0 %vm259_vm0, %v1072_v60  ;;  %1161 = vmatmul.mubr.msk.bf16.vlgmr.msra.gmra.mxu1 %vm252_vm2, %v612_v61 }
  0x26   : >> { %1171 = vmatpush3.bf16.msra.mxu1 %v788_v2  ;;  %1172 = vmatprep.mubr.msk.bf16.mxu1 %vm252_vm2, %v772_v3 }
  0x2b   : >> { %1155 = vmatmul.mubr.msk.bf16.vlgmr.msra.gmra.mxu0 %vm252_vm2, %v543_v8 }
  0x2c   : >> { %1165 = vmatpush3.bf16.msra.mxu0 %v703_v9  ;;  %1166 = vmatprep.mubr.msk.bf16.mxu0 %vm252_vm2, %v1333_v25 }
  0x2d   : >> { %1190 = vmatprep.subr.msk.bf16.mxu0 %vm259_vm0, %v1081_v10  ;;  %1173 = vmatmul.mubr.msk.bf16.vlgmr.msra.gmra.mxu1 %vm252_vm2, %v780_v11 }
  0x33   : >> { %1167 = vmatmul.mubr.msk.bf16.vlgmr.msra.gmra.mxu0 %vm252_vm2, %v1336_v30 }
  0x34   : >> { %1177 = vmatpush3.bf16.msra.mxu0 %v857_v14  ;;  %1178 = vmatprep.mubr.msk.bf16.mxu0 %vm252_vm2, %v847_v15 }
  0x3b   : >> { %1179 = vmatmul.mubr.msk.bf16.vlgmr.msra.gmra.mxu0 %vm252_vm2, %v849_v17 }
  0xd4   : >> { %v1138_v18 = vpop.f32.mrf.mxu1 }
  0xd6   : >> { %v353_v19 = vpop.f32.mrf.mxu1 }
  0xd8   : >> { %v1139_v20 = vpop.f32.mrf.mxu1 }
  0xda   : >> { %v356_v21 = vpop.f32.mrf.mxu1 }
  0xdb   : >> { %v1132_v22 = vpop.f32.mrf.mxu0 }
  0xdc   : >> { %v362_v35 = vadd.f32 %v1138_v18, %v1132_v22 }
  0xdd   : >> { %v297_v23 = vpop.f32.mrf.mxu0  ;;  %v1150_v24 = vpop.f32.mrf.mxu1 }
  0xde   : >> { %v354_v37 = vadd.f32 %v353_v19, %v297_v23 }
  0xdf   : >> { %v1133_v25 = vpop.f32.mrf.mxu0  ;;  %v502_v26 = vpop.f32.mrf.mxu1 }
  0xe0   : >> { %v365_v41 = vadd.f32 %v1139_v20, %v1133_v25 }
  0xe1   : >> { %v300_v27 = vpop.f32.mrf.mxu0  ;;  %v1151_v28 = vpop.f32.mrf.mxu1 }
  0xe2   : >> { %v357_v44 = vadd.f32 %v356_v21, %v300_v27 }
  0xe3   : >> { %v1144_v29 = vpop.f32.mrf.mxu0  ;;  %v505_v30 = vpop.f32.mrf.mxu1 }
  0xe4   : >> { %v436_v38 = vadd.f32 %v1144_v29, %v362_v35 }
  0xe5   : >> { %v419_v31 = vpop.f32.mrf.mxu0  ;;  %v1162_v32 = vpop.f32.mrf.mxu1 }
  0xe6   : >> { %v434_v42 = vadd.f32 %v419_v31, %v354_v37  ;;  %v519_v45 = vadd.f32 %v1150_v24, %v436_v38 }
  0xe7   : >> { %v1145_v33 = vpop.f32.mrf.mxu0  ;;  %v656_v34 = vpop.f32.mrf.mxu1 }
  0xe8   : >> { %v437_v46 = vadd.f32 %v1145_v33, %v365_v41  ;;  %v517_v49 = vadd.f32 %v502_v26, %v434_v42 }
  0xe9   : >> { %v422_v36 = vpop.f32.mrf.mxu0  ;;  %v1163_v40 = vpop.f32.mrf.mxu1 }
  0xea   : >> { %v435_v50 = vadd.f32 %v422_v36, %v357_v44  ;;  %v520_v53 = vadd.f32 %v1151_v28, %v437_v46 }
  0xeb   : >> { %v1156_v39 = vpop.f32.mrf.mxu0  ;;  %v659_v48 = vpop.f32.mrf.mxu1 }
  0xec   : >> { %v604_v51 = vadd.f32 %v1156_v39, %v519_v45  ;;  %v518_v57 = vadd.f32 %v505_v30, %v435_v50 }
  0xed   : >> { %v587_v43 = vpop.f32.mrf.mxu0  ;;  %v1174_v56 = vpop.f32.mrf.mxu1 }
  0xee   : >> { %v602_v54 = vadd.f32 %v587_v43, %v517_v49  ;;  %v673_v58 = vadd.f32 %v1162_v32, %v604_v51 }
  0xef   : >> { %v1157_v47 = vpop.f32.mrf.mxu0  ;;  %v824_v2 = vpop.f32.mrf.mxu1 }
  0xf0   : >> { %v605_v59 = vadd.f32 %v1157_v47, %v520_v53  ;;  %v671_v61 = vadd.f32 %v656_v34, %v602_v54 }
  0xf1   : >> { %v590_v52 = vpop.f32.mrf.mxu0  ;;  %v1175_v10 = vpop.f32.mrf.mxu1 }
  0xf2   : >> { %v603_v62 = vadd.f32 %v590_v52, %v518_v57  ;;  %v674_v4 = vadd.f32 %v1163_v40, %v605_v59 }
  0xf3   : >> { %v1168_v55 = vpop.f32.mrf.mxu0  ;;  %v827_v19 = vpop.f32.mrf.mxu1 }
  0xf4   : >> { %v756_v63 = vadd.f32 %v1168_v55, %v673_v58  ;;  %v672_v7 = vadd.f32 %v659_v48, %v603_v62 }
  0xf5   : >> { %v739_v60 = vpop.f32.mrf.mxu0 }
  0xf6   : >> { %v754_v5 = vadd.f32 %v739_v60, %v671_v61  ;;  %v841_v8 = vadd.f32 %v1174_v56, %v756_v63 }
  0xf7   : >> { %v1169_v3 = vpop.f32.mrf.mxu0 }
  0xf8   : >> { %v757_v9 = vadd.f32 %v1169_v3, %v674_v4  ;;  %v839_v12 = vadd.f32 %v824_v2, %v754_v5 }
  0xf9   : >> { %v742_v6 = vpop.f32.mrf.mxu0 }
  0xfa   : >> { %v755_v13 = vadd.f32 %v742_v6, %v672_v7  ;;  %v842_v16 = vadd.f32 %v1175_v10, %v757_v9 }
  0xfb   : >> { %v1180_v11 = vpop.f32.mrf.mxu0 }
  0xfc   : >> { %v910_v14 = vadd.f32 %v1180_v11, %v841_v8  ;;  %v840_v21 = vadd.f32 %v827_v19, %v755_v13 }
  0xfd   : >> { %v893_v15 = vpop.f32.mrf.mxu0 }
  0xfe   : >> { %v920_v17 = vmul.f32 %v1269_v0, %v910_v14  ;;  %v908_v18 = vadd.f32 %v893_v15, %v839_v12 }
  0xff   : >> { %v1181_v20 = vpop.f32.mrf.mxu0 }
 0x100   : >> { %v930_v22 = vadd.f32 %v1274_v1, %v920_v17  ;;  %v918_v23 = vmul.f32 %v1269_v0, %v908_v18  ;;  %v911_v24 = vadd.f32 %v1181_v20, %v842_v16 }
 0x101   : >> { %v896_v25 = vpop.f32.mrf.mxu0 }
 0x102   : >> { %v934_v26 = vmax.f32 %v930_v22, 0.0  ;;  %v928_v27 = vadd.f32 %v1274_v1, %v918_v23  ;;  %v921_v28 = vmul.f32 %v1269_v0, %v911_v24  ;;  %v909_v29 = vadd.f32 %v896_v25, %v840_v21 }
 0x104   : >> { %v1098_v30 = vpack.c.bf16 %v934_v26, %v934_v26  ;;  %v932_v31 = vmax.f32 %v928_v27, 0.0  ;;  %v931_v32 = vadd.f32 %v1274_v1, %v921_v28  ;;  %v919_v33 = vmul.f32 %v1269_v0, %v909_v29 }
 0x106   : >> { %958 = vst.msk [vmem:[%s954_s27 + $0x8] sm:$0xf] %vm955_vm4, %v1098_v30  ;;  %v1096_v34 = vpack.c.bf16 %v932_v31, %v932_v31  ;;  %v935_v35 = vmax.f32 %v931_v32, 0.0  ;;  %v929_v36 = vadd.f32 %v1274_v1, %v919_v33 }
 0x108   : >> { %956 = vst.msk [vmem:[%s954_s27] sm:$0xf] %vm955_vm4, %v1096_v34  ;;  %v1099_v37 = vpack.c.bf16 %v935_v35, %v935_v35  ;;  %v933_v38 = vmax.f32 %v929_v36, 0.0  ;;  %205 = sbr.rel (!%p203_p4) target bundleno = 15 (0xf), region = 85 }
 0x10a   : >> { %959 = vst.msk [vmem:[%s954_s27 + $0xc] sm:$0xf] %vm955_vm4, %v1099_v37  ;;  %v1097_v39 = vpack.c.bf16 %v933_v38, %v933_v38 }
 0x10c   : >> { %957 = vst.msk [vmem:[%s954_s27 + $0x4] sm:$0xf] %vm955_vm4, %v1097_v39 }
 0x10d PF: > { %s14_s15 = sadd.s32 1, %s1227_s15  }
 0x10e   : > { %p11_p5 = scmp.ge.s32.totalorder %s14_s15, 4  }
 0x110   :  { %13 = sbr.rel (!%p11_p5) target bundleno = 1 (0x1), region = 96 }

// kernel: forward.18
= control target key start
LH: loop header
LB: loop body
LE: loop exit
PB: predicated region body
PF: predicated region fallthrough
CT: control target
= control target key end

     0   :  { %s1508_s15 = smov 0   ;;  %s1740_s0 = inlined_call_operand.vmem [shape: bf16[2,18,18,64], index: 0, kind: input, shape index: {}]   ;;  %s1741_s1 = inlined_call_operand.vmem [shape: bf16[9,64,128], index: 1, kind: input, shape index: {}]   ;;  %s1742_s2 = inlined_call_operand.vmem [shape: f32[1,128], index: 2, kind: input, shape index: {}]   ;;  %s1743_s3 = inlined_call_operand.vmem [shape: f32[1,128], index: 3, kind: input, shape index: {}]   ;;  %s1744_s4 = inlined_call_operand.vmem [shape: bf16[2,16,16,128], index: 4, kind: output, shape index: {}]  }
   0x1 LB: > { %s1103_s16 = sadd.s32 4294967295, %s1475_s15   ;;  %p1107_p0 = scmp.ge.s32.totalorder %s1475_s15, 1  ;;  %s1475_s15 = sphi %s1508_s15, %s14_s15  }
   0x2   : > { %p162_p1 = scmp.lt.s32.totalorder %s1475_s15, 3 }
   0x4   : > { %p163_p2 = pnand %p1107_p0, %p162_p1 }
   0x5   : > { %p188_p3 = scmp.lt.s32.totalorder (!%p163_p2), %s1103_s16, 1  ;;  %s1536_s29 = smov (!%p163_p2), 0  }
   0x6   : > { %166 = sbr.rel (%p163_p2) target bundleno = 304 (0x130), region = 36 }
   0xb   : > { %v1519_v0 = vld [vmem:[%s1742_s2] ss:$0 sm:$0xff]  ;;  %s1746_s16 = smov (!%p188_p3, %s1103_s16), 1 }
   0xc   : > { %v1524_v1 = vld [vmem:[%s1743_s3] ss:$0 sm:$0xff]  ;;  %s1404_s21 = smul.u32 216, %s1746_s16  ;;  %s1241_s22 = sshll.u32 %s1746_s16, 7 }
   0xd   : > { %s1529_s25 = scalar_lea.vmem %s1744_s4, %s1241_s22 }
   0xe   : > { %s1534_s28 = scalar_lea.vmem %s1740_s0, %s1404_s21 }
   0xf LB: >> { %v1423_v2 = vld [vmem:[%s1741_s1 + $0x38] sm:$0xff]   ;;  %v1481_v3 = vmov 0.0   ;;  %v1425_v5 = vld [vmem:[%s1741_s1 + $0x30] sm:$0xff]   ;;  %vm1482_vm0 = vmmov 0   ;;  %s1242_s10 = smul.u32 12, %s1479_s29  ;;  %v1427_v7 = vld [vmem:[%s1741_s1 + $0x28] sm:$0xff]   ;;  %s1479_s29 = sphi %s1536_s29, %s206_s29  }
  0x10   : >> { %1296 = vmatprep.subr.bf16.mxu0 %v1481_v3  ;;  %1308 = vmatprep.subr.bf16.mxu1 %v1481_v3  ;;  %v1424_v4 = vld [vmem:[%s1741_s1 + $0x18] sm:$0xff]   ;;  %v1426_v6 = vld [vmem:[%s1741_s1 + $0x10] sm:$0xff]   ;;  %v1428_v8 = vld [vmem:[%s1741_s1 + $0x8] sm:$0xff]   ;;  %vm238_vm1 = vsmask.f32 7424  ;;  %vm275_vm2 = vcmask 523264  }
  0x11   : >> { %1297 = vmatpush3.bf16.msra.mxu0 %v1423_v2  ;;  %1304 = vmatprep.mubr.msk.bf16.mxu0 %vm1482_vm0, %v1481_v3  ;;  %s1566_s16 = scalar_lea.vmem %s1534_s28, %s1242_s10  ;;  %v1429_v9 = vld [vmem:[%s1741_s1 + $0x20] sm:$0xff]   ;;  %v1433_v18 = vld [vmem:[%s1741_s1 + $0x58] sm:$0xff]   ;;  %v1435_v22 = vld [vmem:[%s1741_s1 + $0x50] sm:$0xff]   ;;  %vm396_vm3 = vcmask 1046528   ;;  %s1245_s13 = sshll.u32 %s1479_s29, 3 }
  0x12   : >> { %1309 = vmatpush3.bf16.msra.mxu1 %v1424_v4  ;;  %1298 = vmatprep.subr.bf16.mxu0 %v1481_v3  ;;  %v1431_v10 = vld [vmem:[%s1566_s16] sm:$0xff]   ;;  %v1432_v11 = vld [vmem:[%s1566_s16 + $0x8] ss:$0 sps:$4 sm:$0x11]   ;;  %v1434_v20 = vld [vmem:[%s1741_s1 + $0x78] sm:$0xff]   ;;  %s1030_s14 = scalar_lea.vmem %s1529_s25, %s1245_s13  ;;  %s206_s29 = sadd.s32 1, %s1479_s29  }
  0x13   : >> { %1310 = vmatprep.subr.bf16.mxu1 %v1481_v3  ;;  %1316 = vmatprep.mubr.msk.bf16.mxu1 %vm1482_vm0, %v1481_v3  ;;  %v1430_v12 = vld [vmem:[%s1741_s1] sm:$0xff]   ;;  %v240_v13 = vshrl.u32 %v1431_v10, 16  ;;  %v242_v14 = vshll.u32 %v1431_v10, 16  ;;  %v247_v15 = vshll.u32 %v1432_v11, 16  ;;  %v1436_v23 = vld [vmem:[%s1741_s1 + $0x70] sm:$0xff]   ;;  %v1437_v24 = vld [vmem:[%s1741_s1 + $0x48] sm:$0xff]  }
  0x14   : >> { %v1438_v25 = vld [vmem:[%s1741_s1 + $0x68] sm:$0xff]   ;;  %v1439_v26 = vld [vmem:[%s1741_s1 + $0x40] sm:$0xff]   ;;  %v397_v28 = vrot.slane %v1431_v10, 1  ;;  %v398_v29 = vrot.slane %v1432_v11, 1  ;;  %v1441_v30 = vld [vmem:[%s1741_s1 + $0x98] sm:$0xff]   ;;  %p203_p4 = scmp.ge.s32.totalorder %s206_s29, 16  }
  0x15   : >> { %1299 = vmatpush3.bf16.msra.mxu0 %v1425_v5  ;;  %v244_v16 = vrot.slane %v242_v14, 1  ;;  %v249_v17 = vrot.slane %v247_v15, 1  ;;  %v1440_v27 = vld [vmem:[%s1741_s1 + $0x60] sm:$0xff]   ;;  %v1442_v31 = vld [vmem:[%s1566_s16 + $0xc] sm:$0xff]   ;;  %v1443_v33 = vld [vmem:[%s1741_s1 + $0xb8] sm:$0xff]  }
  0x16   : >> { %1311 = vmatpush3.bf16.msra.mxu1 %v1426_v6  ;;  %1300 = vmatprep.subr.bf16.mxu0 %v1481_v3  ;;  %v399_v32 = vsel %vm396_vm3, %v397_v28, %v398_v29  ;;  %v1450_v34 = vld [vmem:[%s1566_s16 + $0x14] ss:$0 sps:$4 sm:$0x11]   ;;  %v575_v37 = vshll.u32 %v1442_v31, 16  ;;  %v1446_v38 = vld [vmem:[%s1741_s1 + $0x88] sm:$0xff]   ;;  %v573_v40 = vshrl.u32 %v1442_v31, 16 }
  0x17   : >> { %1312 = vmatprep.subr.bf16.mxu1 %v1481_v3  ;;  %v245_v19 = vor.u32 %v244_v16, %v240_v13  ;;  %v1444_v35 = vld [vmem:[%s1741_s1 + $0x90] sm:$0xff]   ;;  %v1447_v39 = vld [vmem:[%s1741_s1 + $0xa8] sm:$0xff]   ;;  %v580_v42 = vshll.u32 %v1450_v34, 16  ;;  %v1448_v43 = vld [vmem:[%s1741_s1 + $0x80] sm:$0xff]   ;;  %v663_v47 = vrot.slane %v1442_v31, 1  ;;  %v664_v48 = vrot.slane %v1450_v34, 1 }
  0x18   : >> { %v1445_v36 = vld [vmem:[%s1741_s1 + $0xb0] sm:$0xff]   ;;  %v577_v41 = vrot.slane %v575_v37, 1  ;;  %v1449_v44 = vld [vmem:[%s1741_s1 + $0xa0] sm:$0xff]   ;;  %v1451_v50 = vld [vmem:[%s1741_s1 + $0xd8] sm:$0xff]  }
  0x19   : >> { %1301 = vmatpush3.bf16.msra.mxu0 %v1427_v7  ;;  %v250_v21 = vsel %vm238_vm1, %v245_v19, %v249_v17  ;;  %v582_v46 = vrot.slane %v580_v42, 1  ;;  %v665_v51 = vsel %vm396_vm3, %v663_v47, %v664_v48  ;;  %v1452_v52 = vld [vmem:[%s1741_s1 + $0xf8] sm:$0xff]   ;;  %v1453_v54 = vld [vmem:[%s1741_s1 + $0xd0] sm:$0xff]   ;;  %v1461_v56 = vld [vmem:[%s1566_s16 + $0x20] ss:$0 sps:$4 sm:$0x11]  }
  0x1a   : >> { %1313 = vmatpush3.bf16.msra.mxu1 %v1428_v8  ;;  %1302 = vmatprep.subr.bf16.mxu0 %v1481_v3  ;;  %v578_v45 = vor.u32 %v577_v41, %v573_v40  ;;  %v1459_v53 = vld [vmem:[%s1566_s16 + $0x18] sm:$0xff]   ;;  %v1454_v55 = vld [vmem:[%s1741_s1 + $0xf0] sm:$0xff]   ;;  %v1455_v58 = vld [vmem:[%s1741_s1 + $0xc8] sm:$0xff]   ;;  %v846_v62 = vshll.u32 %v1461_v56, 16 }
  0x1b   : >> { %1314 = vmatprep.subr.bf16.mxu1 %v1481_v3  ;;  %v841_v57 = vshll.u32 %v1459_v53, 16  ;;  %v1456_v59 = vld [vmem:[%s1741_s1 + $0xe8] sm:$0xff]   ;;  %v839_v60 = vshrl.u32 %v1459_v53, 16  ;;  %v1457_v63 = vld [vmem:[%s1741_s1 + $0xc0] sm:$0xff]   ;;  %v1460_v6 = vld [vmem:[%s1741_s1 + $0x118] sm:$0xff]   ;;  %v929_v11 = vrot.slane %v1459_v53, 1 }
  0x1c   : >> { %v583_v49 = vsel %vm238_vm1, %v578_v45, %v582_v46  ;;  %v1458_v2 = vld [vmem:[%s1741_s1 + $0xe0] sm:$0xff]   ;;  %v848_v5 = vrot.slane %v846_v62, 1  ;;  %v1462_v8 = vld [vmem:[%s1741_s1 + $0x110] sm:$0xff]  }
  0x1d   : >> { %1303 = vmatpush3.bf16.msra.mxu0 %v1429_v9  ;;  %v843_v61 = vrot.slane %v841_v57, 1  ;;  %v1463_v9 = vld [vmem:[%s1741_s1 + $0x108] sm:$0xff]  }
  0x1e   : >> { %1315 = vmatpush3.bf16.msra.mxu1 %v1430_v12  ;;  %1320 = vmatprep.subr.bf16.mxu0 %v1481_v3  ;;  %v930_v12 = vrot.slane %v1461_v56, 1 }
  0x1f   : >> { %1332 = vmatprep.subr.bf16.mxu1 %v1481_v3  ;;  %v844_v4 = vor.u32 %v843_v61, %v839_v60 }
  0x20   : >> { %1305 = vmatmul.mubr.msk.bf16.vlgmr.msra.gmra.mxu0 %vm275_vm2, %v250_v21  ;;  %v931_v13 = vsel %vm396_vm3, %v929_v11, %v930_v12 }
  0x21   : >> { %1317 = vmatmul.mubr.msk.bf16.vlgmr.msra.gmra.mxu1 %vm275_vm2, %v1431_v10  ;;  %1321 = vmatpush3.bf16.msra.mxu0 %v1433_v18  ;;  %v849_v7 = vsel %vm238_vm1, %v844_v4, %v848_v5  ;;  %v1464_v10 = vld [vmem:[%s1741_s1 + $0x100] sm:$0xff]  }
  0x22   : >> { %1333 = vmatpush3.bf16.msra.mxu1 %v1434_v20  ;;  %1322 = vmatprep.subr.bf16.mxu0 %v1481_v3 }
  0x23   : >> { %1334 = vmatprep.subr.bf16.mxu1 %v1481_v3  ;;  %1328 = vmatprep.mubr.msk.bf16.mxu0 %vm1482_vm0, %v1481_v3 }
  0x24   : >> { %1340 = vmatprep.mubr.msk.bf16.mxu1 %vm1482_vm0, %v1481_v3 }
  0x25   : >> { %1323 = vmatpush3.bf16.msra.mxu0 %v1435_v22 }
  0x26   : >> { %1335 = vmatpush3.bf16.msra.mxu1 %v1436_v23  ;;  %1324 = vmatprep.subr.bf16.mxu0 %v1481_v3 }
  0x27   : >> { %1336 = vmatprep.subr.bf16.mxu1 %v1481_v3 }
  0x29   : >> { %1325 = vmatpush3.bf16.msra.mxu0 %v1437_v24 }
  0x2a   : >> { %1337 = vmatpush3.bf16.msra.mxu1 %v1438_v25  ;;  %1326 = vmatprep.subr.bf16.mxu0 %v1481_v3 }
  0x2b   : >> { %1338 = vmatprep.subr.bf16.mxu1 %v1481_v3 }
  0x2d   : >> { %1327 = vmatpush3.bf16.msra.mxu0 %v1439_v26 }
  0x2e   : >> { %1339 = vmatpush3.bf16.msra.mxu1 %v1440_v27  ;;  %1344 = vmatprep.subr.bf16.mxu0 %v1481_v3 }
  0x2f   : >> { %1356 = vmatprep.subr.bf16.mxu1 %v1481_v3 }
  0x30   : >> { %1329 = vmatmul.mubr.msk.bf16.vlgmr.msra.gmra.mxu0 %vm275_vm2, %v399_v32 }
  0x31   : >> { %1341 = vmatmul.mubr.msk.bf16.vlgmr.msra.gmra.mxu1 %vm275_vm2, %v1442_v31  ;;  %1345 = vmatpush3.bf16.msra.mxu0 %v1441_v30 }
  0x32   : >> { %1357 = vmatpush3.bf16.msra.mxu1 %v1443_v33  ;;  %1346 = vmatprep.subr.bf16.mxu0 %v1481_v3 }
  0x33   : >> { %1358 = vmatprep.subr.bf16.mxu1 %v1481_v3  ;;  %1352 = vmatprep.mubr.msk.bf16.mxu0 %vm1482_vm0, %v1481_v3 }
  0x34   : >> { %1364 = vmatprep.mubr.msk.bf16.mxu1 %vm1482_vm0, %v1481_v3 }
  0x35   : >> { %1347 = vmatpush3.bf16.msra.mxu0 %v1444_v35 }
  0x36   : >> { %1359 = vmatpush3.bf16.msra.mxu1 %v1445_v36  ;;  %1348 = vmatprep.subr.bf16.mxu0 %v1481_v3 }
  0x37   : >> { %1360 = vmatprep.subr.bf16.mxu1 %v1481_v3 }
  0x39   : >> { %1349 = vmatpush3.bf16.msra.mxu0 %v1446_v38 }
  0x3a   : >> { %1361 = vmatpush3.bf16.msra.mxu1 %v1447_v39  ;;  %1350 = vmatprep.subr.bf16.mxu0 %v1481_v3 }
  0x3b   : >> { %1362 = vmatprep.subr.bf16.mxu1 %v1481_v3 }
  0x3d   : >> { %1351 = vmatpush3.bf16.msra.mxu0 %v1448_v43 }
  0x3e   : >> { %1363 = vmatpush3.bf16.msra.mxu1 %v1449_v44  ;;  %1368 = vmatprep.subr.bf16.mxu0 %v1481_v3 }
  0x3f   : >> { %1380 = vmatprep.subr.bf16.mxu1 %v1481_v3 }
  0x40   : >> { %1353 = vmatmul.mubr.msk.bf16.vlgmr.msra.gmra.mxu0 %vm275_vm2, %v583_v49 }
  0x41   : >> { %1365 = vmatmul.mubr.msk.bf16.vlgmr.msra.gmra.mxu1 %vm275_vm2, %v665_v51  ;;  %1369 = vmatpush3.bf16.msra.mxu0 %v1451_v50 }
  0x42   : >> { %1381 = vmatpush3.bf16.msra.mxu1 %v1452_v52  ;;  %1370 = vmatprep.subr.bf16.mxu0 %v1481_v3 }
  0x43   : >> { %1382 = vmatprep.subr.bf16.mxu1 %v1481_v3  ;;  %1376 = vmatprep.mubr.msk.bf16.mxu0 %vm1482_vm0, %v1481_v3 }
  0x44   : >> { %1388 = vmatprep.mubr.msk.bf16.mxu1 %vm1482_vm0, %v1481_v3 }
  0x45   : >> { %1371 = vmatpush3.bf16.msra.mxu0 %v1453_v54 }
  0x46   : >> { %1383 = vmatpush3.bf16.msra.mxu1 %v1454_v55  ;;  %1372 = vmatprep.subr.bf16.mxu0 %v1481_v3 }
  0x47   : >> { %1384 = vmatprep.subr.bf16.mxu1 %v1481_v3 }
  0x49   : >> { %1373 = vmatpush3.bf16.msra.mxu0 %v1455_v58 }
  0x4a   : >> { %1385 = vmatpush3.bf16.msra.mxu1 %v1456_v59  ;;  %1374 = vmatprep.subr.bf16.mxu0 %v1481_v3 }
  0x4b   : >> { %1386 = vmatprep.subr.bf16.mxu1 %v1481_v3 }
  0x4d   : >> { %1375 = vmatpush3.bf16.msra.mxu0 %v1457_v63 }
  0x4e   : >> { %1387 = vmatpush3.bf16.msra.mxu1 %v1458_v2  ;;  %1392 = vmatprep.subr.bf16.mxu0 %v1481_v3 }
  0x50   : >> { %1377 = vmatmul.mubr.msk.bf16.vlgmr.msra.gmra.mxu0 %vm275_vm2, %v1459_v53 }
  0x51   : >> { %1389 = vmatmul.mubr.msk.bf16.vlgmr.msra.gmra.mxu1 %vm275_vm2, %v849_v7  ;;  %1393 = vmatpush3.bf16.msra.mxu0 %v1460_v6 }
  0x52   : >> { %1400 = vmatprep.mubr.msk.bf16.mxu0 %vm1482_vm0, %v1481_v3  ;;  %1394 = vmatprep.subr.bf16.mxu0 %v1481_v3 }
  0x55   : >> { %1395 = vmatpush3.bf16.msra.mxu0 %v1462_v8 }
  0x56   : >> { %1396 = vmatprep.subr.bf16.mxu0 %v1481_v3 }
  0x59   : >> { %1397 = vmatpush3.bf16.msra.mxu0 %v1463_v9 }
  0x5a   : >> { %1398 = vmatprep.subr.bf16.mxu0 %v1481_v3 }
  0x5d   : >> { %1399 = vmatpush3.bf16.msra.mxu0 %v1464_v10 }
  0x60   : >> { %1401 = vmatmul.mubr.msk.bf16.vlgmr.msra.gmra.mxu0 %vm275_vm2, %v931_v13 }
  0xe0   : >> { %v313_v14 = vpop.f32.mrf.mxu0 }
  0xe1   : >> { %v380_v15 = vpop.f32.mrf.mxu1 }
  0xe2   : >> { %v1306_v16 = vpop.f32.mrf.mxu0  ;;  %v381_v37 = vadd.f32 %v380_v15, %v313_v14 }
  0xe3   : >> { %v1318_v17 = vpop.f32.mrf.mxu1 }
  0xe4   : >> { %v316_v18 = vpop.f32.mrf.mxu0 }
  0xe5   : >> { %v383_v19 = vpop.f32.mrf.mxu1 }
  0xe6   : >> { %v1307_v20 = vpop.f32.mrf.mxu0  ;;  %v384_v41 = vadd.f32 %v383_v19, %v316_v18 }
  0xe7   : >> { %v1319_v21 = vpop.f32.mrf.mxu1 }
  0xf0   : >> { %v461_v22 = vpop.f32.mrf.mxu0 }
  0xf1   : >> { %v552_v23 = vpop.f32.mrf.mxu1  ;;  %v468_v38 = vadd.f32 %v461_v22, %v381_v37 }
  0xf2   : >> { %v1330_v24 = vpop.f32.mrf.mxu0 }
  0xf3   : >> { %v1342_v25 = vpop.f32.mrf.mxu1  ;;  %v559_v44 = vadd.f32 %v552_v23, %v468_v38 }
  0xf4   : >> { %v464_v26 = vpop.f32.mrf.mxu0 }
  0xf5   : >> { %v555_v27 = vpop.f32.mrf.mxu1  ;;  %v469_v45 = vadd.f32 %v464_v26, %v384_v41 }
  0xf6   : >> { %v1331_v3 = vpop.f32.mrf.mxu0 }
  0xf7   : >> { %v1343_v28 = vpop.f32.mrf.mxu1  ;;  %v560_v51 = vadd.f32 %v555_v27, %v469_v45 }
 0x100   : >> { %v645_v29 = vpop.f32.mrf.mxu0 }
 0x101   : >> { %v727_v30 = vpop.f32.mrf.mxu1  ;;  %v652_v48 = vadd.f32 %v645_v29, %v559_v44 }
 0x102   : >> { %v1354_v31 = vpop.f32.mrf.mxu0 }
 0x103   : >> { %v1366_v32 = vpop.f32.mrf.mxu1  ;;  %v734_v52 = vadd.f32 %v727_v30, %v652_v48 }
 0x104   : >> { %v648_v33 = vpop.f32.mrf.mxu0 }
 0x105   : >> { %v730_v34 = vpop.f32.mrf.mxu1  ;;  %v653_v53 = vadd.f32 %v648_v33, %v560_v51 }
 0x106   : >> { %v1355_v35 = vpop.f32.mrf.mxu0 }
 0x107   : >> { %v1367_v36 = vpop.f32.mrf.mxu1  ;;  %v735_v55 = vadd.f32 %v730_v34, %v653_v53 }
 0x110   : >> { %v818_v39 = vpop.f32.mrf.mxu0 }
 0x111   : >> { %v911_v40 = vpop.f32.mrf.mxu1  ;;  %v825_v54 = vadd.f32 %v818_v39, %v734_v52 }
 0x112   : >> { %v1378_v42 = vpop.f32.mrf.mxu0 }
 0x113   : >> { %v1390_v43 = vpop.f32.mrf.mxu1  ;;  %v918_v56 = vadd.f32 %v911_v40, %v825_v54 }
 0x114   : >> { %v821_v46 = vpop.f32.mrf.mxu0 }
 0x115   : >> { %v914_v47 = vpop.f32.mrf.mxu1  ;;  %v826_v57 = vadd.f32 %v821_v46, %v735_v55 }
 0x116   : >> { %v1379_v49 = vpop.f32.mrf.mxu0 }
 0x117   : >> { %v1391_v50 = vpop.f32.mrf.mxu1  ;;  %v919_v61 = vadd.f32 %v914_v47, %v826_v57 }
 0x120   : >> { %v993_v58 = vpop.f32.mrf.mxu0 }
 0x121   : >> { %v1000_v59 = vadd.f32 %v993_v58, %v918_v56 }
 0x122   : >> { %v1402_v60 = vpop.f32.mrf.mxu0 }
 0x123   : >> { %v1008_v62 = vmul.f32 %v1519_v0, %v1000_v59 }
 0x124   : >> { %v996_v63 = vpop.f32.mrf.mxu0 }
 0x125   : >> { %v1001_v2 = vadd.f32 %v996_v63, %v919_v61  ;;  %v1016_v5 = vadd.f32 %v1524_v1, %v1008_v62 }
 0x126   : >> { %v1403_v4 = vpop.f32.mrf.mxu0 }
 0x127   : >> { %v1009_v6 = vmul.f32 %v1519_v0, %v1001_v2  ;;  %v1018_v8 = vmax.f32 %v1016_v5, 0.0 }
 0x129   : >> { %v1017_v7 = vadd.f32 %v1524_v1, %v1009_v6 }
 0x12b   : >> { %v1019_v9 = vmax.f32 %v1017_v7, 0.0  ;;  %205 = sbr.rel (!%p203_p4) target bundleno = 15 (0xf), region = 85 }
 0x12d   : >> { %v1249_v10 = vpack.c.bf16 %v1019_v9, %v1018_v8 }
 0x12f   : >> { %1250 = vst [vmem:[%s1030_s14] sm:$0xff] %v1249_v10  }
 0x130 PF: > { %s14_s15 = sadd.s32 1, %s1475_s15  }
 0x131   : > { %p11_p5 = scmp.ge.s32.totalorder %s14_s15, 4  }
 0x133   :  { %13 = sbr.rel (!%p11_p5) target bundleno = 1 (0x1), region = 96 }

// kernel: forward.19
= control target key start
LH: loop header
LB: loop body
LE: loop exit
PB: predicated region body
PF: predicated region fallthrough
CT: control target
= control target key end

     0   :  { %s2211_s15 = smov 0   ;;  %s2720_s0 = inlined_call_operand.vmem [shape: bf16[2,10,10,128], index: 0, kind: input, shape index: {}]   ;;  %s2721_s1 = inlined_call_operand.vmem [shape: bf16[9,128,256], index: 1, kind: input, shape index: {}]   ;;  %s2722_s2 = inlined_call_operand.vmem [shape: f32[1,256], index: 2, kind: input, shape index: {}]   ;;  %s2723_s3 = inlined_call_operand.vmem [shape: f32[1,256], index: 3, kind: input, shape index: {}]   ;;  %s2724_s4 = inlined_call_operand.vmem [shape: bf16[2,8,8,256], index: 4, kind: output, shape index: {}]  }
   0x1 LB: > { %s1633_s16 = sadd.s32 4294967295, %s2179_s15   ;;  %p1637_p0 = scmp.ge.s32.totalorder %s2179_s15, 1  ;;  %s2179_s15 = sphi %s2211_s15, %s14_s15  }
   0x2   : > { %p162_p1 = scmp.lt.s32.totalorder %s2179_s15, 3 }
   0x4   : > { %p163_p2 = pnand %p1637_p0, %p162_p1 }
   0x5   : > { %p188_p3 = scmp.lt.s32.totalorder (!%p163_p2), %s1633_s16, 1  ;;  %s2239_s29 = smov (!%p163_p2), 0  }
   0x6   : > { %166 = sbr.rel (%p163_p2) target bundleno = 383 (0x17f), region = 36 }
   0xb   : > { %v2222_v0 = vld [vmem:[%s2722_s2] sm:$0x3]  ;;  %s2726_s16 = smov (!%p188_p3, %s1633_s16), 1 }
   0xc   : > { %v2227_v1 = vld [vmem:[%s2723_s3] sm:$0x3]  ;;  %s1932_s21 = smul.u32 80, %s2726_s16  ;;  %s1928_s22 = sshll.u32 %s2726_s16, 6 }
   0xd   : > { %s2232_s25 = scalar_lea.vmem %s2724_s4, %s1928_s22 }
   0xe   : > { %s2237_s28 = scalar_lea.vmem %s2720_s0, %s1932_s21 }
   0xf LB: >> { %v1950_v2 = vld [vmem:[%s2721_s1 + $0xf4] ss:$8 sps:$4 sm:$0xff]   ;;  %v2185_v4 = vmov 0   ;;  %v1954_v5 = vld [vmem:[%s2721_s1 + $0xf0] ss:$8 sps:$4 sm:$0xff]   ;;  %s1929_s23 = sshll.u32 %s2183_s29, 3  ;;  %s2183_s29 = sphi %s2239_s29, %s206_s29  }
  0x10   : >> { %v1952_v3 = vld [vmem:[%s2721_s1 + $0x74] ss:$8 sps:$4 sm:$0xff]   ;;  %370 = vmatprep.mubr.bf16.mxu0 %v2185_v4  ;;  %491 = vmatprep.mubr.bf16.mxu1 %v2185_v4  ;;  %v1955_v6 = vld [vmem:[%s2721_s1 + $0x70] ss:$8 sps:$4 sm:$0xff]   ;;  %v1956_v7 = vld [vmem:[%s2721_s1 + $0xe4] ss:$8 sps:$4 sm:$0xff]   ;;  %s2316_s5 = scalar_lea.vmem %s2237_s28, %s1929_s23  ;;  %s1561_s7 = scalar_lea.vmem %s2232_s25, %s1929_s23 }
  0x11   : >> { %338 = vmatprep.subr.bf16.mxu0 %v1950_v2  ;;  %459 = vmatprep.subr.bf16.mxu1 %v1952_v3  ;;  %v1958_v8 = vld [vmem:[%s2721_s1 + $0x64] ss:$8 sps:$4 sm:$0xff]   ;;  %v1960_v9 = vld [vmem:[%s2721_s1 + $0xe0] ss:$8 sps:$4 sm:$0xff]   ;;  %v1962_v11 = vld [vmem:[%s2721_s1 + $0xd4] ss:$8 sps:$4 sm:$0xff]  }
  0x12   : >> { %339 = vmatpush1.bf16.msra.mxu0 %v1954_v5  ;;  %460 = vmatpush1.bf16.msra.mxu1 %v1955_v6  ;;  %v1961_v10 = vld [vmem:[%s2721_s1 + $0x60] ss:$8 sps:$4 sm:$0xff]   ;;  %v1964_v12 = vld [vmem:[%s2721_s1 + $0x54] ss:$8 sps:$4 sm:$0xff]   ;;  %v1966_v13 = vld [vmem:[%s2721_s1 + $0xd0] ss:$8 sps:$4 sm:$0xff]  }
  0x13   : >> { %340 = vmatprep.subr.bf16.mxu0 %v1956_v7  ;;  %461 = vmatprep.subr.bf16.mxu1 %v1958_v8  ;;  %v1967_v14 = vld [vmem:[%s2721_s1 + $0x50] ss:$8 sps:$4 sm:$0xff]   ;;  %v1968_v15 = vld [vmem:[%s2721_s1 + $0xc4] ss:$8 sps:$4 sm:$0xff]   ;;  %v1972_v17 = vld [vmem:[%s2721_s1 + $0xc0] ss:$8 sps:$4 sm:$0xff]  }
  0x14   : >> { %v1970_v16 = vld [vmem:[%s2721_s1 + $0x44] ss:$8 sps:$4 sm:$0xff]   ;;  %v1973_v18 = vld [vmem:[%s2721_s1 + $0x40] ss:$8 sps:$4 sm:$0xff]   ;;  %v1974_v19 = vld [vmem:[%s2721_s1 + $0xb4] ss:$8 sps:$4 sm:$0xff]  }
  0x15   : >> { %v1976_v20 = vld [vmem:[%s2721_s1 + $0x34] ss:$8 sps:$4 sm:$0xff]   ;;  %v1978_v21 = vld [vmem:[%s2721_s1 + $0xb0] ss:$8 sps:$4 sm:$0xff]   ;;  %v1980_v23 = vld [vmem:[%s2721_s1 + $0xa4] ss:$8 sps:$4 sm:$0xff]  }
  0x16   : >> { %341 = vmatpush1.bf16.msra.mxu0 %v1960_v9  ;;  %462 = vmatpush1.bf16.msra.mxu1 %v1961_v10  ;;  %v1979_v22 = vld [vmem:[%s2721_s1 + $0x30] ss:$8 sps:$4 sm:$0xff]   ;;  %v1982_v24 = vld [vmem:[%s2721_s1 + $0x24] ss:$8 sps:$4 sm:$0xff]   ;;  %v1984_v25 = vld [vmem:[%s2721_s1 + $0xa0] ss:$8 sps:$4 sm:$0xff]  }
  0x17   : >> { %342 = vmatprep.subr.bf16.mxu0 %v1962_v11  ;;  %463 = vmatprep.subr.bf16.mxu1 %v1964_v12  ;;  %v1985_v26 = vld [vmem:[%s2721_s1 + $0x20] ss:$8 sps:$4 sm:$0xff]   ;;  %v1986_v27 = vld [vmem:[%s2721_s1 + $0x94] ss:$8 sps:$4 sm:$0xff]   ;;  %v211_v30 = vld [vmem:[%s2316_s5 + $0x4] sm:$0x1] }
  0x18   : >> { %v1988_v28 = vld [vmem:[%s2721_s1 + $0x14] ss:$8 sps:$4 sm:$0xff]   ;;  %v210_v29 = vld [vmem:[%s2316_s5] sm:$0xf]  ;;  %v1990_v32 = vld [vmem:[%s2721_s1 + $0x90] ss:$8 sps:$4 sm:$0xff]  }
  0x19   : >> { %v2332_v31 = vcombine.low %v210_v29, %v211_v30  ;;  %v1991_v33 = vld [vmem:[%s2721_s1 + $0x10] ss:$8 sps:$4 sm:$0xff]   ;;  %v1992_v34 = vld [vmem:[%s2721_s1 + $0x84] ss:$8 sps:$4 sm:$0xff]   ;;  %v1996_v37 = vld [vmem:[%s2721_s1 + $0x80] ss:$8 sps:$4 sm:$0xff]  }
  0x1a   : >> { %343 = vmatpush1.bf16.msra.mxu0 %v1966_v13  ;;  %464 = vmatpush1.bf16.msra.mxu1 %v1967_v14  ;;  %v1994_v36 = vld [vmem:[%s2721_s1 + $0x4] ss:$8 sps:$4 sm:$0xff]   ;;  %v1997_v40 = vld [vmem:[%s2721_s1] ss:$8 sps:$4 sm:$0xff]   ;;  %v2001_v41 = vld [vmem:[%s2721_s1 + $0x174] ss:$8 sps:$4 sm:$0xff]  }
  0x1b   : >> { %344 = vmatprep.subr.bf16.mxu0 %v1968_v15  ;;  %465 = vmatprep.subr.bf16.mxu1 %v1970_v16  ;;  %v253_v35 = vshll.u32 %v2332_v31, 16  ;;  %v251_v38 = vshrl.u32 %v2332_v31, 16  ;;  %v2004_v42 = vld [vmem:[%s2721_s1 + $0x1f4] ss:$8 sps:$4 sm:$0xff]   ;;  %v1999_v44 = vld [vmem:[%s2721_s1 + $0x170] ss:$8 sps:$4 sm:$0xff]  }
  0x1c   : >> { %v2002_v45 = vld [vmem:[%s2721_s1 + $0x1f0] ss:$8 sps:$4 sm:$0xff]   ;;  %v2007_v46 = vld [vmem:[%s2721_s1 + $0x164] ss:$8 sps:$4 sm:$0xff]   ;;  %v2005_v48 = vld [vmem:[%s2721_s1 + $0x160] ss:$8 sps:$4 sm:$0xff]  }
  0x1d   : >> { %v255_v39 = vrot.slane %v253_v35, 1  ;;  %v2010_v47 = vld [vmem:[%s2721_s1 + $0x1e4] ss:$8 sps:$4 sm:$0xff]   ;;  %v2008_v49 = vld [vmem:[%s2721_s1 + $0x1e0] ss:$8 sps:$4 sm:$0xff]   ;;  %v517_v16 = vrot.slane %v2332_v31, 1 }
  0x1e   : >> { %345 = vmatpush1.bf16.msra.mxu0 %v1972_v17  ;;  %466 = vmatpush1.bf16.msra.mxu1 %v1973_v18  ;;  %v2013_v50 = vld [vmem:[%s2721_s1 + $0x154] ss:$8 sps:$4 sm:$0xff]   ;;  %v2011_v52 = vld [vmem:[%s2721_s1 + $0x150] ss:$8 sps:$4 sm:$0xff]   ;;  %v2019_v54 = vld [vmem:[%s2721_s1 + $0x144] ss:$8 sps:$4 sm:$0xff]  }
  0x1f   : >> { %346 = vmatprep.subr.bf16.mxu0 %v1974_v19  ;;  %467 = vmatprep.subr.bf16.mxu1 %v1976_v20  ;;  %v256_v43 = vor.u32 %v255_v39, %v251_v38  ;;  %v2016_v51 = vld [vmem:[%s2721_s1 + $0x1d4] ss:$8 sps:$4 sm:$0xff]   ;;  %v2014_v53 = vld [vmem:[%s2721_s1 + $0x1d0] ss:$8 sps:$4 sm:$0xff]   ;;  %v2022_v55 = vld [vmem:[%s2721_s1 + $0x1c4] ss:$8 sps:$4 sm:$0xff]  }
  0x20   : >> { %v2017_v56 = vld [vmem:[%s2721_s1 + $0x140] ss:$8 sps:$4 sm:$0xff]   ;;  %v2025_v58 = vld [vmem:[%s2721_s1 + $0x134] ss:$8 sps:$4 sm:$0xff]   ;;  %v2023_v60 = vld [vmem:[%s2721_s1 + $0x130] ss:$8 sps:$4 sm:$0xff]  }
  0x21   : >> { %v2020_v57 = vld [vmem:[%s2721_s1 + $0x1c0] ss:$8 sps:$4 sm:$0xff]   ;;  %v2028_v59 = vld [vmem:[%s2721_s1 + $0x1b4] ss:$8 sps:$4 sm:$0xff]   ;;  %v2026_v61 = vld [vmem:[%s2721_s1 + $0x1b0] ss:$8 sps:$4 sm:$0xff]  }
  0x22   : >> { %347 = vmatpush1.bf16.msra.mxu0 %v1978_v21  ;;  %468 = vmatpush1.bf16.msra.mxu1 %v1979_v22  ;;  %v2031_v62 = vld [vmem:[%s2721_s1 + $0x124] ss:$8 sps:$4 sm:$0xff]   ;;  %v2029_v2 = vld [vmem:[%s2721_s1 + $0x120] ss:$8 sps:$4 sm:$0xff]   ;;  %v2037_v5 = vld [vmem:[%s2721_s1 + $0x114] ss:$8 sps:$4 sm:$0xff]  }
  0x23   : >> { %348 = vmatprep.subr.bf16.mxu0 %v1980_v23  ;;  %469 = vmatprep.subr.bf16.mxu1 %v1982_v24  ;;  %v2034_v63 = vld [vmem:[%s2721_s1 + $0x1a4] ss:$8 sps:$4 sm:$0xff]   ;;  %v2032_v3 = vld [vmem:[%s2721_s1 + $0x1a0] ss:$8 sps:$4 sm:$0xff]   ;;  %v2040_v6 = vld [vmem:[%s2721_s1 + $0x194] ss:$8 sps:$4 sm:$0xff]  }
  0x24   : >> { %v2035_v7 = vld [vmem:[%s2721_s1 + $0x110] ss:$8 sps:$4 sm:$0xff]   ;;  %v2043_v9 = vld [vmem:[%s2721_s1 + $0x104] ss:$8 sps:$4 sm:$0xff]   ;;  %v2041_v11 = vld [vmem:[%s2721_s1 + $0x100] ss:$8 sps:$4 sm:$0xff]  }
  0x25   : >> { %v2038_v8 = vld [vmem:[%s2721_s1 + $0x190] ss:$8 sps:$4 sm:$0xff]   ;;  %v2046_v10 = vld [vmem:[%s2721_s1 + $0x184] ss:$8 sps:$4 sm:$0xff]   ;;  %v2044_v12 = vld [vmem:[%s2721_s1 + $0x180] ss:$8 sps:$4 sm:$0xff]  }
  0x26   : >> { %349 = vmatpush1.bf16.msra.mxu0 %v1984_v25  ;;  %470 = vmatpush1.bf16.msra.mxu1 %v1985_v26  ;;  %v2049_v13 = vld [vmem:[%s2721_s1 + $0x274] ss:$8 sps:$4 sm:$0xff]   ;;  %v2047_v15 = vld [vmem:[%s2721_s1 + $0x270] ss:$8 sps:$4 sm:$0xff]   ;;  %v1725_v17 = vld [vmem:[%s2316_s5 + $0x8] sm:$0xf] }
  0x27   : >> { %350 = vmatprep.subr.bf16.mxu0 %v1986_v27  ;;  %471 = vmatprep.subr.bf16.mxu1 %v1988_v28  ;;  %v2053_v14 = vld [vmem:[%s2721_s1 + $0x2f4] ss:$8 sps:$4 sm:$0xff]   ;;  %v2051_v18 = vld [vmem:[%s2721_s1 + $0x2f0] ss:$8 sps:$4 sm:$0xff]   ;;  %v2056_v19 = vld [vmem:[%s2721_s1 + $0x264] ss:$8 sps:$4 sm:$0xff]  }
  0x28   : >> { %v2059_v20 = vld [vmem:[%s2721_s1 + $0x2e4] ss:$8 sps:$4 sm:$0xff]   ;;  %v2054_v21 = vld [vmem:[%s2721_s1 + $0x260] ss:$8 sps:$4 sm:$0xff]   ;;  %v2062_v23 = vld [vmem:[%s2721_s1 + $0x254] ss:$8 sps:$4 sm:$0xff]  }
  0x29   : >> { %v2057_v22 = vld [vmem:[%s2721_s1 + $0x2e0] ss:$8 sps:$4 sm:$0xff]   ;;  %v2065_v24 = vld [vmem:[%s2721_s1 + $0x2d4] ss:$8 sps:$4 sm:$0xff]   ;;  %v2060_v25 = vld [vmem:[%s2721_s1 + $0x250] ss:$8 sps:$4 sm:$0xff]  }
  0x2a   : >> { %351 = vmatpush1.bf16.msra.mxu0 %v1990_v32  ;;  %472 = vmatpush1.bf16.msra.mxu1 %v1991_v33  ;;  %v2063_v26 = vld [vmem:[%s2721_s1 + $0x2d0] ss:$8 sps:$4 sm:$0xff]   ;;  %v2068_v27 = vld [vmem:[%s2721_s1 + $0x244] ss:$8 sps:$4 sm:$0xff]   ;;  %v2069_v30 = vld [vmem:[%s2721_s1 + $0x2c0] ss:$8 sps:$4 sm:$0xff]  }
  0x2b   : >> { %352 = vmatprep.subr.bf16.mxu0 %v1992_v34  ;;  %473 = vmatprep.subr.bf16.mxu1 %v1994_v36  ;;  %v2071_v28 = vld [vmem:[%s2721_s1 + $0x2c4] ss:$8 sps:$4 sm:$0xff]   ;;  %v2074_v31 = vld [vmem:[%s2721_s1 + $0x234] ss:$8 sps:$4 sm:$0xff]   ;;  %v2072_v34 = vld [vmem:[%s2721_s1 + $0x230] ss:$8 sps:$4 sm:$0xff]  }
  0x2c   : >> { %v2077_v32 = vld [vmem:[%s2721_s1 + $0x2b4] ss:$8 sps:$4 sm:$0xff]   ;;  %v1726_v33 = vld [vmem:[%s2316_s5 + $0xc] sm:$0x1]  ;;  %v2075_v35 = vld [vmem:[%s2721_s1 + $0x2b0] ss:$8 sps:$4 sm:$0xff]  }
  0x2d   : >> { %v2080_v36 = vld [vmem:[%s2721_s1 + $0x224] ss:$8 sps:$4 sm:$0xff]   ;;  %v1775_v38 = vcombine.low %v1725_v17, %v1726_v33  ;;  %v2078_v39 = vld [vmem:[%s2721_s1 + $0x220] ss:$8 sps:$4 sm:$0xff]   ;;  %v2145_v33 = vld [vmem:[%s2721_s1 + $0x470] ss:$8 sps:$4 sm:$0xff]  }
  0x2e   : >> { %353 = vmatpush1.bf16.msra.mxu0 %v1996_v37  ;;  %474 = vmatpush1.bf16.msra.mxu1 %v1997_v40  ;;  %v2083_v37 = vld [vmem:[%s2721_s1 + $0x2a4] ss:$8 sps:$4 sm:$0xff]   ;;  %v2081_v40 = vld [vmem:[%s2721_s1 + $0x2a0] ss:$8 sps:$4 sm:$0xff]   ;;  %s206_s29 = sadd.s32 1, %s2183_s29  }
  0x2f   : >> { %599 = vmatprep.subr.bf16.mxu0 %v2001_v41  ;;  %745 = vmatprep.subr.bf16.mxu1 %v2004_v42  ;;  %v2086_v41 = vld [vmem:[%s2721_s1 + $0x214] ss:$8 sps:$4 sm:$0xff]   ;;  %p203_p4 = scmp.ge.s32.totalorder %s206_s29, 8  }
  0x30   : >> { %v2089_v42 = vld [vmem:[%s2721_s1 + $0x294] ss:$8 sps:$4 sm:$0xff]  }
  0x31   : >> { %371 = vmatmul.mubr.bf16.vlgmr.msra.gmra.mxu0 %v256_v43  ;;  %492 = vmatmul.mubr.bf16.vlgmr.msra.gmra.mxu1 %v210_v29  ;;  %v2066_v29 = vld [vmem:[%s2721_s1 + $0x240] ss:$8 sps:$4 sm:$0xff]   ;;  %v813_v43 = vshll.u32 %v1775_v38, 16 }
  0x32   : >> { %600 = vmatpush1.bf16.msra.mxu0 %v1999_v44  ;;  %746 = vmatpush1.bf16.msra.mxu1 %v2002_v45  ;;  %v2084_v44 = vld [vmem:[%s2721_s1 + $0x210] ss:$8 sps:$4 sm:$0xff]  }
  0x33   : >> { %601 = vmatprep.subr.bf16.mxu0 %v2007_v46  ;;  %747 = vmatprep.subr.bf16.mxu1 %v2010_v47  ;;  %v2087_v45 = vld [vmem:[%s2721_s1 + $0x290] ss:$8 sps:$4 sm:$0xff]   ;;  %v2092_v46 = vld [vmem:[%s2721_s1 + $0x204] ss:$8 sps:$4 sm:$0xff]  }
  0x34   : >> { %631 = vmatprep.mubr.bf16.mxu0 %v2185_v4  ;;  %777 = vmatprep.mubr.bf16.mxu1 %v2185_v4  ;;  %v2095_v47 = vld [vmem:[%s2721_s1 + $0x284] ss:$8 sps:$4 sm:$0xff]  }
  0x36   : >> { %602 = vmatpush1.bf16.msra.mxu0 %v2005_v48  ;;  %748 = vmatpush1.bf16.msra.mxu1 %v2008_v49  ;;  %v811_v48 = vshrl.u32 %v1775_v38, 16  ;;  %v2090_v49 = vld [vmem:[%s2721_s1 + $0x200] ss:$8 sps:$4 sm:$0xff]  }
  0x37   : >> { %603 = vmatprep.subr.bf16.mxu0 %v2013_v50  ;;  %749 = vmatprep.subr.bf16.mxu1 %v2016_v51  ;;  %v815_v50 = vrot.slane %v813_v43, 1  ;;  %v2093_v51 = vld [vmem:[%s2721_s1 + $0x280] ss:$8 sps:$4 sm:$0xff]   ;;  %v2165_v43 = vld [vmem:[%s2721_s1 + $0x414] ss:$8 sps:$4 sm:$0xff]  }
  0x3a   : >> { %604 = vmatpush1.bf16.msra.mxu0 %v2011_v52  ;;  %750 = vmatpush1.bf16.msra.mxu1 %v2014_v53  ;;  %v2098_v52 = vld [vmem:[%s2721_s1 + $0x374] ss:$8 sps:$4 sm:$0xff]  }
  0x3b   : >> { %605 = vmatprep.subr.bf16.mxu0 %v2019_v54  ;;  %751 = vmatprep.subr.bf16.mxu1 %v2022_v55  ;;  %v2101_v53 = vld [vmem:[%s2721_s1 + $0x3f4] ss:$8 sps:$4 sm:$0xff]   ;;  %v816_v54 = vor.u32 %v815_v50, %v811_v48  ;;  %v2096_v55 = vld [vmem:[%s2721_s1 + $0x370] ss:$8 sps:$4 sm:$0xff]  }
  0x3e   : >> { %606 = vmatpush1.bf16.msra.mxu0 %v2017_v56  ;;  %752 = vmatpush1.bf16.msra.mxu1 %v2020_v57  ;;  %v958_v56 = vrot.slane %v1775_v38, 1  ;;  %v2099_v57 = vld [vmem:[%s2721_s1 + $0x3f0] ss:$8 sps:$4 sm:$0xff]   ;;  %v2156_v38 = vld [vmem:[%s2721_s1 + $0x444] ss:$8 sps:$4 sm:$0xff]  }
  0x3f   : >> { %607 = vmatprep.subr.bf16.mxu0 %v2025_v58  ;;  %753 = vmatprep.subr.bf16.mxu1 %v2028_v59  ;;  %v2104_v58 = vld [vmem:[%s2721_s1 + $0x364] ss:$8 sps:$4 sm:$0xff]  }
  0x40   : >> { %v2107_v59 = vld [vmem:[%s2721_s1 + $0x3e4] ss:$8 sps:$4 sm:$0xff]  }
  0x42   : >> { %608 = vmatpush1.bf16.msra.mxu0 %v2023_v60  ;;  %754 = vmatpush1.bf16.msra.mxu1 %v2026_v61  ;;  %v2102_v60 = vld [vmem:[%s2721_s1 + $0x360] ss:$8 sps:$4 sm:$0xff]  }
  0x43   : >> { %609 = vmatprep.subr.bf16.mxu0 %v2031_v62  ;;  %755 = vmatprep.subr.bf16.mxu1 %v2034_v63  ;;  %v2105_v61 = vld [vmem:[%s2721_s1 + $0x3e0] ss:$8 sps:$4 sm:$0xff]   ;;  %v2110_v62 = vld [vmem:[%s2721_s1 + $0x354] ss:$8 sps:$4 sm:$0xff]  }
  0x44   : >> { %v2113_v63 = vld [vmem:[%s2721_s1 + $0x3d4] ss:$8 sps:$4 sm:$0xff]  }
  0x46   : >> { %610 = vmatpush1.bf16.msra.mxu0 %v2029_v2  ;;  %756 = vmatpush1.bf16.msra.mxu1 %v2032_v3  ;;  %v2108_v2 = vld [vmem:[%s2721_s1 + $0x350] ss:$8 sps:$4 sm:$0xff]  }
  0x47   : >> { %611 = vmatprep.subr.bf16.mxu0 %v2037_v5  ;;  %757 = vmatprep.subr.bf16.mxu1 %v2040_v6  ;;  %v2111_v3 = vld [vmem:[%s2721_s1 + $0x3d0] ss:$8 sps:$4 sm:$0xff]   ;;  %v2116_v5 = vld [vmem:[%s2721_s1 + $0x344] ss:$8 sps:$4 sm:$0xff]  }
  0x48   : >> { %v2119_v6 = vld [vmem:[%s2721_s1 + $0x3c4] ss:$8 sps:$4 sm:$0xff]  }
  0x4a   : >> { %612 = vmatpush1.bf16.msra.mxu0 %v2035_v7  ;;  %758 = vmatpush1.bf16.msra.mxu1 %v2038_v8  ;;  %v2114_v7 = vld [vmem:[%s2721_s1 + $0x340] ss:$8 sps:$4 sm:$0xff]  }
  0x4b   : >> { %613 = vmatprep.subr.bf16.mxu0 %v2043_v9  ;;  %759 = vmatprep.subr.bf16.mxu1 %v2046_v10  ;;  %v2117_v8 = vld [vmem:[%s2721_s1 + $0x3c0] ss:$8 sps:$4 sm:$0xff]   ;;  %v2122_v9 = vld [vmem:[%s2721_s1 + $0x334] ss:$8 sps:$4 sm:$0xff]  }
  0x4c   : >> { %v2125_v10 = vld [vmem:[%s2721_s1 + $0x3b4] ss:$8 sps:$4 sm:$0xff]  }
  0x4e   : >> { %614 = vmatpush1.bf16.msra.mxu0 %v2041_v11  ;;  %760 = vmatpush1.bf16.msra.mxu1 %v2044_v12  ;;  %v2120_v11 = vld [vmem:[%s2721_s1 + $0x330] ss:$8 sps:$4 sm:$0xff]  }
  0x4f   : >> { %898 = vmatprep.subr.bf16.mxu0 %v2049_v13  ;;  %1040 = vmatprep.subr.bf16.mxu1 %v2053_v14  ;;  %v2123_v12 = vld [vmem:[%s2721_s1 + $0x3b0] ss:$8 sps:$4 sm:$0xff]   ;;  %v1826_v14 = vld [vmem:[%s2316_s5 + $0x14] sm:$0x1] }
  0x50   : >> { %v1825_v13 = vld [vmem:[%s2316_s5 + $0x10] sm:$0xf] }
  0x51   : >> { %632 = vmatmul.mubr.bf16.vlgmr.msra.gmra.mxu0 %v517_v16  ;;  %778 = vmatmul.mubr.bf16.vlgmr.msra.gmra.mxu1 %v1725_v17  ;;  %v2131_v16 = vld [vmem:[%s2721_s1 + $0x3a4] ss:$8 sps:$4 sm:$0xff]   ;;  %v2623_v17 = vcombine.low %v1825_v13, %v1826_v14 }
  0x52   : >> { %899 = vmatpush1.bf16.msra.mxu0 %v2047_v15  ;;  %1041 = vmatpush1.bf16.msra.mxu1 %v2051_v18  ;;  %v2128_v15 = vld [vmem:[%s2721_s1 + $0x324] ss:$8 sps:$4 sm:$0xff]   ;;  %v2126_v18 = vld [vmem:[%s2721_s1 + $0x320] ss:$8 sps:$4 sm:$0xff]  }
  0x53   : >> { %900 = vmatprep.subr.bf16.mxu0 %v2056_v19  ;;  %1042 = vmatprep.subr.bf16.mxu1 %v2059_v20  ;;  %v2129_v19 = vld [vmem:[%s2721_s1 + $0x3a0] ss:$8 sps:$4 sm:$0xff]   ;;  %v2134_v20 = vld [vmem:[%s2721_s1 + $0x314] ss:$8 sps:$4 sm:$0xff]  }
  0x54   : >> { %930 = vmatprep.mubr.bf16.mxu0 %v2185_v4  ;;  %1072 = vmatprep.mubr.bf16.mxu1 %v2185_v4 }
  0x56   : >> { %901 = vmatpush1.bf16.msra.mxu0 %v2054_v21  ;;  %1043 = vmatpush1.bf16.msra.mxu1 %v2057_v22  ;;  %v2137_v21 = vld [vmem:[%s2721_s1 + $0x394] ss:$8 sps:$4 sm:$0xff]   ;;  %v1254_v22 = vshll.u32 %v2623_v17, 16 }
  0x57   : >> { %902 = vmatprep.subr.bf16.mxu0 %v2062_v23  ;;  %1044 = vmatprep.subr.bf16.mxu1 %v2065_v24  ;;  %v2132_v23 = vld [vmem:[%s2721_s1 + $0x310] ss:$8 sps:$4 sm:$0xff]  }
  0x58   : >> { %v2135_v24 = vld [vmem:[%s2721_s1 + $0x390] ss:$8 sps:$4 sm:$0xff]  }
  0x5a   : >> { %903 = vmatpush1.bf16.msra.mxu0 %v2060_v25  ;;  %1045 = vmatpush1.bf16.msra.mxu1 %v2063_v26  ;;  %v2140_v25 = vld [vmem:[%s2721_s1 + $0x304] ss:$8 sps:$4 sm:$0xff]  }
  0x5b   : >> { %904 = vmatprep.subr.bf16.mxu0 %v2068_v27  ;;  %1046 = vmatprep.subr.bf16.mxu1 %v2071_v28  ;;  %v2143_v26 = vld [vmem:[%s2721_s1 + $0x384] ss:$8 sps:$4 sm:$0xff]   ;;  %v1252_v27 = vshrl.u32 %v2623_v17, 16  ;;  %v1256_v28 = vrot.slane %v1254_v22, 1 }
  0x5e   : >> { %905 = vmatpush1.bf16.msra.mxu0 %v2066_v29  ;;  %1047 = vmatpush1.bf16.msra.mxu1 %v2069_v30  ;;  %v2138_v29 = vld [vmem:[%s2721_s1 + $0x300] ss:$8 sps:$4 sm:$0xff]  }
  0x5f   : >> { %906 = vmatprep.subr.bf16.mxu0 %v2074_v31  ;;  %1048 = vmatprep.subr.bf16.mxu1 %v2077_v32  ;;  %v2141_v30 = vld [vmem:[%s2721_s1 + $0x380] ss:$8 sps:$4 sm:$0xff]   ;;  %v2147_v31 = vld [vmem:[%s2721_s1 + $0x474] ss:$8 sps:$4 sm:$0xff]   ;;  %v1257_v32 = vor.u32 %v1256_v28, %v1252_v27 }
  0x62   : >> { %907 = vmatpush1.bf16.msra.mxu0 %v2072_v34  ;;  %1049 = vmatpush1.bf16.msra.mxu1 %v2075_v35  ;;  %v2150_v34 = vld [vmem:[%s2721_s1 + $0x464] ss:$8 sps:$4 sm:$0xff]   ;;  %v2148_v35 = vld [vmem:[%s2721_s1 + $0x460] ss:$8 sps:$4 sm:$0xff]  }
  0x63   : >> { %908 = vmatprep.subr.bf16.mxu0 %v2080_v36  ;;  %1050 = vmatprep.subr.bf16.mxu1 %v2083_v37  ;;  %v2153_v36 = vld [vmem:[%s2721_s1 + $0x454] ss:$8 sps:$4 sm:$0xff]   ;;  %v2151_v37 = vld [vmem:[%s2721_s1 + $0x450] ss:$8 sps:$4 sm:$0xff]  }
  0x66   : >> { %909 = vmatpush1.bf16.msra.mxu0 %v2078_v39  ;;  %1051 = vmatpush1.bf16.msra.mxu1 %v2081_v40  ;;  %v2159_v39 = vld [vmem:[%s2721_s1 + $0x434] ss:$8 sps:$4 sm:$0xff]   ;;  %v2157_v40 = vld [vmem:[%s2721_s1 + $0x430] ss:$8 sps:$4 sm:$0xff]  }
  0x67   : >> { %910 = vmatprep.subr.bf16.mxu0 %v2086_v41  ;;  %1052 = vmatprep.subr.bf16.mxu1 %v2089_v42  ;;  %v2162_v41 = vld [vmem:[%s2721_s1 + $0x424] ss:$8 sps:$4 sm:$0xff]   ;;  %v2160_v42 = vld [vmem:[%s2721_s1 + $0x420] ss:$8 sps:$4 sm:$0xff]  }
  0x6a   : >> { %911 = vmatpush1.bf16.msra.mxu0 %v2084_v44  ;;  %1053 = vmatpush1.bf16.msra.mxu1 %v2087_v45  ;;  %v2163_v44 = vld [vmem:[%s2721_s1 + $0x410] ss:$8 sps:$4 sm:$0xff]   ;;  %v2168_v45 = vld [vmem:[%s2721_s1 + $0x404] ss:$8 sps:$4 sm:$0xff]  }
  0x6b   : >> { %912 = vmatprep.subr.bf16.mxu0 %v2092_v46  ;;  %1054 = vmatprep.subr.bf16.mxu1 %v2095_v47  ;;  %v2166_v46 = vld [vmem:[%s2721_s1 + $0x400] ss:$8 sps:$4 sm:$0xff]   ;;  %v1399_v47 = vrot.slane %v2623_v17, 1 }
  0x6e   : >> { %913 = vmatpush1.bf16.msra.mxu0 %v2090_v49  ;;  %1055 = vmatpush1.bf16.msra.mxu1 %v2093_v51 }
  0x6f   : >> { %1186 = vmatprep.subr.bf16.mxu0 %v2098_v52  ;;  %1339 = vmatprep.subr.bf16.mxu1 %v2101_v53 }
  0x71   : >> { %931 = vmatmul.mubr.bf16.vlgmr.msra.gmra.mxu0 %v816_v54  ;;  %1073 = vmatmul.mubr.bf16.vlgmr.msra.gmra.mxu1 %v958_v56 }
  0x72   : >> { %1187 = vmatpush1.bf16.msra.mxu0 %v2096_v55  ;;  %1340 = vmatpush1.bf16.msra.mxu1 %v2099_v57 }
  0x73   : >> { %1188 = vmatprep.subr.bf16.mxu0 %v2104_v58  ;;  %1341 = vmatprep.subr.bf16.mxu1 %v2107_v59 }
  0x74   : >> { %1218 = vmatprep.mubr.bf16.mxu0 %v2185_v4  ;;  %1371 = vmatprep.mubr.bf16.mxu1 %v2185_v4 }
  0x76   : >> { %1189 = vmatpush1.bf16.msra.mxu0 %v2102_v60  ;;  %1342 = vmatpush1.bf16.msra.mxu1 %v2105_v61 }
  0x77   : >> { %1190 = vmatprep.subr.bf16.mxu0 %v2110_v62  ;;  %1343 = vmatprep.subr.bf16.mxu1 %v2113_v63 }
  0x7a   : >> { %1191 = vmatpush1.bf16.msra.mxu0 %v2108_v2  ;;  %1344 = vmatpush1.bf16.msra.mxu1 %v2111_v3 }
  0x7b   : >> { %1192 = vmatprep.subr.bf16.mxu0 %v2116_v5  ;;  %1345 = vmatprep.subr.bf16.mxu1 %v2119_v6 }
  0x7e   : >> { %1193 = vmatpush1.bf16.msra.mxu0 %v2114_v7  ;;  %1346 = vmatpush1.bf16.msra.mxu1 %v2117_v8 }
  0x7f   : >> { %1194 = vmatprep.subr.bf16.mxu0 %v2122_v9  ;;  %1347 = vmatprep.subr.bf16.mxu1 %v2125_v10 }
  0x82   : >> { %1195 = vmatpush1.bf16.msra.mxu0 %v2120_v11  ;;  %1348 = vmatpush1.bf16.msra.mxu1 %v2123_v12 }
  0x83   : >> { %1196 = vmatprep.subr.bf16.mxu0 %v2128_v15  ;;  %1349 = vmatprep.subr.bf16.mxu1 %v2131_v16 }
  0x86   : >> { %1197 = vmatpush1.bf16.msra.mxu0 %v2126_v18  ;;  %1350 = vmatpush1.bf16.msra.mxu1 %v2129_v19 }
  0x87   : >> { %1198 = vmatprep.subr.bf16.mxu0 %v2134_v20  ;;  %1351 = vmatprep.subr.bf16.mxu1 %v2137_v21 }
  0x8a   : >> { %1199 = vmatpush1.bf16.msra.mxu0 %v2132_v23  ;;  %1352 = vmatpush1.bf16.msra.mxu1 %v2135_v24 }
  0x8b   : >> { %1200 = vmatprep.subr.bf16.mxu0 %v2140_v25  ;;  %1353 = vmatprep.subr.bf16.mxu1 %v2143_v26  ;;  %v1525_v25 = vlaneseq }
  0x8d   : >> { %v1526_v28 = vshrl.u32 %v1525_v25, 7 }
  0x8e   : >> { %1201 = vmatpush1.bf16.msra.mxu0 %v2138_v29  ;;  %1354 = vmatpush1.bf16.msra.mxu1 %v2141_v30 }
  0x8f   : >> { %1481 = vmatprep.subr.bf16.mxu0 %v2147_v31 }
  0x91   : >> { %1219 = vmatmul.mubr.bf16.vlgmr.msra.gmra.mxu0 %v1825_v13  ;;  %1372 = vmatmul.mubr.bf16.vlgmr.msra.gmra.mxu1 %v1257_v32  ;;  %v1527_v32 = vsub.s32 0, %v1526_v28 }
  0x92   : >> { %1482 = vmatpush1.bf16.msra.mxu0 %v2145_v33  ;;  %1513 = vmatprep.mubr.bf16.mxu0 %v2185_v4  ;;  %v2154_v4 = vld [vmem:[%s2721_s1 + $0x440] ss:$8 sps:$4 sm:$0xff]  }
  0x93   : >> { %1483 = vmatprep.subr.bf16.mxu0 %v2150_v34  ;;  %v1531_v34 = vsub.s32 1, %v1526_v28 }
  0x96   : >> { %1484 = vmatpush1.bf16.msra.mxu0 %v2148_v35 }
  0x97   : >> { %1485 = vmatprep.subr.bf16.mxu0 %v2153_v36  ;;  %v1528_v36 = vrot.slane %v2222_v0, %v1527_v32 }
  0x9a   : >> { %1486 = vmatpush1.bf16.msra.mxu0 %v2151_v37 }
  0x9b   : >> { %1487 = vmatprep.subr.bf16.mxu0 %v2156_v38 }
  0x9e   : >> { %1488 = vmatpush1.bf16.msra.mxu0 %v2154_v4 }
  0x9f   : >> { %1489 = vmatprep.subr.bf16.mxu0 %v2159_v39  ;;  %v1541_v39 = vrot.slane %v2227_v1, %v1527_v32 }
  0xa2   : >> { %1490 = vmatpush1.bf16.msra.mxu0 %v2157_v40  ;;  %v1532_v40 = vrot.slane %v2222_v0, %v1531_v34 }
  0xa3   : >> { %1491 = vmatprep.subr.bf16.mxu0 %v2162_v41 }
  0xa6   : >> { %1492 = vmatpush1.bf16.msra.mxu0 %v2160_v42 }
  0xa7   : >> { %1493 = vmatprep.subr.bf16.mxu0 %v2165_v43 }
  0xaa   : >> { %1494 = vmatpush1.bf16.msra.mxu0 %v2163_v44  ;;  %v1545_v44 = vrot.slane %v2227_v1, %v1531_v34 }
  0xab   : >> { %1495 = vmatprep.subr.bf16.mxu0 %v2168_v45 }
  0xae   : >> { %1496 = vmatpush1.bf16.msra.mxu0 %v2166_v46 }
  0xb1   : >> { %1514 = vmatmul.mubr.bf16.vlgmr.msra.gmra.mxu0 %v1399_v47 }
  0xf1   : >> { %v372_v48 = vpop.f32.mrf.mxu0  ;;  %v493_v49 = vpop.f32.mrf.mxu1 }
  0xf2   : >> { %v494_v50 = vadd.f32 %v493_v49, %v372_v48 }
  0xf3   : >> { %v374_v51 = vpop.f32.mrf.mxu0  ;;  %v495_v52 = vpop.f32.mrf.mxu1 }
  0xf4   : >> { %v496_v53 = vadd.f32 %v495_v52, %v374_v51 }
  0xf5   : >> { %v376_v54 = vpop.f32.mrf.mxu0  ;;  %v497_v55 = vpop.f32.mrf.mxu1 }
  0xf7   : >> { %v377_v56 = vpop.f32.mrf.mxu0  ;;  %v498_v57 = vpop.f32.mrf.mxu1 }
 0x111   : >> { %v633_v58 = vpop.f32.mrf.mxu0  ;;  %v779_v59 = vpop.f32.mrf.mxu1 }
 0x112   : >> { %v640_v60 = vadd.f32 %v633_v58, %v494_v50 }
 0x113   : >> { %v635_v61 = vpop.f32.mrf.mxu0  ;;  %v781_v62 = vpop.f32.mrf.mxu1 }
 0x114   : >> { %v641_v63 = vadd.f32 %v635_v61, %v496_v53  ;;  %v786_v2 = vadd.f32 %v779_v59, %v640_v60 }
 0x115   : >> { %v637_v3 = vpop.f32.mrf.mxu0  ;;  %v783_v5 = vpop.f32.mrf.mxu1 }
 0x116   : >> { %v787_v6 = vadd.f32 %v781_v62, %v641_v63 }
 0x117   : >> { %v638_v7 = vpop.f32.mrf.mxu0  ;;  %v784_v8 = vpop.f32.mrf.mxu1 }
 0x131   : >> { %v932_v9 = vpop.f32.mrf.mxu0  ;;  %v1074_v10 = vpop.f32.mrf.mxu1 }
 0x132   : >> { %v939_v26 = vadd.f32 %v932_v9, %v786_v2 }
 0x133   : >> { %v934_v11 = vpop.f32.mrf.mxu0  ;;  %v1076_v12 = vpop.f32.mrf.mxu1 }
 0x134   : >> { %v940_v27 = vadd.f32 %v934_v11, %v787_v6  ;;  %v1081_v29 = vadd.f32 %v1074_v10, %v939_v26 }
 0x135   : >> { %v936_v13 = vpop.f32.mrf.mxu0  ;;  %v1078_v14 = vpop.f32.mrf.mxu1 }
 0x136   : >> { %v1082_v30 = vadd.f32 %v1076_v12, %v940_v27 }
 0x137   : >> { %v937_v15 = vpop.f32.mrf.mxu0  ;;  %v1079_v16 = vpop.f32.mrf.mxu1 }
 0x151   : >> { %v1220_v17 = vpop.f32.mrf.mxu0  ;;  %v1373_v18 = vpop.f32.mrf.mxu1 }
 0x152   : >> { %v1227_v31 = vadd.f32 %v1220_v17, %v1081_v29 }
 0x153   : >> { %v1222_v19 = vpop.f32.mrf.mxu0  ;;  %v1375_v20 = vpop.f32.mrf.mxu1 }
 0x154   : >> { %v1228_v33 = vadd.f32 %v1222_v19, %v1082_v30  ;;  %v1380_v35 = vadd.f32 %v1373_v18, %v1227_v31 }
 0x155   : >> { %v1224_v21 = vpop.f32.mrf.mxu0  ;;  %v1377_v22 = vpop.f32.mrf.mxu1 }
 0x156   : >> { %v1381_v38 = vadd.f32 %v1375_v20, %v1228_v33 }
 0x157   : >> { %v1225_v23 = vpop.f32.mrf.mxu0  ;;  %v1378_v24 = vpop.f32.mrf.mxu1 }
 0x171   : >> { %v1515_v37 = vpop.f32.mrf.mxu0 }
 0x172   : >> { %v1522_v4 = vadd.f32 %v1515_v37, %v1380_v35 }
 0x173   : >> { %v1517_v41 = vpop.f32.mrf.mxu0 }
 0x174   : >> { %v1535_v42 = vmul.f32 %v1528_v36, %v1522_v4  ;;  %v1523_v43 = vadd.f32 %v1517_v41, %v1381_v38 }
 0x175   : >> { %v1519_v45 = vpop.f32.mrf.mxu0 }
 0x176   : >> { %v1548_v46 = vadd.f32 %v1541_v39, %v1535_v42  ;;  %v1536_v47 = vmul.f32 %v1532_v40, %v1523_v43 }
 0x177   : >> { %v1520_v48 = vpop.f32.mrf.mxu0 }
 0x178   : >> { %v1549_v49 = vadd.f32 %v1545_v44, %v1536_v47  ;;  %v1550_v50 = vmax.f32 %v1548_v46, 0.0 }
 0x17a   : >> { %v1551_v51 = vmax.f32 %v1549_v49, 0.0  ;;  %205 = sbr.rel (!%p203_p4) target bundleno = 15 (0xf), region = 85 }
 0x17c   : >> { %v1930_v52 = vpack.c.bf16 %v1551_v51, %v1550_v50 }
 0x17e   : >> { %1562 = vst [vmem:[%s1561_s7] sm:$0xff] %v1930_v52 }
 0x17f PF: > { %s14_s15 = sadd.s32 1, %s2179_s15  }
 0x180   : > { %p11_p5 = scmp.ge.s32.totalorder %s14_s15, 4  }
 0x182   :  { %13 = sbr.rel (!%p11_p5) target bundleno = 1 (0x1), region = 96 }

// kernel: sub.20
= control target key start
LH: loop header
LB: loop body
LE: loop exit
PB: predicated region body
PF: predicated region fallthrough
CT: control target
= control target key end

     0   :  { %s30_s10 = smov 3  ;;  %s11_s11 = smov 3  ;;  %vm13_vm0 = vcmask 31744   ;;  %vm20_vm1 = vcmask 130144   ;;  %vm27_vm2 = vcmask 97344   ;;  %vm34_vm3 = vcmask 64544   ;;  %s70_s0 = inlined_call_operand.vmem [shape: s32[2,4,4], index: 0, kind: input, shape index: {}]   ;;  %s71_s1 = inlined_call_operand.vmem [shape: s32[2,16], index: 1, kind: output, shape index: {}]  }
   0x1   :  { %v44_v0 = vld [vmem:[%s70_s0 + $0x4] sm:$0xf]  ;;  %v9_v1 = vld [vmem:[%s70_s0] sm:$0xf]  ;;  %s16_s0 = smov 3  ;;  %s23_s12 = smov 3 }
   0x2   :  { %8 = vst [vmem:[#allocation1 + $0x8] sm:$0xf] %v44_v0  ;;  %10 = vst [vmem:[#allocation1] sm:$0xf] %v9_v1  ;;  %s48_s13 = smov 12   ;;  %s49_s14 = smov 4  }
   0x3   :  { %s50_s15 = smov 8  }
   0x9   :  { %v17_v2 = vld [vmem:[#allocation1 + $0x3] ss:$8 sm:%s16_s0]   ;;  %v31_v3 = vld [vmem:[#allocation1 + $0x1] ss:$8 sm:%s30_s10]   ;;  %v12_v4 = vld [vmem:[#allocation1] ss:$8 sm:%s11_s11]  }
   0xa   :  { %18 = vrot.lane.b32.xlu0 %v17_v2, %s48_s13  ;;  %32 = vrot.lane.b32.xlu1 %v31_v3, %s49_s14  ;;  %v24_v5 = vld [vmem:[#allocation1 + $0x2] ss:$8 sm:%s23_s12]   ;;  %14 = vst.msk [vmem:[#allocation0] sm:$0x3] %vm13_vm0, %v12_v4  }
   0xe   :  { %25 = vrot.lane.b32.xlu0 %v24_v5, %s50_s15 }
  0x7c   :  { %v19_v6 = vpop.permute.xlu0 %18   ;;  %v33_v7 = vpop.permute.xlu1 %32  }
  0x7d   :  { %21 = vst.msk [vmem:[#allocation0] sm:$0x3] %vm20_vm1, %v19_v6  }
  0x80   :  { %v26_v8 = vpop.permute.xlu0 %25  }
  0x81   :  { %28 = vst.msk [vmem:[#allocation0] sm:$0x3] %vm27_vm2, %v26_v8  }
  0x82   :  { %35 = vst.msk [vmem:[#allocation0] sm:$0x3] %vm34_vm3, %v33_v7  }
  0x89   :  { %v40_v9 = vld [vmem:[#allocation0] sm:$0x3] }
  0x8a   :  { %43 = vst [vmem:[%s71_s1] sm:$0x3] %v40_v9 }

// kernel: forward.21
= control target key start
LH: loop header
LB: loop body
LE: loop exit
PB: predicated region body
PF: predicated region fallthrough
CT: control target
= control target key end

     0   :  { %7 = vsyncpa [#allocation3], 0  ;;  %s298_s9 = smov 0   ;;  %s345_s0 = inlined_call_operand.vmem [shape: f32[2], index: 0, kind: input, shape index: {}]   ;;  %s346_s1 = inlined_call_operand.vmem [shape: f32[16,16], index: 1, kind: input, shape index: {}]   ;;  %s347_s2 = inlined_call_operand.vmem [shape: f32[2,16,16], index: 2, kind: output, shape index: {}]  }
   0x1 LB: > { %s304_s10 = sadd.s32 4294967295, %s280_s9   ;;  %p219_p0 = scmp.ge.s32.totalorder %s280_s9, 1  ;;  %s280_s9 = sphi %s298_s9, %s13_s9  }
   0x2   : > { %p86_p1 = scmp.lt.s32.totalorder %s280_s9, 3  ;;  %s99_s13 = sshll.u32 %s345_s0, 4  ;;  %s100_s13 = int_to_ptr.vmem [resolvable:$true] %s99_s13 }
   0x3   : > { %p236_p3 = scmp.eq.s32.totalorder %s304_s10, 0  ;;  %s255_s15 = scalar_lea.vmem %s100_s13, 16 }
   0x4   : > { %p311_p2 = pnand %p219_p0, %p86_p1  ;;  %p256_p6 = scmp.ne.s32.totalorder %s100_s13, %s255_s15 }
   0x5   : > { %p263_p10 = scmp.lt.s32.totalorder %s100_s13, %s100_s13  ;;  %p264_p11 = scmp.lt.s32.totalorder %s255_s15, %s255_s15 }
   0x6   : > { %p232_p4 = pneg %p311_p2 }
   0x7   : > { %p265_p12 = por %p264_p11, %p263_p10 }
   0x8   : > { %p233_p5 = pnand %p236_p3, %p232_p4 }
   0xa   : > { %p257_p7 = pneg %p233_p5 }
   0xc   : > { %p258_p8 = pnand %p257_p7, %p256_p6 }
   0xe   : > { %p259_p9 = pneg %p258_p8 }
  0x10   : > { %p266_p13 = pnand %p265_p12, %p259_p9 }
  0x12   : > { %269 = shalt.err (!%p266_p13)
}
  0x13   : > { %s282_s16 = smov [#allocation2]   ;;  %115 = sbr.rel (%p311_p2) target bundleno = 214 (0xd6), region = 28 }
  0x14   : > { %235 = dma.vmem_to_smem (!%p233_p5), %s100_s13, 16, %s282_s16, [#allocation3]  }
  0x18   : > { %275 = dma.done.wait (%p236_p3), [#allocation3], 16  }
  0x19   : > { %277 = vsyncadd (%p236_p3), [#allocation3], 4294967280 }
  0x1a   : > { %121 = sfence }
  0x1b   : > { %s138_s17 = sld [smem:[#allocation2 + %s304_s10]]  ;;  %v140_v0 = vld [vmem:[%s346_s1] sm:$0xff]  ;;  %v141_v1 = vld [vmem:[%s346_s1 + $0x8] sm:$0xff]  ;;  %vm149_vm0 = vcmask 130048   ;;  %p133_p0 = scmp.lt.s32.totalorder %s304_s10, 1 }
  0x1d   : > { %s350_s10 = smov (!%p133_p0, %s304_s10), 1 }
  0x1e   : > { %s227_s23 = sshll.u32 %s350_s10, 4 }
  0x1f   : > { %s137_s26 = scalar_lea.vmem %s347_s2, %s227_s23 }
  0x21   : > { %s139_s18 = ssub.f32 0.0, %s138_s17 }
  0x23   : > { %v142_v2 = vstv %s139_s18 }
  0x24   : > { %v143_v3 = vmul.f32 %v142_v2, %v140_v0  ;;  %v144_v4 = vmul.f32 %v142_v2, %v141_v1 }
  0x26   : > { %v145_v5 = vmul.f32 1.442695, %v143_v3  ;;  %v147_v6 = vmul.f32 1.442695, %v144_v4 }
  0x28   : > { %247 = vpow2.f32 %v145_v5 }
  0x29   : > { %249 = vpow2.f32 %v147_v6 }
  0x35   : > { %v248_v7 = vpop.eup %247 }
  0x36   : > { %v250_v8 = vpop.eup %249  ;;  %v150_v9 = vsel %vm149_vm0, %v248_v7, 0.0 }
  0x37   : > { %151 = vadd.xlane.f32.xlu0 %v150_v9  ;;  %v153_v10 = vsel %vm149_vm0, %v250_v8, 0.0 }
  0x3b   : > { %154 = vadd.xlane.f32.xlu0 %v153_v10 }
  0xc0   : > { %v152_v11 = vpop.xlane.xlu0 %151 }
  0xc1   : > { %251 = vrcp.f32 %v152_v11 }
  0xc4   : > { %v155_v12 = vpop.xlane.xlu0 %154 }
  0xc5   : > { %253 = vrcp.f32 %v155_v12 }
  0xce   : > { %v252_v13 = vpop.eup %251 }
  0xcf   : > { %v158_v14 = vmul.f32 %v252_v13, %v248_v7 }
  0xd1   : > { %160 = vst.msk [vmem:[%s137_s26] sm:$0xff] %vm149_vm0, %v158_v14 }
  0xd2   : > { %v254_v15 = vpop.eup %253 }
  0xd3   : > { %v159_v16 = vmul.f32 %v254_v15, %v250_v8 }
  0xd5   : > { %161 = vst.msk [vmem:[%s137_s26 + $0x8] sm:$0xff] %vm149_vm0, %v159_v16 }
  0xd6 PF: > { %s13_s9 = sadd.s32 1, %s280_s9  }
  0xd7   : > { %p10_p1 = scmp.ge.s32.totalorder %s13_s9, 4  }
  0xd9   :  { %12 = sbr.rel (!%p10_p1) target bundleno = 1 (0x1), region = 60 }
  0xde   :  { %183 = vsyncpa [#allocation3], 1 }
  0xdf   :  { %185 = vsyncpa [#allocation3 + $0x1], 1 }

// kernel: forward.20
= control target key start
LH: loop header
LB: loop body
LE: loop exit
PB: predicated region body
PF: predicated region fallthrough
CT: control target
= control target key end

     0   :  { %s2752_s15 = smov 0   ;;  %s3246_s0 = inlined_call_operand.vmem [shape: bf16[2,6,6,256], index: 0, kind: input, shape index: {}]   ;;  %s3247_s1 = inlined_call_operand.vmem [shape: bf16[9,256,32], index: 1, kind: input, shape index: {}]   ;;  %s3248_s2 = inlined_call_operand.vmem [shape: f32[1,32], index: 2, kind: input, shape index: {}]   ;;  %s3249_s3 = inlined_call_operand.vmem [shape: f32[1,32], index: 3, kind: input, shape index: {}]   ;;  %s3250_s4 = inlined_call_operand.vmem [shape: bf16[2,4,4,32], index: 4, kind: output, shape index: {}]  }
   0x1 LB: > { %s1919_s16 = sadd.s32 4294967295, %s2721_s15   ;;  %p1923_p0 = scmp.ge.s32.totalorder %s2721_s15, 1  ;;  %s2721_s15 = sphi %s2752_s15, %s14_s15  }
   0x2   : > { %p162_p1 = scmp.lt.s32.totalorder %s2721_s15, 3 }
   0x4   : > { %p163_p2 = pnand %p1923_p0, %p162_p1 }
   0x5   : > { %p188_p3 = scmp.lt.s32.totalorder (!%p163_p2), %s1919_s16, 1  ;;  %s2780_s29 = smov (!%p163_p2), 0  }
   0x6   : > { %166 = sbr.rel (%p163_p2) target bundleno = 385 (0x181), region = 36 }
   0xb   : > { %v2763_v0 = vld [vmem:[%s3248_s2] ss:$0 sm:$0xff]  ;;  %s3252_s16 = smov (!%p188_p3, %s1919_s16), 1 }
   0xc   : > { %v2768_v1 = vld [vmem:[%s3249_s3] ss:$0 sm:$0xff]  ;;  %s2544_s21 = smul.u32 48, %s3252_s16  ;;  %s2344_s22 = sshll.u32 %s3252_s16, 3 }
   0xd   : > { %s2773_s25 = scalar_lea.vmem %s3250_s4, %s2344_s22 }
   0xe   : > { %s2778_s28 = scalar_lea.vmem %s3246_s0, %s2544_s21 }
   0xf LB: >> { %v2561_v2 = vld [vmem:[%s3247_s1 + $0xf8] sm:$0xff]   ;;  %v2565_v6 = vld [vmem:[%s3247_s1 + $0xf0] sm:$0xff]   ;;  %v2569_v10 = vld [vmem:[%s3247_s1 + $0xe8] sm:$0xff]   ;;  %s2345_s14 = sshll.u32 %s2725_s29, 3  ;;  %s2341_s17 = sshll.u32 %s2725_s29, 1  ;;  %vm1847_vm0 = vcmask 254976   ;;  %s2725_s29 = sphi %s2780_s29, %s206_s29  }
  0x10   : >> { %v2562_v3 = vld [vmem:[%s3247_s1 + $0x78] sm:$0xff]   ;;  %2346 = vmatprep.subr.bf16.mxu0 %v2561_v2  ;;  %v2566_v7 = vld [vmem:[%s3247_s1 + $0x70] sm:$0xff]   ;;  %v2570_v11 = vld [vmem:[%s3247_s1 + $0x68] sm:$0xff]   ;;  %s2877_s22 = scalar_lea.vmem %s2778_s28, %s2345_s14  ;;  %s1846_s18 = scalar_lea.vmem %s2773_s25, %s2341_s17 }
  0x11   : >> { %v2563_v4 = vld [vmem:[%s3247_s1 + $0xb8] sm:$0xff]   ;;  %2368 = vmatprep.subr.bf16.mxu1 %v2562_v3  ;;  %v2567_v8 = vld [vmem:[%s3247_s1 + $0xb0] sm:$0xff]   ;;  %v2571_v12 = vld [vmem:[%s3247_s1 + $0xa8] sm:$0xff]   ;;  %s206_s29 = sadd.s32 1, %s2725_s29  }
  0x12   : >> { %v2564_v5 = vld [vmem:[%s3247_s1 + $0x38] sm:$0xff]   ;;  %2347 = vmatpush3.bf16.msra.mxu0 %v2563_v4  ;;  %v2568_v9 = vld [vmem:[%s3247_s1 + $0x30] sm:$0xff]   ;;  %v2572_v13 = vld [vmem:[%s3247_s1 + $0x28] sm:$0xff]   ;;  %p203_p4 = scmp.ge.s32.totalorder %s206_s29, 4  }
  0x13   : >> { %2369 = vmatpush3.bf16.msra.mxu1 %v2564_v5  ;;  %2348 = vmatprep.subr.bf16.mxu0 %v2565_v6  ;;  %v2573_v14 = vld [vmem:[%s3247_s1 + $0xe0] sm:$0xff]   ;;  %v2577_v18 = vld [vmem:[%s3247_s1 + $0xd8] sm:$0xff]   ;;  %v2581_v22 = vld [vmem:[%s3247_s1 + $0xd0] sm:$0xff]  }
  0x14   : >> { %2370 = vmatprep.subr.bf16.mxu1 %v2566_v7  ;;  %v2574_v15 = vld [vmem:[%s3247_s1 + $0x60] sm:$0xff]   ;;  %v2578_v19 = vld [vmem:[%s3247_s1 + $0x58] sm:$0xff]   ;;  %v2582_v23 = vld [vmem:[%s3247_s1 + $0x50] sm:$0xff]  }
  0x15   : >> { %v2575_v16 = vld [vmem:[%s3247_s1 + $0xa0] sm:$0xff]   ;;  %v2579_v20 = vld [vmem:[%s3247_s1 + $0x98] sm:$0xff]   ;;  %v2583_v24 = vld [vmem:[%s3247_s1 + $0x90] sm:$0xff]  }
  0x16   : >> { %2349 = vmatpush3.bf16.msra.mxu0 %v2567_v8  ;;  %v2576_v17 = vld [vmem:[%s3247_s1 + $0x20] sm:$0xff]   ;;  %v2580_v21 = vld [vmem:[%s3247_s1 + $0x18] sm:$0xff]   ;;  %v2584_v25 = vld [vmem:[%s3247_s1 + $0x10] sm:$0xff]  }
  0x17   : >> { %2371 = vmatpush3.bf16.msra.mxu1 %v2568_v9  ;;  %2350 = vmatprep.subr.bf16.mxu0 %v2569_v10  ;;  %v2585_v26 = vld [vmem:[%s3247_s1 + $0xc8] sm:$0xff]   ;;  %v2589_v30 = vld [vmem:[%s3247_s1 + $0xc0] sm:$0xff]   ;;  %v2595_v37 = vld [vmem:[%s3247_s1 + $0x178] sm:$0xff]  }
  0x18   : >> { %2372 = vmatprep.subr.bf16.mxu1 %v2570_v11  ;;  %v2586_v27 = vld [vmem:[%s3247_s1 + $0x48] sm:$0xff]   ;;  %v2590_v31 = vld [vmem:[%s3247_s1 + $0x40] sm:$0xff]   ;;  %v2597_v42 = vld [vmem:[%s3247_s1 + $0x1f8] sm:$0xff]  }
  0x19   : >> { %v2587_v28 = vld [vmem:[%s3247_s1 + $0x88] sm:$0xff]   ;;  %v2591_v32 = vld [vmem:[%s3247_s1 + $0x80] sm:$0xff]   ;;  %v2598_v43 = vld [vmem:[%s3247_s1 + $0x1b8] sm:$0xff]  }
  0x1a   : >> { %2351 = vmatpush3.bf16.msra.mxu0 %v2571_v12  ;;  %v2588_v29 = vld [vmem:[%s3247_s1 + $0x8] sm:$0xff]   ;;  %v2592_v33 = vld [vmem:[%s3247_s1] sm:$0xff]   ;;  %v2596_v46 = vld [vmem:[%s3247_s1 + $0x138] sm:$0xff]  }
  0x1b   : >> { %2373 = vmatpush3.bf16.msra.mxu1 %v2572_v13  ;;  %2352 = vmatprep.subr.bf16.mxu0 %v2573_v14  ;;  %v210_v34 = vld [vmem:[%s2877_s22] sm:$0x77]  ;;  %v2599_v47 = vld [vmem:[%s3247_s1 + $0x170] sm:$0xff]   ;;  %v2603_v54 = vld [vmem:[%s3247_s1 + $0x168] sm:$0xff]  }
  0x1c   : >> { %2374 = vmatprep.subr.bf16.mxu1 %v2574_v15  ;;  %v2886_v35 = vcombine.low %v210_v34, %v210_v34  ;;  %v1962_v36 = vcombine.high %v210_v34, %v210_v34  ;;  %v2601_v50 = vld [vmem:[%s3247_s1 + $0x1f0] sm:$0xff]   ;;  %v2605_v55 = vld [vmem:[%s3247_s1 + $0x1e8] sm:$0xff]   ;;  %v2607_v58 = vld [vmem:[%s3247_s1 + $0x160] sm:$0xff]  }
  0x1d   : >> { %v2602_v52 = vld [vmem:[%s3247_s1 + $0x1b0] sm:$0xff]   ;;  %v2606_v56 = vld [vmem:[%s3247_s1 + $0x1a8] sm:$0xff]   ;;  %v2609_v59 = vld [vmem:[%s3247_s1 + $0x1e0] sm:$0xff]  }
  0x1e   : >> { %2353 = vmatpush3.bf16.msra.mxu0 %v2575_v16  ;;  %v289_v38 = vshrl.u32 %v1962_v36, 16  ;;  %v291_v39 = vshll.u32 %v1962_v36, 16  ;;  %563 = vmatprep.mubr.bf16.mxu1 %v1962_v36  ;;  %v282_v40 = vshrl.u32 %v2886_v35, 16  ;;  %v284_v41 = vshll.u32 %v2886_v35, 16  ;;  %v2600_v53 = vld [vmem:[%s3247_s1 + $0x130] sm:$0xff]   ;;  %v2604_v57 = vld [vmem:[%s3247_s1 + $0x128] sm:$0xff]  }
  0x1f   : >> { %2375 = vmatpush3.bf16.msra.mxu1 %v2576_v17  ;;  %2354 = vmatprep.subr.bf16.mxu0 %v2577_v18  ;;  %v605_v51 = vrot.slane %v1962_v36, 1  ;;  %v2610_v60 = vld [vmem:[%s3247_s1 + $0x1a0] sm:$0xff]   ;;  %v2611_v62 = vld [vmem:[%s3247_s1 + $0x158] sm:$0xff]   ;;  %v2615_v4 = vld [vmem:[%s3247_s1 + $0x150] sm:$0xff]  }
  0x20   : >> { %2376 = vmatprep.subr.bf16.mxu1 %v2578_v19  ;;  %v293_v44 = vrot.slane %v291_v39, 1  ;;  %v286_v45 = vrot.slane %v284_v41, 1  ;;  %v2608_v61 = vld [vmem:[%s3247_s1 + $0x120] sm:$0xff]   ;;  %v2613_v63 = vld [vmem:[%s3247_s1 + $0x1d8] sm:$0xff]   ;;  %v2617_v5 = vld [vmem:[%s3247_s1 + $0x1d0] sm:$0xff]  }
  0x21   : >> { %v2614_v2 = vld [vmem:[%s3247_s1 + $0x198] sm:$0xff]   ;;  %v2618_v6 = vld [vmem:[%s3247_s1 + $0x190] sm:$0xff]   ;;  %v2619_v8 = vld [vmem:[%s3247_s1 + $0x148] sm:$0xff]  }
  0x22   : >> { %2355 = vmatpush3.bf16.msra.mxu0 %v2579_v20  ;;  %v294_v48 = vor.u32 %v293_v44, %v289_v38  ;;  %v287_v49 = vor.u32 %v286_v45, %v282_v40  ;;  %v2612_v3 = vld [vmem:[%s3247_s1 + $0x118] sm:$0xff]   ;;  %v2616_v7 = vld [vmem:[%s3247_s1 + $0x110] sm:$0xff]   ;;  %v2621_v9 = vld [vmem:[%s3247_s1 + $0x1c8] sm:$0xff]  }
  0x23   : >> { %2377 = vmatpush3.bf16.msra.mxu1 %v2580_v21  ;;  %2356 = vmatprep.subr.bf16.mxu0 %v2581_v22  ;;  %v2622_v10 = vld [vmem:[%s3247_s1 + $0x188] sm:$0xff]   ;;  %v2623_v12 = vld [vmem:[%s3247_s1 + $0x140] sm:$0xff]   ;;  %v2627_v17 = vld [vmem:[%s3247_s1 + $0x278] sm:$0xff]  }
  0x24   : >> { %2378 = vmatprep.subr.bf16.mxu1 %v2582_v23  ;;  %425 = vmatprep.mubr.bf16.mxu0 %v294_v48  ;;  %v2620_v11 = vld [vmem:[%s3247_s1 + $0x108] sm:$0xff]   ;;  %v2625_v13 = vld [vmem:[%s3247_s1 + $0x1c0] sm:$0xff]   ;;  %v2631_v20 = vld [vmem:[%s3247_s1 + $0x2f8] sm:$0xff]  }
  0x25   : >> { %v2626_v14 = vld [vmem:[%s3247_s1 + $0x180] sm:$0xff]   ;;  %v2044_v16 = vld [vmem:[%s2877_s22 + $0x8] sm:$0x77]  ;;  %v2632_v21 = vld [vmem:[%s3247_s1 + $0x2b8] sm:$0xff]  }
  0x26   : >> { %2357 = vmatpush3.bf16.msra.mxu0 %v2583_v24  ;;  %v2624_v15 = vld [vmem:[%s3247_s1 + $0x100] sm:$0xff]   ;;  %v2078_v18 = vcombine.high %v2044_v16, %v2044_v16  ;;  %v2991_v19 = vcombine.low %v2044_v16, %v2044_v16  ;;  %v2629_v22 = vld [vmem:[%s3247_s1 + $0x238] sm:$0xff]   ;;  %v2639_v34 = vld [vmem:[%s3247_s1 + $0x2e8] sm:$0xff]  }
  0x27   : >> { %2379 = vmatpush3.bf16.msra.mxu1 %v2584_v25  ;;  %2358 = vmatprep.subr.bf16.mxu0 %v2585_v26  ;;  %v604_v25 = vrot.slane %v2886_v35, 1  ;;  %v2633_v26 = vld [vmem:[%s3247_s1 + $0x270] sm:$0xff]   ;;  %v2638_v36 = vld [vmem:[%s3247_s1 + $0x228] sm:$0xff]   ;;  %v2643_v38 = vld [vmem:[%s3247_s1 + $0x2e0] sm:$0xff]  }
  0x28   : >> { %2380 = vmatprep.subr.bf16.mxu1 %v2586_v27  ;;  %v968_v23 = vshrl.u32 %v2078_v18, 16  ;;  %v970_v24 = vshll.u32 %v2078_v18, 16  ;;  %v2635_v27 = vld [vmem:[%s3247_s1 + $0x2f0] sm:$0xff]   ;;  %v2644_v39 = vld [vmem:[%s3247_s1 + $0x2a0] sm:$0xff]   ;;  %v2645_v41 = vld [vmem:[%s3247_s1 + $0x258] sm:$0xff]  }
  0x29   : >> { %v2642_v40 = vld [vmem:[%s3247_s1 + $0x220] sm:$0xff]   ;;  %v2646_v44 = vld [vmem:[%s3247_s1 + $0x218] sm:$0xff]   ;;  %v2649_v45 = vld [vmem:[%s3247_s1 + $0x250] sm:$0xff]  }
  0x2a   : >> { %2359 = vmatpush3.bf16.msra.mxu0 %v2587_v28  ;;  %v972_v28 = vrot.slane %v970_v24, 1  ;;  %v2650_v48 = vld [vmem:[%s3247_s1 + $0x210] sm:$0xff]   ;;  %v2677_v16 = vld [vmem:[%s3247_s1 + $0x358] sm:$0xff]   ;;  %v2685_v24 = vld [vmem:[%s3247_s1 + $0x348] sm:$0xff]  }
  0x2b   : >> { %2381 = vmatpush3.bf16.msra.mxu1 %v2588_v29  ;;  %2360 = vmatprep.subr.bf16.mxu0 %v2589_v30  ;;  %v2636_v29 = vld [vmem:[%s3247_s1 + $0x2b0] sm:$0xff]  }
  0x2c   : >> { %2382 = vmatprep.subr.bf16.mxu1 %v2590_v31  ;;  %v2634_v30 = vld [vmem:[%s3247_s1 + $0x230] sm:$0xff]   ;;  %v973_v31 = vor.u32 %v972_v28, %v968_v23  ;;  %v2689_v28 = vld [vmem:[%s3247_s1 + $0x340] sm:$0xff]  }
  0x2d   : >> { %v2682_v23 = vld [vmem:[%s3247_s1 + $0x310] sm:$0xff]  }
  0x2e   : >> { %2361 = vmatpush3.bf16.msra.mxu0 %v2591_v32  ;;  %v1147_v32 = vrot.slane %v2078_v18, 1 }
  0x2f   : >> { %2383 = vmatpush3.bf16.msra.mxu1 %v2592_v33  ;;  %2390 = vmatprep.subr.bf16.mxu0 %v2595_v37  ;;  %v2637_v33 = vld [vmem:[%s3247_s1 + $0x268] sm:$0xff]   ;;  %v2641_v37 = vld [vmem:[%s3247_s1 + $0x260] sm:$0xff]  }
  0x30   : >> { %2412 = vmatprep.subr.bf16.mxu1 %v2597_v42  ;;  %v2647_v42 = vld [vmem:[%s3247_s1 + $0x2d8] sm:$0xff]  }
  0x31   : >> { %426 = vmatmul.mubr.bf16.vlgmr.msra.gmra.mxu0 %v287_v49  ;;  %v2653_v49 = vld [vmem:[%s3247_s1 + $0x248] sm:$0xff]  }
  0x32   : >> { %564 = vmatmul.mubr.bf16.vlgmr.msra.gmra.mxu1 %v2886_v35  ;;  %2391 = vmatpush3.bf16.msra.mxu0 %v2596_v46  ;;  %v2640_v35 = vld [vmem:[%s3247_s1 + $0x2a8] sm:$0xff]   ;;  %v2651_v46 = vld [vmem:[%s3247_s1 + $0x2d0] sm:$0xff]  }
  0x33   : >> { %2413 = vmatpush3.bf16.msra.mxu1 %v2598_v43  ;;  %736 = vmatprep.mubr.bf16.mxu0 %v605_v51  ;;  %v2648_v43 = vld [vmem:[%s3247_s1 + $0x298] sm:$0xff]   ;;  %v2656_v51 = vld [vmem:[%s3247_s1 + $0x288] sm:$0xff]  }
  0x34   : >> { %2414 = vmatprep.subr.bf16.mxu1 %v2601_v50  ;;  %2392 = vmatprep.subr.bf16.mxu0 %v2599_v47  ;;  %v2652_v47 = vld [vmem:[%s3247_s1 + $0x290] sm:$0xff]   ;;  %v2655_v50 = vld [vmem:[%s3247_s1 + $0x2c8] sm:$0xff]  }
  0x35   : >> { %918 = vmatprep.mubr.bf16.mxu1 %v2078_v18  ;;  %v2680_v18 = vld [vmem:[%s3247_s1 + $0x398] sm:$0xff]  }
  0x36   : >> { %2393 = vmatpush3.bf16.msra.mxu0 %v2600_v53  ;;  %v2657_v53 = vld [vmem:[%s3247_s1 + $0x240] sm:$0xff]  }
  0x37   : >> { %2415 = vmatpush3.bf16.msra.mxu1 %v2602_v52  ;;  %2394 = vmatprep.subr.bf16.mxu0 %v2603_v54  ;;  %v2654_v52 = vld [vmem:[%s3247_s1 + $0x208] sm:$0xff]   ;;  %v963_v54 = vshll.u32 %v2991_v19, 16 }
  0x38   : >> { %2416 = vmatprep.subr.bf16.mxu1 %v2605_v55  ;;  %v2659_v55 = vld [vmem:[%s3247_s1 + $0x2c0] sm:$0xff]  }
  0x3a   : >> { %2395 = vmatpush3.bf16.msra.mxu0 %v2604_v57  ;;  %v961_v57 = vshrl.u32 %v2991_v19, 16 }
  0x3b   : >> { %2417 = vmatpush3.bf16.msra.mxu1 %v2606_v56  ;;  %2396 = vmatprep.subr.bf16.mxu0 %v2607_v58  ;;  %v2660_v56 = vld [vmem:[%s3247_s1 + $0x280] sm:$0xff]  }
  0x3c   : >> { %2418 = vmatprep.subr.bf16.mxu1 %v2609_v59  ;;  %v2658_v58 = vld [vmem:[%s3247_s1 + $0x200] sm:$0xff]   ;;  %v1146_v59 = vrot.slane %v2991_v19, 1 }
  0x3e   : >> { %2397 = vmatpush3.bf16.msra.mxu0 %v2608_v61  ;;  %v2661_v61 = vld [vmem:[%s3247_s1 + $0x378] sm:$0xff]  }
  0x3f   : >> { %2419 = vmatpush3.bf16.msra.mxu1 %v2610_v60  ;;  %2398 = vmatprep.subr.bf16.mxu0 %v2611_v62  ;;  %v965_v60 = vrot.slane %v963_v54, 1  ;;  %v2663_v62 = vld [vmem:[%s3247_s1 + $0x3f8] sm:$0xff]   ;;  %v2705_v54 = vld [vmem:[%s3247_s1 + $0x450] sm:$0xff]  }
  0x40   : >> { %2420 = vmatprep.subr.bf16.mxu1 %v2613_v63  ;;  %v2664_v63 = vld [vmem:[%s3247_s1 + $0x3b8] sm:$0xff]  }
  0x42   : >> { %2399 = vmatpush3.bf16.msra.mxu0 %v2612_v3  ;;  %v966_v3 = vor.u32 %v965_v60, %v961_v57  ;;  %v2708_v57 = vld [vmem:[%s3247_s1 + $0x408] sm:$0xff]  }
  0x43   : >> { %2421 = vmatpush3.bf16.msra.mxu1 %v2614_v2  ;;  %2400 = vmatprep.subr.bf16.mxu0 %v2615_v4  ;;  %v2662_v2 = vld [vmem:[%s3247_s1 + $0x338] sm:$0xff]   ;;  %v2665_v4 = vld [vmem:[%s3247_s1 + $0x370] sm:$0xff]  }
  0x44   : >> { %2422 = vmatprep.subr.bf16.mxu1 %v2617_v5  ;;  %v2667_v5 = vld [vmem:[%s3247_s1 + $0x3f0] sm:$0xff]  }
  0x46   : >> { %2401 = vmatpush3.bf16.msra.mxu0 %v2616_v7  ;;  %v2666_v7 = vld [vmem:[%s3247_s1 + $0x330] sm:$0xff]  }
  0x47   : >> { %2423 = vmatpush3.bf16.msra.mxu1 %v2618_v6  ;;  %2402 = vmatprep.subr.bf16.mxu0 %v2619_v8  ;;  %v2668_v6 = vld [vmem:[%s3247_s1 + $0x3b0] sm:$0xff]   ;;  %v2669_v8 = vld [vmem:[%s3247_s1 + $0x368] sm:$0xff]  }
  0x48   : >> { %2424 = vmatprep.subr.bf16.mxu1 %v2621_v9  ;;  %v2671_v9 = vld [vmem:[%s3247_s1 + $0x3e8] sm:$0xff]  }
  0x4a   : >> { %2403 = vmatpush3.bf16.msra.mxu0 %v2620_v11  ;;  %v2670_v11 = vld [vmem:[%s3247_s1 + $0x328] sm:$0xff]  }
  0x4b   : >> { %2425 = vmatpush3.bf16.msra.mxu1 %v2622_v10  ;;  %2404 = vmatprep.subr.bf16.mxu0 %v2623_v12  ;;  %v2672_v10 = vld [vmem:[%s3247_s1 + $0x3a8] sm:$0xff]   ;;  %v2673_v12 = vld [vmem:[%s3247_s1 + $0x360] sm:$0xff]  }
  0x4c   : >> { %2426 = vmatprep.subr.bf16.mxu1 %v2625_v13  ;;  %v2675_v13 = vld [vmem:[%s3247_s1 + $0x3e0] sm:$0xff]  }
  0x4e   : >> { %2405 = vmatpush3.bf16.msra.mxu0 %v2624_v15  ;;  %v2674_v15 = vld [vmem:[%s3247_s1 + $0x320] sm:$0xff]  }
  0x4f   : >> { %2427 = vmatpush3.bf16.msra.mxu1 %v2626_v14  ;;  %2434 = vmatprep.subr.bf16.mxu0 %v2627_v17  ;;  %v2676_v14 = vld [vmem:[%s3247_s1 + $0x3a0] sm:$0xff]   ;;  %v2679_v17 = vld [vmem:[%s3247_s1 + $0x3d8] sm:$0xff]  }
  0x50   : >> { %2456 = vmatprep.subr.bf16.mxu1 %v2631_v20  ;;  %v2681_v20 = vld [vmem:[%s3247_s1 + $0x350] sm:$0xff]  }
  0x51   : >> { %737 = vmatmul.mubr.bf16.vlgmr.msra.gmra.mxu0 %v604_v25  ;;  %v2687_v25 = vld [vmem:[%s3247_s1 + $0x3c8] sm:$0xff]  }
  0x52   : >> { %919 = vmatmul.mubr.bf16.vlgmr.msra.gmra.mxu1 %v2991_v19  ;;  %2435 = vmatpush3.bf16.msra.mxu0 %v2629_v22  ;;  %v2678_v19 = vld [vmem:[%s3247_s1 + $0x318] sm:$0xff]   ;;  %v2684_v22 = vld [vmem:[%s3247_s1 + $0x390] sm:$0xff]  }
  0x53   : >> { %2457 = vmatpush3.bf16.msra.mxu1 %v2632_v21  ;;  %1104 = vmatprep.mubr.bf16.mxu0 %v973_v31  ;;  %v2683_v21 = vld [vmem:[%s3247_s1 + $0x3d0] sm:$0xff]  }
  0x54   : >> { %2458 = vmatprep.subr.bf16.mxu1 %v2635_v27  ;;  %2436 = vmatprep.subr.bf16.mxu0 %v2633_v26  ;;  %v2688_v26 = vld [vmem:[%s3247_s1 + $0x388] sm:$0xff]  }
  0x55   : >> { %1278 = vmatprep.mubr.bf16.mxu1 %v1147_v32  ;;  %v2686_v27 = vld [vmem:[%s3247_s1 + $0x308] sm:$0xff]   ;;  %v2693_v32 = vld [vmem:[%s3247_s1 + $0x380] sm:$0xff]  }
  0x56   : >> { %2437 = vmatpush3.bf16.msra.mxu0 %v2634_v30  ;;  %v2192_v30 = vld [vmem:[%s2877_s22 + $0x10] sm:$0x77] }
  0x57   : >> { %2459 = vmatpush3.bf16.msra.mxu1 %v2636_v29  ;;  %2438 = vmatprep.subr.bf16.mxu0 %v2637_v33  ;;  %v2691_v29 = vld [vmem:[%s3247_s1 + $0x3c0] sm:$0xff]   ;;  %v2226_v31 = vcombine.high %v2192_v30, %v2192_v30  ;;  %v2225_v33 = vcombine.low %v2192_v30, %v2192_v30 }
  0x58   : >> { %2460 = vmatprep.subr.bf16.mxu1 %v2639_v34  ;;  %v2690_v34 = vld [vmem:[%s3247_s1 + $0x300] sm:$0xff]  }
  0x59   : >> { %v1688_v60 = vrot.slane %v2225_v33, 1 }
  0x5a   : >> { %2439 = vmatpush3.bf16.msra.mxu0 %v2638_v36  ;;  %v1510_v36 = vshrl.u32 %v2226_v31, 16 }
  0x5b   : >> { %2461 = vmatpush3.bf16.msra.mxu1 %v2640_v35  ;;  %2440 = vmatprep.subr.bf16.mxu0 %v2641_v37  ;;  %v2695_v35 = vld [vmem:[%s3247_s1 + $0x478] sm:$0xff]   ;;  %v1512_v37 = vshll.u32 %v2226_v31, 16 }
  0x5c   : >> { %2462 = vmatprep.subr.bf16.mxu1 %v2643_v38  ;;  %v1503_v38 = vshrl.u32 %v2225_v33, 16 }
  0x5e   : >> { %2441 = vmatpush3.bf16.msra.mxu0 %v2642_v40  ;;  %v1514_v40 = vrot.slane %v1512_v37, 1 }
  0x5f   : >> { %2463 = vmatpush3.bf16.msra.mxu1 %v2644_v39  ;;  %2442 = vmatprep.subr.bf16.mxu0 %v2645_v41  ;;  %v1505_v39 = vshll.u32 %v2225_v33, 16 }
  0x60   : >> { %2464 = vmatprep.subr.bf16.mxu1 %v2647_v42  ;;  %v1515_v42 = vor.u32 %v1514_v40, %v1510_v36 }
  0x61   : >> { %v1507_v41 = vrot.slane %v1505_v39, 1 }
  0x62   : >> { %2443 = vmatpush3.bf16.msra.mxu0 %v2646_v44 }
  0x63   : >> { %2465 = vmatpush3.bf16.msra.mxu1 %v2648_v43  ;;  %2444 = vmatprep.subr.bf16.mxu0 %v2649_v45  ;;  %v2696_v43 = vld [vmem:[%s3247_s1 + $0x438] sm:$0xff]   ;;  %v1508_v44 = vor.u32 %v1507_v41, %v1503_v38  ;;  %v1689_v45 = vrot.slane %v2226_v31, 1 }
  0x64   : >> { %2466 = vmatprep.subr.bf16.mxu1 %v2651_v46  ;;  %v2697_v46 = vld [vmem:[%s3247_s1 + $0x470] sm:$0xff]  }
  0x66   : >> { %2445 = vmatpush3.bf16.msra.mxu0 %v2650_v48  ;;  %v2699_v48 = vld [vmem:[%s3247_s1 + $0x468] sm:$0xff]  }
  0x67   : >> { %2467 = vmatpush3.bf16.msra.mxu1 %v2652_v47  ;;  %2446 = vmatprep.subr.bf16.mxu0 %v2653_v49  ;;  %v2698_v47 = vld [vmem:[%s3247_s1 + $0x430] sm:$0xff]   ;;  %v2700_v49 = vld [vmem:[%s3247_s1 + $0x428] sm:$0xff]  }
  0x68   : >> { %2468 = vmatprep.subr.bf16.mxu1 %v2655_v50  ;;  %v2701_v50 = vld [vmem:[%s3247_s1 + $0x460] sm:$0xff]  }
  0x6a   : >> { %2447 = vmatpush3.bf16.msra.mxu0 %v2654_v52  ;;  %v2703_v52 = vld [vmem:[%s3247_s1 + $0x458] sm:$0xff]  }
  0x6b   : >> { %2469 = vmatpush3.bf16.msra.mxu1 %v2656_v51  ;;  %2448 = vmatprep.subr.bf16.mxu0 %v2657_v53  ;;  %v2702_v51 = vld [vmem:[%s3247_s1 + $0x420] sm:$0xff]   ;;  %v2704_v53 = vld [vmem:[%s3247_s1 + $0x418] sm:$0xff]  }
  0x6c   : >> { %2470 = vmatprep.subr.bf16.mxu1 %v2659_v55  ;;  %v2706_v55 = vld [vmem:[%s3247_s1 + $0x410] sm:$0xff]  }
  0x6e   : >> { %2449 = vmatpush3.bf16.msra.mxu0 %v2658_v58  ;;  %v2709_v58 = vld [vmem:[%s3247_s1 + $0x440] sm:$0xff]  }
  0x6f   : >> { %2471 = vmatpush3.bf16.msra.mxu1 %v2660_v56  ;;  %2478 = vmatprep.subr.bf16.mxu0 %v2661_v61  ;;  %v2707_v56 = vld [vmem:[%s3247_s1 + $0x448] sm:$0xff]  }
  0x70   : >> { %2500 = vmatprep.subr.bf16.mxu1 %v2663_v62 }
  0x71   : >> { %1105 = vmatmul.mubr.bf16.vlgmr.msra.gmra.mxu0 %v966_v3 }
  0x72   : >> { %1279 = vmatmul.mubr.bf16.vlgmr.msra.gmra.mxu1 %v1146_v59  ;;  %2479 = vmatpush3.bf16.msra.mxu0 %v2662_v2  ;;  %v2710_v59 = vld [vmem:[%s3247_s1 + $0x400] sm:$0xff]  }
  0x73   : >> { %2501 = vmatpush3.bf16.msra.mxu1 %v2664_v63  ;;  %2480 = vmatprep.subr.bf16.mxu0 %v2665_v4 }
  0x74   : >> { %2502 = vmatprep.subr.bf16.mxu1 %v2667_v5  ;;  %1460 = vmatprep.mubr.bf16.mxu0 %v2226_v31 }
  0x75   : >> { %1646 = vmatprep.mubr.bf16.mxu1 %v1515_v42 }
  0x76   : >> { %2481 = vmatpush3.bf16.msra.mxu0 %v2666_v7 }
  0x77   : >> { %2503 = vmatpush3.bf16.msra.mxu1 %v2668_v6  ;;  %2482 = vmatprep.subr.bf16.mxu0 %v2669_v8 }
  0x78   : >> { %2504 = vmatprep.subr.bf16.mxu1 %v2671_v9 }
  0x7a   : >> { %2483 = vmatpush3.bf16.msra.mxu0 %v2670_v11 }
  0x7b   : >> { %2505 = vmatpush3.bf16.msra.mxu1 %v2672_v10  ;;  %2484 = vmatprep.subr.bf16.mxu0 %v2673_v12 }
  0x7c   : >> { %2506 = vmatprep.subr.bf16.mxu1 %v2675_v13 }
  0x7e   : >> { %2485 = vmatpush3.bf16.msra.mxu0 %v2674_v15 }
  0x7f   : >> { %2507 = vmatpush3.bf16.msra.mxu1 %v2676_v14  ;;  %2486 = vmatprep.subr.bf16.mxu0 %v2677_v16 }
  0x80   : >> { %2508 = vmatprep.subr.bf16.mxu1 %v2679_v17 }
  0x82   : >> { %2487 = vmatpush3.bf16.msra.mxu0 %v2678_v19 }
  0x83   : >> { %2509 = vmatpush3.bf16.msra.mxu1 %v2680_v18  ;;  %2488 = vmatprep.subr.bf16.mxu0 %v2681_v20 }
  0x84   : >> { %2510 = vmatprep.subr.bf16.mxu1 %v2683_v21 }
  0x86   : >> { %2489 = vmatpush3.bf16.msra.mxu0 %v2682_v23 }
  0x87   : >> { %2511 = vmatpush3.bf16.msra.mxu1 %v2684_v22  ;;  %2490 = vmatprep.subr.bf16.mxu0 %v2685_v24 }
  0x88   : >> { %2512 = vmatprep.subr.bf16.mxu1 %v2687_v25 }
  0x8a   : >> { %2491 = vmatpush3.bf16.msra.mxu0 %v2686_v27 }
  0x8b   : >> { %2513 = vmatpush3.bf16.msra.mxu1 %v2688_v26  ;;  %2492 = vmatprep.subr.bf16.mxu0 %v2689_v28 }
  0x8c   : >> { %2514 = vmatprep.subr.bf16.mxu1 %v2691_v29 }
  0x8e   : >> { %2493 = vmatpush3.bf16.msra.mxu0 %v2690_v34 }
  0x8f   : >> { %2515 = vmatpush3.bf16.msra.mxu1 %v2693_v32  ;;  %2522 = vmatprep.subr.bf16.mxu0 %v2695_v35 }
  0x91   : >> { %1461 = vmatmul.mubr.bf16.vlgmr.msra.gmra.mxu0 %v2225_v33 }
  0x92   : >> { %1647 = vmatmul.mubr.bf16.vlgmr.msra.gmra.mxu1 %v1508_v44  ;;  %2523 = vmatpush3.bf16.msra.mxu0 %v2696_v43 }
  0x93   : >> { %1820 = vmatprep.mubr.bf16.mxu0 %v1689_v45  ;;  %2524 = vmatprep.subr.bf16.mxu0 %v2697_v46 }
  0x96   : >> { %2525 = vmatpush3.bf16.msra.mxu0 %v2698_v47 }
  0x97   : >> { %2526 = vmatprep.subr.bf16.mxu0 %v2699_v48 }
  0x9a   : >> { %2527 = vmatpush3.bf16.msra.mxu0 %v2700_v49 }
  0x9b   : >> { %2528 = vmatprep.subr.bf16.mxu0 %v2701_v50 }
  0x9e   : >> { %2529 = vmatpush3.bf16.msra.mxu0 %v2702_v51 }
  0x9f   : >> { %2530 = vmatprep.subr.bf16.mxu0 %v2703_v52 }
  0xa2   : >> { %2531 = vmatpush3.bf16.msra.mxu0 %v2704_v53 }
  0xa3   : >> { %2532 = vmatprep.subr.bf16.mxu0 %v2705_v54 }
  0xa6   : >> { %2533 = vmatpush3.bf16.msra.mxu0 %v2706_v55 }
  0xa7   : >> { %2534 = vmatprep.subr.bf16.mxu0 %v2707_v56 }
  0xaa   : >> { %2535 = vmatpush3.bf16.msra.mxu0 %v2708_v57 }
  0xab   : >> { %2536 = vmatprep.subr.bf16.mxu0 %v2709_v58 }
  0xae   : >> { %2537 = vmatpush3.bf16.msra.mxu0 %v2710_v59 }
  0xb1   : >> { %1821 = vmatmul.mubr.bf16.vlgmr.msra.gmra.mxu0 %v1688_v60 }
  0xf1   : >> { %v2362_v3 = vpop.f32.mrf.mxu0 }
  0xf2   : >> { %v2384_v61 = vpop.f32.mrf.mxu1 }
  0xf3   : >> { %v2363_v5 = vpop.f32.mrf.mxu0 }
  0xf4   : >> { %v2385_v62 = vpop.f32.mrf.mxu1  ;;  %v2364_v6 = vadd.f32 %v2363_v5, %v2362_v3 }
  0xf5   : >> { %v2386_v63 = vadd.f32 %v2385_v62, %v2384_v61  ;;  %v2365_v7 = vpop.f32.mrf.mxu0 }
  0xf6   : >> { %v2387_v2 = vpop.f32.mrf.mxu1 }
  0xf7   : >> { %v566_v8 = vadd.f32 %v2386_v63, %v2364_v6  ;;  %v2366_v9 = vpop.f32.mrf.mxu0 }
  0xf8   : >> { %v2388_v4 = vpop.f32.mrf.mxu1 }
 0x111   : >> { %v2406_v14 = vpop.f32.mrf.mxu0 }
 0x112   : >> { %v2428_v10 = vpop.f32.mrf.mxu1 }
 0x113   : >> { %v2407_v16 = vpop.f32.mrf.mxu0 }
 0x114   : >> { %v2429_v11 = vpop.f32.mrf.mxu1  ;;  %v2408_v17 = vadd.f32 %v2407_v16, %v2406_v14 }
 0x115   : >> { %v2430_v12 = vadd.f32 %v2429_v11, %v2428_v10  ;;  %v2409_v18 = vpop.f32.mrf.mxu0 }
 0x116   : >> { %v2431_v13 = vpop.f32.mrf.mxu1  ;;  %v744_v19 = vadd.f32 %v2408_v17, %v566_v8 }
 0x117   : >> { %v2410_v20 = vpop.f32.mrf.mxu0 }
 0x118   : >> { %v2432_v15 = vpop.f32.mrf.mxu1  ;;  %v926_v21 = vadd.f32 %v2430_v12, %v744_v19 }
 0x131   : >> { %v2450_v25 = vpop.f32.mrf.mxu0 }
 0x132   : >> { %v2472_v22 = vpop.f32.mrf.mxu1 }
 0x133   : >> { %v2451_v27 = vpop.f32.mrf.mxu0 }
 0x134   : >> { %v2473_v23 = vpop.f32.mrf.mxu1  ;;  %v2452_v28 = vadd.f32 %v2451_v27, %v2450_v25 }
 0x135   : >> { %v2474_v29 = vadd.f32 %v2473_v23, %v2472_v22  ;;  %v2453_v30 = vpop.f32.mrf.mxu0 }
 0x136   : >> { %v2475_v24 = vpop.f32.mrf.mxu1  ;;  %v1112_v31 = vadd.f32 %v2452_v28, %v926_v21 }
 0x137   : >> { %v2454_v32 = vpop.f32.mrf.mxu0 }
 0x138   : >> { %v2476_v26 = vpop.f32.mrf.mxu1  ;;  %v1286_v33 = vadd.f32 %v2474_v29, %v1112_v31 }
 0x151   : >> { %v2494_v34 = vpop.f32.mrf.mxu0 }
 0x152   : >> { %v2516_v35 = vpop.f32.mrf.mxu1 }
 0x153   : >> { %v2495_v36 = vpop.f32.mrf.mxu0 }
 0x154   : >> { %v2517_v37 = vpop.f32.mrf.mxu1  ;;  %v2496_v42 = vadd.f32 %v2495_v36, %v2494_v34 }
 0x155   : >> { %v2497_v38 = vpop.f32.mrf.mxu0  ;;  %v2518_v44 = vadd.f32 %v2517_v37, %v2516_v35 }
 0x156   : >> { %v2519_v39 = vpop.f32.mrf.mxu1  ;;  %v1468_v43 = vadd.f32 %v2496_v42, %v1286_v33 }
 0x157   : >> { %v2498_v40 = vpop.f32.mrf.mxu0 }
 0x158   : >> { %v2520_v41 = vpop.f32.mrf.mxu1  ;;  %v1654_v47 = vadd.f32 %v2518_v44, %v1468_v43 }
 0x171   : >> { %v2538_v45 = vpop.f32.mrf.mxu0 }
 0x173   : >> { %v2539_v46 = vpop.f32.mrf.mxu0 }
 0x174   : >> { %v2540_v48 = vadd.f32 %v2539_v46, %v2538_v45 }
 0x175   : >> { %v2541_v49 = vpop.f32.mrf.mxu0 }
 0x176   : >> { %v1828_v50 = vadd.f32 %v2540_v48, %v1654_v47 }
 0x177   : >> { %v2542_v51 = vpop.f32.mrf.mxu0 }
 0x178   : >> { %v1835_v52 = vmul.f32 %v2763_v0, %v1828_v50 }
 0x17a   : >> { %v1842_v53 = vadd.f32 %v2768_v1, %v1835_v52 }
 0x17c   : >> { %v1843_v54 = vmax.f32 %v1842_v53, 0.0  ;;  %205 = sbr.rel (!%p203_p4) target bundleno = 15 (0xf), region = 85 }
 0x17e   : >> { %v1844_v55 = vpack.c.bf16 %v1843_v54, %v1843_v54 }
 0x180   : >> { %1848 = vst.msk [vmem:[%s1846_s18] sm:$0x3] %vm1847_vm0, %v1844_v55 }
 0x181 PF: > { %s14_s15 = sadd.s32 1, %s2721_s15  }
 0x182   : > { %p11_p5 = scmp.ge.s32.totalorder %s14_s15, 4  }
 0x184   :  { %13 = sbr.rel (!%p11_p5) target bundleno = 1 (0x1), region = 96 }

// kernel: forward.22
= control target key start
LH: loop header
LB: loop body
LE: loop exit
PB: predicated region body
PF: predicated region fallthrough
CT: control target
= control target key end

     0   :  { %s1150_s15 = smov 0   ;;  %s1299_s0 = inlined_call_operand.vmem [shape: bf16[2,6,6,32], index: 0, kind: input, shape index: {}]   ;;  %s1300_s1 = inlined_call_operand.vmem [shape: bf16[9,32,48], index: 1, kind: input, shape index: {}]   ;;  %s1301_s2 = inlined_call_operand.vmem [shape: f32[1,48], index: 2, kind: input, shape index: {}]   ;;  %s1302_s3 = inlined_call_operand.vmem [shape: f32[1,48], index: 3, kind: input, shape index: {}]   ;;  %s1303_s4 = inlined_call_operand.vmem [shape: bf16[2,4,4,48], index: 4, kind: output, shape index: {}]  }
   0x1 LB: > { %s887_s16 = sadd.s32 4294967295, %s1117_s15   ;;  %p891_p0 = scmp.ge.s32.totalorder %s1117_s15, 1  ;;  %s1117_s15 = sphi %s1150_s15, %s14_s15  }
   0x2   : > { %p162_p1 = scmp.lt.s32.totalorder %s1117_s15, 3 }
   0x4   : > { %p163_p2 = pnand %p891_p0, %p162_p1 }
   0x5   : > { %p188_p3 = scmp.lt.s32.totalorder (!%p163_p2), %s887_s16, 1  ;;  %s1178_s29 = smov (!%p163_p2), 0  }
   0x6   : > { %166 = sbr.rel (%p163_p2) target bundleno = 261 (0x105), region = 36 }
   0xb   : > { %v1161_v0 = vld [vmem:[%s1301_s2] ss:$0 sm:$0xff]  ;;  %s1305_s16 = smov (!%p188_p3, %s887_s16), 1 }
   0xc   : > { %v1166_v1 = vld [vmem:[%s1302_s3] ss:$0 sm:$0xff]  ;;  %s1067_s21 = smul.u32 24, %s1305_s16  ;;  %s967_s22 = sshll.u32 %s1305_s16, 3 }
   0xd   : > { %s1171_s25 = scalar_lea.vmem %s1303_s4, %s967_s22 }
   0xe   : > { %s1176_s28 = scalar_lea.vmem %s1299_s0, %s1067_s21 }
   0xf LB: >> { %v1086_v2 = vld [vmem:[%s1300_s1 + $0x18] sm:$0xff]   ;;  %v1123_v3 = vmov 0.0   ;;  %v1087_v4 = vld [vmem:[%s1300_s1 + $0x8] sm:$0xff]   ;;  %v1088_v5 = vld [vmem:[%s1300_s1 + $0x10] sm:$0xff]   ;;  %vm1124_vm0 = vmmov 0   ;;  %s895_s10 = sshll.u32 %s1121_s29, 2  ;;  %s1121_s29 = sphi %s1178_s29, %s206_s29  }
  0x10   : >> { %995 = vmatprep.subr.bf16.mxu0 %v1123_v3  ;;  %1003 = vmatprep.subr.bf16.mxu1 %v1123_v3  ;;  %v1089_v6 = vld [vmem:[%s1300_s1] sm:$0xff]   ;;  %s1202_s13 = scalar_lea.vmem %s1176_s28, %s895_s10  ;;  %vm241_vm1 = vcmask 261120   ;;  %v1092_v11 = vld [vmem:[%s1300_s1 + $0x38] sm:$0xff]   ;;  %v1091_v14 = vld [vmem:[%s1300_s1 + $0x28] sm:$0xff]   ;;  %s964_s21 = sshll.u32 %s1121_s29, 1  ;;  %vm815_vm2 = vcmask 386048  }
  0x11   : >> { %996 = vmatpush3.bf16.msra.mxu0 %v1086_v2  ;;  %999 = vmatprep.mubr.msk.bf16.mxu0 %vm1124_vm0, %v1123_v3  ;;  %v209_v7 = vld [vmem:[%s1202_s13] sm:$0x7]  ;;  %v915_v12 = vld [vmem:[%s1202_s13 + $0x4] sm:$0x7]  ;;  %v1094_v16 = vld [vmem:[%s1300_s1 + $0x30] sm:$0xff]   ;;  %s814_s22 = scalar_lea.vmem %s1171_s25, %s964_s21  ;;  %s206_s29 = sadd.s32 1, %s1121_s29  }
  0x12   : >> { %1004 = vmatpush3.bf16.msra.mxu1 %v1087_v4  ;;  %997 = vmatprep.subr.bf16.mxu0 %v1123_v3  ;;  %v900_v8 = vcombine.low %v209_v7, %v209_v7  ;;  %v927_v17 = vcombine.low %v915_v12, %v915_v12  ;;  %v1093_v18 = vld [vmem:[%s1300_s1 + $0x20] sm:$0xff]   ;;  %v1097_v19 = vld [vmem:[%s1300_s1 + $0x58] sm:$0xff]   ;;  %v939_v22 = vld [vmem:[%s1202_s13 + $0x8] sm:$0x7]  ;;  %p203_p4 = scmp.ge.s32.totalorder %s206_s29, 4  }
  0x13   : >> { %1005 = vmatprep.subr.bf16.mxu1 %v1123_v3  ;;  %1007 = vmatprep.mubr.msk.bf16.mxu1 %vm1124_vm0, %v1123_v3  ;;  %v1096_v23 = vld [vmem:[%s1300_s1 + $0x48] sm:$0xff]   ;;  %v951_v24 = vcombine.low %v939_v22, %v939_v22  ;;  %v1099_v25 = vld [vmem:[%s1300_s1 + $0x50] sm:$0xff]   ;;  %v1098_v29 = vld [vmem:[%s1300_s1 + $0x40] sm:$0xff]  }
  0x14   : >> { %v223_v9 = vshrl.u32 %v900_v8, 16  ;;  %v225_v10 = vshll.u32 %v900_v8, 16  ;;  %v345_v20 = vrot.slane %v900_v8, 1  ;;  %v478_v21 = vshll.u32 %v927_v17, 16  ;;  %v1101_v31 = vld [vmem:[%s1300_s1 + $0x78] sm:$0xff]   ;;  %v1100_v33 = vld [vmem:[%s1300_s1 + $0x68] sm:$0xff]  }
  0x15   : >> { %998 = vmatpush3.bf16.msra.mxu0 %v1088_v5  ;;  %v476_v26 = vshrl.u32 %v927_v17, 16  ;;  %v543_v28 = vrot.slane %v927_v17, 1  ;;  %v676_v30 = vshll.u32 %v951_v24, 16  ;;  %v674_v34 = vshrl.u32 %v951_v24, 16  ;;  %v1103_v36 = vld [vmem:[%s1300_s1 + $0x70] sm:$0xff]   ;;  %v1102_v37 = vld [vmem:[%s1300_s1 + $0x60] sm:$0xff]  }
  0x16   : >> { %1006 = vmatpush3.bf16.msra.mxu1 %v1089_v6  ;;  %1011 = vmatprep.subr.bf16.mxu0 %v1123_v3  ;;  %v227_v13 = vrot.slane %v225_v10, 1  ;;  %v480_v27 = vrot.slane %v478_v21, 1  ;;  %v1105_v39 = vld [vmem:[%s1300_s1 + $0x88] sm:$0xff]   ;;  %v1106_v40 = vld [vmem:[%s1300_s1 + $0x80] sm:$0xff]   ;;  %v741_v41 = vrot.slane %v951_v24, 1 }
  0x17   : >> { %1019 = vmatprep.subr.bf16.mxu1 %v1123_v3  ;;  %v678_v35 = vrot.slane %v676_v30, 1 }
  0x18   : >> { %v228_v15 = vor.u32 %v227_v13, %v223_v9  ;;  %v481_v32 = vor.u32 %v480_v27, %v476_v26 }
  0x19   : >> { %1008 = vmatmul.mubr.msk.bf16.vlgmr.msra.gmra.mxu1 %vm241_vm1, %v209_v7  ;;  %v679_v38 = vor.u32 %v678_v35, %v674_v34 }
  0x1a   : >> { %1020 = vmatpush3.bf16.msra.mxu1 %v1092_v11  ;;  %1023 = vmatprep.mubr.msk.bf16.mxu1 %vm1124_vm0, %v1123_v3 }
  0x1b   : >> { %1021 = vmatprep.subr.bf16.mxu1 %v1123_v3  ;;  %1000 = vmatmul.mubr.msk.bf16.vlgmr.msra.gmra.mxu0 %vm241_vm1, %v228_v15 }
  0x1c   : >> { %1012 = vmatpush3.bf16.msra.mxu0 %v1091_v14  ;;  %1015 = vmatprep.mubr.msk.bf16.mxu0 %vm1124_vm0, %v1123_v3 }
  0x1d   : >> { %1013 = vmatprep.subr.bf16.mxu0 %v1123_v3 }
  0x1e   : >> { %1022 = vmatpush3.bf16.msra.mxu1 %v1094_v16 }
  0x1f   : >> { %1035 = vmatprep.subr.bf16.mxu1 %v1123_v3 }
  0x20   : >> { %1014 = vmatpush3.bf16.msra.mxu0 %v1093_v18 }
  0x21   : >> { %1024 = vmatmul.mubr.msk.bf16.vlgmr.msra.gmra.mxu1 %vm241_vm1, %v915_v12  ;;  %1027 = vmatprep.subr.bf16.mxu0 %v1123_v3 }
  0x22   : >> { %1036 = vmatpush3.bf16.msra.mxu1 %v1097_v19  ;;  %1039 = vmatprep.mubr.msk.bf16.mxu1 %vm1124_vm0, %v1123_v3 }
  0x23   : >> { %1037 = vmatprep.subr.bf16.mxu1 %v1123_v3  ;;  %1016 = vmatmul.mubr.msk.bf16.vlgmr.msra.gmra.mxu0 %vm241_vm1, %v345_v20 }
  0x24   : >> { %1028 = vmatpush3.bf16.msra.mxu0 %v1096_v23  ;;  %1031 = vmatprep.mubr.msk.bf16.mxu0 %vm1124_vm0, %v1123_v3 }
  0x25   : >> { %1029 = vmatprep.subr.bf16.mxu0 %v1123_v3 }
  0x26   : >> { %1038 = vmatpush3.bf16.msra.mxu1 %v1099_v25 }
  0x27   : >> { %1051 = vmatprep.subr.bf16.mxu1 %v1123_v3 }
  0x28   : >> { %1030 = vmatpush3.bf16.msra.mxu0 %v1098_v29 }
  0x29   : >> { %1040 = vmatmul.mubr.msk.bf16.vlgmr.msra.gmra.mxu1 %vm241_vm1, %v543_v28  ;;  %1043 = vmatprep.subr.bf16.mxu0 %v1123_v3 }
  0x2a   : >> { %1052 = vmatpush3.bf16.msra.mxu1 %v1101_v31  ;;  %1055 = vmatprep.mubr.msk.bf16.mxu1 %vm1124_vm0, %v1123_v3 }
  0x2b   : >> { %1053 = vmatprep.subr.bf16.mxu1 %v1123_v3  ;;  %1032 = vmatmul.mubr.msk.bf16.vlgmr.msra.gmra.mxu0 %vm241_vm1, %v481_v32 }
  0x2c   : >> { %1044 = vmatpush3.bf16.msra.mxu0 %v1100_v33  ;;  %1047 = vmatprep.mubr.msk.bf16.mxu0 %vm1124_vm0, %v1123_v3 }
  0x2d   : >> { %1045 = vmatprep.subr.bf16.mxu0 %v1123_v3 }
  0x2e   : >> { %1054 = vmatpush3.bf16.msra.mxu1 %v1103_v36 }
  0x30   : >> { %1046 = vmatpush3.bf16.msra.mxu0 %v1102_v37 }
  0x31   : >> { %1056 = vmatmul.mubr.msk.bf16.vlgmr.msra.gmra.mxu1 %vm241_vm1, %v679_v38  ;;  %1059 = vmatprep.subr.bf16.mxu0 %v1123_v3 }
  0x33   : >> { %1048 = vmatmul.mubr.msk.bf16.vlgmr.msra.gmra.mxu0 %vm241_vm1, %v939_v22 }
  0x34   : >> { %1060 = vmatpush3.bf16.msra.mxu0 %v1105_v39  ;;  %1063 = vmatprep.mubr.msk.bf16.mxu0 %vm1124_vm0, %v1123_v3 }
  0x35   : >> { %1061 = vmatprep.subr.bf16.mxu0 %v1123_v3 }
  0x38   : >> { %1062 = vmatpush3.bf16.msra.mxu0 %v1106_v40 }
  0x3b   : >> { %1064 = vmatmul.mubr.msk.bf16.vlgmr.msra.gmra.mxu0 %vm241_vm1, %v741_v41 }
  0xd9   : >> { %v334_v42 = vpop.f32.mrf.mxu1 }
  0xdb   : >> { %v1009_v43 = vpop.f32.mrf.mxu1  ;;  %v279_v44 = vpop.f32.mrf.mxu0 }
  0xdc   : >> { %v335_v57 = vadd.f32 %v334_v42, %v279_v44 }
  0xdd   : >> { %v337_v45 = vpop.f32.mrf.mxu1  ;;  %v1001_v46 = vpop.f32.mrf.mxu0 }
  0xdf   : >> { %v1010_v47 = vpop.f32.mrf.mxu1  ;;  %v282_v48 = vpop.f32.mrf.mxu0 }
  0xe1   : >> { %v460_v49 = vpop.f32.mrf.mxu1  ;;  %v1002_v50 = vpop.f32.mrf.mxu0 }
  0xe3   : >> { %v1025_v51 = vpop.f32.mrf.mxu1  ;;  %v395_v52 = vpop.f32.mrf.mxu0 }
  0xe4   : >> { %v401_v60 = vadd.f32 %v395_v52, %v335_v57 }
  0xe5   : >> { %v463_v53 = vpop.f32.mrf.mxu1  ;;  %v1017_v54 = vpop.f32.mrf.mxu0 }
  0xe6   : >> { %v466_v3 = vadd.f32 %v460_v49, %v401_v60 }
  0xe7   : >> { %v1026_v55 = vpop.f32.mrf.mxu1  ;;  %v398_v56 = vpop.f32.mrf.mxu0 }
  0xe9   : >> { %v593_v58 = vpop.f32.mrf.mxu1  ;;  %v1018_v59 = vpop.f32.mrf.mxu0 }
  0xeb   : >> { %v1041_v61 = vpop.f32.mrf.mxu1  ;;  %v531_v62 = vpop.f32.mrf.mxu0 }
  0xec   : >> { %v537_v6 = vadd.f32 %v531_v62, %v466_v3 }
  0xed   : >> { %v596_v63 = vpop.f32.mrf.mxu1  ;;  %v1033_v2 = vpop.f32.mrf.mxu0 }
  0xee   : >> { %v599_v11 = vadd.f32 %v593_v58, %v537_v6 }
  0xef   : >> { %v1042_v4 = vpop.f32.mrf.mxu1  ;;  %v534_v5 = vpop.f32.mrf.mxu0 }
  0xf1   : >> { %v729_v7 = vpop.f32.mrf.mxu1  ;;  %v1034_v8 = vpop.f32.mrf.mxu0 }
  0xf3   : >> { %v1057_v9 = vpop.f32.mrf.mxu1  ;;  %v658_v10 = vpop.f32.mrf.mxu0 }
  0xf4   : >> { %v664_v14 = vadd.f32 %v658_v10, %v599_v11 }
  0xf5   : >> { %v732_v12 = vpop.f32.mrf.mxu1  ;;  %v1049_v13 = vpop.f32.mrf.mxu0 }
  0xf6   : >> { %v735_v18 = vadd.f32 %v729_v7, %v664_v14 }
  0xf7   : >> { %v1058_v15 = vpop.f32.mrf.mxu1  ;;  %v661_v16 = vpop.f32.mrf.mxu0 }
  0xf9   : >> { %v1050_v17 = vpop.f32.mrf.mxu0 }
  0xfb   : >> { %v791_v19 = vpop.f32.mrf.mxu0 }
  0xfc   : >> { %v797_v20 = vadd.f32 %v791_v19, %v735_v18 }
  0xfd   : >> { %v1065_v21 = vpop.f32.mrf.mxu0 }
  0xfe   : >> { %v804_v22 = vmul.f32 %v1161_v0, %v797_v20 }
  0xff   : >> { %v794_v23 = vpop.f32.mrf.mxu0 }
 0x100   : >> { %v811_v24 = vadd.f32 %v1166_v1, %v804_v22  ;;  %205 = sbr.rel (!%p203_p4) target bundleno = 15 (0xf), region = 85 }
 0x101   : >> { %v1066_v25 = vpop.f32.mrf.mxu0 }
 0x102   : >> { %v812_v26 = vpack.c.bf16 %v811_v24, %v811_v24 }
 0x104   : >> { %816 = vst.msk [vmem:[%s814_s22] sm:$0x3] %vm815_vm2, %v812_v26 }
 0x105 PF: > { %s14_s15 = sadd.s32 1, %s1117_s15  }
 0x106   : > { %p11_p5 = scmp.ge.s32.totalorder %s14_s15, 4  }
 0x108   :  { %13 = sbr.rel (!%p11_p5) target bundleno = 1 (0x1), region = 96 }

// kernel: forward.23
= control target key start
LH: loop header
LB: loop body
LE: loop exit
PB: predicated region body
PF: predicated region fallthrough
CT: control target
= control target key end

     0   :  { %s707_s9 = smov 0   ;;  %s767_s0 = inlined_call_operand.vmem [shape: bf16[2,16,48], index: 0, kind: input, shape index: {}]   ;;  %s768_s1 = inlined_call_operand.vmem [shape: f32[2,16,16], index: 1, kind: input, shape index: {}]   ;;  %s769_s2 = inlined_call_operand.vmem [shape: bf16[2,16,16], index: 2, kind: output, shape index: {}]  }
   0x1 LB: > { %s576_s10 = sadd.s32 4294967295, %s682_s9   ;;  %p580_p0 = scmp.ge.s32.totalorder %s682_s9, 1  ;;  %s682_s9 = sphi %s707_s9, %s12_s9  }
   0x2   : > { %p112_p1 = scmp.lt.s32.totalorder %s682_s9, 3 }
   0x4   : > { %p113_p2 = pnand %p580_p0, %p112_p1 }
   0x5   : > { %p134_p3 = scmp.lt.s32.totalorder (!%p113_p2), %s576_s10, 1  ;;  %s684_s15 = smov (!%p113_p2), 112  }
   0x6   : > { %116 = sbr.rel (%p113_p2) target bundleno = 764 (0x2fc), region = 28  ;;  %s685_s16 = smov (!%p113_p2), 120  }
   0x7   : > { %s686_s17 = smov (!%p113_p2), 104   ;;  %s689_s18 = smov (!%p113_p2), 88  }
   0x8   : > { %s690_s19 = smov (!%p113_p2), 96   ;;  %s691_s28 = smov (!%p113_p2), 8  }
   0xb   : > { %s771_s10 = smov (!%p134_p3, %s576_s10), 1  ;;  %v687_v1 = vmov 0.0   ;;  %vm688_vm0 = vmmov 0   ;;  %vm171_vm1 = vcmask 64512   ;;  %vm175_vm2 = vcmask 1043456  }
   0xc   : > { %s596_s11 = sshll.u32 %s771_s10, 3  ;;  %608 = vmatprep.subr.bf16.mxu0 %v687_v1  ;;  %614 = vmatprep.subr.bf16.mxu1 %v687_v1  ;;  %vm248_vm3 = vcmask 130048  }
   0xd   : > { %s138_s14 = scalar_lea.vmem %s767_s0, %s596_s11  ;;  %610 = vmatprep.mubr.msk.bf16.mxu0 %vm688_vm0, %v687_v1  ;;  %616 = vmatprep.mubr.msk.bf16.mxu1 %vm688_vm0, %v687_v1  ;;  %s143_s3 = scalar_lea.vmem %s769_s2, %s596_s11 }
   0xe   : > { %v145_v0 = vld [vmem:[%s138_s14] sm:$0xff]  }
   0xf   : > { %152 = vrot.lane.b32.xlu0 %v145_v0, %s684_s15  ;;  %343 = vrot.lane.b32.xlu1 %v145_v0, %s685_s16  ;;  %v221_v2 = vunpack.c.h.bf16 %v145_v0  ;;  %v220_v6 = vunpack.c.l.bf16 %v145_v0 }
  0x11   : > { %v224_v4 = vmul.f32 %v221_v2, %v221_v2  ;;  %v223_v7 = vmul.f32 %v220_v6, %v220_v6 }
  0x13   : > { %324 = vrot.lane.b32.xlu0 %v145_v0, %s686_s17  ;;  %v225_v8 = vsel %vm171_vm1, %v223_v7, 0.0  ;;  %v228_v9 = vsel %vm171_vm1, %v224_v4, 0.0 }
  0x81   : > { %v153_v3 = vpop.permute.xlu0 %152  ;;  %v344_v10 = vpop.permute.xlu1 %343 }
  0x82   : > { %155 = vxpose.xlu1.c.b16.start.end [1/1] (short) (narrow) %v153_v3, 16 }
  0x85   : > { %v325_v5 = vpop.permute.xlu0 %324 }
  0x86   : > { %397 = vrot.lane.b32.xlu1 %v224_v4, %s685_s16  ;;  %327 = vxpose.xlu0.c.b16.start.end [1/1] (short) (narrow) %v325_v5, 16 }
  0x8f   : > { %395 = vrot.lane.b32.xlu0 %v223_v7, %s685_s16 }
  0xaa   : > { %226 = vadd.xlane.f32.xlu1 %v225_v8 }
  0xae   : > { %229 = vadd.xlane.f32.xlu0 %v228_v9 }
  0xe4   : > { %v163_v11 = vpop.trf.xlu1 }
  0xe5   : > { %v177_v12 = vsel %vm175_vm2, %v163_v11, 0  ;;  %v222_v19 = vunpack.c.l.bf16 %v163_v11 }
  0xe6   : > { %609 = vmatpush3.bf16.msra.mxu0 %v177_v12 }
  0xe7   : > { %620 = vmatprep.subr.bf16.mxu0 %v687_v1  ;;  %v247_v20 = vmul.f32 %v222_v19, %v222_v19 }
  0xe8   : > { %v335_v13 = vpop.trf.xlu0 }
  0xe9   : > { %v349_v14 = vsel %vm175_vm2, %v335_v13, 0  ;;  %611 = vmatmul.mubr.msk.bf16.vlgmr.msra.gmra.mxu0 %vm171_vm1, %v145_v0  ;;  %v249_v21 = vsel %vm248_vm3, %v247_v20, 0.0  ;;  %v392_v22 = vunpack.c.l.bf16 %v335_v13 }
  0xea   : > { %621 = vmatpush3.bf16.msra.mxu0 %v349_v14  ;;  %622 = vmatprep.mubr.msk.bf16.mxu0 %vm688_vm0, %v687_v1  ;;  %v250_v23 = vrot.slane %v249_v21, 4 }
  0xeb   : > { %v423_v24 = vmul.f32 %v392_v22, %v392_v22 }
  0xec   : > { %v251_v25 = vadd.f32 %v250_v23, %v249_v21 }
  0xed   : > { %v424_v27 = vsel %vm248_vm3, %v423_v24, 0.0 }
  0xee   : > { %v252_v26 = vrot.slane %v251_v25, 2  ;;  %v425_v28 = vrot.slane %v424_v27, 4 }
  0xf0   : > { %v253_v29 = vadd.f32 %v252_v26, %v251_v25  ;;  %v426_v30 = vadd.f32 %v425_v28, %v424_v27  ;;  %v272_v28 = vld [vmem:[%s768_s1] sm:$0xff] }
  0xf1   : > { %623 = vmatmul.mubr.msk.bf16.vlgmr.msra.gmra.mxu0 %vm171_vm1, %v344_v10 }
  0xf2   : > { %v254_v31 = vrot.slane %v253_v29, 1  ;;  %v427_v32 = vrot.slane %v426_v30, 2 }
  0xf4   : > { %v255_v34 = vadd.f32 %v254_v31, %v253_v29  ;;  %v428_v37 = vadd.f32 %v427_v32, %v426_v30  ;;  %v273_v30 = vld [vmem:[%s768_s1 + $0x8] sm:$0xff] }
  0xf6   : > { %v256_v38 = vadd.f32 0.0001, %v255_v34  ;;  %v429_v40 = vrot.slane %v428_v37, 1 }
  0xf8   : > { %v398_v15 = vpop.permute.xlu1 %397  ;;  %v430_v41 = vadd.f32 %v429_v40, %v428_v37  ;;  %vm259_vm7 = vcmp.eq.f32.partialorder %v256_v38, inf  ;;  %v262_v61 = vand.u32 2147483648, %v256_v38  ;;  %vm261_vm9 = vcmp.eq.f32.partialorder %v256_v38, 0.0 }
  0xf9   : > { %v404_v16 = vsel %vm171_vm1, %v398_v15, 0.0 }
  0xfa   : > { %405 = vadd.xlane.f32.xlu1 %v404_v16  ;;  %v431_v44 = vadd.f32 0.0001, %v430_v41 }
  0xfc   : > { %vm434_vm11 = vcmp.eq.f32.partialorder %v431_v44, inf  ;;  %v437_v13 = vand.u32 2147483648, %v431_v44  ;;  %vm436_vm14 = vcmp.eq.f32.partialorder %v431_v44, 0.0 }
 0x101   : > { %v396_v17 = vpop.permute.xlu0 %395 }
 0x102   : > { %v401_v18 = vsel %vm171_vm1, %v396_v17, 0.0 }
 0x103   : > { %402 = vadd.xlane.f32.xlu0 %v401_v18 }
 0x10b   : > { %453 = vrot.lane.b32.xlu1 %v145_v0, %s689_s18 }
 0x119   : > { %277 = vrot.lane.b32.xlu0 %v145_v0, %s690_s19 }
 0x133   : > { %v227_v33 = vpop.xlane.xlu1 %226 }
 0x134   : > { %v231_v36 = vadd.f32 0.0001, %v227_v33 }
 0x136   : > { %656 = vrsqrt.f32 %v231_v36  ;;  %vm235_vm4 = vcmp.eq.f32.partialorder %v231_v36, inf  ;;  %v238_v53 = vand.u32 2147483648, %v231_v36  ;;  %vm237_vm6 = vcmp.eq.f32.partialorder %v231_v36, 0.0 }
 0x137   : > { %v230_v35 = vpop.xlane.xlu0 %229  ;;  %658 = vrsqrt.f32 %v256_v38 }
 0x138   : > { %v232_v39 = vadd.f32 0.0001, %v230_v35 }
 0x13a   : > { %660 = vrsqrt.f32 %v232_v39  ;;  %vm242_vm5 = vcmp.eq.f32.partialorder %v232_v39, inf  ;;  %v245_v56 = vand.u32 2147483648, %v232_v39  ;;  %vm244_vm8 = vcmp.eq.f32.partialorder %v232_v39, 0.0 }
 0x143   : > { %v657_v45 = vpop.eup %656 }
 0x144   : > { %v659_v46 = vpop.eup %658  ;;  %v234_v48 = vmul.f32 %v657_v45, %v231_v36 }
 0x145   : > { %v258_v52 = vmul.f32 %v659_v46, %v256_v38 }
 0x146   : > { %v236_v54 = vsel %vm235_vm4, %v231_v36, %v234_v48 }
 0x147   : > { %v661_v47 = vpop.eup %660  ;;  %v260_v58 = vsel %vm259_vm7, %v256_v38, %v258_v52  ;;  %v239_v60 = vsel %vm237_vm6, %v238_v53, %v236_v54 }
 0x148   : > { %v241_v51 = vmul.f32 %v661_v47, %v232_v39  ;;  %v263_v63 = vsel %vm261_vm9, %v262_v61, %v260_v58 }
 0x149   : > { %v264_v3 = vmul.f32 %v263_v63, %v239_v60 }
 0x14a   : > { %v243_v57 = vsel %vm242_vm5, %v232_v39, %v241_v51 }
 0x14b   : > { %v246_v0 = vsel %vm244_vm8, %v245_v56, %v243_v57  ;;  %v266_v7 = vadd.f32 0.0001, %v264_v3 }
 0x14c   : > { %v265_v4 = vmul.f32 %v263_v63, %v246_v0 }
 0x14e   : > { %v267_v10 = vadd.f32 0.0001, %v265_v4 }
 0x183   : > { %v406_v42 = vpop.xlane.xlu1 %405 }
 0x184   : > { %v408_v43 = vadd.f32 0.0001, %v406_v42  ;;  %v589_v42 = vld [vmem:[%s768_s1 + $0x10] sm:$0xff] }
 0x186   : > { %662 = vrsqrt.f32 %v408_v43  ;;  %vm418_vm10 = vcmp.eq.f32.partialorder %v408_v43, inf  ;;  %v421_v8 = vand.u32 2147483648, %v408_v43  ;;  %vm420_vm12 = vcmp.eq.f32.partialorder %v408_v43, 0.0 }
 0x187   : > { %664 = vrsqrt.f32 %v431_v44  ;;  %v454_v38 = vpop.permute.xlu1 %453 }
 0x18c   : > { %v403_v49 = vpop.xlane.xlu0 %402 }
 0x18d   : > { %v407_v50 = vadd.f32 0.0001, %v403_v49 }
 0x18f   : > { %666 = vrsqrt.f32 %v407_v50  ;;  %vm411_vm13 = vcmp.eq.f32.partialorder %v407_v50, inf  ;;  %v414_v15 = vand.u32 2147483648, %v407_v50  ;;  %vm413_vm15 = vcmp.eq.f32.partialorder %v407_v50, 0.0 }
 0x190   : > { %v278_v55 = vpop.permute.xlu0 %277  ;;  %668 = vrcp.f32 %v266_v7 }
 0x191   : > { %615 = vmatpush3.bf16.msra.mxu1 %v278_v55  ;;  %670 = vrcp.f32 %v267_v10 }
 0x192   : > { %626 = vmatprep.subr.bf16.mxu1 %v687_v1 }
 0x193   : > { %v663_v59 = vpop.eup %662 }
 0x194   : > { %v665_v62 = vpop.eup %664  ;;  %v417_v2 = vmul.f32 %v663_v59, %v408_v43 }
 0x195   : > { %v433_v5 = vmul.f32 %v665_v62, %v431_v44 }
 0x196   : > { %v419_v6 = vsel %vm418_vm10, %v408_v43, %v417_v2 }
 0x197   : > { %v435_v11 = vsel %vm434_vm11, %v431_v44, %v433_v5  ;;  %v422_v14 = vsel %vm420_vm12, %v421_v8, %v419_v6  ;;  %v590_v44 = vld [vmem:[%s768_s1 + $0x18] sm:$0xff] }
 0x198   : > { %v438_v17 = vsel %vm436_vm14, %v437_v13, %v435_v11 }
 0x199   : > { %v440_v19 = vmul.f32 %v438_v17, %v422_v14 }
 0x19b   : > { %v442_v22 = vadd.f32 0.0001, %v440_v19 }
 0x19c   : > { %v667_v9 = vpop.eup %666 }
 0x19d   : > { %v410_v12 = vmul.f32 %v667_v9, %v407_v50  ;;  %v669_v24 = vpop.eup %668 }
 0x19e   : > { %v671_v27 = vpop.eup %670 }
 0x19f   : > { %v412_v16 = vsel %vm411_vm13, %v407_v50, %v410_v12 }
 0x1a0   : > { %v415_v18 = vsel %vm413_vm15, %v414_v15, %v412_v16 }
 0x1a1   : > { %v439_v20 = vmul.f32 %v438_v17, %v415_v18 }
 0x1a3   : > { %v441_v21 = vadd.f32 0.0001, %v439_v20 }
 0x1a5   : > { %672 = vrcp.f32 %v441_v21 }
 0x1a6   : > { %674 = vrcp.f32 %v442_v22 }
 0x1a9   : > { %v213_v23 = vpop.f32.mrf.mxu0 }
 0x1aa   : > { %v270_v26 = vmul.f32 %v669_v24, %v213_v23 }
 0x1ab   : > { %v612_v25 = vpop.f32.mrf.mxu0 }
 0x1ac   : > { %v274_v33 = vmul.f32 %v272_v28, %v270_v26 }
 0x1ad   : > { %v216_v29 = vpop.f32.mrf.mxu0 }
 0x1ae   : > { %v271_v31 = vmul.f32 %v671_v27, %v216_v29 }
 0x1af   : > { %v613_v32 = vpop.f32.mrf.mxu0 }
 0x1b0   : > { %v275_v34 = vmul.f32 %v273_v30, %v271_v31 }
 0x1b1   : > { %v385_v35 = vpop.f32.mrf.mxu0 }
 0x1b2   : > { %v673_v36 = vpop.eup %672  ;;  %v276_v37 = vpack.c.bf16 %v275_v34, %v274_v33 }
 0x1b3   : > { %v624_v39 = vpop.f32.mrf.mxu0  ;;  %v445_v40 = vmul.f32 %v673_v36, %v385_v35  ;;  %v675_v41 = vpop.eup %674 }
 0x1b4   : > { %617 = vmatmul.mubr.msk.bf16.vlgmr.msra.gmra.mxu1 %vm248_vm3, %v276_v37 }
 0x1b5   : > { %v388_v43 = vpop.f32.mrf.mxu0  ;;  %627 = vmatpush3.bf16.msra.mxu1 %v454_v38  ;;  %628 = vmatprep.mubr.msk.bf16.mxu1 %vm688_vm0, %v687_v1  ;;  %v450_v47 = vmul.f32 %v589_v42, %v445_v40  ;;  %vm518_vm0 = vcmask 125952  }
 0x1b6   : > { %v446_v45 = vmul.f32 %v675_v41, %v388_v43 }
 0x1b7   : > { %v625_v46 = vpop.f32.mrf.mxu0 }
 0x1b8   : > { %v451_v48 = vmul.f32 %v590_v44, %v446_v45 }
 0x1ba   : > { %v452_v49 = vpack.c.bf16 %v451_v48, %v450_v47 }
 0x1bc   : > { %629 = vmatmul.mubr.msk.bf16.vlgmr.msra.gmra.mxu1 %vm248_vm3, %v452_v49 }
 0x274   : > { %v317_v50 = vpop.f32.mrf.mxu1 }
 0x276   : > { %v618_v51 = vpop.f32.mrf.mxu1 }
 0x278   : > { %v320_v52 = vpop.f32.mrf.mxu1 }
 0x27a   : > { %v619_v53 = vpop.f32.mrf.mxu1 }
 0x27c   : > { %v493_v54 = vpop.f32.mrf.mxu1 }
 0x27e   : > { %v630_v55 = vpop.f32.mrf.mxu1 }
 0x280   : > { %v496_v56 = vpop.f32.mrf.mxu1 }
 0x281   : > { %v649_v57 = vpack.i.bf16 %v496_v56, %v493_v54 }
 0x282   : > { %v631_v58 = vpop.f32.mrf.mxu1 }
 0x283   : > { %650 = vrot.lane.b32.xlu1 %v649_v57, %s691_s28 }
 0x2f5   : > { %v651_v1 = vpop.permute.xlu1 %650 }
 0x2f6   : > { %v653_v59 = vunpack.i.h.bf16 %v651_v1  ;;  %v652_v60 = vunpack.i.l.bf16 %v651_v1 }
 0x2f8   : > { %v509_v61 = vsel %vm171_vm1, %v320_v52, %v653_v59  ;;  %v508_v62 = vsel %vm171_vm1, %v317_v50, %v652_v60 }
 0x2f9   : > { %v599_v63 = vpack.c.bf16 %v509_v61, %v509_v61  ;;  %v598_v0 = vpack.c.bf16 %v508_v62, %v508_v62 }
 0x2fb   : > { %520 = vst.msk [vmem:[%s143_s3 + $0x4] sm:$0xf] %vm518_vm0, %v599_v63  ;;  %519 = vst.msk [vmem:[%s143_s3] sm:$0xf] %vm518_vm0, %v598_v0 }
 0x2fc PF: > { %s12_s9 = sadd.s32 1, %s682_s9  }
 0x2fd   : > { %p9_p4 = scmp.ge.s32.totalorder %s12_s9, 4  }
 0x2ff   :  { %11 = sbr.rel (!%p9_p4) target bundleno = 1 (0x1), region = 59 }

// kernel: forward.24
= control target key start
LH: loop header
LB: loop body
LE: loop exit
PB: predicated region body
PF: predicated region fallthrough
CT: control target
= control target key end

     0   :  { %s397_s1 = inlined_call_operand.vmem [shape: bf16[128,128], index: 1, kind: input, shape index: {}]   ;;  %s398_s0 = inlined_call_operand.vmem [shape: bf16[32,128], index: 0, kind: input, shape index: {}]   ;;  %s399_s2 = inlined_call_operand.vmem [shape: f32[1,128], index: 2, kind: input, shape index: {}]   ;;  %s400_s3 = inlined_call_operand.vmem [shape: f32[1,128], index: 3, kind: input, shape index: {}]   ;;  %s401_s4 = inlined_call_operand.vmem [shape: bf16[32,128], index: 4, kind: input, shape index: {}]   ;;  %s402_s5 = inlined_call_operand.vmem [shape: bf16[32,128], index: 5, kind: output, shape index: {}]  }
   0x1   :  { %v309_v0 = vld [vmem:[%s397_s1 + $0x38] sm:$0xff]   ;;  %v310_v1 = vld [vmem:[%s397_s1 + $0x30] sm:$0xff]   ;;  %v311_v2 = vld [vmem:[%s397_s1 + $0x28] sm:$0xff]  }
   0x2   :  { %289 = vmatprep.subr.bf16.mxu0 %v309_v0  ;;  %v312_v3 = vld [vmem:[%s397_s1 + $0x20] sm:$0xff]   ;;  %v313_v5 = vld [vmem:[%s397_s1 + $0x18] sm:$0xff]   ;;  %v314_v6 = vld [vmem:[%s397_s1 + $0x10] sm:$0xff]  }
   0x3   :  { %290 = vmatpush3.bf16.msra.mxu0 %v309_v0  ;;  %v317_v4 = vld [vmem:[%s398_s0] sm:$0xff]   ;;  %v315_v7 = vld [vmem:[%s397_s1 + $0x8] sm:$0xff]  }
   0x4   :  { %291 = vmatprep.subr.bf16.mxu0 %v310_v1  ;;  %305 = vmatprep.mubr.bf16.mxu0 %v317_v4  ;;  %v316_v8 = vld [vmem:[%s397_s1] sm:$0xff]   ;;  %v318_v9 = vld [vmem:[%s398_s0 + $0x8] sm:$0xff]  }
   0x5   :  { %v249_v10 = vld [vmem:[%s399_s2] ss:$0 sm:$0xff]  ;;  %v277_v16 = vld [vmem:[%s401_s4 + $0x8] sm:$0xff]  }
   0x6   :  { %v250_v12 = vld [vmem:[%s400_s3] ss:$0 sm:$0xff]  ;;  %v265_v22 = vunpack.c.l.bf16 %v277_v16  ;;  %v266_v26 = vunpack.c.h.bf16 %v277_v16 }
   0x7   :  { %292 = vmatpush3.bf16.msra.mxu0 %v310_v1  ;;  %v260_v20 = vld [vmem:[%s401_s4] sm:$0xff]  }
   0x8   :  { %293 = vmatprep.subr.bf16.mxu0 %v311_v2  ;;  %v261_v28 = vunpack.c.l.bf16 %v260_v20  ;;  %v262_v32 = vunpack.c.h.bf16 %v260_v20 }
   0xb   :  { %294 = vmatpush3.bf16.msra.mxu0 %v311_v2 }
   0xc   :  { %295 = vmatprep.subr.bf16.mxu0 %v312_v3 }
   0xf   :  { %296 = vmatpush3.bf16.msra.mxu0 %v312_v3 }
  0x10   :  { %297 = vmatprep.subr.bf16.mxu0 %v313_v5 }
  0x13   :  { %298 = vmatpush3.bf16.msra.mxu0 %v313_v5 }
  0x14   :  { %299 = vmatprep.subr.bf16.mxu0 %v314_v6 }
  0x17   :  { %300 = vmatpush3.bf16.msra.mxu0 %v314_v6 }
  0x18   :  { %301 = vmatprep.subr.bf16.mxu0 %v315_v7 }
  0x1b   :  { %302 = vmatpush3.bf16.msra.mxu0 %v315_v7 }
  0x1c   :  { %303 = vmatprep.subr.bf16.mxu0 %v316_v8 }
  0x1f   :  { %304 = vmatpush3.bf16.msra.mxu0 %v316_v8 }
  0x22   :  { %306 = vmatmul.mubr.bf16.vlgmr.msra.gmra.mxu0 %v318_v9 }
  0xe2   :  { %v307_v11 = vpop.f32.mrf.mxu0 }
  0xe3   :  { %v186_v13 = vmul.f32 %v307_v11, %v249_v10 }
  0xe4   :  { %v147_v14 = vpop.f32.mrf.mxu0 }
  0xe5   :  { %v197_v15 = vadd.f32 %v250_v12, %v186_v13  ;;  %v184_v17 = vmul.f32 %v249_v10, %v147_v14 }
  0xe6   :  { %v308_v18 = vpop.f32.mrf.mxu0 }
  0xe7   :  { %v195_v19 = vadd.f32 %v250_v12, %v184_v17  ;;  %v187_v21 = vmul.f32 %v308_v18, %v249_v10  ;;  %v201_v24 = vmax.f32 %v197_v15, 0.0 }
  0xe8   :  { %v150_v23 = vpop.f32.mrf.mxu0 }
  0xe9   :  { %v198_v25 = vadd.f32 %v250_v12, %v187_v21  ;;  %v185_v27 = vmul.f32 %v249_v10, %v150_v23  ;;  %v199_v29 = vmax.f32 %v195_v19, 0.0  ;;  %v213_v33 = vadd.f32 %v265_v22, %v201_v24 }
  0xeb   :  { %v202_v30 = vmax.f32 %v198_v25, 0.0  ;;  %v196_v31 = vadd.f32 %v250_v12, %v185_v27  ;;  %v211_v36 = vadd.f32 %v261_v28, %v199_v29 }
  0xed   :  { %v214_v34 = vadd.f32 %v266_v26, %v202_v30  ;;  %v200_v35 = vmax.f32 %v196_v31, 0.0 }
  0xef   :  { %v275_v37 = vpack.c.bf16 %v214_v34, %v213_v33  ;;  %v212_v38 = vadd.f32 %v262_v32, %v200_v35 }
  0xf1   :  { %278 = vst [vmem:[%s402_s5 + $0x8] sm:$0xff] %v275_v37   ;;  %v270_v39 = vpack.c.bf16 %v212_v38, %v211_v36 }
  0xf3   :  { %271 = vst [vmem:[%s402_s5] sm:$0xff] %v270_v39  }

// kernel: forward.25
= control target key start
LH: loop header
LB: loop body
LE: loop exit
PB: predicated region body
PF: predicated region fallthrough
CT: control target
= control target key end

     0   :  { %vm57_vm0 = vcmask 261120   ;;  %vm173_vm1 = vcmask 523264   ;;  %vm279_vm2 = vcmask 257024   ;;  %s450_s1 = inlined_call_operand.vmem [shape: bf16[32,64], index: 1, kind: input, shape index: {}]   ;;  %s451_s0 = inlined_call_operand.vmem [shape: bf16[32,32], index: 0, kind: input, shape index: {}]   ;;  %s452_s4 = inlined_call_operand.vmem [shape: bf16[64,32], index: 4, kind: input, shape index: {}]   ;;  %s453_s2 = inlined_call_operand.vmem [shape: f32[1,64], index: 2, kind: input, shape index: {}]   ;;  %s454_s3 = inlined_call_operand.vmem [shape: f32[1,64], index: 3, kind: input, shape index: {}]   ;;  %s455_s5 = inlined_call_operand.vmem [shape: f32[1,32], index: 5, kind: input, shape index: {}]   ;;  %s456_s6 = inlined_call_operand.vmem [shape: f32[1,32], index: 6, kind: input, shape index: {}]   ;;  %s457_s7 = inlined_call_operand.vmem [shape: bf16[32,32], index: 7, kind: output, shape index: {}]  }
   0x1   :  { %v342_v0 = vld [vmem:[%s450_s1 + $0x8] sm:$0xff]   ;;  %v343_v1 = vld [vmem:[%s450_s1] sm:$0xff]   ;;  %v346_v4 = vld [vmem:[%s452_s4 + $0x18] sm:$0xff]  }
   0x2   :  { %322 = vmatprep.subr.bf16.mxu0 %v342_v0  ;;  %v401_v2 = vld [vmem:[%s451_s0] sm:$0xff]   ;;  %v406_v3 = vld [vmem:[%s451_s0 + $0x8] sm:$0xff]   ;;  %330 = vmatprep.subr.bf16.mxu1 %v346_v4  ;;  %v347_v5 = vld [vmem:[%s452_s4 + $0x10] sm:$0xff]  }
   0x3   :  { %323 = vmatpush3.bf16.msra.mxu0 %v342_v0  ;;  %326 = vmatprep.mubr.msk.bf16.mxu0 %vm57_vm0, %v401_v2  ;;  %v348_v6 = vld [vmem:[%s452_s4 + $0x8] sm:$0xff]   ;;  %v349_v7 = vld [vmem:[%s452_s4] sm:$0xff]   ;;  %v257_v34 = vunpack.c.l.bf16 %v406_v3  ;;  %v255_v37 = vunpack.c.l.bf16 %v401_v2  ;;  %v258_v41 = vunpack.c.h.bf16 %v406_v3  ;;  %v256_v47 = vunpack.c.h.bf16 %v401_v2 }
   0x4   :  { %324 = vmatprep.subr.bf16.mxu0 %v343_v1  ;;  %331 = vmatpush3.bf16.msra.mxu1 %v346_v4  ;;  %v294_v9 = vld [vmem:[%s453_s2] ss:$0 sm:$0xff] }
   0x5   :  { %332 = vmatprep.subr.bf16.mxu1 %v347_v5  ;;  %v295_v14 = vld [vmem:[%s454_s3] ss:$0 sm:$0xff] }
   0x6   :  { %v302_v28 = vld [vmem:[%s455_s5] ss:$0 sm:$0xff] }
   0x7   :  { %325 = vmatpush3.bf16.msra.mxu0 %v343_v1  ;;  %v303_v30 = vld [vmem:[%s456_s6] ss:$0 sm:$0xff] }
   0x8   :  { %333 = vmatpush3.bf16.msra.mxu1 %v347_v5 }
   0x9   :  { %334 = vmatprep.subr.bf16.mxu1 %v348_v6 }
   0xa   :  { %327 = vmatmul.mubr.msk.bf16.vlgmr.msra.gmra.mxu0 %vm57_vm0, %v406_v3 }
   0xc   :  { %335 = vmatpush3.bf16.msra.mxu1 %v348_v6 }
   0xd   :  { %336 = vmatprep.subr.bf16.mxu1 %v349_v7 }
  0x10   :  { %337 = vmatpush3.bf16.msra.mxu1 %v349_v7 }
  0xca   :  { %v328_v8 = vpop.f32.mrf.mxu0 }
  0xcb   :  { %v122_v12 = vmul.f32 %v328_v8, %v294_v9 }
  0xcc   :  { %v98_v10 = vpop.f32.mrf.mxu0 }
  0xcd   :  { %v120_v11 = vmul.f32 %v294_v9, %v98_v10  ;;  %v133_v20 = vadd.f32 %v295_v14, %v122_v12 }
  0xce   :  { %v329_v13 = vpop.f32.mrf.mxu0 }
  0xcf   :  { %v123_v15 = vmul.f32 %v329_v13, %v294_v9  ;;  %v131_v17 = vadd.f32 %v295_v14, %v120_v11  ;;  %v137_v25 = vmax.f32 %v133_v20, 0.0 }
  0xd0   :  { %v101_v16 = vpop.f32.mrf.mxu0 }
  0xd1   :  { %v134_v18 = vadd.f32 %v295_v14, %v123_v15  ;;  %v121_v19 = vmul.f32 %v294_v9, %v101_v16  ;;  %v135_v23 = vmax.f32 %v131_v17, 0.0 }
  0xd3   :  { %v132_v21 = vadd.f32 %v295_v14, %v121_v19  ;;  %v138_v22 = vmax.f32 %v134_v18, 0.0 }
  0xd5   :  { %v136_v24 = vmax.f32 %v132_v21, 0.0  ;;  %v140_v27 = vpack.c.bf16 %v138_v22, %v137_v25 }
  0xd7   :  { %v139_v26 = vpack.c.bf16 %v136_v24, %v135_v23 }
  0xd9   :  { %338 = vmatprep.mubr.msk.bf16.mxu1 %vm173_vm1, %v139_v26 }
  0xda   :  { %339 = vmatmul.mubr.msk.bf16.vlgmr.msra.gmra.mxu1 %vm173_vm1, %v140_v27 }
 0x19a   :  { %v340_v29 = vpop.f32.mrf.mxu1 }
 0x19b   :  { %v238_v31 = vmul.f32 %v340_v29, %v302_v28 }
 0x19c   :  { %v214_v32 = vpop.f32.mrf.mxu1 }
 0x19d   :  { %v249_v33 = vadd.f32 %v303_v30, %v238_v31  ;;  %v236_v35 = vmul.f32 %v302_v28, %v214_v32 }
 0x19e   :  { %v341_v36 = vpop.f32.mrf.mxu1 }
 0x19f   :  { %v253_v38 = vmax.f32 %v249_v33, 0.0  ;;  %v247_v39 = vadd.f32 %v303_v30, %v236_v35  ;;  %v239_v40 = vmul.f32 %v341_v36, %v302_v28 }
 0x1a0   :  { %v217_v42 = vpop.f32.mrf.mxu1 }
 0x1a1   :  { %v261_v43 = vadd.f32 %v257_v34, %v253_v38  ;;  %v251_v44 = vmax.f32 %v247_v39, 0.0  ;;  %v250_v45 = vadd.f32 %v303_v30, %v239_v40  ;;  %v237_v46 = vmul.f32 %v302_v28, %v217_v42 }
 0x1a3   :  { %v310_v48 = vpack.c.bf16 %v261_v43, %v261_v43  ;;  %v259_v49 = vadd.f32 %v255_v37, %v251_v44  ;;  %v254_v50 = vmax.f32 %v250_v45, 0.0  ;;  %v248_v51 = vadd.f32 %v303_v30, %v237_v46 }
 0x1a5   :  { %282 = vst.msk [vmem:[%s457_s7 + $0x8] sm:$0xf] %vm279_vm2, %v310_v48  ;;  %v308_v52 = vpack.c.bf16 %v259_v49, %v259_v49  ;;  %v262_v53 = vadd.f32 %v258_v41, %v254_v50  ;;  %v252_v54 = vmax.f32 %v248_v51, 0.0 }
 0x1a7   :  { %280 = vst.msk [vmem:[%s457_s7] sm:$0xf] %vm279_vm2, %v308_v52  ;;  %v311_v55 = vpack.c.bf16 %v262_v53, %v262_v53  ;;  %v260_v56 = vadd.f32 %v256_v47, %v252_v54 }
 0x1a9   :  { %283 = vst.msk [vmem:[%s457_s7 + $0xc] sm:$0xf] %vm279_vm2, %v311_v55  ;;  %v309_v57 = vpack.c.bf16 %v260_v56, %v260_v56 }
 0x1ab   :  { %281 = vst.msk [vmem:[%s457_s7 + $0x4] sm:$0xf] %vm279_vm2, %v309_v57 }

// kernel: forward.31
= control target key start
LH: loop header
LB: loop body
LE: loop exit
PB: predicated region body
PF: predicated region fallthrough
CT: control target
= control target key end

     0   :  { %s1151_s15 = smov 0   ;;  %s1300_s0 = inlined_call_operand.vmem [shape: bf16[2,6,6,32], index: 0, kind: input, shape index: {}]   ;;  %s1301_s1 = inlined_call_operand.vmem [shape: bf16[9,32,8], index: 1, kind: input, shape index: {}]   ;;  %s1302_s2 = inlined_call_operand.vmem [shape: f32[1,8], index: 2, kind: input, shape index: {}]   ;;  %s1303_s3 = inlined_call_operand.vmem [shape: f32[1,8], index: 3, kind: input, shape index: {}]   ;;  %s1304_s4 = inlined_call_operand.vmem [shape: bf16[2,4,4,8], index: 4, kind: output, shape index: {}]  }
   0x1 LB: > { %s888_s16 = sadd.s32 4294967295, %s1118_s15   ;;  %p892_p0 = scmp.ge.s32.totalorder %s1118_s15, 1  ;;  %s1118_s15 = sphi %s1151_s15, %s14_s15  }
   0x2   : > { %p162_p1 = scmp.lt.s32.totalorder %s1118_s15, 3 }
   0x4   : > { %p163_p2 = pnand %p892_p0, %p162_p1 }
   0x5   : > { %p188_p3 = scmp.lt.s32.totalorder (!%p163_p2), %s888_s16, 1  ;;  %s1179_s29 = smov (!%p163_p2), 0  }
   0x6   : > { %166 = sbr.rel (%p163_p2) target bundleno = 263 (0x107), region = 36 }
   0xb   : > { %v1162_v0 = vld [vmem:[%s1302_s2] ss:$0 sm:$0xff]  ;;  %s1306_s16 = smov (!%p188_p3, %s888_s16), 1 }
   0xc   : > { %v1167_v1 = vld [vmem:[%s1303_s3] ss:$0 sm:$0xff]  ;;  %s1068_s21 = smul.u32 24, %s1306_s16  ;;  %s968_s22 = sshll.u32 %s1306_s16, 3 }
   0xd   : > { %s1172_s25 = scalar_lea.vmem %s1304_s4, %s968_s22 }
   0xe   : > { %s1177_s28 = scalar_lea.vmem %s1300_s0, %s1068_s21 }
   0xf LB: >> { %v1087_v2 = vld [vmem:[%s1301_s1 + $0x18] sm:$0xff]   ;;  %v1124_v3 = vmov 0.0   ;;  %v1088_v4 = vld [vmem:[%s1301_s1 + $0x8] sm:$0xff]   ;;  %v1089_v5 = vld [vmem:[%s1301_s1 + $0x10] sm:$0xff]   ;;  %vm1125_vm0 = vmmov 0   ;;  %s896_s10 = sshll.u32 %s1122_s29, 2  ;;  %s1122_s29 = sphi %s1179_s29, %s206_s29  }
  0x10   : >> { %996 = vmatprep.subr.bf16.mxu0 %v1124_v3  ;;  %1004 = vmatprep.subr.bf16.mxu1 %v1124_v3  ;;  %v1090_v6 = vld [vmem:[%s1301_s1] sm:$0xff]   ;;  %s1203_s13 = scalar_lea.vmem %s1177_s28, %s896_s10  ;;  %vm241_vm1 = vcmask 261120   ;;  %v1093_v11 = vld [vmem:[%s1301_s1 + $0x38] sm:$0xff]   ;;  %v1092_v14 = vld [vmem:[%s1301_s1 + $0x28] sm:$0xff]   ;;  %s965_s21 = sshll.u32 %s1122_s29, 1  ;;  %vm816_vm2 = vcmask 58368  }
  0x11   : >> { %997 = vmatpush3.bf16.msra.mxu0 %v1087_v2  ;;  %1000 = vmatprep.mubr.msk.bf16.mxu0 %vm1125_vm0, %v1124_v3  ;;  %v209_v7 = vld [vmem:[%s1203_s13] sm:$0x7]  ;;  %v916_v12 = vld [vmem:[%s1203_s13 + $0x4] sm:$0x7]  ;;  %v1095_v16 = vld [vmem:[%s1301_s1 + $0x30] sm:$0xff]   ;;  %s815_s22 = scalar_lea.vmem %s1172_s25, %s965_s21  ;;  %s206_s29 = sadd.s32 1, %s1122_s29  }
  0x12   : >> { %1005 = vmatpush3.bf16.msra.mxu1 %v1088_v4  ;;  %998 = vmatprep.subr.bf16.mxu0 %v1124_v3  ;;  %v901_v8 = vcombine.low %v209_v7, %v209_v7  ;;  %v928_v17 = vcombine.low %v916_v12, %v916_v12  ;;  %v1094_v18 = vld [vmem:[%s1301_s1 + $0x20] sm:$0xff]   ;;  %v1098_v19 = vld [vmem:[%s1301_s1 + $0x58] sm:$0xff]   ;;  %v940_v22 = vld [vmem:[%s1203_s13 + $0x8] sm:$0x7]  ;;  %p203_p4 = scmp.ge.s32.totalorder %s206_s29, 4  }
  0x13   : >> { %1006 = vmatprep.subr.bf16.mxu1 %v1124_v3  ;;  %1008 = vmatprep.mubr.msk.bf16.mxu1 %vm1125_vm0, %v1124_v3  ;;  %v1097_v23 = vld [vmem:[%s1301_s1 + $0x48] sm:$0xff]   ;;  %v952_v24 = vcombine.low %v940_v22, %v940_v22  ;;  %v1100_v25 = vld [vmem:[%s1301_s1 + $0x50] sm:$0xff]   ;;  %v1099_v29 = vld [vmem:[%s1301_s1 + $0x40] sm:$0xff]  }
  0x14   : >> { %v223_v9 = vshrl.u32 %v901_v8, 16  ;;  %v225_v10 = vshll.u32 %v901_v8, 16  ;;  %v345_v20 = vrot.slane %v901_v8, 1  ;;  %v478_v21 = vshll.u32 %v928_v17, 16  ;;  %v1102_v31 = vld [vmem:[%s1301_s1 + $0x78] sm:$0xff]   ;;  %v1101_v33 = vld [vmem:[%s1301_s1 + $0x68] sm:$0xff]  }
  0x15   : >> { %999 = vmatpush3.bf16.msra.mxu0 %v1089_v5  ;;  %v476_v26 = vshrl.u32 %v928_v17, 16  ;;  %v543_v28 = vrot.slane %v928_v17, 1  ;;  %v676_v30 = vshll.u32 %v952_v24, 16  ;;  %v674_v34 = vshrl.u32 %v952_v24, 16  ;;  %v1104_v36 = vld [vmem:[%s1301_s1 + $0x70] sm:$0xff]   ;;  %v1103_v37 = vld [vmem:[%s1301_s1 + $0x60] sm:$0xff]  }
  0x16   : >> { %1007 = vmatpush3.bf16.msra.mxu1 %v1090_v6  ;;  %1012 = vmatprep.subr.bf16.mxu0 %v1124_v3  ;;  %v227_v13 = vrot.slane %v225_v10, 1  ;;  %v480_v27 = vrot.slane %v478_v21, 1  ;;  %v1106_v39 = vld [vmem:[%s1301_s1 + $0x88] sm:$0xff]   ;;  %v1107_v40 = vld [vmem:[%s1301_s1 + $0x80] sm:$0xff]   ;;  %v741_v41 = vrot.slane %v952_v24, 1 }
  0x17   : >> { %1020 = vmatprep.subr.bf16.mxu1 %v1124_v3  ;;  %v678_v35 = vrot.slane %v676_v30, 1 }
  0x18   : >> { %v228_v15 = vor.u32 %v227_v13, %v223_v9  ;;  %v481_v32 = vor.u32 %v480_v27, %v476_v26 }
  0x19   : >> { %1009 = vmatmul.mubr.msk.bf16.vlgmr.msra.gmra.mxu1 %vm241_vm1, %v209_v7  ;;  %v679_v38 = vor.u32 %v678_v35, %v674_v34 }
  0x1a   : >> { %1021 = vmatpush3.bf16.msra.mxu1 %v1093_v11  ;;  %1024 = vmatprep.mubr.msk.bf16.mxu1 %vm1125_vm0, %v1124_v3 }
  0x1b   : >> { %1022 = vmatprep.subr.bf16.mxu1 %v1124_v3  ;;  %1001 = vmatmul.mubr.msk.bf16.vlgmr.msra.gmra.mxu0 %vm241_vm1, %v228_v15 }
  0x1c   : >> { %1013 = vmatpush3.bf16.msra.mxu0 %v1092_v14  ;;  %1016 = vmatprep.mubr.msk.bf16.mxu0 %vm1125_vm0, %v1124_v3 }
  0x1d   : >> { %1014 = vmatprep.subr.bf16.mxu0 %v1124_v3 }
  0x1e   : >> { %1023 = vmatpush3.bf16.msra.mxu1 %v1095_v16 }
  0x1f   : >> { %1036 = vmatprep.subr.bf16.mxu1 %v1124_v3 }
  0x20   : >> { %1015 = vmatpush3.bf16.msra.mxu0 %v1094_v18 }
  0x21   : >> { %1025 = vmatmul.mubr.msk.bf16.vlgmr.msra.gmra.mxu1 %vm241_vm1, %v916_v12  ;;  %1028 = vmatprep.subr.bf16.mxu0 %v1124_v3 }
  0x22   : >> { %1037 = vmatpush3.bf16.msra.mxu1 %v1098_v19  ;;  %1040 = vmatprep.mubr.msk.bf16.mxu1 %vm1125_vm0, %v1124_v3 }
  0x23   : >> { %1038 = vmatprep.subr.bf16.mxu1 %v1124_v3  ;;  %1017 = vmatmul.mubr.msk.bf16.vlgmr.msra.gmra.mxu0 %vm241_vm1, %v345_v20 }
  0x24   : >> { %1029 = vmatpush3.bf16.msra.mxu0 %v1097_v23  ;;  %1032 = vmatprep.mubr.msk.bf16.mxu0 %vm1125_vm0, %v1124_v3 }
  0x25   : >> { %1030 = vmatprep.subr.bf16.mxu0 %v1124_v3 }
  0x26   : >> { %1039 = vmatpush3.bf16.msra.mxu1 %v1100_v25 }
  0x27   : >> { %1052 = vmatprep.subr.bf16.mxu1 %v1124_v3 }
  0x28   : >> { %1031 = vmatpush3.bf16.msra.mxu0 %v1099_v29 }
  0x29   : >> { %1041 = vmatmul.mubr.msk.bf16.vlgmr.msra.gmra.mxu1 %vm241_vm1, %v543_v28  ;;  %1044 = vmatprep.subr.bf16.mxu0 %v1124_v3 }
  0x2a   : >> { %1053 = vmatpush3.bf16.msra.mxu1 %v1102_v31  ;;  %1056 = vmatprep.mubr.msk.bf16.mxu1 %vm1125_vm0, %v1124_v3 }
  0x2b   : >> { %1054 = vmatprep.subr.bf16.mxu1 %v1124_v3  ;;  %1033 = vmatmul.mubr.msk.bf16.vlgmr.msra.gmra.mxu0 %vm241_vm1, %v481_v32 }
  0x2c   : >> { %1045 = vmatpush3.bf16.msra.mxu0 %v1101_v33  ;;  %1048 = vmatprep.mubr.msk.bf16.mxu0 %vm1125_vm0, %v1124_v3 }
  0x2d   : >> { %1046 = vmatprep.subr.bf16.mxu0 %v1124_v3 }
  0x2e   : >> { %1055 = vmatpush3.bf16.msra.mxu1 %v1104_v36 }
  0x30   : >> { %1047 = vmatpush3.bf16.msra.mxu0 %v1103_v37 }
  0x31   : >> { %1057 = vmatmul.mubr.msk.bf16.vlgmr.msra.gmra.mxu1 %vm241_vm1, %v679_v38  ;;  %1060 = vmatprep.subr.bf16.mxu0 %v1124_v3 }
  0x33   : >> { %1049 = vmatmul.mubr.msk.bf16.vlgmr.msra.gmra.mxu0 %vm241_vm1, %v940_v22 }
  0x34   : >> { %1061 = vmatpush3.bf16.msra.mxu0 %v1106_v39  ;;  %1064 = vmatprep.mubr.msk.bf16.mxu0 %vm1125_vm0, %v1124_v3 }
  0x35   : >> { %1062 = vmatprep.subr.bf16.mxu0 %v1124_v3 }
  0x38   : >> { %1063 = vmatpush3.bf16.msra.mxu0 %v1107_v40 }
  0x3b   : >> { %1065 = vmatmul.mubr.msk.bf16.vlgmr.msra.gmra.mxu0 %vm241_vm1, %v741_v41 }
  0xd9   : >> { %v334_v42 = vpop.f32.mrf.mxu1 }
  0xdb   : >> { %v1010_v43 = vpop.f32.mrf.mxu1  ;;  %v279_v44 = vpop.f32.mrf.mxu0 }
  0xdc   : >> { %v335_v57 = vadd.f32 %v334_v42, %v279_v44 }
  0xdd   : >> { %v337_v45 = vpop.f32.mrf.mxu1  ;;  %v1002_v46 = vpop.f32.mrf.mxu0 }
  0xdf   : >> { %v1011_v47 = vpop.f32.mrf.mxu1  ;;  %v282_v48 = vpop.f32.mrf.mxu0 }
  0xe1   : >> { %v460_v49 = vpop.f32.mrf.mxu1  ;;  %v1003_v50 = vpop.f32.mrf.mxu0 }
  0xe3   : >> { %v1026_v51 = vpop.f32.mrf.mxu1  ;;  %v395_v52 = vpop.f32.mrf.mxu0 }
  0xe4   : >> { %v401_v60 = vadd.f32 %v395_v52, %v335_v57 }
  0xe5   : >> { %v463_v53 = vpop.f32.mrf.mxu1  ;;  %v1018_v54 = vpop.f32.mrf.mxu0 }
  0xe6   : >> { %v466_v3 = vadd.f32 %v460_v49, %v401_v60 }
  0xe7   : >> { %v1027_v55 = vpop.f32.mrf.mxu1  ;;  %v398_v56 = vpop.f32.mrf.mxu0 }
  0xe9   : >> { %v593_v58 = vpop.f32.mrf.mxu1  ;;  %v1019_v59 = vpop.f32.mrf.mxu0 }
  0xeb   : >> { %v1042_v61 = vpop.f32.mrf.mxu1  ;;  %v531_v62 = vpop.f32.mrf.mxu0 }
  0xec   : >> { %v537_v6 = vadd.f32 %v531_v62, %v466_v3 }
  0xed   : >> { %v596_v63 = vpop.f32.mrf.mxu1  ;;  %v1034_v2 = vpop.f32.mrf.mxu0 }
  0xee   : >> { %v599_v11 = vadd.f32 %v593_v58, %v537_v6 }
  0xef   : >> { %v1043_v4 = vpop.f32.mrf.mxu1  ;;  %v534_v5 = vpop.f32.mrf.mxu0 }
  0xf1   : >> { %v729_v7 = vpop.f32.mrf.mxu1  ;;  %v1035_v8 = vpop.f32.mrf.mxu0 }
  0xf3   : >> { %v1058_v9 = vpop.f32.mrf.mxu1  ;;  %v658_v10 = vpop.f32.mrf.mxu0 }
  0xf4   : >> { %v664_v14 = vadd.f32 %v658_v10, %v599_v11 }
  0xf5   : >> { %v732_v12 = vpop.f32.mrf.mxu1  ;;  %v1050_v13 = vpop.f32.mrf.mxu0 }
  0xf6   : >> { %v735_v18 = vadd.f32 %v729_v7, %v664_v14 }
  0xf7   : >> { %v1059_v15 = vpop.f32.mrf.mxu1  ;;  %v661_v16 = vpop.f32.mrf.mxu0 }
  0xf9   : >> { %v1051_v17 = vpop.f32.mrf.mxu0 }
  0xfb   : >> { %v791_v19 = vpop.f32.mrf.mxu0 }
  0xfc   : >> { %v797_v20 = vadd.f32 %v791_v19, %v735_v18 }
  0xfd   : >> { %v1066_v21 = vpop.f32.mrf.mxu0 }
  0xfe   : >> { %v804_v22 = vmul.f32 %v1162_v0, %v797_v20 }
  0xff   : >> { %v794_v23 = vpop.f32.mrf.mxu0 }
 0x100   : >> { %v811_v24 = vadd.f32 %v1167_v1, %v804_v22 }
 0x101   : >> { %v1067_v25 = vpop.f32.mrf.mxu0 }
 0x102   : >> { %v812_v26 = vmax.f32 %v811_v24, 0.0  ;;  %205 = sbr.rel (!%p203_p4) target bundleno = 15 (0xf), region = 85 }
 0x104   : >> { %v813_v27 = vpack.c.bf16 %v812_v26, %v812_v26 }
 0x106   : >> { %817 = vst.msk [vmem:[%s815_s22] sm:$0x3] %vm816_vm2, %v813_v27 }
 0x107 PF: > { %s14_s15 = sadd.s32 1, %s1118_s15  }
 0x108   : > { %p11_p5 = scmp.ge.s32.totalorder %s14_s15, 4  }
 0x10a   :  { %13 = sbr.rel (!%p11_p5) target bundleno = 1 (0x1), region = 96 }

// kernel: forward.32
= control target key start
LH: loop header
LB: loop body
LE: loop exit
PB: predicated region body
PF: predicated region fallthrough
CT: control target
= control target key end

     0   :  { %s973_s15 = smov 0   ;;  %s1090_s0 = inlined_call_operand.vmem [shape: bf16[2,10,10,8], index: 0, kind: input, shape index: {}]   ;;  %s1091_s1 = inlined_call_operand.vmem [shape: bf16[9,8,8], index: 1, kind: input, shape index: {}]   ;;  %s1092_s2 = inlined_call_operand.vmem [shape: f32[1,8], index: 2, kind: input, shape index: {}]   ;;  %s1093_s3 = inlined_call_operand.vmem [shape: f32[1,8], index: 3, kind: input, shape index: {}]   ;;  %s1094_s4 = inlined_call_operand.vmem [shape: bf16[2,8,8,8], index: 4, kind: output, shape index: {}]  }
   0x1 LB: > { %s793_s16 = sadd.s32 4294967295, %s940_s15   ;;  %p797_p0 = scmp.ge.s32.totalorder %s940_s15, 1  ;;  %s940_s15 = sphi %s973_s15, %s14_s15  }
   0x2   : > { %p162_p1 = scmp.lt.s32.totalorder %s940_s15, 3 }
   0x4   : > { %p163_p2 = pnand %p797_p0, %p162_p1 }
   0x5   : > { %p188_p3 = scmp.lt.s32.totalorder (!%p163_p2), %s793_s16, 1  ;;  %s1001_s29 = smov (!%p163_p2), 0  }
   0x6   : > { %166 = sbr.rel (%p163_p2) target bundleno = 263 (0x107), region = 36 }
   0xb   : > { %v984_v0 = vld [vmem:[%s1092_s2] ss:$0 sm:$0xff]  ;;  %s1096_s16 = smov (!%p188_p3, %s793_s16), 1 }
   0xc   : > { %v989_v1 = vld [vmem:[%s1093_s3] ss:$0 sm:$0xff]  ;;  %s908_s21 = smul.u32 80, %s1096_s16  ;;  %s834_s22 = sshll.u32 %s1096_s16, 5 }
   0xd   : > { %s994_s25 = scalar_lea.vmem %s1094_s4, %s834_s22 }
   0xe   : > { %s999_s28 = scalar_lea.vmem %s1090_s0, %s908_s21 }
   0xf LB: >> { %v803_v2 = vld [vmem:[%s1091_s1 + $0x4] sm:$0xf]  ;;  %vm231_vm0 = vcmask 1043456   ;;  %v212_v3 = vld [vmem:[%s1091_s1] sm:$0xf]  ;;  %v946_v4 = vmov 0.0   ;;  %s944_s29 = sphi %s1001_s29, %s206_s29  }
  0x10   : >> { %854 = vmatprep.subr.bf16.mxu0 %v946_v4  ;;  %v233_v5 = vsel %vm231_vm0, %v803_v2, 0  ;;  %860 = vmatprep.subr.bf16.mxu1 %v946_v4  ;;  %v279_v6 = vsel %vm231_vm0, %v212_v3, 0  ;;  %s835_s8 = sshll.u32 %s944_s29, 3  ;;  %vm227_vm1 = vcmask 64512   ;;  %v812_v7 = vld [vmem:[%s1091_s1 + $0xc] sm:$0xf] }
  0x11   : >> { %855 = vmatpush3.bf16.msra.mxu0 %v233_v5  ;;  %861 = vmatpush3.bf16.msra.mxu1 %v279_v6  ;;  %vm947_vm2 = vmmov 0   ;;  %s209_s11 = scalar_lea.vmem %s999_s28, %s835_s8  ;;  %v383_v8 = vsel %vm231_vm0, %v812_v7, 0  ;;  %v807_v14 = vld [vmem:[%s1091_s1 + $0x8] sm:$0xf]  ;;  %v817_v17 = vld [vmem:[%s1091_s1 + $0x14] sm:$0xf] }
  0x12   : >> { %856 = vmatprep.mubr.msk.bf16.mxu0 %vm947_vm2, %v946_v4  ;;  %862 = vmatprep.mubr.msk.bf16.mxu1 %vm947_vm2, %v946_v4  ;;  %v210_v9 = vld [vmem:[%s209_s11] sm:$0xf]  ;;  %v211_v10 = vld [vmem:[%s209_s11 + $0x4] sm:$0x1]  ;;  %v810_v16 = vld [vmem:[%s209_s11 + $0x8] sm:$0xf] }
  0x13   : >> { %866 = vmatprep.subr.bf16.mxu0 %v946_v4  ;;  %872 = vmatprep.subr.bf16.mxu1 %v946_v4  ;;  %v804_v11 = vcombine.low %v210_v9, %v211_v10  ;;  %v811_v18 = vld [vmem:[%s209_s11 + $0xc] sm:$0x1]  ;;  %v820_v19 = vld [vmem:[%s209_s11 + $0x10] sm:$0xf]  ;;  %v821_v20 = vld [vmem:[%s209_s11 + $0x14] sm:$0x1] }
  0x14   : >> { %863 = vmatmul.mubr.msk.bf16.vlgmr.msra.gmra.mxu1 %vm227_vm1, %v210_v9  ;;  %v328_v22 = vsel %vm231_vm0, %v807_v14, 0  ;;  %v494_v23 = vsel %vm231_vm0, %v817_v17, 0  ;;  %v815_v24 = vcombine.low %v810_v16, %v811_v18  ;;  %v825_v25 = vcombine.low %v820_v19, %v821_v20  ;;  %v814_v26 = vld [vmem:[%s1091_s1 + $0x10] sm:$0xf]  ;;  %v824_v30 = vld [vmem:[%s1091_s1 + $0x1c] sm:$0xf] }
  0x15   : >> { %873 = vmatpush3.bf16.msra.mxu1 %v383_v8  ;;  %874 = vmatprep.mubr.msk.bf16.mxu1 %vm947_vm2, %v946_v4  ;;  %v221_v12 = vshrl.u32 %v804_v11, 16  ;;  %v223_v13 = vshll.u32 %v804_v11, 16  ;;  %v323_v27 = vrot.slane %v804_v11, 1  ;;  %v444_v32 = vsel %vm231_vm0, %v814_v26, 0  ;;  %v822_v38 = vld [vmem:[%s1091_s1 + $0x18] sm:$0xf] }
  0x16   : >> { %884 = vmatprep.subr.bf16.mxu1 %v946_v4  ;;  %v436_v28 = vshll.u32 %v815_v24, 16  ;;  %v489_v29 = vrot.slane %v815_v24, 1  ;;  %v602_v31 = vshll.u32 %v825_v25, 16  ;;  %v610_v33 = vsel %vm231_vm0, %v824_v30, 0  ;;  %v827_v42 = vld [vmem:[%s1091_s1 + $0x20] sm:$0xf] }
  0x17   : >> { %v225_v15 = vrot.slane %v223_v13, 1  ;;  %v434_v34 = vshrl.u32 %v815_v24, 16  ;;  %v600_v36 = vshrl.u32 %v825_v25, 16  ;;  %v549_v41 = vsel %vm231_vm0, %v822_v38, 0  ;;  %s831_s26 = sshll.u32 %s944_s29, 2  ;;  %s206_s29 = sadd.s32 1, %s944_s29  }
  0x18   : >> { %v438_v35 = vrot.slane %v436_v28, 1  ;;  %v604_v37 = vrot.slane %v602_v31, 1  ;;  %v660_v43 = vsel %vm231_vm0, %v827_v42, 0  ;;  %v655_v44 = vrot.slane %v825_v25, 1  ;;  %s720_s27 = scalar_lea.vmem %s994_s25, %s831_s26  ;;  %p203_p4 = scmp.ge.s32.totalorder %s206_s29, 8  }
  0x19   : >> { %v226_v21 = vor.u32 %v225_v15, %v221_v12  ;;  %vm721_vm3 = vcmask 60416  }
  0x1a   : >> { %v439_v39 = vor.u32 %v438_v35, %v434_v34  ;;  %v605_v40 = vor.u32 %v604_v37, %v600_v36 }
  0x1b   : >> { %857 = vmatmul.mubr.msk.bf16.vlgmr.msra.gmra.mxu0 %vm227_vm1, %v226_v21 }
  0x1c   : >> { %875 = vmatmul.mubr.msk.bf16.vlgmr.msra.gmra.mxu1 %vm227_vm1, %v810_v16  ;;  %867 = vmatpush3.bf16.msra.mxu0 %v328_v22 }
  0x1d   : >> { %868 = vmatprep.mubr.msk.bf16.mxu0 %vm947_vm2, %v946_v4  ;;  %878 = vmatprep.subr.bf16.mxu0 %v946_v4 }
  0x1e   : >> { %885 = vmatpush3.bf16.msra.mxu1 %v494_v23  ;;  %886 = vmatprep.mubr.msk.bf16.mxu1 %vm947_vm2, %v946_v4 }
  0x1f   : >> { %896 = vmatprep.subr.bf16.mxu1 %v946_v4 }
  0x23   : >> { %869 = vmatmul.mubr.msk.bf16.vlgmr.msra.gmra.mxu0 %vm227_vm1, %v323_v27 }
  0x24   : >> { %887 = vmatmul.mubr.msk.bf16.vlgmr.msra.gmra.mxu1 %vm227_vm1, %v489_v29  ;;  %879 = vmatpush3.bf16.msra.mxu0 %v444_v32 }
  0x25   : >> { %880 = vmatprep.mubr.msk.bf16.mxu0 %vm947_vm2, %v946_v4  ;;  %890 = vmatprep.subr.bf16.mxu0 %v946_v4 }
  0x26   : >> { %897 = vmatpush3.bf16.msra.mxu1 %v610_v33  ;;  %898 = vmatprep.mubr.msk.bf16.mxu1 %vm947_vm2, %v946_v4 }
  0x2b   : >> { %881 = vmatmul.mubr.msk.bf16.vlgmr.msra.gmra.mxu0 %vm227_vm1, %v439_v39 }
  0x2c   : >> { %899 = vmatmul.mubr.msk.bf16.vlgmr.msra.gmra.mxu1 %vm227_vm1, %v605_v40  ;;  %891 = vmatpush3.bf16.msra.mxu0 %v549_v41 }
  0x2d   : >> { %892 = vmatprep.mubr.msk.bf16.mxu0 %vm947_vm2, %v946_v4  ;;  %902 = vmatprep.subr.bf16.mxu0 %v946_v4 }
  0x33   : >> { %893 = vmatmul.mubr.msk.bf16.vlgmr.msra.gmra.mxu0 %vm227_vm1, %v820_v19 }
  0x34   : >> { %903 = vmatpush3.bf16.msra.mxu0 %v660_v43  ;;  %904 = vmatprep.mubr.msk.bf16.mxu0 %vm947_vm2, %v946_v4 }
  0x3b   : >> { %905 = vmatmul.mubr.msk.bf16.vlgmr.msra.gmra.mxu0 %vm227_vm1, %v655_v44 }
  0xd4   : >> { %v315_v45 = vpop.f32.mrf.mxu1 }
  0xd6   : >> { %v864_v46 = vpop.f32.mrf.mxu1 }
  0xd8   : >> { %v318_v47 = vpop.f32.mrf.mxu1 }
  0xda   : >> { %v865_v48 = vpop.f32.mrf.mxu1 }
  0xdb   : >> { %v269_v49 = vpop.f32.mrf.mxu0 }
  0xdc   : >> { %v419_v50 = vpop.f32.mrf.mxu1  ;;  %v316_v63 = vadd.f32 %v315_v45, %v269_v49 }
  0xdd   : >> { %v858_v51 = vpop.f32.mrf.mxu0 }
  0xde   : >> { %v876_v52 = vpop.f32.mrf.mxu1 }
  0xdf   : >> { %v272_v53 = vpop.f32.mrf.mxu0 }
  0xe0   : >> { %v422_v54 = vpop.f32.mrf.mxu1 }
  0xe1   : >> { %v859_v55 = vpop.f32.mrf.mxu0 }
  0xe2   : >> { %v877_v56 = vpop.f32.mrf.mxu1 }
  0xe3   : >> { %v364_v57 = vpop.f32.mrf.mxu0 }
  0xe4   : >> { %v530_v58 = vpop.f32.mrf.mxu1  ;;  %v370_v4 = vadd.f32 %v364_v57, %v316_v63 }
  0xe5   : >> { %v870_v59 = vpop.f32.mrf.mxu0 }
  0xe6   : >> { %v888_v60 = vpop.f32.mrf.mxu1  ;;  %v425_v9 = vadd.f32 %v419_v50, %v370_v4 }
  0xe7   : >> { %v367_v61 = vpop.f32.mrf.mxu0 }
  0xe8   : >> { %v533_v62 = vpop.f32.mrf.mxu1 }
  0xe9   : >> { %v871_v2 = vpop.f32.mrf.mxu0 }
  0xea   : >> { %v889_v3 = vpop.f32.mrf.mxu1 }
  0xeb   : >> { %v480_v5 = vpop.f32.mrf.mxu0 }
  0xec   : >> { %v646_v6 = vpop.f32.mrf.mxu1  ;;  %v486_v12 = vadd.f32 %v480_v5, %v425_v9 }
  0xed   : >> { %v882_v7 = vpop.f32.mrf.mxu0 }
  0xee   : >> { %v900_v8 = vpop.f32.mrf.mxu1  ;;  %v536_v16 = vadd.f32 %v530_v58, %v486_v12 }
  0xef   : >> { %v483_v10 = vpop.f32.mrf.mxu0 }
  0xf0   : >> { %v649_v11 = vpop.f32.mrf.mxu1 }
  0xf1   : >> { %v883_v13 = vpop.f32.mrf.mxu0 }
  0xf2   : >> { %v901_v14 = vpop.f32.mrf.mxu1 }
  0xf3   : >> { %v585_v15 = vpop.f32.mrf.mxu0 }
  0xf4   : >> { %v591_v18 = vadd.f32 %v585_v15, %v536_v16 }
  0xf5   : >> { %v894_v17 = vpop.f32.mrf.mxu0 }
  0xf6   : >> { %v652_v21 = vadd.f32 %v646_v6, %v591_v18 }
  0xf7   : >> { %v588_v19 = vpop.f32.mrf.mxu0 }
  0xf9   : >> { %v895_v20 = vpop.f32.mrf.mxu0 }
  0xfb   : >> { %v696_v22 = vpop.f32.mrf.mxu0 }
  0xfc   : >> { %v702_v23 = vadd.f32 %v696_v22, %v652_v21 }
  0xfd   : >> { %v906_v24 = vpop.f32.mrf.mxu0 }
  0xfe   : >> { %v709_v25 = vmul.f32 %v984_v0, %v702_v23 }
  0xff   : >> { %v699_v26 = vpop.f32.mrf.mxu0 }
 0x100   : >> { %v716_v27 = vadd.f32 %v989_v1, %v709_v25 }
 0x101   : >> { %v907_v28 = vpop.f32.mrf.mxu0 }
 0x102   : >> { %v717_v29 = vmax.f32 %v716_v27, 0.0  ;;  %205 = sbr.rel (!%p203_p4) target bundleno = 15 (0xf), region = 85 }
 0x104   : >> { %v718_v30 = vpack.c.bf16 %v717_v29, %v717_v29 }
 0x106   : >> { %722 = vst.msk [vmem:[%s720_s27] sm:$0xf] %vm721_vm3, %v718_v30 }
 0x107 PF: > { %s14_s15 = sadd.s32 1, %s940_s15  }
 0x108   : > { %p11_p5 = scmp.ge.s32.totalorder %s14_s15, 4  }
 0x10a   :  { %13 = sbr.rel (!%p11_p5) target bundleno = 1 (0x1), region = 96 }

// kernel: forward.33
= control target key start
LH: loop header
LB: loop body
LE: loop exit
PB: predicated region body
PF: predicated region fallthrough
CT: control target
= control target key end

     0   :  { %s1566_s15 = smov 0   ;;  %s1568_s16 = smov 0   ;;  %s1740_s0 = inlined_call_operand.vmem [shape: bf16[512,128], index: 0, kind: input, shape index: {}]   ;;  %s1741_s1 = inlined_call_operand.vmem [shape: bf16[128,128], index: 1, kind: input, shape index: {}]   ;;  %s1742_s2 = inlined_call_operand.vmem [shape: f32[1,128], index: 2, kind: input, shape index: {}]   ;;  %s1743_s3 = inlined_call_operand.vmem [shape: f32[1,128], index: 3, kind: input, shape index: {}]   ;;  %s1744_s4 = inlined_call_operand.vmem [shape: bf16[512,128], index: 4, kind: output, shape index: {}]  }
   0x1   :  { %s1570_s17 = smov 0  }
   0x2 LB: > { %s33_s18 = sadd.s32 1, %s1535_s16  ;;  %p1189_p0 = scmp.ge.s32.totalorder %s1539_s17, 1  ;;  %s1539_s17 = sphi %s1570_s17, %s14_s17   ;;  %s1535_s16 = sphi %s1568_s16, %s1746_s16   ;;  %s1531_s15 = sphi %s1566_s15, %s1745_s15  }
   0x3   : > { %p35_p1 = scmp.ge.s32.totalorder %s33_s18, 2  ;;  %p221_p2 = scmp.lt.s32.totalorder %s1539_s17, 3 }
   0x5   : > { %s1748_s18 = smov (%p35_p1, %s33_s18), 0  ;;  %p222_p3 = pnand %p1189_p0, %p221_p2 }
   0x6   : > { %s1190_s21 = sshll.u32 (!%p222_p3), %s1531_s15, 5 }
   0x7   : > { %225 = sbr.rel (%p222_p3) target bundleno = 275 (0x113), region = 36  ;;  %p268_p4 = scmp.lt.s32.totalorder (!%p222_p3), %s1190_s21, 63 }
   0xc   : > { %v1493_v0 = vld [vmem:[%s1741_s1 + $0x38] sm:$0xff]   ;;  %v1494_v1 = vld [vmem:[%s1741_s1 + $0x30] sm:$0xff]   ;;  %s1750_s21 = smov (!%p268_p4, %s1190_s21), 63  ;;  %v1495_v2 = vld [vmem:[%s1741_s1 + $0x28] sm:$0xff]  }
   0xd   : > { %1405 = vmatprep.subr.bf16.mxu0 %v1493_v0  ;;  %1453 = vmatprep.subr.bf16.mxu1 %v1493_v0  ;;  %s1191_s26 = sshll.u32 %s1750_s21, 2  ;;  %v1496_v3 = vld [vmem:[%s1741_s1 + $0x20] sm:$0xff]   ;;  %v1497_v6 = vld [vmem:[%s1741_s1 + $0x18] sm:$0xff]   ;;  %v1498_v7 = vld [vmem:[%s1741_s1 + $0x10] sm:$0xff]  }
   0xe   : > { %1406 = vmatpush3.bf16.msra.mxu0 %v1493_v0  ;;  %1461 = vmatpush3.bf16.msra.mxu1 %v1493_v0  ;;  %s1601_s29 = scalar_lea.vmem %s1740_s0, %s1191_s26  ;;  %v1499_v8 = vld [vmem:[%s1741_s1 + $0x8] sm:$0xff]   ;;  %v1500_v9 = vld [vmem:[%s1741_s1] sm:$0xff]   ;;  %s1663_s24 = scalar_lea.vmem %s1744_s4, %s1191_s26 }
   0xf   : > { %1407 = vmatprep.subr.bf16.mxu0 %v1494_v1  ;;  %1454 = vmatprep.subr.bf16.mxu1 %v1494_v1  ;;  %v1501_v4 = vld [vmem:[%s1601_s29] sm:$0xff]   ;;  %v1503_v10 = vld [vmem:[%s1601_s29 + $0x8] sm:$0xff]   ;;  %v1505_v12 = vld [vmem:[%s1601_s29 + $0x10] sm:$0xff]  }
  0x10   : > { %v1502_v5 = vld [vmem:[%s1601_s29 + $0x40] sm:$0xff]   ;;  %1421 = vmatprep.mubr.bf16.mxu0 %v1501_v4  ;;  %v1504_v11 = vld [vmem:[%s1601_s29 + $0x48] sm:$0xff]   ;;  %v1506_v13 = vld [vmem:[%s1601_s29 + $0x50] sm:$0xff]  }
  0x11   : > { %1437 = vmatprep.mubr.bf16.mxu1 %v1502_v5  ;;  %v1507_v14 = vld [vmem:[%s1601_s29 + $0x18] sm:$0xff]   ;;  %v1509_v16 = vld [vmem:[%s1601_s29 + $0x20] sm:$0xff]   ;;  %v1511_v18 = vld [vmem:[%s1601_s29 + $0x28] sm:$0xff]  }
  0x12   : > { %1408 = vmatpush3.bf16.msra.mxu0 %v1494_v1  ;;  %1462 = vmatpush3.bf16.msra.mxu1 %v1494_v1  ;;  %v1508_v15 = vld [vmem:[%s1601_s29 + $0x58] sm:$0xff]   ;;  %v1510_v17 = vld [vmem:[%s1601_s29 + $0x60] sm:$0xff]   ;;  %v1512_v19 = vld [vmem:[%s1601_s29 + $0x68] sm:$0xff]  }
  0x13   : > { %1409 = vmatprep.subr.bf16.mxu0 %v1495_v2  ;;  %1455 = vmatprep.subr.bf16.mxu1 %v1495_v2  ;;  %v1513_v20 = vld [vmem:[%s1601_s29 + $0x30] sm:$0xff]   ;;  %v1515_v22 = vld [vmem:[%s1601_s29 + $0x38] sm:$0xff]   ;;  %v1637_v24 = vld [vmem:[%s1742_s2] ss:$0 sm:$0xff] }
  0x14   : > { %v1514_v21 = vld [vmem:[%s1601_s29 + $0x70] sm:$0xff]   ;;  %v1516_v23 = vld [vmem:[%s1601_s29 + $0x78] sm:$0xff]   ;;  %v1644_v31 = vld [vmem:[%s1743_s3] ss:$0 sm:$0xff] }
  0x16   : > { %1410 = vmatpush3.bf16.msra.mxu0 %v1495_v2  ;;  %1463 = vmatpush3.bf16.msra.mxu1 %v1495_v2 }
  0x17   : > { %1411 = vmatprep.subr.bf16.mxu0 %v1496_v3  ;;  %1456 = vmatprep.subr.bf16.mxu1 %v1496_v3 }
  0x1a   : > { %1412 = vmatpush3.bf16.msra.mxu0 %v1496_v3  ;;  %1464 = vmatpush3.bf16.msra.mxu1 %v1496_v3 }
  0x1b   : > { %1413 = vmatprep.subr.bf16.mxu0 %v1497_v6  ;;  %1457 = vmatprep.subr.bf16.mxu1 %v1497_v6 }
  0x1e   : > { %1414 = vmatpush3.bf16.msra.mxu0 %v1497_v6  ;;  %1465 = vmatpush3.bf16.msra.mxu1 %v1497_v6 }
  0x1f   : > { %1415 = vmatprep.subr.bf16.mxu0 %v1498_v7  ;;  %1458 = vmatprep.subr.bf16.mxu1 %v1498_v7 }
  0x22   : > { %1416 = vmatpush3.bf16.msra.mxu0 %v1498_v7  ;;  %1466 = vmatpush3.bf16.msra.mxu1 %v1498_v7 }
  0x23   : > { %1417 = vmatprep.subr.bf16.mxu0 %v1499_v8  ;;  %1459 = vmatprep.subr.bf16.mxu1 %v1499_v8 }
  0x26   : > { %1418 = vmatpush3.bf16.msra.mxu0 %v1499_v8  ;;  %1467 = vmatpush3.bf16.msra.mxu1 %v1499_v8 }
  0x27   : > { %1419 = vmatprep.subr.bf16.mxu0 %v1500_v9  ;;  %1460 = vmatprep.subr.bf16.mxu1 %v1500_v9 }
  0x2a   : > { %1420 = vmatpush3.bf16.msra.mxu0 %v1500_v9  ;;  %1468 = vmatpush3.bf16.msra.mxu1 %v1500_v9 }
  0x2d   : > { %1422 = vmatmul.mubr.bf16.vlgmr.msra.gmra.mxu0 %v1503_v10  ;;  %1438 = vmatmul.mubr.bf16.vlgmr.msra.gmra.mxu1 %v1504_v11 }
  0x2e   : > { %1425 = vmatprep.mubr.bf16.mxu0 %v1505_v12  ;;  %1441 = vmatprep.mubr.bf16.mxu1 %v1506_v13 }
  0x35   : > { %1426 = vmatmul.mubr.bf16.gmra.mxu0 %v1507_v14  ;;  %1442 = vmatmul.mubr.bf16.gmra.mxu1 %v1508_v15 }
  0x36   : > { %1429 = vmatprep.mubr.bf16.mxu0 %v1509_v16  ;;  %1445 = vmatprep.mubr.bf16.mxu1 %v1510_v17 }
  0x3d   : > { %1430 = vmatmul.mubr.bf16.gmra.mxu0 %v1511_v18  ;;  %1446 = vmatmul.mubr.bf16.gmra.mxu1 %v1512_v19 }
  0x3e   : > { %1433 = vmatprep.mubr.bf16.mxu0 %v1513_v20  ;;  %1449 = vmatprep.mubr.bf16.mxu1 %v1514_v21 }
  0x45   : > { %1434 = vmatmul.mubr.bf16.gmra.mxu0 %v1515_v22  ;;  %1450 = vmatmul.mubr.bf16.gmra.mxu1 %v1516_v23 }
  0xed   : > { %v1423_v25 = vpop.f32.mrf.mxu0  ;;  %v1439_v26 = vpop.f32.mrf.mxu1 }
  0xee   : > { %v830_v27 = vmul.f32 %v1423_v25, %v1637_v24  ;;  %v846_v28 = vmul.f32 %v1439_v26, %v1637_v24 }
  0xef   : > { %v595_v29 = vpop.f32.mrf.mxu0  ;;  %v659_v30 = vpop.f32.mrf.mxu1 }
  0xf0   : > { %v828_v32 = vmul.f32 %v1637_v24, %v595_v29  ;;  %v844_v33 = vmul.f32 %v1637_v24, %v659_v30  ;;  %v869_v38 = vadd.f32 %v1644_v31, %v830_v27  ;;  %v885_v39 = vadd.f32 %v1644_v31, %v846_v28 }
  0xf1   : > { %v1424_v34 = vpop.f32.mrf.mxu0  ;;  %v1440_v35 = vpop.f32.mrf.mxu1 }
  0xf2   : > { %v831_v36 = vmul.f32 %v1424_v34, %v1637_v24  ;;  %v847_v37 = vmul.f32 %v1440_v35, %v1637_v24  ;;  %v867_v46 = vadd.f32 %v1644_v31, %v828_v32  ;;  %v883_v47 = vadd.f32 %v1644_v31, %v844_v33 }
  0xf3   : > { %v598_v40 = vpop.f32.mrf.mxu0  ;;  %v662_v41 = vpop.f32.mrf.mxu1 }
  0xf4   : > { %v870_v42 = vadd.f32 %v1644_v31, %v831_v36  ;;  %v886_v43 = vadd.f32 %v1644_v31, %v847_v37  ;;  %v829_v44 = vmul.f32 %v1637_v24, %v598_v40  ;;  %v845_v45 = vmul.f32 %v1637_v24, %v662_v41 }
  0xf5   : > { %v1427_v48 = vpop.f32.mrf.mxu0  ;;  %v1443_v49 = vpop.f32.mrf.mxu1 }
  0xf6   : > { %v1294_v50 = vpack.c.bf16 %v870_v42, %v869_v38  ;;  %v1334_v51 = vpack.c.bf16 %v886_v43, %v885_v39  ;;  %v868_v52 = vadd.f32 %v1644_v31, %v829_v44  ;;  %v884_v53 = vadd.f32 %v1644_v31, %v845_v45 }
  0xf7   : > { %v834_v54 = vmul.f32 %v1427_v48, %v1637_v24  ;;  %v850_v55 = vmul.f32 %v1443_v49, %v1637_v24  ;;  %v611_v56 = vpop.f32.mrf.mxu0  ;;  %v675_v57 = vpop.f32.mrf.mxu1 }
  0xf8   : > { %1366 = vst [vmem:[%s1663_s24 + $0x8] sm:$0xff] %v1294_v50   ;;  %1374 = vst [vmem:[%s1663_s24 + $0x48] sm:$0xff] %v1334_v51   ;;  %v1289_v58 = vpack.c.bf16 %v868_v52, %v867_v46  ;;  %v1329_v59 = vpack.c.bf16 %v884_v53, %v883_v47  ;;  %v832_v60 = vmul.f32 %v1637_v24, %v611_v56 }
  0xf9   : > { %v848_v61 = vmul.f32 %v1637_v24, %v675_v57  ;;  %v1428_v62 = vpop.f32.mrf.mxu0  ;;  %v1444_v63 = vpop.f32.mrf.mxu1  ;;  %v873_v2 = vadd.f32 %v1644_v31, %v834_v54  ;;  %v889_v3 = vadd.f32 %v1644_v31, %v850_v55 }
  0xfa   : > { %1290 = vst [vmem:[%s1663_s24] sm:$0xff] %v1289_v58   ;;  %1373 = vst [vmem:[%s1663_s24 + $0x40] sm:$0xff] %v1329_v59   ;;  %v835_v0 = vmul.f32 %v1428_v62, %v1637_v24  ;;  %v851_v1 = vmul.f32 %v1444_v63, %v1637_v24  ;;  %v871_v10 = vadd.f32 %v1644_v31, %v832_v60 }
  0xfb   : > { %v614_v4 = vpop.f32.mrf.mxu0  ;;  %v678_v5 = vpop.f32.mrf.mxu1  ;;  %v887_v11 = vadd.f32 %v1644_v31, %v848_v61 }
  0xfc   : > { %v874_v6 = vadd.f32 %v1644_v31, %v835_v0  ;;  %v890_v7 = vadd.f32 %v1644_v31, %v851_v1  ;;  %v833_v8 = vmul.f32 %v1637_v24, %v614_v4  ;;  %v849_v9 = vmul.f32 %v1637_v24, %v678_v5 }
  0xfd   : > { %v1431_v12 = vpop.f32.mrf.mxu0  ;;  %v1447_v13 = vpop.f32.mrf.mxu1 }
  0xfe   : > { %v1304_v14 = vpack.c.bf16 %v874_v6, %v873_v2  ;;  %v1344_v15 = vpack.c.bf16 %v890_v7, %v889_v3  ;;  %v872_v16 = vadd.f32 %v1644_v31, %v833_v8  ;;  %v888_v17 = vadd.f32 %v1644_v31, %v849_v9 }
  0xff   : > { %v838_v18 = vmul.f32 %v1431_v12, %v1637_v24  ;;  %v854_v19 = vmul.f32 %v1447_v13, %v1637_v24  ;;  %v627_v20 = vpop.f32.mrf.mxu0  ;;  %v691_v21 = vpop.f32.mrf.mxu1 }
 0x100   : > { %1368 = vst [vmem:[%s1663_s24 + $0x18] sm:$0xff] %v1304_v14   ;;  %1376 = vst [vmem:[%s1663_s24 + $0x58] sm:$0xff] %v1344_v15   ;;  %v1299_v22 = vpack.c.bf16 %v872_v16, %v871_v10  ;;  %v1339_v23 = vpack.c.bf16 %v888_v17, %v887_v11  ;;  %v836_v25 = vmul.f32 %v1637_v24, %v627_v20 }
 0x101   : > { %v852_v26 = vmul.f32 %v1637_v24, %v691_v21  ;;  %v1432_v27 = vpop.f32.mrf.mxu0  ;;  %v1448_v28 = vpop.f32.mrf.mxu1  ;;  %v877_v32 = vadd.f32 %v1644_v31, %v838_v18  ;;  %v893_v33 = vadd.f32 %v1644_v31, %v854_v19 }
 0x102   : > { %1367 = vst [vmem:[%s1663_s24 + $0x10] sm:$0xff] %v1299_v22   ;;  %1375 = vst [vmem:[%s1663_s24 + $0x50] sm:$0xff] %v1339_v23   ;;  %v839_v29 = vmul.f32 %v1432_v27, %v1637_v24  ;;  %v855_v30 = vmul.f32 %v1448_v28, %v1637_v24  ;;  %v875_v40 = vadd.f32 %v1644_v31, %v836_v25 }
 0x103   : > { %v630_v34 = vpop.f32.mrf.mxu0  ;;  %v694_v35 = vpop.f32.mrf.mxu1  ;;  %v891_v41 = vadd.f32 %v1644_v31, %v852_v26 }
 0x104   : > { %v878_v36 = vadd.f32 %v1644_v31, %v839_v29  ;;  %v894_v37 = vadd.f32 %v1644_v31, %v855_v30  ;;  %v837_v38 = vmul.f32 %v1637_v24, %v630_v34  ;;  %v853_v39 = vmul.f32 %v1637_v24, %v694_v35 }
 0x105   : > { %v1435_v42 = vpop.f32.mrf.mxu0  ;;  %v1451_v43 = vpop.f32.mrf.mxu1 }
 0x106   : > { %v1314_v44 = vpack.c.bf16 %v878_v36, %v877_v32  ;;  %v1354_v45 = vpack.c.bf16 %v894_v37, %v893_v33  ;;  %v876_v46 = vadd.f32 %v1644_v31, %v837_v38  ;;  %v892_v47 = vadd.f32 %v1644_v31, %v853_v39 }
 0x107   : > { %v842_v48 = vmul.f32 %v1435_v42, %v1637_v24  ;;  %v858_v49 = vmul.f32 %v1451_v43, %v1637_v24  ;;  %v643_v50 = vpop.f32.mrf.mxu0  ;;  %v707_v51 = vpop.f32.mrf.mxu1 }
 0x108   : > { %1370 = vst [vmem:[%s1663_s24 + $0x28] sm:$0xff] %v1314_v44   ;;  %1378 = vst [vmem:[%s1663_s24 + $0x68] sm:$0xff] %v1354_v45   ;;  %v1309_v52 = vpack.c.bf16 %v876_v46, %v875_v40  ;;  %v1349_v53 = vpack.c.bf16 %v892_v47, %v891_v41  ;;  %v840_v54 = vmul.f32 %v1637_v24, %v643_v50 }
 0x109   : > { %v856_v55 = vmul.f32 %v1637_v24, %v707_v51  ;;  %v1436_v56 = vpop.f32.mrf.mxu0  ;;  %v1452_v57 = vpop.f32.mrf.mxu1  ;;  %v881_v60 = vadd.f32 %v1644_v31, %v842_v48  ;;  %v897_v61 = vadd.f32 %v1644_v31, %v858_v49 }
 0x10a   : > { %1369 = vst [vmem:[%s1663_s24 + $0x20] sm:$0xff] %v1309_v52   ;;  %1377 = vst [vmem:[%s1663_s24 + $0x60] sm:$0xff] %v1349_v53   ;;  %v843_v58 = vmul.f32 %v1436_v56, %v1637_v24  ;;  %v859_v59 = vmul.f32 %v1452_v57, %v1637_v24  ;;  %v879_v4 = vadd.f32 %v1644_v31, %v840_v54 }
 0x10b   : > { %v646_v62 = vpop.f32.mrf.mxu0  ;;  %v710_v63 = vpop.f32.mrf.mxu1  ;;  %v895_v5 = vadd.f32 %v1644_v31, %v856_v55 }
 0x10c   : > { %v882_v0 = vadd.f32 %v1644_v31, %v843_v58  ;;  %v898_v1 = vadd.f32 %v1644_v31, %v859_v59  ;;  %v841_v2 = vmul.f32 %v1637_v24, %v646_v62  ;;  %v857_v3 = vmul.f32 %v1637_v24, %v710_v63 }
 0x10e   : > { %v1324_v6 = vpack.c.bf16 %v882_v0, %v881_v60  ;;  %v1364_v7 = vpack.c.bf16 %v898_v1, %v897_v61  ;;  %v880_v8 = vadd.f32 %v1644_v31, %v841_v2  ;;  %v896_v9 = vadd.f32 %v1644_v31, %v857_v3 }
 0x110   : > { %1372 = vst [vmem:[%s1663_s24 + $0x38] sm:$0xff] %v1324_v6   ;;  %1380 = vst [vmem:[%s1663_s24 + $0x78] sm:$0xff] %v1364_v7   ;;  %v1319_v10 = vpack.c.bf16 %v880_v8, %v879_v4  ;;  %v1359_v11 = vpack.c.bf16 %v896_v9, %v895_v5 }
 0x112   : > { %1371 = vst [vmem:[%s1663_s24 + $0x30] sm:$0xff] %v1319_v10   ;;  %1379 = vst [vmem:[%s1663_s24 + $0x70] sm:$0xff] %v1359_v11  }
 0x113 PF: > { %s14_s17 = sadd.s32 1, %s1539_s17   ;;  %s1745_s15 = smov %s1535_s16 }
 0x114   : > { %p11_p5 = scmp.ge.s32.totalorder %s14_s17, 4   ;;  %s1746_s16 = smov %s1748_s18 }
 0x116   :  { %13 = sbr.rel (!%p11_p5) target bundleno = 2 (0x2), region = 83 }

</bundles_post_ra>
